<compile_context>
chip_gen: v7x
topology: tpu7x:2x2x1
jax: 0.10.0
libtpu: 0.0.40
codegen_flags: <defaults>
</compile_context>

<pallas_src>
import jax
import jax.numpy as jnp
from jax.experimental import pallas as pl
from jax.experimental.pallas import tpu as pltpu

CL_DIM = 4          # stand-in for ToyDataset.CL_DIM
LATENT_DIM = 100
OUTPUT_SIZE = 2
IN_DIM = CL_DIM + LATENT_DIM   # 104
IN_PAD = 128                   # padded input features (extra rows of W1 are zero)
OUT_PAD = 128                  # padded output features (extra cols of W4 are zero)
H1, H2, H3 = 2048, 1024, 512
EPS = 1e-5


def _linear_relu_bn(x_bf16, wq_ref, p_ref, inv_b):
    """int8-weight Linear -> (dequant-scale + bias) -> ReLU -> BatchNorm1d (batch stats).

    The int8 weights are upcast to bf16 in VMEM (int8 -> f32 -> bf16) so the MXU runs a
    native bf16 matmul with f32 accumulation on every TPU generation.  The per-channel
    dequant scale is applied with the Linear bias in a single FMA after the matmul.
    BN uses the centered two-pass variance in f32 (robust vs. E[x^2]-E[x]^2).
    """
    w_bf16 = wq_ref[...].astype(jnp.float32).astype(jnp.bfloat16)
    m = jnp.dot(x_bf16, w_bf16, preferred_element_type=jnp.float32)
    p = p_ref[...]                                   # (4, H) f32
    bias, gamma, beta, w_scale = p[0:1, :], p[1:2, :], p[2:3, :], p[3:4, :]
    h = jnp.maximum(m * w_scale + bias, 0.0)         # dequant scale + bias + ReLU
    mu = jnp.sum(h, axis=0, keepdims=True) * inv_b
    c = h - mu
    var = jnp.sum(c * c, axis=0, keepdims=True) * inv_b   # biased var (PyTorch BN fwd)
    bn_scale = gamma * jax.lax.rsqrt(var + EPS)
    return c * bn_scale + beta


def generator_kernel(x_ref,
                     w1q, p1, w2q, p2, w3q, p3, w4, b4,
                     o_ref):
    inv_b = 1.0 / x_ref.shape[0]                     # static batch size -> constant
    x = x_ref[...].astype(jnp.bfloat16)              # cast only the MXU operand
    h = _linear_relu_bn(x, w1q, p1, inv_b)                          # (B, 2048) f32
    h = _linear_relu_bn(h.astype(jnp.bfloat16), w2q, p2, inv_b)     # (B, 1024) f32
    h = _linear_relu_bn(h.astype(jnp.bfloat16), w3q, p3, inv_b)     # (B, 512)  f32
    # final Linear(512 -> output_size) in a 128-lane padded slab, no activation / BN
    o_ref[...] = jnp.dot(h.astype(jnp.bfloat16), w4[...],
                         preferred_element_type=jnp.float32) + b4[...]


def _quantize_per_channel(w):
    """Symmetric per-output-channel int8 quantization: w ~= w_q * scale[col]."""
    max_abs = jnp.max(jnp.abs(w), axis=0, keepdims=True)            # (1, dout)
    scale = jnp.maximum(max_abs, 1e-8) / 127.0
    w_q = jnp.clip(jnp.round(w / scale), -127.0, 127.0).astype(jnp.int8)
    return w_q, scale


def init_params(key):
    """Deterministic DCGAN-style init (init_gan_weights): Linear ~ N(0, 0.02),
    Linear bias = 0, BN gamma ~ N(1, 0.02), BN beta = 0.  Hidden-layer weights stored
    int8 + per-channel scale; bias/gamma/beta/scale packed per layer into a (4, H) f32
    slab; the final Linear stays bf16 (tiny)."""
    ks = jax.random.split(key, 8)

    def lin_w(k, din, dout):
        return jax.random.normal(k, (din, dout), jnp.float32) * 0.02

    def bn_slab(k, h, w_scale):
        bias = jnp.zeros((1, h), jnp.float32)                        # Linear bias = 0
        gamma = 1.0 + jax.random.normal(k, (1, h), jnp.float32) * 0.02
        beta = jnp.zeros((1, h), jnp.float32)
        return jnp.concatenate([bias, gamma, beta, w_scale], axis=0)  # (4, h)

    # Layer 1: (IN_DIM -> 2048), zero-padded input rows up to IN_PAD
    w1_f32 = jnp.zeros((IN_PAD, H1), jnp.float32).at[:IN_DIM, :].set(
        lin_w(ks[0], IN_DIM, H1))
    w1q, s1 = _quantize_per_channel(w1_f32)
    p1 = bn_slab(ks[1], H1, s1)

    # Layer 2: (2048 -> 1024)
    w2q, s2 = _quantize_per_channel(lin_w(ks[2], H1, H2))
    p2 = bn_slab(ks[3], H2, s2)

    # Layer 3: (1024 -> 512)
    w3q, s3 = _quantize_per_channel(lin_w(ks[4], H2, H3))
    p3 = bn_slab(ks[5], H3, s3)

    # Layer 4: (512 -> OUTPUT_SIZE), zero-padded output columns up to OUT_PAD
    w4 = jnp.zeros((H3, OUT_PAD), jnp.float32).at[:, :OUTPUT_SIZE].set(
        lin_w(ks[6], H3, OUTPUT_SIZE)).astype(jnp.bfloat16)
    b4 = jnp.zeros((1, OUT_PAD), jnp.float32)

    return (w1q, p1, w2q, p2, w3q, p3, w4, b4)


@jax.jit
def larger_toy_generator_forward(cl, z, params):
    """Equivalent of LargerToyGenerator._forward_conditional(cl, z) (training-mode BN)."""
    x = jnp.concatenate([cl, z], axis=1).astype(jnp.float32)      # (B, 104)
    x_pad = jnp.pad(x, ((0, 0), (0, IN_PAD - IN_DIM)))            # single fused pad op
    B = x_pad.shape[0]

    vmem = pl.BlockSpec(memory_space=pltpu.MemorySpace.VMEM)
    out = pl.pallas_call(
        generator_kernel,
        out_shape=jax.ShapeDtypeStruct((B, OUT_PAD), jnp.float32),
        in_specs=[vmem] * (1 + len(params)),
        out_specs=vmem,
        compiler_params=pltpu.CompilerParams(vmem_limit_bytes=32 << 20),
    )(x_pad, *params)
    return out[:, :OUTPUT_SIZE]                                   # (B, 2)


@jax.jit
def reference_forward(cl, z, params):
    """Pure-JAX f32 reference using the SAME int8 weights (validates the kernel's
    dequant/bias/ReLU/BN plumbing; only activation precision differs)."""
    w1q, p1, w2q, p2, w3q, p3, w4, b4 = params
    x = jnp.pad(jnp.concatenate([cl, z], axis=1).astype(jnp.float32),
                ((0, 0), (0, IN_PAD - IN_DIM)))

    def layer(h, wq, p):
        m = h @ wq.astype(jnp.float32)
        bias, gamma, beta, w_scale = p[0:1], p[1:2], p[2:3], p[3:4]
        a = jnp.maximum(m * w_scale + bias, 0.0)
        mu = jnp.mean(a, axis=0, keepdims=True)
        c = a - mu
        var = jnp.mean(c * c, axis=0, keepdims=True)
        return c * (gamma * jax.lax.rsqrt(var + EPS)) + beta

    h = layer(x, w1q, p1)
    h = layer(h, w2q, p2)
    h = layer(h, w3q, p3)
    out = h @ w4.astype(jnp.float32) + b4
    return out[:, :OUTPUT_SIZE]


if __name__ == "__main__":
    key = jax.random.PRNGKey(0)
    k_params, k_cl, k_z = jax.random.split(key, 3)

    params = init_params(k_params)

    B = 8
    # conditional class labels (one-hot style) and Uniform(0,1) latent code,
    # matching self.latent_distribution = Uniform(0, 1)
    labels = jax.random.randint(k_cl, (B,), 0, CL_DIM)
    cl = jax.nn.one_hot(labels, CL_DIM, dtype=jnp.float32)        # (B, 4)
    z = jax.random.uniform(k_z, (B, LATENT_DIM), jnp.float32)     # (B, 100)

    out = larger_toy_generator_forward(cl, z, params)
    jax.block_until_ready(out)
    assert out.shape == (B, OUTPUT_SIZE)
    assert bool(jnp.all(jnp.isfinite(out)))

    # Sanity-check the fused kernel against a pure-JAX reference that uses the same
    # quantized weights (remaining differences: bf16 matmul operands / accumulate order).
    ref = reference_forward(cl, z, params)
    err = float(jnp.max(jnp.abs(out - ref)))
    bound = 0.1 + 0.1 * float(jnp.max(jnp.abs(ref)))
    assert err < bound, f"kernel/reference mismatch: {err} >= {bound}"

    print("KERNEL_OK")
</pallas_src>

<mosaic_0001>
module attributes {stable_mosaic.version = 11 : i64} {
  func.func @generator_kernel(%arg0: memref<8x128xf32, #tpu.memory_space<vmem>>, %arg1: memref<128x2048xi8, #tpu.memory_space<vmem>>, %arg2: memref<4x2048xf32, #tpu.memory_space<vmem>>, %arg3: memref<2048x1024xi8, #tpu.memory_space<vmem>>, %arg4: memref<4x1024xf32, #tpu.memory_space<vmem>>, %arg5: memref<1024x512xi8, #tpu.memory_space<vmem>>, %arg6: memref<4x512xf32, #tpu.memory_space<vmem>>, %arg7: memref<512x128xbf16, #tpu.memory_space<vmem>>, %arg8: memref<1x128xf32, #tpu.memory_space<vmem>>, %arg9: memref<8x128xf32, #tpu.memory_space<vmem>>) attributes {dimension_semantics = [], scalar_prefetch = 0 : i64, scratch_operands = 0 : i64, tpu.core_type = #tpu.core_type<tc>} {
    %c0 = arith.constant 0 : index
    %c0_0 = arith.constant 0 : index
    %0 = vector.load %arg0[%c0, %c0_0] : memref<8x128xf32, #tpu.memory_space<vmem>>, vector<8x128xf32>
    %1 = arith.truncf %0 : vector<8x128xf32> to vector<8x128xbf16>
    %c0_1 = arith.constant 0 : index
    %c0_2 = arith.constant 0 : index
    %2 = vector.load %arg1[%c0_1, %c0_2] : memref<128x2048xi8, #tpu.memory_space<vmem>>, vector<128x2048xi8>
    %3 = arith.sitofp %2 : vector<128x2048xi8> to vector<128x2048xf32>
    %4 = arith.truncf %3 : vector<128x2048xf32> to vector<128x2048xbf16>
    %cst = arith.constant dense<0.000000e+00> : vector<8x2048xf32>
    %5 = tpu.matmul %1, %4, %cst {dimension_numbers = #tpu.dot_dimension_numbers<[1], [0], [0], [1], [0, 0, 1, 1], [], []>} : vector<8x128xbf16>, vector<128x2048xbf16>, vector<8x2048xf32> -> vector<8x2048xf32>
    %c0_3 = arith.constant 0 : index
    %c0_4 = arith.constant 0 : index
    %6 = vector.load %arg2[%c0_3, %c0_4] : memref<4x2048xf32, #tpu.memory_space<vmem>>, vector<4x2048xf32>
    %7 = vector.extract_strided_slice %6 {offsets = [0, 0], sizes = [1, 2048], strides = [1, 1]} : vector<4x2048xf32> to vector<1x2048xf32>
    %8 = vector.extract_strided_slice %6 {offsets = [1, 0], sizes = [1, 2048], strides = [1, 1]} : vector<4x2048xf32> to vector<1x2048xf32>
    %9 = vector.extract_strided_slice %6 {offsets = [2, 0], sizes = [1, 2048], strides = [1, 1]} : vector<4x2048xf32> to vector<1x2048xf32>
    %10 = vector.extract_strided_slice %6 {offsets = [3, 0], sizes = [1, 2048], strides = [1, 1]} : vector<4x2048xf32> to vector<1x2048xf32>
    %11 = vector.broadcast %10 : vector<1x2048xf32> to vector<8x2048xf32>
    %12 = arith.mulf %5, %11 : vector<8x2048xf32>
    %13 = vector.broadcast %7 : vector<1x2048xf32> to vector<8x2048xf32>
    %14 = arith.addf %12, %13 : vector<8x2048xf32>
    %cst_5 = arith.constant 0.000000e+00 : f32
    %15 = vector.broadcast %cst_5 : f32 to vector<8x2048xf32>
    %16 = arith.maximumf %14, %15 : vector<8x2048xf32>
    %cst_6 = arith.constant dense<0.000000e+00> : vector<2048xf32>
    %17 = vector.multi_reduction <add>, %16, %cst_6 [0] : vector<8x2048xf32> to vector<2048xf32>
    %18 = vector.shape_cast %17 : vector<2048xf32> to vector<1x2048xf32>
    %cst_7 = arith.constant 1.250000e-01 : f32
    %19 = vector.broadcast %cst_7 : f32 to vector<1x2048xf32>
    %20 = arith.mulf %18, %19 : vector<1x2048xf32>
    %21 = vector.broadcast %20 : vector<1x2048xf32> to vector<8x2048xf32>
    %22 = arith.subf %16, %21 : vector<8x2048xf32>
    %23 = arith.mulf %22, %22 : vector<8x2048xf32>
    %cst_8 = arith.constant dense<0.000000e+00> : vector<2048xf32>
    %24 = vector.multi_reduction <add>, %23, %cst_8 [0] : vector<8x2048xf32> to vector<2048xf32>
    %25 = vector.shape_cast %24 : vector<2048xf32> to vector<1x2048xf32>
    %cst_9 = arith.constant 1.250000e-01 : f32
    %26 = vector.broadcast %cst_9 : f32 to vector<1x2048xf32>
    %27 = arith.mulf %25, %26 : vector<1x2048xf32>
    %cst_10 = arith.constant 9.99999974E-6 : f32
    %28 = vector.broadcast %cst_10 : f32 to vector<1x2048xf32>
    %29 = arith.addf %27, %28 : vector<1x2048xf32>
    %30 = math.rsqrt %29 : vector<1x2048xf32>
    %31 = arith.mulf %8, %30 : vector<1x2048xf32>
    %32 = vector.broadcast %31 : vector<1x2048xf32> to vector<8x2048xf32>
    %33 = arith.mulf %22, %32 : vector<8x2048xf32>
    %34 = vector.broadcast %9 : vector<1x2048xf32> to vector<8x2048xf32>
    %35 = arith.addf %33, %34 : vector<8x2048xf32>
    %36 = arith.truncf %35 : vector<8x2048xf32> to vector<8x2048xbf16>
    %c0_11 = arith.constant 0 : index
    %c0_12 = arith.constant 0 : index
    %37 = vector.load %arg3[%c0_11, %c0_12] : memref<2048x1024xi8, #tpu.memory_space<vmem>>, vector<2048x1024xi8>
    %38 = arith.sitofp %37 : vector<2048x1024xi8> to vector<2048x1024xf32>
    %39 = arith.truncf %38 : vector<2048x1024xf32> to vector<2048x1024xbf16>
    %cst_13 = arith.constant dense<0.000000e+00> : vector<8x1024xf32>
    %40 = tpu.matmul %36, %39, %cst_13 {dimension_numbers = #tpu.dot_dimension_numbers<[1], [0], [0], [1], [0, 0, 1, 1], [], []>} : vector<8x2048xbf16>, vector<2048x1024xbf16>, vector<8x1024xf32> -> vector<8x1024xf32>
    %c0_14 = arith.constant 0 : index
    %c0_15 = arith.constant 0 : index
    %41 = vector.load %arg4[%c0_14, %c0_15] : memref<4x1024xf32, #tpu.memory_space<vmem>>, vector<4x1024xf32>
    %42 = vector.extract_strided_slice %41 {offsets = [0, 0], sizes = [1, 1024], strides = [1, 1]} : vector<4x1024xf32> to vector<1x1024xf32>
    %43 = vector.extract_strided_slice %41 {offsets = [1, 0], sizes = [1, 1024], strides = [1, 1]} : vector<4x1024xf32> to vector<1x1024xf32>
    %44 = vector.extract_strided_slice %41 {offsets = [2, 0], sizes = [1, 1024], strides = [1, 1]} : vector<4x1024xf32> to vector<1x1024xf32>
    %45 = vector.extract_strided_slice %41 {offsets = [3, 0], sizes = [1, 1024], strides = [1, 1]} : vector<4x1024xf32> to vector<1x1024xf32>
    %46 = vector.broadcast %45 : vector<1x1024xf32> to vector<8x1024xf32>
    %47 = arith.mulf %40, %46 : vector<8x1024xf32>
    %48 = vector.broadcast %42 : vector<1x1024xf32> to vector<8x1024xf32>
    %49 = arith.addf %47, %48 : vector<8x1024xf32>
    %cst_16 = arith.constant 0.000000e+00 : f32
    %50 = vector.broadcast %cst_16 : f32 to vector<8x1024xf32>
    %51 = arith.maximumf %49, %50 : vector<8x1024xf32>
    %cst_17 = arith.constant dense<0.000000e+00> : vector<1024xf32>
    %52 = vector.multi_reduction <add>, %51, %cst_17 [0] : vector<8x1024xf32> to vector<1024xf32>
    %53 = vector.shape_cast %52 : vector<1024xf32> to vector<1x1024xf32>
    %cst_18 = arith.constant 1.250000e-01 : f32
    %54 = vector.broadcast %cst_18 : f32 to vector<1x1024xf32>
    %55 = arith.mulf %53, %54 : vector<1x1024xf32>
    %56 = vector.broadcast %55 : vector<1x1024xf32> to vector<8x1024xf32>
    %57 = arith.subf %51, %56 : vector<8x1024xf32>
    %58 = arith.mulf %57, %57 : vector<8x1024xf32>
    %cst_19 = arith.constant dense<0.000000e+00> : vector<1024xf32>
    %59 = vector.multi_reduction <add>, %58, %cst_19 [0] : vector<8x1024xf32> to vector<1024xf32>
    %60 = vector.shape_cast %59 : vector<1024xf32> to vector<1x1024xf32>
    %cst_20 = arith.constant 1.250000e-01 : f32
    %61 = vector.broadcast %cst_20 : f32 to vector<1x1024xf32>
    %62 = arith.mulf %60, %61 : vector<1x1024xf32>
    %cst_21 = arith.constant 9.99999974E-6 : f32
    %63 = vector.broadcast %cst_21 : f32 to vector<1x1024xf32>
    %64 = arith.addf %62, %63 : vector<1x1024xf32>
    %65 = math.rsqrt %64 : vector<1x1024xf32>
    %66 = arith.mulf %43, %65 : vector<1x1024xf32>
    %67 = vector.broadcast %66 : vector<1x1024xf32> to vector<8x1024xf32>
    %68 = arith.mulf %57, %67 : vector<8x1024xf32>
    %69 = vector.broadcast %44 : vector<1x1024xf32> to vector<8x1024xf32>
    %70 = arith.addf %68, %69 : vector<8x1024xf32>
    %71 = arith.truncf %70 : vector<8x1024xf32> to vector<8x1024xbf16>
    %c0_22 = arith.constant 0 : index
    %c0_23 = arith.constant 0 : index
    %72 = vector.load %arg5[%c0_22, %c0_23] : memref<1024x512xi8, #tpu.memory_space<vmem>>, vector<1024x512xi8>
    %73 = arith.sitofp %72 : vector<1024x512xi8> to vector<1024x512xf32>
    %74 = arith.truncf %73 : vector<1024x512xf32> to vector<1024x512xbf16>
    %cst_24 = arith.constant dense<0.000000e+00> : vector<8x512xf32>
    %75 = tpu.matmul %71, %74, %cst_24 {dimension_numbers = #tpu.dot_dimension_numbers<[1], [0], [0], [1], [0, 0, 1, 1], [], []>} : vector<8x1024xbf16>, vector<1024x512xbf16>, vector<8x512xf32> -> vector<8x512xf32>
    %c0_25 = arith.constant 0 : index
    %c0_26 = arith.constant 0 : index
    %76 = vector.load %arg6[%c0_25, %c0_26] : memref<4x512xf32, #tpu.memory_space<vmem>>, vector<4x512xf32>
    %77 = vector.extract_strided_slice %76 {offsets = [0, 0], sizes = [1, 512], strides = [1, 1]} : vector<4x512xf32> to vector<1x512xf32>
    %78 = vector.extract_strided_slice %76 {offsets = [1, 0], sizes = [1, 512], strides = [1, 1]} : vector<4x512xf32> to vector<1x512xf32>
    %79 = vector.extract_strided_slice %76 {offsets = [2, 0], sizes = [1, 512], strides = [1, 1]} : vector<4x512xf32> to vector<1x512xf32>
    %80 = vector.extract_strided_slice %76 {offsets = [3, 0], sizes = [1, 512], strides = [1, 1]} : vector<4x512xf32> to vector<1x512xf32>
    %81 = vector.broadcast %80 : vector<1x512xf32> to vector<8x512xf32>
    %82 = arith.mulf %75, %81 : vector<8x512xf32>
    %83 = vector.broadcast %77 : vector<1x512xf32> to vector<8x512xf32>
    %84 = arith.addf %82, %83 : vector<8x512xf32>
    %cst_27 = arith.constant 0.000000e+00 : f32
    %85 = vector.broadcast %cst_27 : f32 to vector<8x512xf32>
    %86 = arith.maximumf %84, %85 : vector<8x512xf32>
    %cst_28 = arith.constant dense<0.000000e+00> : vector<512xf32>
    %87 = vector.multi_reduction <add>, %86, %cst_28 [0] : vector<8x512xf32> to vector<512xf32>
    %88 = vector.shape_cast %87 : vector<512xf32> to vector<1x512xf32>
    %cst_29 = arith.constant 1.250000e-01 : f32
    %89 = vector.broadcast %cst_29 : f32 to vector<1x512xf32>
    %90 = arith.mulf %88, %89 : vector<1x512xf32>
    %91 = vector.broadcast %90 : vector<1x512xf32> to vector<8x512xf32>
    %92 = arith.subf %86, %91 : vector<8x512xf32>
    %93 = arith.mulf %92, %92 : vector<8x512xf32>
    %cst_30 = arith.constant dense<0.000000e+00> : vector<512xf32>
    %94 = vector.multi_reduction <add>, %93, %cst_30 [0] : vector<8x512xf32> to vector<512xf32>
    %95 = vector.shape_cast %94 : vector<512xf32> to vector<1x512xf32>
    %cst_31 = arith.constant 1.250000e-01 : f32
    %96 = vector.broadcast %cst_31 : f32 to vector<1x512xf32>
    %97 = arith.mulf %95, %96 : vector<1x512xf32>
    %cst_32 = arith.constant 9.99999974E-6 : f32
    %98 = vector.broadcast %cst_32 : f32 to vector<1x512xf32>
    %99 = arith.addf %97, %98 : vector<1x512xf32>
    %100 = math.rsqrt %99 : vector<1x512xf32>
    %101 = arith.mulf %78, %100 : vector<1x512xf32>
    %102 = vector.broadcast %101 : vector<1x512xf32> to vector<8x512xf32>
    %103 = arith.mulf %92, %102 : vector<8x512xf32>
    %104 = vector.broadcast %79 : vector<1x512xf32> to vector<8x512xf32>
    %105 = arith.addf %103, %104 : vector<8x512xf32>
    %106 = arith.truncf %105 : vector<8x512xf32> to vector<8x512xbf16>
    %c0_33 = arith.constant 0 : index
    %c0_34 = arith.constant 0 : index
    %107 = vector.load %arg7[%c0_33, %c0_34] : memref<512x128xbf16, #tpu.memory_space<vmem>>, vector<512x128xbf16>
    %cst_35 = arith.constant dense<0.000000e+00> : vector<8x128xf32>
    %108 = tpu.matmul %106, %107, %cst_35 {dimension_numbers = #tpu.dot_dimension_numbers<[1], [0], [0], [1], [0, 0, 1, 1], [], []>} : vector<8x512xbf16>, vector<512x128xbf16>, vector<8x128xf32> -> vector<8x128xf32>
    %c0_36 = arith.constant 0 : index
    %c0_37 = arith.constant 0 : index
    %109 = vector.load %arg8[%c0_36, %c0_37] : memref<1x128xf32, #tpu.memory_space<vmem>>, vector<1x128xf32>
    %110 = vector.broadcast %109 : vector<1x128xf32> to vector<8x128xf32>
    %111 = arith.addf %108, %110 : vector<8x128xf32>
    %c0_38 = arith.constant 0 : index
    %c0_39 = arith.constant 0 : index
    %112 = vector.load %arg9[%c0_38, %c0_39] : memref<8x128xf32, #tpu.memory_space<vmem>>, vector<8x128xf32>
    tpu.vector_store %arg9[%c0_38, %c0_39], %111 {strides = array<i32>} : memref<8x128xf32, #tpu.memory_space<vmem>>, vector<8x128xf32>,
    return
  }
}

</mosaic_0001>

<bundles_post_ra>
// kernel: larger_toy_generator_forward.1
= control target key start
LH: loop header
LB: loop body
LE: loop exit
PB: predicated region body
PF: predicated region fallthrough
CT: control target
= control target key end

     0   :  { %14 = vsyncpa [#allocation3], 0  ;;  %s8093_s0 = inlined_call_operand.vmem [shape: f32[8,128], index: 0, kind: input, shape index: {}]   ;;  %s8094_s1 = inlined_call_operand.hbm [shape: s8[128,2048], index: 1, kind: input, shape index: {}]   ;;  %s8095_s2 = inlined_call_operand.hbm [shape: f32[4,2048], index: 2, kind: input, shape index: {}]   ;;  %s8096_s3 = inlined_call_operand.hbm [shape: s8[2048,1024], index: 3, kind: input, shape index: {}]   ;;  %s8097_s4 = inlined_call_operand.hbm [shape: f32[4,1024], index: 4, kind: input, shape index: {}]   ;;  %s8098_s5 = inlined_call_operand.hbm [shape: s8[1024,512], index: 5, kind: input, shape index: {}]   ;;  %s8099_s6 = inlined_call_operand.hbm [shape: f32[4,512], index: 6, kind: input, shape index: {}]   ;;  %s8100_s7 = inlined_call_operand.hbm [shape: bf16[512,128], index: 7, kind: input, shape index: {}]   ;;  %s8101_s8 = inlined_call_operand.hbm [shape: f32[1,128], index: 8, kind: input, shape index: {}]   ;;  %s8102_s9 = inlined_call_operand.vmem [shape: f32[8,128], index: 9, kind: output, shape index: {}]  }
   0x1   :  { %15 = vsyncpa [#allocation5], 0 }
   0x2   :  { %16 = vsyncpa [#allocation8], 0 }
   0x3   :  { %17 = vsyncpa [#allocation11], 0 }
   0x4   :  { %18 = vsyncpa [#allocation14], 0  ;;  %s6886_s30 = smov [#allocation4]   ;;  %s6887_s11 = smov [#allocation7]  }
   0x5   :  { %s39_s10 = sshll.u32 %s6886_s30, 4  ;;  %s61_s12 = sshll.u32 %s6887_s11, 4  ;;  %s40_s10 = int_to_ptr.vmem [resolvable:$true] %s39_s10  ;;  %s62_s12 = int_to_ptr.vmem [resolvable:$true] %s61_s12 }
   0x6   :  { %s6700_s15 = scalar_lea.hbm %s8095_s2, 1024 }
   0x7   :  { %p6701_p0 = scmp.ne.s32.totalorder %s8095_s2, %s6700_s15  ;;  %p6704_p1 = scmp.lt.u32.totalorder %s6700_s15, %s8095_s2 }
   0x9   :  { %p6706_p2 = pnand %p6704_p1, %p6701_p0 }
   0xb   :  { %6709 = shalt.err (!%p6706_p2)
}
   0xc   :  { %s6710_s20 = scalar_lea.vmem %s40_s10, 1024  ;;  %p6715_p4 = scmp.lt.s32.totalorder %s40_s10, %s40_s10 }
   0xd   :  { %p6711_p3 = scmp.ne.s32.totalorder %s40_s10, %s6710_s20  ;;  %p6716_p5 = scmp.lt.s32.totalorder %s6710_s20, %s6710_s20 }
   0xf   :  { %p6717_p6 = por %p6716_p5, %p6715_p4 }
  0x11   :  { %p6718_p7 = pnand %p6717_p6, %p6711_p3 }
  0x13   :  { %6721 = shalt.err (!%p6718_p7)
}
  0x14   :  { %42 = dma.hbm_to_vmem [thread:$0]  %s8095_s2, 1024, %s40_s10, [#allocation5]  }
  0x15   :  { %s6722_s25 = scalar_lea.hbm %s8097_s4, 512 }
  0x16   :  { %p6723_p8 = scmp.ne.s32.totalorder %s8097_s4, %s6722_s25  ;;  %p6726_p9 = scmp.lt.u32.totalorder %s6722_s25, %s8097_s4 }
  0x18   :  { %p6728_p10 = pnand %p6726_p9, %p6723_p8 }
  0x1a   :  { %6731 = shalt.err (!%p6728_p10)
}
  0x1b   :  { %s6732_s30 = scalar_lea.vmem %s62_s12, 512  ;;  %p6737_p12 = scmp.lt.s32.totalorder %s62_s12, %s62_s12 }
  0x1c   :  { %p6733_p11 = scmp.ne.s32.totalorder %s62_s12, %s6732_s30  ;;  %p6738_p13 = scmp.lt.s32.totalorder %s6732_s30, %s6732_s30 }
  0x1e   :  { %p6739_p0 = por %p6738_p13, %p6737_p12 }
  0x20   :  { %p6740_p1 = pnand %p6739_p0, %p6733_p11 }
  0x22   :  { %6743 = shalt.err (!%p6740_p1)
}
  0x23   :  { %64 = dma.hbm_to_vmem [thread:$0]  %s8097_s4, 512, %s62_s12, [#allocation8]  }
  0x24   :  { %s6888_s11 = smov [#allocation10]   ;;  %s6889_s14 = smov [#allocation2]  }
  0x25   :  { %s83_s13 = sshll.u32 %s6888_s11, 4  ;;  %s26_s15 = sshll.u32 %s6889_s14, 4  ;;  %s84_s13 = int_to_ptr.vmem [resolvable:$true] %s83_s13  ;;  %s6976_s15 = int_to_ptr.vmem [resolvable:$true] %s26_s15 }
  0x26   :  { %s6744_s18 = scalar_lea.hbm %s8099_s6, 256 }
  0x27   :  { %p6745_p2 = scmp.ne.s32.totalorder %s8099_s6, %s6744_s18  ;;  %p6748_p3 = scmp.lt.u32.totalorder %s6744_s18, %s8099_s6 }
  0x29   :  { %p6750_p4 = pnand %p6748_p3, %p6745_p2 }
  0x2b   :  { %6753 = shalt.err (!%p6750_p4)
}
  0x2c   :  { %s6754_s4 = scalar_lea.vmem %s84_s13, 256  ;;  %p6759_p6 = scmp.lt.s32.totalorder %s84_s13, %s84_s13 }
  0x2d   :  { %p6755_p5 = scmp.ne.s32.totalorder %s84_s13, %s6754_s4  ;;  %p6760_p7 = scmp.lt.s32.totalorder %s6754_s4, %s6754_s4 }
  0x2f   :  { %p6761_p8 = por %p6760_p7, %p6759_p6 }
  0x31   :  { %p6762_p9 = pnand %p6761_p8, %p6755_p5 }
  0x33   :  { %6765 = shalt.err (!%p6762_p9)
}
  0x34   :  { %86 = dma.hbm_to_vmem [thread:$0]  %s8099_s6, 256, %s84_s13, [#allocation11]  }
  0x35   :  { %s6766_s26 = scalar_lea.hbm %s8094_s1, 8192 }
  0x36   :  { %p6767_p10 = scmp.ne.s32.totalorder %s8094_s1, %s6766_s26  ;;  %p6770_p11 = scmp.lt.u32.totalorder %s6766_s26, %s8094_s1 }
  0x38   :  { %p6772_p12 = pnand %p6770_p11, %p6767_p10 }
  0x3a   :  { %6775 = shalt.err (!%p6772_p12)
}
  0x3b   :  { %s6776_s2 = scalar_lea.vmem %s6976_s15, 8192  ;;  %p6781_p0 = scmp.lt.s32.totalorder %s6976_s15, %s6976_s15 }
  0x3c   :  { %p6777_p13 = scmp.ne.s32.totalorder %s6976_s15, %s6776_s2  ;;  %p6782_p1 = scmp.lt.s32.totalorder %s6776_s2, %s6776_s2 }
  0x3e   :  { %p6783_p2 = por %p6782_p1, %p6781_p0 }
  0x40   :  { %p6784_p3 = pnand %p6783_p2, %p6777_p13 }
  0x42   :  { %6787 = shalt.err (!%p6784_p3)
}
  0x43   :  { %s6890_s6 = smov 2048   ;;  %s6891_s10 = smov 128  }
  0x44   :  { %32 = dma.hbm_to_vmem [thread:$0]  %s8094_s1, 8192, %s6976_s15, [#allocation3], %s6890_s6, %s6890_s6, %s6891_s10  }
  0x45   :  { %s6892_s14 = smov [#allocation6]   ;;  %s6788_s19 = scalar_lea.hbm %s8096_s3, 65536 }
  0x46   :  { %s48_s16 = sshll.u32 %s6892_s14, 4  ;;  %p6789_p4 = scmp.ne.s32.totalorder %s8096_s3, %s6788_s19  ;;  %s49_s16 = int_to_ptr.vmem [resolvable:$true] %s48_s16 }
  0x47   :  { %p6792_p5 = scmp.lt.u32.totalorder %s6788_s19, %s8096_s3 }
  0x49   :  { %p6794_p6 = pnand %p6792_p5, %p6789_p4 }
  0x4b   :  { %6797 = shalt.err (!%p6794_p6)
}
  0x4c   :  { %s6798_s12 = scalar_lea.vmem %s49_s16, 65536  ;;  %p6803_p8 = scmp.lt.s32.totalorder %s49_s16, %s49_s16 }
  0x4d   :  { %p6799_p7 = scmp.ne.s32.totalorder %s49_s16, %s6798_s12  ;;  %p6804_p9 = scmp.lt.s32.totalorder %s6798_s12, %s6798_s12 }
  0x4f   :  { %p6805_p10 = por %p6804_p9, %p6803_p8 }
  0x51   :  { %p6806_p11 = pnand %p6805_p10, %p6799_p7 }
  0x53   :  { %6809 = shalt.err (!%p6806_p11)
}
  0x54   :  { %s6893_s1 = smov 1024   ;;  %s6894_s15 = smov 64  }
  0x55   :  { %54 = dma.hbm_to_vmem [thread:$0]  %s8096_s3, 65536, %s49_s16, [#allocation5], %s6893_s1, %s6893_s1, %s6894_s15  }
  0x56   :  { %s6895_s25 = smov [#allocation9]   ;;  %s6810_s29 = scalar_lea.hbm %s8098_s5, 16384 }
  0x57   :  { %s70_s26 = sshll.u32 %s6895_s25, 4  ;;  %p6811_p12 = scmp.ne.s32.totalorder %s8098_s5, %s6810_s29  ;;  %s71_s26 = int_to_ptr.vmem [resolvable:$true] %s70_s26 }
  0x58   :  { %p6814_p13 = scmp.lt.u32.totalorder %s6810_s29, %s8098_s5 }
  0x5a   :  { %p6816_p0 = pnand %p6814_p13, %p6811_p12 }
  0x5c   :  { %6819 = shalt.err (!%p6816_p0)
}
  0x5d   :  { %s6820_s11 = scalar_lea.vmem %s71_s26, 16384  ;;  %p6825_p2 = scmp.lt.s32.totalorder %s71_s26, %s71_s26 }
  0x5e   :  { %p6821_p1 = scmp.ne.s32.totalorder %s71_s26, %s6820_s11  ;;  %p6826_p3 = scmp.lt.s32.totalorder %s6820_s11, %s6820_s11 }
  0x60   :  { %p6827_p4 = por %p6826_p3, %p6825_p2 }
  0x62   :  { %p6828_p5 = pnand %p6827_p4, %p6821_p1 }
  0x64   :  { %6831 = shalt.err (!%p6828_p5)
}
  0x65   :  { %s6896_s3 = smov 512   ;;  %s6897_s13 = smov 32  }
  0x66   :  { %76 = dma.hbm_to_vmem [thread:$0]  %s8098_s5, 16384, %s71_s26, [#allocation8], %s6896_s3, %s6896_s3, %s6897_s13  }
  0x67   :  { %s6898_s17 = smov [#allocation12]   ;;  %s6899_s19 = smov [#allocation13]  }
  0x68   :  { %s92_s18 = sshll.u32 %s6898_s17, 4  ;;  %s105_s20 = sshll.u32 %s6899_s19, 4  ;;  %s93_s18 = int_to_ptr.vmem [resolvable:$true] %s92_s18  ;;  %s106_s20 = int_to_ptr.vmem [resolvable:$true] %s105_s20 }
  0x69   :  { %s6832_s4 = scalar_lea.hbm %s8100_s7, 4096 }
  0x6a   :  { %p6833_p6 = scmp.ne.s32.totalorder %s8100_s7, %s6832_s4  ;;  %p6836_p7 = scmp.lt.u32.totalorder %s6832_s4, %s8100_s7 }
  0x6c   :  { %p6838_p8 = pnand %p6836_p7, %p6833_p6 }
  0x6e   :  { %6841 = shalt.err (!%p6838_p8)
}
  0x6f   :  { %s6842_s5 = scalar_lea.vmem %s93_s18, 4096  ;;  %p6847_p10 = scmp.lt.s32.totalorder %s93_s18, %s93_s18 }
  0x70   :  { %p6843_p9 = scmp.ne.s32.totalorder %s93_s18, %s6842_s5  ;;  %p6848_p11 = scmp.lt.s32.totalorder %s6842_s5, %s6842_s5 }
  0x72   :  { %p6849_p12 = por %p6848_p11, %p6847_p10 }
  0x74   :  { %p6850_p13 = pnand %p6849_p12, %p6843_p9 }
  0x76   :  { %6853 = shalt.err (!%p6850_p13)
}
  0x77   :  { %s6900_s25 = smov 4   ;;  %s6854_s30 = scalar_lea.hbm %s8101_s8, 16 }
  0x78   :  { %98 = dma.hbm_to_vmem [thread:$0]  %s8100_s7, 4096, %s93_s18, [#allocation11], %s6894_s15, %s6894_s15, %s6900_s25  }
  0x79   :  { %p6855_p0 = scmp.ne.s32.totalorder %s8101_s8, %s6854_s30  ;;  %p6858_p1 = scmp.lt.u32.totalorder %s6854_s30, %s8101_s8 }
  0x7b   :  { %p6860_p2 = pnand %p6858_p1, %p6855_p0 }
  0x7d   :  { %6863 = shalt.err (!%p6860_p2)
}
  0x7e   :  { %s6864_s3 = scalar_lea.vmem %s106_s20, 16  ;;  %s6868_s13 = scalar_lea.vmem %s106_s20, 32 }
  0x7f   :  { %p6865_p3 = scmp.ne.s32.totalorder %s106_s20, %s6864_s3  ;;  %p6869_p4 = scmp.lt.s32.totalorder %s106_s20, %s106_s20 }
  0x80   :  { %p6870_p5 = scmp.lt.s32.totalorder %s6868_s13, %s6864_s3 }
  0x82   :  { %p6871_p6 = por %p6870_p5, %p6869_p4 }
  0x84   :  { %p6872_p7 = pnand %p6871_p6, %p6865_p3 }
  0x86   :  { %6875 = shalt.err (!%p6872_p7)
}
  0x87   :  { %108 = dma.hbm_to_vmem [thread:$0]  %s8101_s8, 16, %s106_s20, [#allocation14]  }
  0x88   :  { %6876 = dma.done.wait [#allocation3], 8192  }
  0x89   :  { %6877 = vsyncadd [#allocation3], 4294959104 }
  0x8a   :  { %6878 = dma.done.wait [#allocation5], 66560  }
  0x8b   :  { %6879 = vsyncadd [#allocation5], 4294900736 }
  0x8c   :  { %6880 = dma.done.wait [#allocation8], 16896  }
  0x8d   :  { %6881 = vsyncadd [#allocation8], 4294950400 }
  0x8e   :  { %6882 = dma.done.wait [#allocation11], 4352  }
  0x8f   :  { %6883 = vsyncadd [#allocation11], 4294962944 }
  0x90   :  { %6884 = dma.done.wait [#allocation14], 16  }
  0x91   :  { %6885 = vsyncadd [#allocation14], 4294967280  ;;  %v6901_v0 = vmov 0   ;;  %v137_v1 = vld [vmem:[#allocation2 + $0x8] sm:$0xff]  ;;  %v136_v2 = vld [vmem:[#allocation2] sm:$0xff] }
  0x92   :  { %360 = vmatprep.mubr.bf16.mxu0 %v6901_v0  ;;  %401 = vmatprep.mubr.bf16.mxu1 %v6901_v0  ;;  %v201_v3 = vunpack.c.l.s8.bf16 %v137_v1  ;;  %v217_v4 = vunpack.c.h.s8.bf16 %v137_v1  ;;  %v200_v5 = vunpack.c.l.s8.bf16 %v136_v2  ;;  %v139_v6 = vld [vmem:[#allocation2 + $0x18] sm:$0xff]  ;;  %v138_v7 = vld [vmem:[#allocation2 + $0x10] sm:$0xff]  ;;  %v153_v8 = vld [vmem:[#allocation2 + $0x88] sm:$0xff]  ;;  %v216_v13 = vunpack.c.h.s8.bf16 %v136_v2 }
  0x93   :  { %v203_v9 = vunpack.c.l.s8.bf16 %v139_v6  ;;  %v219_v10 = vunpack.c.h.s8.bf16 %v139_v6  ;;  %v202_v11 = vunpack.c.l.s8.bf16 %v138_v7  ;;  %v155_v12 = vld [vmem:[#allocation2 + $0x98] sm:$0xff]  ;;  %v233_v14 = vunpack.c.l.s8.bf16 %v153_v8  ;;  %v152_v15 = vld [vmem:[#allocation2 + $0x80] sm:$0xff]  ;;  %v154_v18 = vld [vmem:[#allocation2 + $0x90] sm:$0xff] }
  0x94   :  { %328 = vmatprep.subr.bf16.mxu0 %v201_v3  ;;  %v218_v16 = vunpack.c.h.s8.bf16 %v138_v7  ;;  %v235_v17 = vunpack.c.l.s8.bf16 %v155_v12  ;;  %v232_v19 = vunpack.c.l.s8.bf16 %v152_v15  ;;  %v249_v20 = vunpack.c.h.s8.bf16 %v153_v8  ;;  %v169_v22 = vld [vmem:[#allocation2 + $0x108] sm:$0xff]  ;;  %v171_v24 = vld [vmem:[#allocation2 + $0x118] sm:$0xff]  ;;  %v168_v27 = vld [vmem:[#allocation2 + $0x100] sm:$0xff] }
  0x95   :  { %329 = vmatpush1.bf16.msra.mxu0 %v200_v5  ;;  %369 = vmatprep.subr.bf16.mxu1 %v203_v9  ;;  %v234_v21 = vunpack.c.l.s8.bf16 %v154_v18  ;;  %v251_v23 = vunpack.c.h.s8.bf16 %v155_v12  ;;  %v248_v25 = vunpack.c.h.s8.bf16 %v152_v15  ;;  %v265_v26 = vunpack.c.l.s8.bf16 %v169_v22  ;;  %v170_v30 = vld [vmem:[#allocation2 + $0x110] sm:$0xff]  ;;  %v185_v34 = vld [vmem:[#allocation2 + $0x188] sm:$0xff]  ;;  %v187_v36 = vld [vmem:[#allocation2 + $0x198] sm:$0xff] }
  0x96   :  { %330 = vmatprep.subr.bf16.mxu0 %v217_v4  ;;  %370 = vmatpush1.bf16.msra.mxu1 %v202_v11  ;;  %v250_v28 = vunpack.c.h.s8.bf16 %v154_v18  ;;  %v267_v29 = vunpack.c.l.s8.bf16 %v171_v24  ;;  %v264_v31 = vunpack.c.l.s8.bf16 %v168_v27  ;;  %v281_v32 = vunpack.c.h.s8.bf16 %v169_v22  ;;  %v184_v39 = vld [vmem:[#allocation2 + $0x180] sm:$0xff]  ;;  %v186_v41 = vld [vmem:[#allocation2 + $0x190] sm:$0xff]  ;;  %v141_v44 = vld [vmem:[#allocation2 + $0x28] sm:$0xff] }
  0x97   :  { %371 = vmatprep.subr.bf16.mxu1 %v219_v10  ;;  %v266_v33 = vunpack.c.l.s8.bf16 %v170_v30  ;;  %v283_v35 = vunpack.c.h.s8.bf16 %v171_v24  ;;  %v280_v37 = vunpack.c.h.s8.bf16 %v168_v27  ;;  %v297_v38 = vunpack.c.l.s8.bf16 %v185_v34  ;;  %v143_v47 = vld [vmem:[#allocation2 + $0x38] sm:$0xff]  ;;  %v134_v48 = vld [vmem:[%s8093_s0] sm:$0xff]  ;;  %v142_v54 = vld [vmem:[#allocation2 + $0x30] sm:$0xff] }
  0x98   :  { %v282_v40 = vunpack.c.h.s8.bf16 %v170_v30  ;;  %v299_v42 = vunpack.c.l.s8.bf16 %v187_v36  ;;  %v296_v43 = vunpack.c.l.s8.bf16 %v184_v39  ;;  %v313_v45 = vunpack.c.h.s8.bf16 %v185_v34  ;;  %v140_v50 = vld [vmem:[#allocation2 + $0x20] sm:$0xff]  ;;  %v157_v58 = vld [vmem:[#allocation2 + $0xa8] sm:$0xff]  ;;  %v159_v61 = vld [vmem:[#allocation2 + $0xb8] sm:$0xff] }
  0x99   :  { %331 = vmatpush1.bf16.msra.mxu0 %v216_v13  ;;  %v298_v46 = vunpack.c.l.s8.bf16 %v186_v41  ;;  %v315_v49 = vunpack.c.h.s8.bf16 %v187_v36  ;;  %v312_v51 = vunpack.c.h.s8.bf16 %v184_v39  ;;  %v314_v52 = vunpack.c.h.s8.bf16 %v186_v41  ;;  %v156_v62 = vld [vmem:[#allocation2 + $0xa0] sm:$0xff]  ;;  %v158_v3 = vld [vmem:[#allocation2 + $0xb0] sm:$0xff]  ;;  %v173_v7 = vld [vmem:[#allocation2 + $0x128] sm:$0xff] }
  0x9a   :  { %332 = vmatprep.subr.bf16.mxu0 %v233_v14  ;;  %372 = vmatpush1.bf16.msra.mxu1 %v218_v16  ;;  %v205_v53 = vunpack.c.l.s8.bf16 %v141_v44  ;;  %v207_v55 = vunpack.c.l.s8.bf16 %v143_v47  ;;  %v7063_v56 = vpack.c.bf16 %v134_v48, %v134_v48  ;;  %v204_v57 = vunpack.c.l.s8.bf16 %v140_v50  ;;  %v175_v12 = vld [vmem:[#allocation2 + $0x138] sm:$0xff]  ;;  %v172_v14 = vld [vmem:[#allocation2 + $0x120] sm:$0xff]  ;;  %v146_v41 = vld [vmem:[#allocation2 + $0x50] sm:$0xff] }
  0x9b   :  { %373 = vmatprep.subr.bf16.mxu1 %v235_v17  ;;  %v221_v59 = vunpack.c.h.s8.bf16 %v141_v44  ;;  %v206_v60 = vunpack.c.l.s8.bf16 %v142_v54  ;;  %v223_v63 = vunpack.c.h.s8.bf16 %v143_v47  ;;  %v220_v1 = vunpack.c.h.s8.bf16 %v140_v50  ;;  %v174_v17 = vld [vmem:[#allocation2 + $0x130] sm:$0xff]  ;;  %v191_v24 = vld [vmem:[#allocation2 + $0x1b8] sm:$0xff]  ;;  %v161_v44 = vld [vmem:[#allocation2 + $0xc8] sm:$0xff] }
  0x9c   :  { %v237_v2 = vunpack.c.l.s8.bf16 %v157_v58  ;;  %v222_v4 = vunpack.c.h.s8.bf16 %v142_v54  ;;  %v239_v5 = vunpack.c.l.s8.bf16 %v159_v61  ;;  %v236_v6 = vunpack.c.l.s8.bf16 %v156_v62  ;;  %v147_v36 = vld [vmem:[#allocation2 + $0x58] sm:$0xff]  ;;  %v160_v50 = vld [vmem:[#allocation2 + $0xc0] sm:$0xff] }
  0x9d   :  { %333 = vmatpush1.bf16.msra.mxu0 %v232_v19  ;;  %v253_v8 = vunpack.c.h.s8.bf16 %v157_v58  ;;  %v238_v9 = vunpack.c.l.s8.bf16 %v158_v3  ;;  %v255_v10 = vunpack.c.h.s8.bf16 %v159_v61  ;;  %v252_v11 = vunpack.c.h.s8.bf16 %v156_v62  ;;  %v163_v48 = vld [vmem:[#allocation2 + $0xd8] sm:$0xff] }
  0x9e   :  { %334 = vmatprep.subr.bf16.mxu0 %v249_v20  ;;  %374 = vmatpush1.bf16.msra.mxu1 %v234_v21  ;;  %v269_v13 = vunpack.c.l.s8.bf16 %v173_v7  ;;  %v254_v15 = vunpack.c.h.s8.bf16 %v158_v3  ;;  %v271_v16 = vunpack.c.l.s8.bf16 %v175_v12  ;;  %v268_v18 = vunpack.c.l.s8.bf16 %v172_v14  ;;  %v189_v20 = vld [vmem:[#allocation2 + $0x1a8] sm:$0xff]  ;;  %v179_v61 = vld [vmem:[#allocation2 + $0x158] sm:$0xff]  ;;  %v178_v3 = vld [vmem:[#allocation2 + $0x150] sm:$0xff] }
  0x9f   :  { %375 = vmatprep.subr.bf16.mxu1 %v251_v23  ;;  %v285_v19 = vunpack.c.h.s8.bf16 %v173_v7  ;;  %v270_v21 = vunpack.c.l.s8.bf16 %v174_v17  ;;  %v287_v22 = vunpack.c.h.s8.bf16 %v175_v12  ;;  %v284_v23 = vunpack.c.h.s8.bf16 %v172_v14  ;;  %v192_v12 = vld [vmem:[#allocation2 + $0x1c0] sm:$0xff] }
  0xa0   :  { %v286_v27 = vunpack.c.h.s8.bf16 %v174_v17  ;;  %v319_v34 = vunpack.c.h.s8.bf16 %v191_v24  ;;  %v240_v54 = vunpack.c.l.s8.bf16 %v160_v50  ;;  %v274_v7 = vunpack.c.l.s8.bf16 %v178_v3 }
  0xa1   :  { %335 = vmatpush1.bf16.msra.mxu0 %v248_v25  ;;  %v301_v25 = vunpack.c.l.s8.bf16 %v189_v20 }
  0xa2   :  { %336 = vmatprep.subr.bf16.mxu0 %v265_v26  ;;  %376 = vmatpush1.bf16.msra.mxu1 %v250_v28  ;;  %v188_v26 = vld [vmem:[#allocation2 + $0x1a0] sm:$0xff]  ;;  %v303_v28 = vunpack.c.l.s8.bf16 %v191_v24 }
  0xa3   :  { %377 = vmatprep.subr.bf16.mxu1 %v267_v29  ;;  %v190_v29 = vld [vmem:[#allocation2 + $0x1b0] sm:$0xff]  ;;  %v300_v30 = vunpack.c.l.s8.bf16 %v188_v26  ;;  %v148_v24 = vld [vmem:[#allocation2 + $0x60] sm:$0xff] }
  0xa4   :  { %v318_v39 = vunpack.c.h.s8.bf16 %v190_v29 }
  0xa5   :  { %337 = vmatpush1.bf16.msra.mxu0 %v264_v31  ;;  %v317_v31 = vunpack.c.h.s8.bf16 %v189_v20 }
  0xa6   :  { %338 = vmatprep.subr.bf16.mxu0 %v281_v32  ;;  %378 = vmatpush1.bf16.msra.mxu1 %v266_v33  ;;  %v145_v32 = vld [vmem:[#allocation2 + $0x48] sm:$0xff]  ;;  %v302_v33 = vunpack.c.l.s8.bf16 %v190_v29 }
  0xa7   :  { %379 = vmatprep.subr.bf16.mxu1 %v283_v35  ;;  %v316_v35 = vunpack.c.h.s8.bf16 %v188_v26 }
  0xa9   :  { %339 = vmatpush1.bf16.msra.mxu0 %v280_v37  ;;  %v209_v37 = vunpack.c.l.s8.bf16 %v145_v32 }
  0xaa   :  { %340 = vmatprep.subr.bf16.mxu0 %v297_v38  ;;  %380 = vmatpush1.bf16.msra.mxu1 %v282_v40  ;;  %v144_v38 = vld [vmem:[#allocation2 + $0x40] sm:$0xff]  ;;  %v211_v40 = vunpack.c.l.s8.bf16 %v147_v36 }
  0xab   :  { %381 = vmatprep.subr.bf16.mxu1 %v299_v42  ;;  %v208_v42 = vunpack.c.l.s8.bf16 %v144_v38  ;;  %v224_v47 = vunpack.c.h.s8.bf16 %v144_v38 }
  0xad   :  { %341 = vmatpush1.bf16.msra.mxu0 %v296_v43  ;;  %v225_v43 = vunpack.c.h.s8.bf16 %v145_v32 }
  0xae   :  { %342 = vmatprep.subr.bf16.mxu0 %v313_v45  ;;  %382 = vmatpush1.bf16.msra.mxu1 %v298_v46  ;;  %v210_v45 = vunpack.c.l.s8.bf16 %v146_v41  ;;  %v227_v46 = vunpack.c.h.s8.bf16 %v147_v36  ;;  %v164_v36 = vld [vmem:[#allocation2 + $0xe0] sm:$0xff] }
  0xaf   :  { %383 = vmatprep.subr.bf16.mxu1 %v315_v49  ;;  %v241_v49 = vunpack.c.l.s8.bf16 %v161_v44 }
  0xb1   :  { %343 = vmatpush1.bf16.msra.mxu0 %v312_v51  ;;  %v226_v51 = vunpack.c.h.s8.bf16 %v146_v41 }
  0xb2   :  { %384 = vmatpush1.bf16.msra.mxu1 %v314_v52  ;;  %410 = vmatprep.subr.bf16.mxu0 %v205_v53  ;;  %v243_v52 = vunpack.c.l.s8.bf16 %v163_v48  ;;  %v162_v53 = vld [vmem:[#allocation2 + $0xd0] sm:$0xff] }
  0xb3   :  { %451 = vmatprep.subr.bf16.mxu1 %v207_v55  ;;  %v257_v55 = vunpack.c.h.s8.bf16 %v161_v44  ;;  %v242_v58 = vunpack.c.l.s8.bf16 %v162_v53 }
  0xb4   :  { %361 = vmatmul.mubr.bf16.vlgmr.msra.gmra.mrb[0].mxu0 %v7063_v56 }
  0xb5   :  { %402 = vmatmul.mubr.bf16.vlgmr.msra.gmra.mrb[0].mxu1 %v7063_v56  ;;  %411 = vmatpush1.bf16.msra.mxu0 %v204_v57  ;;  %v177_v57 = vld [vmem:[#allocation2 + $0x148] sm:$0xff] }
  0xb6   :  { %412 = vmatprep.subr.bf16.mxu0 %v221_v59  ;;  %442 = vmatprep.mubr.bf16.mxu0 %v6901_v0  ;;  %v259_v59 = vunpack.c.h.s8.bf16 %v163_v48  ;;  %v273_v62 = vunpack.c.l.s8.bf16 %v177_v57  ;;  %v180_v48 = vld [vmem:[#allocation2 + $0x160] sm:$0xff] }
  0xb7   :  { %452 = vmatpush1.bf16.msra.mxu1 %v206_v60  ;;  %483 = vmatprep.mubr.bf16.mxu1 %v6901_v0  ;;  %v256_v60 = vunpack.c.h.s8.bf16 %v160_v50  ;;  %v182_v50 = vld [vmem:[#allocation2 + $0x170] sm:$0xff] }
  0xb8   :  { %453 = vmatprep.subr.bf16.mxu1 %v223_v63  ;;  %v176_v63 = vld [vmem:[#allocation2 + $0x140] sm:$0xff] }
  0xb9   :  { %413 = vmatpush1.bf16.msra.mxu0 %v220_v1  ;;  %v258_v1 = vunpack.c.h.s8.bf16 %v162_v53  ;;  %v197_v53 = vld [vmem:[#allocation2 + $0x1e8] sm:$0xff] }
  0xba   :  { %414 = vmatprep.subr.bf16.mxu0 %v237_v2  ;;  %v275_v2 = vunpack.c.l.s8.bf16 %v179_v61 }
  0xbb   :  { %454 = vmatpush1.bf16.msra.mxu1 %v222_v4  ;;  %v272_v4 = vunpack.c.l.s8.bf16 %v176_v63 }
  0xbc   :  { %455 = vmatprep.subr.bf16.mxu1 %v239_v5  ;;  %v289_v5 = vunpack.c.h.s8.bf16 %v177_v57  ;;  %v292_v57 = vunpack.c.h.s8.bf16 %v180_v48 }
  0xbd   :  { %415 = vmatpush1.bf16.msra.mxu0 %v236_v6  ;;  %v193_v6 = vld [vmem:[#allocation2 + $0x1c8] sm:$0xff] }
  0xbe   :  { %416 = vmatprep.subr.bf16.mxu0 %v253_v8  ;;  %v291_v8 = vunpack.c.h.s8.bf16 %v179_v61  ;;  %v321_v17 = vunpack.c.h.s8.bf16 %v193_v6  ;;  %v294_v61 = vunpack.c.h.s8.bf16 %v182_v50 }
  0xbf   :  { %456 = vmatpush1.bf16.msra.mxu1 %v238_v9  ;;  %v288_v9 = vunpack.c.h.s8.bf16 %v176_v63  ;;  %v198_v63 = vld [vmem:[#allocation2 + $0x1f0] sm:$0xff] }
  0xc0   :  { %457 = vmatprep.subr.bf16.mxu1 %v255_v10  ;;  %v195_v10 = vld [vmem:[#allocation2 + $0x1d8] sm:$0xff] }
  0xc1   :  { %417 = vmatpush1.bf16.msra.mxu0 %v252_v11  ;;  %v305_v11 = vunpack.c.l.s8.bf16 %v193_v6  ;;  %v307_v14 = vunpack.c.l.s8.bf16 %v195_v10  ;;  %v323_v20 = vunpack.c.h.s8.bf16 %v195_v10  ;;  %v326_v10 = vunpack.c.h.s8.bf16 %v198_v63 }
  0xc2   :  { %418 = vmatprep.subr.bf16.mxu0 %v269_v13  ;;  %v290_v13 = vunpack.c.h.s8.bf16 %v178_v3  ;;  %v310_v3 = vunpack.c.l.s8.bf16 %v198_v63  ;;  %v1729_v63 = vld [vmem:[#allocation6 + $0x148] sm:$0xff] }
  0xc3   :  { %458 = vmatpush1.bf16.msra.mxu1 %v254_v15  ;;  %v194_v15 = vld [vmem:[#allocation2 + $0x1d0] sm:$0xff] }
  0xc4   :  { %459 = vmatprep.subr.bf16.mxu1 %v271_v16  ;;  %v304_v16 = vunpack.c.l.s8.bf16 %v192_v12 }
  0xc5   :  { %419 = vmatpush1.bf16.msra.mxu0 %v268_v18  ;;  %v149_v18 = vld [vmem:[#allocation2 + $0x68] sm:$0xff] }
  0xc6   :  { %420 = vmatprep.subr.bf16.mxu0 %v285_v19  ;;  %v306_v19 = vunpack.c.l.s8.bf16 %v194_v15  ;;  %v229_v29 = vunpack.c.h.s8.bf16 %v149_v18 }
  0xc7   :  { %460 = vmatpush1.bf16.msra.mxu1 %v270_v21  ;;  %v320_v21 = vunpack.c.h.s8.bf16 %v192_v12  ;;  %v1690_v12 = vld [vmem:[#allocation6 + $0x10] sm:$0xff] }
  0xc8   :  { %461 = vmatprep.subr.bf16.mxu1 %v287_v22  ;;  %v151_v22 = vld [vmem:[#allocation2 + $0x78] sm:$0xff] }
  0xc9   :  { %421 = vmatpush1.bf16.msra.mxu0 %v284_v23  ;;  %v213_v23 = vunpack.c.l.s8.bf16 %v149_v18  ;;  %v215_v26 = vunpack.c.l.s8.bf16 %v151_v22  ;;  %v231_v32 = vunpack.c.h.s8.bf16 %v151_v22  ;;  %v2210_v22 = vunpack.c.h.s8.bf16 %v1690_v12 }
  0xca   :  { %422 = vmatprep.subr.bf16.mxu0 %v301_v25  ;;  %v322_v25 = vunpack.c.h.s8.bf16 %v194_v15  ;;  %v2202_v15 = vunpack.c.l.s8.bf16 %v1690_v12  ;;  %v1737_v12 = vld [vmem:[#allocation6 + $0x188] sm:$0xff] }
  0xcb   :  { %462 = vmatpush1.bf16.msra.mxu1 %v286_v27  ;;  %v150_v27 = vld [vmem:[#allocation2 + $0x70] sm:$0xff] }
  0xcc   :  { %463 = vmatprep.subr.bf16.mxu1 %v303_v28  ;;  %v212_v28 = vunpack.c.l.s8.bf16 %v148_v24 }
  0xcd   :  { %423 = vmatpush1.bf16.msra.mxu0 %v300_v30  ;;  %v165_v30 = vld [vmem:[#allocation2 + $0xe8] sm:$0xff] }
  0xce   :  { %424 = vmatprep.subr.bf16.mxu0 %v317_v31  ;;  %v214_v31 = vunpack.c.l.s8.bf16 %v150_v27  ;;  %v261_v41 = vunpack.c.h.s8.bf16 %v165_v30 }
  0xcf   :  { %464 = vmatpush1.bf16.msra.mxu1 %v302_v33  ;;  %v228_v33 = vunpack.c.h.s8.bf16 %v148_v24  ;;  %v1698_v24 = vld [vmem:[#allocation6 + $0x50] sm:$0xff] }
  0xd0   :  { %465 = vmatprep.subr.bf16.mxu1 %v319_v34  ;;  %v167_v34 = vld [vmem:[#allocation2 + $0xf8] sm:$0xff] }
  0xd1   :  { %425 = vmatpush1.bf16.msra.mxu0 %v316_v35  ;;  %v245_v35 = vunpack.c.l.s8.bf16 %v165_v30  ;;  %v247_v38 = vunpack.c.l.s8.bf16 %v167_v34  ;;  %v263_v44 = vunpack.c.h.s8.bf16 %v167_v34 }
  0xd2   :  { %492 = vmatprep.subr.bf16.mxu0 %v209_v37  ;;  %v230_v37 = vunpack.c.h.s8.bf16 %v150_v27  ;;  %v2218_v27 = vunpack.c.l.s8.bf16 %v1698_v24 }
  0xd3   :  { %466 = vmatpush1.bf16.msra.mxu1 %v318_v39  ;;  %v166_v39 = vld [vmem:[#allocation2 + $0xf0] sm:$0xff] }
  0xd4   :  { %443 = vmatmul.mubr.bf16.vlgmr.msra.gmra.mrb[4].mxu0 %v7063_v56  ;;  %533 = vmatprep.subr.bf16.mxu1 %v211_v40  ;;  %v244_v40 = vunpack.c.l.s8.bf16 %v164_v36 }
  0xd5   :  { %493 = vmatpush1.bf16.msra.mxu0 %v208_v42  ;;  %524 = vmatprep.mubr.bf16.mxu0 %v6901_v0  ;;  %v181_v42 = vld [vmem:[#allocation2 + $0x168] sm:$0xff] }
  0xd6   :  { %494 = vmatprep.subr.bf16.mxu0 %v225_v43  ;;  %484 = vmatmul.mubr.bf16.vlgmr.msra.gmra.mrb[4].mxu1 %v7063_v56  ;;  %v246_v43 = vunpack.c.l.s8.bf16 %v166_v39 }
  0xd7   :  { %534 = vmatpush1.bf16.msra.mxu1 %v210_v45  ;;  %565 = vmatprep.mubr.bf16.mxu1 %v6901_v0  ;;  %v260_v45 = vunpack.c.h.s8.bf16 %v164_v36 }
  0xd8   :  { %535 = vmatprep.subr.bf16.mxu1 %v227_v46  ;;  %v183_v46 = vld [vmem:[#allocation2 + $0x178] sm:$0xff] }
  0xd9   :  { %495 = vmatpush1.bf16.msra.mxu0 %v224_v47  ;;  %v277_v47 = vunpack.c.l.s8.bf16 %v181_v42 }
  0xda   :  { %496 = vmatprep.subr.bf16.mxu0 %v241_v49  ;;  %v279_v49 = vunpack.c.l.s8.bf16 %v183_v46 }
  0xdb   :  { %536 = vmatpush1.bf16.msra.mxu1 %v226_v51  ;;  %v276_v51 = vunpack.c.l.s8.bf16 %v180_v48 }
  0xdc   :  { %537 = vmatprep.subr.bf16.mxu1 %v243_v52  ;;  %v293_v52 = vunpack.c.h.s8.bf16 %v181_v42  ;;  %v1715_v42 = vld [vmem:[#allocation6 + $0xd8] sm:$0xff] }
  0xdd   :  { %497 = vmatpush1.bf16.msra.mxu0 %v240_v54  ;;  %v278_v54 = vunpack.c.l.s8.bf16 %v182_v50  ;;  %v1721_v50 = vld [vmem:[#allocation6 + $0x108] sm:$0xff] }
  0xde   :  { %498 = vmatprep.subr.bf16.mxu0 %v257_v55  ;;  %v295_v55 = vunpack.c.h.s8.bf16 %v183_v46  ;;  %v2251_v46 = vunpack.c.l.s8.bf16 %v1715_v42 }
  0xdf   :  { %538 = vmatpush1.bf16.msra.mxu1 %v242_v58  ;;  %v199_v58 = vld [vmem:[#allocation2 + $0x1f8] sm:$0xff] }
  0xe0   :  { %539 = vmatprep.subr.bf16.mxu1 %v259_v59  ;;  %v309_v59 = vunpack.c.l.s8.bf16 %v197_v53 }
  0xe1   :  { %499 = vmatpush1.bf16.msra.mxu0 %v256_v60  ;;  %v196_v60 = vld [vmem:[#allocation2 + $0x1e0] sm:$0xff] }
  0xe2   :  { %500 = vmatprep.subr.bf16.mxu0 %v273_v62  ;;  %v311_v62 = vunpack.c.l.s8.bf16 %v199_v58  ;;  %v324_v6 = vunpack.c.h.s8.bf16 %v196_v60 }
  0xe3   :  { %540 = vmatpush1.bf16.msra.mxu1 %v258_v1  ;;  %v308_v1 = vunpack.c.l.s8.bf16 %v196_v60 }
  0xe4   :  { %541 = vmatprep.subr.bf16.mxu1 %v275_v2  ;;  %v325_v2 = vunpack.c.h.s8.bf16 %v197_v53  ;;  %v1723_v53 = vld [vmem:[#allocation6 + $0x118] sm:$0xff] }
  0xe5   :  { %501 = vmatpush1.bf16.msra.mxu0 %v272_v4  ;;  %v1689_v4 = vld [vmem:[#allocation6 + $0x8] sm:$0xff] }
  0xe6   :  { %502 = vmatprep.subr.bf16.mxu0 %v289_v5  ;;  %v327_v5 = vunpack.c.h.s8.bf16 %v199_v58  ;;  %v2267_v58 = vunpack.c.l.s8.bf16 %v1723_v53 }
  0xe7   :  { %542 = vmatpush1.bf16.msra.mxu1 %v274_v7  ;;  %v1691_v7 = vld [vmem:[#allocation6 + $0x18] sm:$0xff] }
  0xe8   :  { %543 = vmatprep.subr.bf16.mxu1 %v291_v8  ;;  %v2201_v8 = vunpack.c.l.s8.bf16 %v1689_v4 }
  0xe9   :  { %503 = vmatpush1.bf16.msra.mxu0 %v288_v9  ;;  %v1688_v9 = vld [vmem:[#allocation6] sm:$0xff] }
  0xea   :  { %504 = vmatprep.subr.bf16.mxu0 %v305_v11  ;;  %v2203_v11 = vunpack.c.l.s8.bf16 %v1691_v7  ;;  %v2208_v18 = vunpack.c.h.s8.bf16 %v1688_v9 }
  0xeb   :  { %544 = vmatpush1.bf16.msra.mxu1 %v290_v13  ;;  %v2200_v13 = vunpack.c.l.s8.bf16 %v1688_v9 }
  0xec   :  { %545 = vmatprep.subr.bf16.mxu1 %v307_v14  ;;  %v2209_v14 = vunpack.c.h.s8.bf16 %v1689_v4  ;;  %v2281_v4 = vunpack.c.l.s8.bf16 %v1729_v63 }
  0xed   :  { %505 = vmatpush1.bf16.msra.mxu0 %v304_v16  ;;  %v1697_v16 = vld [vmem:[#allocation6 + $0x48] sm:$0xff] }
  0xee   :  { %506 = vmatprep.subr.bf16.mxu0 %v321_v17  ;;  %v2211_v17 = vunpack.c.h.s8.bf16 %v1691_v7 }
  0xef   :  { %546 = vmatpush1.bf16.msra.mxu1 %v306_v19  ;;  %v1699_v19 = vld [vmem:[#allocation6 + $0x58] sm:$0xff] }
  0xf0   :  { %547 = vmatprep.subr.bf16.mxu1 %v323_v20  ;;  %v2217_v20 = vunpack.c.l.s8.bf16 %v1697_v16 }
  0xf1   :  { %507 = vmatpush1.bf16.msra.mxu0 %v320_v21  ;;  %v1696_v21 = vld [vmem:[#allocation6 + $0x40] sm:$0xff] }
  0xf2   :  { %574 = vmatprep.subr.bf16.mxu0 %v213_v23  ;;  %v2219_v23 = vunpack.c.l.s8.bf16 %v1699_v19  ;;  %v2224_v30 = vunpack.c.h.s8.bf16 %v1696_v21 }
  0xf3   :  { %548 = vmatpush1.bf16.msra.mxu1 %v322_v25  ;;  %v2216_v25 = vunpack.c.l.s8.bf16 %v1696_v21 }
  0xf4   :  { %525 = vmatmul.mubr.bf16.vlgmr.msra.gmra.mrb[8].mxu0 %v7063_v56  ;;  %615 = vmatprep.subr.bf16.mxu1 %v215_v26  ;;  %v2225_v26 = vunpack.c.h.s8.bf16 %v1697_v16  ;;  %v2297_v16 = vunpack.c.l.s8.bf16 %v1737_v12 }
  0xf5   :  { %575 = vmatpush1.bf16.msra.mxu0 %v212_v28  ;;  %606 = vmatprep.mubr.bf16.mxu0 %v6901_v0  ;;  %v1705_v28 = vld [vmem:[#allocation6 + $0x88] sm:$0xff] }
  0xf6   :  { %576 = vmatprep.subr.bf16.mxu0 %v229_v29  ;;  %566 = vmatmul.mubr.bf16.vlgmr.msra.gmra.mrb[8].mxu1 %v7063_v56  ;;  %v2227_v29 = vunpack.c.h.s8.bf16 %v1699_v19 }
  0xf7   :  { %616 = vmatpush1.bf16.msra.mxu1 %v214_v31  ;;  %647 = vmatprep.mubr.bf16.mxu1 %v6901_v0  ;;  %v262_v0 = vunpack.c.h.s8.bf16 %v166_v39  ;;  %v2233_v31 = vunpack.c.l.s8.bf16 %v1705_v28  ;;  %v1713_v39 = vld [vmem:[#allocation6 + $0xc8] sm:$0xff] }
  0xf8   :  { %617 = vmatprep.subr.bf16.mxu1 %v231_v32  ;;  %v1704_v32 = vld [vmem:[#allocation6 + $0x80] sm:$0xff] }
  0xf9   :  { %577 = vmatpush1.bf16.msra.mxu0 %v228_v33  ;;  %v2226_v33 = vunpack.c.h.s8.bf16 %v1698_v24  ;;  %v2232_v36 = vunpack.c.l.s8.bf16 %v1704_v32  ;;  %v1745_v24 = vld [vmem:[#allocation6 + $0x1c8] sm:$0xff] }
  0xfa   :  { %578 = vmatprep.subr.bf16.mxu0 %v245_v35  ;;  %v1706_v35 = vld [vmem:[#allocation6 + $0x90] sm:$0xff] }
  0xfb   :  { %618 = vmatpush1.bf16.msra.mxu1 %v230_v37  ;;  %v2241_v37 = vunpack.c.h.s8.bf16 %v1705_v28  ;;  %v2313_v28 = vunpack.c.l.s8.bf16 %v1745_v24 }
  0xfc   :  { %619 = vmatprep.subr.bf16.mxu1 %v247_v38  ;;  %v2234_v38 = vunpack.c.l.s8.bf16 %v1706_v35 }
  0xfd   :  { %579 = vmatpush1.bf16.msra.mxu0 %v244_v40 }
  0xfe   :  { %580 = vmatprep.subr.bf16.mxu0 %v261_v41  ;;  %v2240_v41 = vunpack.c.h.s8.bf16 %v1704_v32 }
  0xff   :  { %620 = vmatpush1.bf16.msra.mxu1 %v246_v43  ;;  %v2249_v43 = vunpack.c.l.s8.bf16 %v1713_v39 }
 0x100   :  { %621 = vmatprep.subr.bf16.mxu1 %v263_v44  ;;  %v1712_v44 = vld [vmem:[#allocation6 + $0xc0] sm:$0xff] }
 0x101   :  { %581 = vmatpush1.bf16.msra.mxu0 %v260_v45  ;;  %v2242_v45 = vunpack.c.h.s8.bf16 %v1706_v35  ;;  %v2248_v48 = vunpack.c.l.s8.bf16 %v1712_v44  ;;  %v7079_v35 = vld [vmem:[#allocation6 + $0x208] sm:$0xff] }
 0x102   :  { %582 = vmatprep.subr.bf16.mxu0 %v277_v47  ;;  %v1714_v47 = vld [vmem:[#allocation6 + $0xd0] sm:$0xff] }
 0x103   :  { %622 = vmatpush1.bf16.msra.mxu1 %v262_v0  ;;  %v2257_v0 = vunpack.c.h.s8.bf16 %v1713_v39  ;;  %v2329_v39 = vunpack.c.l.s8.bf16 %v7079_v35 }
 0x104   :  { %623 = vmatprep.subr.bf16.mxu1 %v279_v49  ;;  %v2250_v49 = vunpack.c.l.s8.bf16 %v1714_v47 }
 0x105   :  { %583 = vmatpush1.bf16.msra.mxu0 %v276_v51  ;;  %v2259_v51 = vunpack.c.h.s8.bf16 %v1715_v42  ;;  %v672_v42 = vlaneseq }
 0x106   :  { %584 = vmatprep.subr.bf16.mxu0 %v293_v52  ;;  %v2256_v52 = vunpack.c.h.s8.bf16 %v1712_v44 }
 0x107   :  { %624 = vmatpush1.bf16.msra.mxu1 %v278_v54  ;;  %v2265_v54 = vunpack.c.l.s8.bf16 %v1721_v50 }
 0x108   :  { %625 = vmatprep.subr.bf16.mxu1 %v295_v55  ;;  %v1720_v55 = vld [vmem:[#allocation6 + $0x100] sm:$0xff] }
 0x109   :  { %585 = vmatpush1.bf16.msra.mxu0 %v292_v57  ;;  %v2258_v57 = vunpack.c.h.s8.bf16 %v1714_v47  ;;  %v2264_v60 = vunpack.c.l.s8.bf16 %v1720_v55 }
 0x10a   :  { %586 = vmatprep.subr.bf16.mxu0 %v309_v59  ;;  %v1722_v59 = vld [vmem:[#allocation6 + $0x110] sm:$0xff] }
 0x10b   :  { %626 = vmatpush1.bf16.msra.mxu1 %v294_v61  ;;  %v2273_v61 = vunpack.c.h.s8.bf16 %v1721_v50 }
 0x10c   :  { %627 = vmatprep.subr.bf16.mxu1 %v311_v62  ;;  %v2266_v62 = vunpack.c.l.s8.bf16 %v1722_v59 }
 0x10d   :  { %587 = vmatpush1.bf16.msra.mxu0 %v308_v1  ;;  %v2275_v1 = vunpack.c.h.s8.bf16 %v1723_v53 }
 0x10e   :  { %588 = vmatprep.subr.bf16.mxu0 %v325_v2  ;;  %v2272_v2 = vunpack.c.h.s8.bf16 %v1720_v55 }
 0x10f   :  { %628 = vmatpush1.bf16.msra.mxu1 %v310_v3  ;;  %v1731_v3 = vld [vmem:[#allocation6 + $0x158] sm:$0xff] }
 0x110   :  { %629 = vmatprep.subr.bf16.mxu1 %v327_v5  ;;  %v1728_v5 = vld [vmem:[#allocation6 + $0x140] sm:$0xff]  ;;  %v2283_v7 = vunpack.c.l.s8.bf16 %v1731_v3 }
 0x111   :  { %589 = vmatpush1.bf16.msra.mxu0 %v324_v6  ;;  %v2274_v6 = vunpack.c.h.s8.bf16 %v1722_v59  ;;  %v2280_v9 = vunpack.c.l.s8.bf16 %v1728_v5 }
 0x112   :  { %3224 = vmatprep.subr.bf16.mxu0 %v2201_v8  ;;  %v1730_v8 = vld [vmem:[#allocation6 + $0x150] sm:$0xff] }
 0x113   :  { %630 = vmatpush1.bf16.msra.mxu1 %v326_v10  ;;  %v2289_v10 = vunpack.c.h.s8.bf16 %v1729_v63 }
 0x114   :  { %607 = vmatmul.mubr.bf16.vlgmr.msra.gmra.mrb[12].mxu0 %v7063_v56  ;;  %3552 = vmatprep.subr.bf16.mxu1 %v2203_v11  ;;  %v2282_v11 = vunpack.c.l.s8.bf16 %v1730_v8 }
 0x115   :  { %3225 = vmatpush1.bf16.msra.mxu0 %v2200_v13  ;;  %v2291_v13 = vunpack.c.h.s8.bf16 %v1731_v3 }
 0x116   :  { %648 = vmatmul.mubr.bf16.vlgmr.msra.gmra.mrb[12].mxu1 %v7063_v56  ;;  %3226 = vmatprep.subr.bf16.mxu0 %v2209_v14  ;;  %v1707_v56 = vld [vmem:[#allocation6 + $0x98] sm:$0xff]  ;;  %v2288_v14 = vunpack.c.h.s8.bf16 %v1728_v5 }
 0x117   :  { %3553 = vmatpush1.bf16.msra.mxu1 %v2202_v15  ;;  %v2235_v34 = vunpack.c.l.s8.bf16 %v1707_v56  ;;  %v2243_v40 = vunpack.c.h.s8.bf16 %v1707_v56  ;;  %v1739_v15 = vld [vmem:[#allocation6 + $0x198] sm:$0xff] }
 0x118   :  { %3554 = vmatprep.subr.bf16.mxu1 %v2211_v17  ;;  %v1736_v17 = vld [vmem:[#allocation6 + $0x180] sm:$0xff]  ;;  %v2299_v19 = vunpack.c.l.s8.bf16 %v1739_v15 }
 0x119   :  { %3227 = vmatpush1.bf16.msra.mxu0 %v2208_v18  ;;  %v2290_v18 = vunpack.c.h.s8.bf16 %v1730_v8  ;;  %v2296_v21 = vunpack.c.l.s8.bf16 %v1736_v17 }
 0x11a   :  { %3228 = vmatprep.subr.bf16.mxu0 %v2217_v20  ;;  %v1738_v20 = vld [vmem:[#allocation6 + $0x190] sm:$0xff] }
 0x11b   :  { %3555 = vmatpush1.bf16.msra.mxu1 %v2210_v22  ;;  %v2305_v22 = vunpack.c.h.s8.bf16 %v1737_v12 }
 0x11c   :  { %3556 = vmatprep.subr.bf16.mxu1 %v2219_v23  ;;  %v2298_v23 = vunpack.c.l.s8.bf16 %v1738_v20 }
 0x11d   :  { %3229 = vmatpush1.bf16.msra.mxu0 %v2216_v25  ;;  %v2307_v25 = vunpack.c.h.s8.bf16 %v1739_v15 }
 0x11e   :  { %3230 = vmatprep.subr.bf16.mxu0 %v2225_v26  ;;  %v2304_v26 = vunpack.c.h.s8.bf16 %v1736_v17 }
 0x11f   :  { %3557 = vmatpush1.bf16.msra.mxu1 %v2218_v27  ;;  %v1747_v27 = vld [vmem:[#allocation6 + $0x1d8] sm:$0xff] }
 0x120   :  { %3558 = vmatprep.subr.bf16.mxu1 %v2227_v29  ;;  %v1744_v29 = vld [vmem:[#allocation6 + $0x1c0] sm:$0xff]  ;;  %v2315_v56 = vunpack.c.l.s8.bf16 %v1747_v27 }
 0x121   :  { %3231 = vmatpush1.bf16.msra.mxu0 %v2224_v30  ;;  %v2306_v30 = vunpack.c.h.s8.bf16 %v1738_v20  ;;  %v2312_v32 = vunpack.c.l.s8.bf16 %v1744_v29 }
 0x122   :  { %3232 = vmatprep.subr.bf16.mxu0 %v2233_v31  ;;  %v1746_v31 = vld [vmem:[#allocation6 + $0x1d0] sm:$0xff] }
 0x123   :  { %3559 = vmatpush1.bf16.msra.mxu1 %v2226_v33  ;;  %v2321_v33 = vunpack.c.h.s8.bf16 %v1745_v24 }
 0x124   :  { %3560 = vmatprep.subr.bf16.mxu1 %v2235_v34  ;;  %v2314_v34 = vunpack.c.l.s8.bf16 %v1746_v31 }
 0x125   :  { %3233 = vmatpush1.bf16.msra.mxu0 %v2232_v36  ;;  %v2323_v36 = vunpack.c.h.s8.bf16 %v1747_v27 }
 0x126   :  { %3234 = vmatprep.subr.bf16.mxu0 %v2241_v37  ;;  %v2320_v37 = vunpack.c.h.s8.bf16 %v1744_v29 }
 0x127   :  { %3561 = vmatpush1.bf16.msra.mxu1 %v2234_v38  ;;  %v7081_v38 = vld [vmem:[#allocation6 + $0x218] sm:$0xff] }
 0x128   :  { %3562 = vmatprep.subr.bf16.mxu1 %v2243_v40  ;;  %v2322_v40 = vunpack.c.h.s8.bf16 %v1746_v31 }
 0x129   :  { %3235 = vmatpush1.bf16.msra.mxu0 %v2240_v41  ;;  %v2331_v41 = vunpack.c.l.s8.bf16 %v7081_v38 }
 0x12a   :  { %3236 = vmatprep.subr.bf16.mxu0 %v2249_v43  ;;  %v7085_v43 = vshrl.u32 %v672_v42, 7 }
 0x12b   :  { %3563 = vmatpush1.bf16.msra.mxu1 %v2242_v45  ;;  %v7090_v45 = vld [vmem:[#allocation4] sm:$0xff] }
 0x12c   :  { %3564 = vmatprep.subr.bf16.mxu1 %v2251_v46  ;;  %v7088_v44 = vsub.s32 3, %v7085_v43  ;;  %v7093_v46 = vsub.s32 7, %v7085_v43  ;;  %v7096_v47 = vsub.s32 0, %v7085_v43 }
 0x12d   :  { %3237 = vmatpush1.bf16.msra.mxu0 %v2248_v48  ;;  %v7098_v48 = vld [vmem:[#allocation4 + $0x8] sm:$0xff] }
 0x12e   :  { %3238 = vmatprep.subr.bf16.mxu0 %v2257_v0  ;;  %v7101_v0 = vsub.s32 4, %v7085_v43  ;;  %v679_v50 = vrot.slane %v7090_v45, %v7093_v46  ;;  %v687_v53 = vrot.slane %v7098_v48, %v7093_v46  ;;  %v843_v55 = vrot.slane %v7098_v48, %v7096_v47 }
 0x12f   :  { %3565 = vmatpush1.bf16.msra.mxu1 %v2250_v49  ;;  %v675_v49 = vrot.slane %v7090_v45, %v7088_v44 }
 0x130   :  { %3566 = vmatprep.subr.bf16.mxu1 %v2259_v51  ;;  %v683_v51 = vrot.slane %v7098_v48, %v7088_v44  ;;  %v759_v59 = vrot.slane %v679_v50, %v7088_v44 }
 0x131   :  { %3239 = vmatpush1.bf16.msra.mxu0 %v2256_v52  ;;  %v835_v52 = vrot.slane %v7090_v45, %v7096_v47 }
 0x132   :  { %3240 = vmatprep.subr.bf16.mxu0 %v2265_v54  ;;  %v839_v54 = vrot.slane %v7090_v45, %v7101_v0 }
 0x133   :  { %3567 = vmatpush1.bf16.msra.mxu1 %v2258_v57  ;;  %v755_v57 = vrot.slane %v675_v49, %v7088_v44 }
 0x134   :  { %3568 = vmatprep.subr.bf16.mxu1 %v2267_v58  ;;  %v847_v58 = vrot.slane %v7098_v48, %v7101_v0 }
 0x135   :  { %3241 = vmatpush1.bf16.msra.mxu0 %v2264_v60  ;;  %v763_v60 = vrot.slane %v683_v51, %v7088_v44 }
 0x136   :  { %3242 = vmatprep.subr.bf16.mxu0 %v2273_v61  ;;  %v915_v61 = vrot.slane %v835_v52, %v7096_v47 }
 0x137   :  { %3569 = vmatpush1.bf16.msra.mxu1 %v2266_v62  ;;  %v767_v62 = vrot.slane %v687_v53, %v7088_v44 }
 0x138   :  { %3570 = vmatprep.subr.bf16.mxu1 %v2275_v1  ;;  %v919_v1 = vrot.slane %v839_v54, %v7096_v47 }
 0x139   :  { %3243 = vmatpush1.bf16.msra.mxu0 %v2272_v2  ;;  %v923_v2 = vrot.slane %v843_v55, %v7096_v47 }
 0x13a   :  { %3244 = vmatprep.subr.bf16.mxu0 %v2281_v4 }
 0x13b   :  { %3571 = vmatpush1.bf16.msra.mxu1 %v2274_v6  ;;  %v927_v6 = vrot.slane %v847_v58, %v7096_v47 }
 0x13c   :  { %3572 = vmatprep.subr.bf16.mxu1 %v2283_v7 }
 0x13d   :  { %3245 = vmatpush1.bf16.msra.mxu0 %v2280_v9 }
 0x13e   :  { %3246 = vmatprep.subr.bf16.mxu0 %v2289_v10 }
 0x13f   :  { %3573 = vmatpush1.bf16.msra.mxu1 %v2282_v11 }
 0x140   :  { %3574 = vmatprep.subr.bf16.mxu1 %v2291_v13 }
 0x141   :  { %3247 = vmatpush1.bf16.msra.mxu0 %v2288_v14 }
 0x142   :  { %3248 = vmatprep.subr.bf16.mxu0 %v2297_v16 }
 0x143   :  { %3575 = vmatpush1.bf16.msra.mxu1 %v2290_v18 }
 0x144   :  { %3576 = vmatprep.subr.bf16.mxu1 %v2299_v19 }
 0x145   :  { %3249 = vmatpush1.bf16.msra.mxu0 %v2296_v21 }
 0x146   :  { %3250 = vmatprep.subr.bf16.mxu0 %v2305_v22 }
 0x147   :  { %3577 = vmatpush1.bf16.msra.mxu1 %v2298_v23 }
 0x148   :  { %3578 = vmatprep.subr.bf16.mxu1 %v2307_v25 }
 0x149   :  { %3251 = vmatpush1.bf16.msra.mxu0 %v2304_v26 }
 0x14a   :  { %3252 = vmatprep.subr.bf16.mxu0 %v2313_v28 }
 0x14b   :  { %3579 = vmatpush1.bf16.msra.mxu1 %v2306_v30 }
 0x14c   :  { %3580 = vmatprep.subr.bf16.mxu1 %v2315_v56 }
 0x14d   :  { %3253 = vmatpush1.bf16.msra.mxu0 %v2312_v32 }
 0x14e   :  { %3254 = vmatprep.subr.bf16.mxu0 %v2321_v33 }
 0x14f   :  { %3581 = vmatpush1.bf16.msra.mxu1 %v2314_v34 }
 0x150   :  { %3582 = vmatprep.subr.bf16.mxu1 %v2323_v36 }
 0x151   :  { %3255 = vmatpush1.bf16.msra.mxu0 %v2320_v37 }
 0x152   :  { %3265 = vmatprep.subr.bf16.mxu0 %v2329_v39 }
 0x153   :  { %3583 = vmatpush1.bf16.msra.mxu1 %v2322_v40 }
 0x154   :  { %3593 = vmatprep.subr.bf16.mxu1 %v2331_v41 }
 0x187   :  { %v362_v63 = vpop.f32.mrb[0].mxu0 }
 0x188   :  { %v816_v3 = vmul.f32 %v755_v57, %v362_v63  ;;  %v364_v4 = vpop.f32.mrb[1].mxu0  ;;  %v403_v5 = vpop.f32.mrb[0].mxu1 }
 0x189   :  { %v817_v7 = vmul.f32 %v759_v59, %v364_v4  ;;  %v366_v8 = vpop.f32.mrb[2].mxu0  ;;  %v818_v9 = vmul.f32 %v763_v60, %v403_v5  ;;  %v405_v10 = vpop.f32.mrb[1].mxu1 }
 0x18a   :  { %v976_v11 = vadd.f32 %v915_v61, %v816_v3  ;;  %v367_v12 = vpop.f32.mrb[3].mxu0  ;;  %v819_v13 = vmul.f32 %v767_v62, %v405_v10  ;;  %v407_v14 = vpop.f32.mrb[2].mxu1  ;;  %v7133_v62 = vld [vmem:[#allocation4 + $0x10] sm:$0xff] }
 0x18b   :  { %v977_v15 = vadd.f32 %v919_v1, %v817_v7  ;;  %v978_v16 = vadd.f32 %v923_v2, %v818_v9  ;;  %v408_v17 = vpop.f32.mrb[3].mxu1  ;;  %v695_v9 = vrot.slane %v7133_v62, %v7093_v46  ;;  %v851_v12 = vrot.slane %v7133_v62, %v7096_v47 }
 0x18c   :  { %v992_v18 = vmax.f32 %v976_v11, 0.0  ;;  %v979_v19 = vadd.f32 %v927_v6, %v819_v13  ;;  %v691_v6 = vrot.slane %v7133_v62, %v7088_v44 }
 0x18d   :  { %v993_v20 = vmax.f32 %v977_v15, 0.0  ;;  %v994_v21 = vmax.f32 %v978_v16, 0.0  ;;  %v855_v15 = vrot.slane %v7133_v62, %v7101_v0 }
 0x18e   :  { %v1008_v22 = vrot.slane %v992_v18, 4  ;;  %v995_v23 = vmax.f32 %v979_v19, 0.0 }
 0x18f   :  { %v1014_v24 = vrot.slane %v993_v20, 4  ;;  %v1020_v25 = vrot.slane %v994_v21, 4 }
 0x190   :  { %v1009_v26 = vadd.f32 %v1008_v22, %v992_v18  ;;  %v1026_v27 = vrot.slane %v995_v23, 4 }
 0x191   :  { %v1015_v28 = vadd.f32 %v1014_v24, %v993_v20  ;;  %v1021_v29 = vadd.f32 %v1020_v25, %v994_v21  ;;  %v931_v24 = vrot.slane %v851_v12, %v7096_v47 }
 0x192   :  { %v1010_v30 = vrot.slane %v1009_v26, 2  ;;  %v1027_v56 = vadd.f32 %v1026_v27, %v995_v23 }
 0x193   :  { %v1016_v31 = vrot.slane %v1015_v28, 2  ;;  %v1022_v32 = vrot.slane %v1021_v29, 2 }
 0x194   :  { %v1011_v33 = vadd.f32 %v1010_v30, %v1009_v26  ;;  %v1028_v34 = vrot.slane %v1027_v56, 2 }
 0x195   :  { %v1017_v36 = vadd.f32 %v1016_v31, %v1015_v28  ;;  %v1023_v37 = vadd.f32 %v1022_v32, %v1021_v29  ;;  %v935_v28 = vrot.slane %v855_v15, %v7096_v47 }
 0x196   :  { %v1012_v39 = vrot.slane %v1011_v33, 1  ;;  %v1029_v40 = vadd.f32 %v1028_v34, %v1027_v56 }
 0x197   :  { %v1018_v41 = vrot.slane %v1017_v36, 1  ;;  %v1024_v42 = vrot.slane %v1023_v37, 1 }
 0x198   :  { %v1013_v49 = vadd.f32 %v1012_v39, %v1011_v33  ;;  %v1030_v50 = vrot.slane %v1029_v40, 1 }
 0x199   :  { %v1019_v51 = vadd.f32 %v1018_v41, %v1017_v36  ;;  %v1025_v52 = vadd.f32 %v1024_v42, %v1023_v37 }
 0x19a   :  { %v1104_v53 = vmul.f32 0.125, %v1013_v49  ;;  %v1031_v54 = vadd.f32 %v1030_v50, %v1029_v40 }
 0x19b   :  { %v1105_v55 = vmul.f32 0.125, %v1019_v51  ;;  %v1106_v57 = vmul.f32 0.125, %v1025_v52 }
 0x19c   :  { %v7127_v58 = vsub.f32 %v992_v18, %v1104_v53  ;;  %v1107_v59 = vmul.f32 0.125, %v1031_v54  ;;  %v771_v18 = vrot.slane %v691_v6, %v7088_v44 }
 0x19d   :  { %v7129_v60 = vsub.f32 %v993_v20, %v1105_v55  ;;  %v7131_v61 = vsub.f32 %v994_v21, %v1106_v57  ;;  %v775_v21 = vrot.slane %v695_v9, %v7088_v44 }
 0x19e   :  { %v1136_v63 = vmul.f32 %v7127_v58, %v7127_v58  ;;  %v7137_v1 = vsub.f32 %v995_v23, %v1107_v59 }
 0x19f   :  { %v1137_v2 = vmul.f32 %v7129_v60, %v7129_v60  ;;  %v1138_v3 = vmul.f32 %v7131_v61, %v7131_v61 }
 0x1a0   :  { %v1152_v4 = vrot.slane %v1136_v63, 4  ;;  %v1139_v5 = vmul.f32 %v7137_v1, %v7137_v1 }
 0x1a1   :  { %v1158_v7 = vrot.slane %v1137_v2, 4  ;;  %v1164_v8 = vrot.slane %v1138_v3, 4 }
 0x1a2   :  { %v1153_v10 = vadd.f32 %v1152_v4, %v1136_v63  ;;  %v1170_v11 = vrot.slane %v1139_v5, 4 }
 0x1a3   :  { %v1159_v13 = vadd.f32 %v1158_v7, %v1137_v2  ;;  %v1165_v14 = vadd.f32 %v1164_v8, %v1138_v3 }
 0x1a4   :  { %v1154_v16 = vrot.slane %v1153_v10, 2  ;;  %v1171_v17 = vadd.f32 %v1170_v11, %v1139_v5 }
 0x1a5   :  { %v1160_v19 = vrot.slane %v1159_v13, 2  ;;  %v1166_v20 = vrot.slane %v1165_v14, 2 }
 0x1a6   :  { %v1155_v22 = vadd.f32 %v1154_v16, %v1153_v10  ;;  %v1172_v23 = vrot.slane %v1171_v17, 2 }
 0x1a7   :  { %v1161_v25 = vadd.f32 %v1160_v19, %v1159_v13  ;;  %v1167_v26 = vadd.f32 %v1166_v20, %v1165_v14  ;;  %v444_v27 = vpop.f32.mrb[4].mxu0 }
 0x1a8   :  { %v1156_v29 = vrot.slane %v1155_v22, 1  ;;  %v1173_v30 = vadd.f32 %v1172_v23, %v1171_v17  ;;  %v820_v56 = vmul.f32 %v771_v18, %v444_v27  ;;  %v446_v31 = vpop.f32.mrb[5].mxu0 }
 0x1a9   :  { %v1162_v32 = vrot.slane %v1161_v25, 1  ;;  %v1168_v33 = vrot.slane %v1167_v26, 1  ;;  %v821_v34 = vmul.f32 %v775_v21, %v446_v31  ;;  %v448_v36 = vpop.f32.mrb[6].mxu0  ;;  %v7157_v37 = vpop.f32.mrb[4].mxu1 }
 0x1aa   :  { %v1157_v39 = vadd.f32 %v1156_v29, %v1155_v22  ;;  %v1174_v40 = vrot.slane %v1173_v30, 1  ;;  %v980_v41 = vadd.f32 %v931_v24, %v820_v56  ;;  %v449_v42 = vpop.f32.mrb[7].mxu0  ;;  %v7159_v49 = vpop.f32.mrb[5].mxu1  ;;  %v7162_v24 = vsub.s32 2, %v7085_v43 }
 0x1ab   :  { %v1163_v50 = vadd.f32 %v1162_v32, %v1161_v25  ;;  %v1169_v51 = vadd.f32 %v1168_v33, %v1167_v26  ;;  %v981_v52 = vadd.f32 %v935_v28, %v821_v34  ;;  %v489_v53 = vpop.f32.mrb[6].mxu1  ;;  %v7165_v25 = vsub.s32 6, %v7085_v43 }
 0x1ac   :  { %v1248_v54 = vmul.f32 0.125, %v1157_v39  ;;  %v1175_v55 = vadd.f32 %v1174_v40, %v1173_v30  ;;  %v996_v57 = vmax.f32 %v980_v41, 0.0  ;;  %v490_v59 = vpop.f32.mrb[7].mxu1  ;;  %v7170_v56 = vsub.s32 1, %v7085_v43 }
 0x1ad   :  { %v1249_v63 = vmul.f32 0.125, %v1163_v50  ;;  %v1250_v2 = vmul.f32 0.125, %v1169_v51  ;;  %v997_v3 = vmax.f32 %v981_v52, 0.0  ;;  %v7175_v33 = vsub.s32 5, %v7085_v43 }
 0x1ae   :  { %v1264_v4 = vadd.f32 1e-05, %v1248_v54  ;;  %v1251_v5 = vmul.f32 0.125, %v1175_v55  ;;  %v1032_v6 = vrot.slane %v996_v57, 4  ;;  %v1519_v39 = vrot.slane %v7090_v45, %v7165_v25 }
 0x1af   :  { %v1265_v7 = vadd.f32 1e-05, %v1249_v63  ;;  %v1266_v8 = vadd.f32 1e-05, %v1250_v2  ;;  %v1038_v9 = vrot.slane %v997_v3, 4  ;;  %v1515_v40 = vrot.slane %v7090_v45, %v7162_v24 }
 0x1b0   :  { %6636 = vrsqrt.f32 %v1264_v4  ;;  %v1267_v10 = vadd.f32 1e-05, %v1251_v5  ;;  %v1033_v11 = vadd.f32 %v1032_v6, %v996_v57  ;;  %v1527_v43 = vrot.slane %v7098_v48, %v7165_v25  ;;  %v7196_v5 = vld [vmem:[#allocation6 + $0x200] sm:$0xff]  ;;  %v7198_v6 = vld [vmem:[#allocation6 + $0x210] sm:$0xff] }
 0x1b1   :  { %6638 = vrsqrt.f32 %v1265_v7  ;;  %v1039_v12 = vadd.f32 %v1038_v9, %v997_v3  ;;  %v1599_v59 = vrot.slane %v1519_v39, %v7162_v24  ;;  %v1595_v63 = vrot.slane %v1515_v40, %v7162_v24 }
 0x1b2   :  { %6640 = vrsqrt.f32 %v1266_v8  ;;  %v1034_v13 = vrot.slane %v1033_v11, 2  ;;  %v1607_v9 = vrot.slane %v1527_v43, %v7162_v24 }
 0x1b3   :  { %6642 = vrsqrt.f32 %v1267_v10  ;;  %v1040_v14 = vrot.slane %v1039_v12, 2 }
 0x1b4   :  { %v1035_v15 = vadd.f32 %v1034_v13, %v1033_v11 }
 0x1b5   :  { %v1041_v16 = vadd.f32 %v1040_v14, %v1039_v12 }
 0x1b6   :  { %v1036_v17 = vrot.slane %v1035_v15, 1 }
 0x1b7   :  { %v1042_v18 = vrot.slane %v1041_v16, 1 }
 0x1b8   :  { %v1037_v19 = vadd.f32 %v1036_v17, %v1035_v15  ;;  %v7205_v15 = vld [vmem:[#allocation4 + $0x18] sm:$0xff]  ;;  %v2330_v17 = vunpack.c.l.s8.bf16 %v7198_v6 }
 0x1b9   :  { %v1043_v20 = vadd.f32 %v1042_v18, %v1041_v16  ;;  %v2328_v16 = vunpack.c.l.s8.bf16 %v7196_v5 }
 0x1ba   :  { %v6637_v21 = vpop.eup %6636  ;;  %v1108_v22 = vmul.f32 0.125, %v1037_v19 }
 0x1bb   :  { %v6639_v23 = vpop.eup %6638  ;;  %v1109_v26 = vmul.f32 0.125, %v1043_v20 }
 0x1bc   :  { %v6641_v27 = vpop.eup %6640  ;;  %v1312_v28 = vcombine.low %v6637_v21, %v6639_v23  ;;  %v7167_v29 = vsub.f32 %v996_v57, %v1108_v22 }
 0x1bd   :  { %v6643_v30 = vpop.eup %6642  ;;  %v7172_v31 = vsub.f32 %v997_v3, %v1109_v26 }
 0x1be   :  { %v1320_v32 = vrot.slane %v1312_v28, 7  ;;  %v1313_v34 = vcombine.low %v6641_v27, %v6643_v30  ;;  %v1140_v36 = vmul.f32 %v7167_v29, %v7167_v29  ;;  %v699_v28 = vrot.slane %v7205_v15, %v7088_v44 }
 0x1bf   :  { %v1141_v41 = vmul.f32 %v7172_v31, %v7172_v31  ;;  %v703_v30 = vrot.slane %v7205_v15, %v7093_v46 }
 0x1c0   :  { %v1336_v42 = vmul.f32 %v1320_v32, %v7090_v45  ;;  %v1321_v50 = vrot.slane %v1313_v34, 7  ;;  %v1176_v51 = vrot.slane %v1140_v36, 4 }
 0x1c1   :  { %v1182_v52 = vrot.slane %v1141_v41, 4 }
 0x1c2   :  { %v1359_v53 = vrot.slane %v1336_v42, %v7175_v33  ;;  %v1337_v54 = vmul.f32 %v1321_v50, %v7098_v48  ;;  %v1355_v55 = vrot.slane %v1336_v42, %v7170_v56  ;;  %v1177_v57 = vadd.f32 %v1176_v51, %v1140_v36 }
 0x1c3   :  { %v1183_v2 = vadd.f32 %v1182_v52, %v1141_v41  ;;  %v2339_v50 = vunpack.c.h.s8.bf16 %v7081_v38  ;;  %v779_v38 = vrot.slane %v699_v28, %v7088_v44 }
 0x1c4   :  { %v1439_v45 = vrot.slane %v1359_v53, %v7170_v56  ;;  %v1367_v3 = vrot.slane %v1337_v54, %v7175_v33  ;;  %v1435_v4 = vrot.slane %v1355_v55, %v7170_v56  ;;  %v1178_v7 = vrot.slane %v1177_v57, 2  ;;  %v1761_v53 = vld [vmem:[#allocation6 + $0x248] sm:$0xff] }
 0x1c5   :  { %v1184_v8 = vrot.slane %v1183_v2, 2  ;;  %v1363_v10 = vrot.slane %v1337_v54, %v7170_v56  ;;  %v1763_v54 = vld [vmem:[#allocation6 + $0x258] sm:$0xff] }
 0x1c6   :  { %v1497_v11 = vmul.f32 %v1439_v45, %v7129_v60  ;;  %v1447_v12 = vrot.slane %v1367_v3, %v7170_v56  ;;  %v1496_v13 = vmul.f32 %v1435_v4, %v7127_v58  ;;  %v1179_v14 = vadd.f32 %v1178_v7, %v1177_v57 }
 0x1c7   :  { %v1185_v18 = vadd.f32 %v1184_v8, %v1183_v2  ;;  %v7209_v19 = vpop.f32.mrb[8].mxu0  ;;  %v1443_v20 = vrot.slane %v1363_v10, %v7170_v56  ;;  %v2338_v45 = vunpack.c.h.s8.bf16 %v7198_v6  ;;  %v783_v3 = vrot.slane %v703_v30, %v7088_v44  ;;  %v1762_v10 = vld [vmem:[#allocation6 + $0x250] sm:$0xff] }
 0x1c8   :  { %v1499_v21 = vmul.f32 %v1447_v12, %v7137_v1  ;;  %v1657_v22 = vadd.f32 %v1599_v59, %v1497_v11  ;;  %v1656_v60 = vadd.f32 %v1595_v63, %v1496_v13  ;;  %v1180_v23 = vrot.slane %v1179_v14, 1  ;;  %v7213_v26 = vpop.f32.mrb[9].mxu0 }
 0x1c9   :  { %v1186_v58 = vrot.slane %v1185_v18, 1  ;;  %v7216_v27 = vmul.f32 %v1443_v20, %v7131_v61  ;;  %v530_v32 = vpop.f32.mrb[10].mxu0  ;;  %v7222_v34 = vpop.f32.mrb[8].mxu1  ;;  %v2337_v61 = vunpack.c.h.s8.bf16 %v7079_v35  ;;  %v2336_v35 = vunpack.c.h.s8.bf16 %v7196_v5 }
 0x1ca   :  { %v7224_v36 = vpack.c.bf16 %v1657_v22, %v1657_v22  ;;  %v7226_v1 = vpack.c.bf16 %v1656_v60, %v1656_v60  ;;  %v1181_v39 = vadd.f32 %v1180_v23, %v1179_v14  ;;  %v1659_v40 = vadd.f32 %v1607_v9, %v1499_v21  ;;  %v531_v41 = vpop.f32.mrb[11].mxu0  ;;  %v7228_v42 = vpop.f32.mrb[9].mxu1  ;;  %v1760_v9 = vld [vmem:[#allocation6 + $0x240] sm:$0xff]  ;;  %v7258_v21 = vld [vmem:[#allocation6 + $0x298] sm:$0xff]  ;;  %v7262_v23 = vld [vmem:[#allocation6 + $0x290] sm:$0xff] }
 0x1cb   :  { %v1187_v51 = vadd.f32 %v1186_v58, %v1185_v18  ;;  %v571_v52 = vpop.f32.mrb[10].mxu1  ;;  %v859_v63 = vrot.slane %v7205_v15, %v7096_v47  ;;  %v863_v4 = vrot.slane %v7205_v15, %v7101_v0  ;;  %v2345_v5 = vunpack.c.l.s8.bf16 %v1761_v53  ;;  %v7252_v15 = vld [vmem:[#allocation6 + $0x288] sm:$0xff] }
 0x1cc   :  { %3256 = vmatprep.mubr.bf16.mxu0 %v7224_v36  ;;  %3584 = vmatprep.mubr.bf16.mxu1 %v7224_v36  ;;  %v1252_v43 = vmul.f32 0.125, %v1181_v39  ;;  %v7234_v55 = vpack.c.bf16 %v1659_v40, %v1659_v40  ;;  %v572_v57 = vpop.f32.mrb[11].mxu1  ;;  %v2347_v8 = vunpack.c.l.s8.bf16 %v1763_v54  ;;  %v1523_v6 = vrot.slane %v7098_v48, %v7162_v24  ;;  %v7256_v18 = vld [vmem:[#allocation4 + $0x28] sm:$0xff] }
 0x1cd   :  { %3257 = vmatmul.mubr.bf16.vlgmr.msra.gmra.mrb[16].mxu0 %v7226_v1  ;;  %3585 = vmatmul.mubr.bf16.vlgmr.msra.gmra.mrb[16].mxu1 %v7226_v1  ;;  %v1253_v59 = vmul.f32 0.125, %v1187_v51  ;;  %v822_v11 = vmul.f32 %v779_v38, %v7157_v37  ;;  %v939_v12 = vrot.slane %v859_v63, %v7096_v47  ;;  %v2344_v13 = vunpack.c.l.s8.bf16 %v1760_v9  ;;  %v7260_v37 = vld [vmem:[#allocation6 + $0x280] sm:$0xff]  ;;  %v7274_v41 = vld [vmem:[#allocation6 + $0x2c8] sm:$0xff] }
 0x1ce   :  { %3266 = vmatpush1.bf16.msra.mxu0 %v2328_v16  ;;  %3594 = vmatpush1.bf16.msra.mxu1 %v2330_v17  ;;  %v1268_v2 = vadd.f32 1e-05, %v1252_v43  ;;  %v2346_v14 = vunpack.c.l.s8.bf16 %v1762_v10  ;;  %v823_v16 = vmul.f32 %v783_v3, %v7159_v49  ;;  %v943_v17 = vrot.slane %v863_v4, %v7096_v47 }
 0x1cf   :  { %3267 = vmatprep.subr.bf16.mxu0 %v2337_v61  ;;  %3595 = vmatprep.subr.bf16.mxu1 %v2339_v50  ;;  %v1269_v7 = vadd.f32 1e-05, %v1253_v59  ;;  %v2353_v48 = vunpack.c.h.s8.bf16 %v1761_v53  ;;  %v2355_v20 = vunpack.c.h.s8.bf16 %v1763_v54  ;;  %v2352_v22 = vunpack.c.h.s8.bf16 %v1760_v9  ;;  %v7281_v53 = vld [vmem:[#allocation6 + $0x2d8] sm:$0xff]  ;;  %v7287_v59 = vld [vmem:[#allocation6 + $0x2d0] sm:$0xff]  ;;  %v7299_v9 = vld [vmem:[#allocation6 + $0x308] sm:$0xff] }
 0x1d0   :  { %6644 = vrsqrt.f32 %v1268_v2  ;;  %3297 = vmatprep.mubr.bf16.mxu0 %v7234_v55  ;;  %3625 = vmatprep.mubr.bf16.mxu1 %v7234_v55  ;;  %v2354_v60 = vunpack.c.h.s8.bf16 %v1762_v10  ;;  %v7265_v58 = vrot.slane %v1523_v6, %v7162_v24  ;;  %v2361_v49 = vunpack.c.l.s8.bf16 %v7252_v15 }
 0x1d1   :  { %6646 = vrsqrt.f32 %v1269_v7  ;;  %v982_v28 = vadd.f32 %v939_v12, %v822_v11  ;;  %v715_v30 = vrot.slane %v7256_v18, %v7088_v44  ;;  %v875_v32 = vrot.slane %v7256_v18, %v7096_v47 }
 0x1d2   :  { %3268 = vmatpush1.bf16.msra.mxu0 %v2336_v35  ;;  %3596 = vmatpush1.bf16.msra.mxu1 %v2338_v45  ;;  %v2363_v39 = vunpack.c.l.s8.bf16 %v7258_v21  ;;  %v2360_v40 = vunpack.c.l.s8.bf16 %v7260_v37  ;;  %v983_v61 = vadd.f32 %v943_v17, %v823_v16  ;;  %v719_v50 = vrot.slane %v7256_v18, %v7093_v46  ;;  %v7285_v35 = vld [vmem:[#allocation6 + $0x2c0] sm:$0xff] }
 0x1d3   :  { %3269 = vmatprep.subr.bf16.mxu0 %v2345_v5  ;;  %3597 = vmatprep.subr.bf16.mxu1 %v2347_v8  ;;  %v2362_v51 = vunpack.c.l.s8.bf16 %v7262_v23  ;;  %v2369_v52 = vunpack.c.h.s8.bf16 %v7252_v15  ;;  %v2371_v43 = vunpack.c.h.s8.bf16 %v7258_v21  ;;  %v795_v54 = vrot.slane %v715_v30, %v7088_v44  ;;  %v7308_v15 = vld [vmem:[#allocation6 + $0x318] sm:$0xff]  ;;  %v7314_v21 = vld [vmem:[#allocation6 + $0x310] sm:$0xff] }
 0x1d4   :  { %v2368_v57 = vunpack.c.h.s8.bf16 %v7260_v37  ;;  %v955_v38 = vrot.slane %v875_v32, %v7096_v47  ;;  %v799_v63 = vrot.slane %v719_v50, %v7088_v44  ;;  %v879_v2 = vrot.slane %v7256_v18, %v7101_v0 }
 0x1d5   :  { %v2370_v45 = vunpack.c.h.s8.bf16 %v7262_v23  ;;  %v2377_v3 = vunpack.c.l.s8.bf16 %v7274_v41  ;;  %v7295_v4 = vmax.f32 %v982_v28, 0.0  ;;  %v826_v7 = vmul.f32 %v795_v54, %v7222_v34 }
 0x1d6   :  { %3270 = vmatpush1.bf16.msra.mxu0 %v2344_v13  ;;  %3598 = vmatpush1.bf16.msra.mxu1 %v2346_v14  ;;  %v2379_v8 = vunpack.c.l.s8.bf16 %v7281_v53  ;;  %v7301_v10 = vmax.f32 %v983_v61, 0.0  ;;  %v827_v6 = vmul.f32 %v799_v63, %v7228_v42  ;;  %v959_v11 = vrot.slane %v879_v2, %v7096_v47  ;;  %v7312_v42 = vld [vmem:[#allocation6 + $0x300] sm:$0xff] }
 0x1d7   :  { %3271 = vmatprep.subr.bf16.mxu0 %v2353_v48  ;;  %3599 = vmatprep.subr.bf16.mxu1 %v2355_v20  ;;  %v2376_v13 = vunpack.c.l.s8.bf16 %v7285_v35  ;;  %v2378_v34 = vunpack.c.l.s8.bf16 %v7287_v59  ;;  %v2385_v14 = vunpack.c.h.s8.bf16 %v7274_v41  ;;  %v986_v16 = vadd.f32 %v955_v38, %v826_v7  ;;  %v7336_v7 = vld [vmem:[#allocation6 + $0x348] sm:$0xff] }
 0x1d8   :  { %v2387_v48 = vunpack.c.h.s8.bf16 %v7281_v53  ;;  %v2384_v20 = vunpack.c.h.s8.bf16 %v7285_v35  ;;  %v987_v37 = vadd.f32 %v959_v11, %v827_v6  ;;  %v1044_v23 = vrot.slane %v7295_v4, 4 }
 0x1d9   :  { %v7321_v28 = vmax.f32 %v986_v16, 0.0  ;;  %v8103_v35 = vunpack.c.l.s8.bf16 %v7308_v15 }
 0x1da   :  { %v6645_v5 = vpop.eup %6644  ;;  %3272 = vmatpush1.bf16.msra.mxu0 %v2352_v22  ;;  %3600 = vmatpush1.bf16.msra.mxu1 %v2354_v60  ;;  %v2386_v22 = vunpack.c.h.s8.bf16 %v7287_v59  ;;  %v2393_v60 = vunpack.c.l.s8.bf16 %v7299_v9  ;;  %v7325_v61 = vmax.f32 %v987_v37, 0.0 }
 0x1db   :  { %v6647_v12 = vpop.eup %6646  ;;  %3273 = vmatprep.subr.bf16.mxu0 %v2361_v49  ;;  %3601 = vmatprep.subr.bf16.mxu1 %v2363_v39  ;;  %v7319_v49 = vld [vmem:[#allocation4 + $0x30] sm:$0xff]  ;;  %v1050_v39 = vrot.slane %v7301_v10, 4  ;;  %v1068_v38 = vrot.slane %v7321_v28, 4 }
 0x1dc   :  { %v1314_v17 = vcombine.low %v6645_v5, %v6647_v12  ;;  %v1074_v2 = vrot.slane %v7325_v61, 4  ;;  %v727_v5 = vrot.slane %v7319_v49, %v7093_v46 }
 0x1dd   :  { %v1069_v6 = vadd.f32 %v1068_v38, %v7321_v28  ;;  %v1051_v16 = vadd.f32 %v1050_v39, %v7301_v10 }
 0x1de   :  { %v1322_v30 = vrot.slane %v1314_v17, 7  ;;  %3274 = vmatpush1.bf16.msra.mxu0 %v2360_v40  ;;  %3602 = vmatpush1.bf16.msra.mxu1 %v2362_v51  ;;  %v723_v51 = vrot.slane %v7319_v49, %v7088_v44  ;;  %v1075_v17 = vadd.f32 %v1074_v2, %v7325_v61  ;;  %v7357_v2 = vld [vmem:[#allocation6 + $0x340] sm:$0xff]  ;;  %v807_v37 = vrot.slane %v727_v5, %v7088_v44 }
 0x1df   :  { %3275 = vmatprep.subr.bf16.mxu0 %v2369_v52  ;;  %3603 = vmatprep.subr.bf16.mxu1 %v2371_v43  ;;  %v1045_v52 = vadd.f32 %v1044_v23, %v7295_v4  ;;  %v883_v43 = vrot.slane %v7319_v49, %v7096_v47  ;;  %v887_v23 = vrot.slane %v7319_v49, %v7101_v0 }
 0x1e0   :  { %v1338_v63 = vmul.f32 %v1322_v30, %v7133_v62  ;;  %v1070_v30 = vrot.slane %v1069_v6, 2  ;;  %v803_v39 = vrot.slane %v723_v51, %v7088_v44  ;;  %v1076_v12 = vrot.slane %v1075_v17, 2 }
 0x1e1   :  { %v967_v5 = vrot.slane %v887_v23, %v7096_v47 }
 0x1e2   :  { %v1375_v11 = vrot.slane %v1338_v63, %v7175_v33  ;;  %3276 = vmatpush1.bf16.msra.mxu0 %v2368_v57  ;;  %3604 = vmatpush1.bf16.msra.mxu1 %v2370_v45  ;;  %v1371_v38 = vrot.slane %v1338_v63, %v7170_v56  ;;  %v7354_v45 = vld [vmem:[#allocation6 + $0x358] sm:$0xff]  ;;  %v1071_v54 = vadd.f32 %v1070_v30, %v1069_v6 }
 0x1e3   :  { %3277 = vmatprep.subr.bf16.mxu0 %v2377_v3  ;;  %3605 = vmatprep.subr.bf16.mxu1 %v2379_v8  ;;  %v7359_v3 = vld [vmem:[#allocation6 + $0x350] sm:$0xff]  ;;  %v1046_v8 = vrot.slane %v1045_v52, 2  ;;  %v963_v57 = vrot.slane %v883_v43, %v7096_v47  ;;  %v1077_v51 = vadd.f32 %v1076_v12, %v1075_v17  ;;  %v2411_v50 = vunpack.c.l.s8.bf16 %v7354_v45  ;;  %v7381_v12 = vld [vmem:[#allocation6 + $0x380] sm:$0xff] }
 0x1e4   :  { %v1455_v40 = vrot.slane %v1375_v11, %v7170_v56  ;;  %v1451_v53 = vrot.slane %v1371_v38, %v7170_v56  ;;  %v1052_v11 = vrot.slane %v1051_v16, 2  ;;  %v1072_v6 = vrot.slane %v1071_v54, 1 }
 0x1e5   :  { %v1078_v41 = vrot.slane %v1077_v51, 1  ;;  %v1047_v17 = vadd.f32 %v1046_v8, %v1045_v52 }
 0x1e6   :  { %v7364_v63 = vmul.f32 %v1455_v40, %v7172_v31  ;;  %3278 = vmatpush1.bf16.msra.mxu0 %v2376_v13  ;;  %3606 = vmatpush1.bf16.msra.mxu1 %v2378_v34  ;;  %v7372_v30 = vmul.f32 %v1451_v53, %v7167_v29  ;;  %v7376_v34 = vld [vmem:[#allocation6 + $0x388] sm:$0xff]  ;;  %v1073_v38 = vadd.f32 %v1072_v6, %v1071_v54  ;;  %v8108_v6 = vunpack.c.h.s8.bf16 %v7312_v42 }
 0x1e7   :  { %3279 = vmatprep.subr.bf16.mxu0 %v2385_v14  ;;  %3607 = vmatprep.subr.bf16.mxu1 %v2387_v48  ;;  %v608_v32 = vpop.f32.mrb[12].mxu0  ;;  %v7379_v48 = vld [vmem:[#allocation6 + $0x398] sm:$0xff]  ;;  %v7391_v14 = vld [vmem:[#allocation6 + $0x390] sm:$0xff]  ;;  %v1053_v13 = vadd.f32 %v1052_v11, %v1051_v16  ;;  %v1079_v11 = vadd.f32 %v1078_v41, %v1077_v51 }
 0x1e8   :  { %v828_v40 = vmul.f32 %v803_v39, %v608_v32  ;;  %v610_v43 = vpop.f32.mrb[13].mxu0  ;;  %v2419_v32 = vunpack.c.h.s8.bf16 %v7354_v45  ;;  %v1114_v54 = vmul.f32 0.125, %v1073_v38  ;;  %v7418_v51 = vld [vmem:[#allocation6 + $0x3d8] sm:$0xff] }
 0x1e9   :  { %v829_v23 = vmul.f32 %v807_v37, %v610_v43  ;;  %v612_v29 = vpop.f32.mrb[14].mxu0  ;;  %v7383_v53 = vpop.f32.mrb[12].mxu1  ;;  %v7406_v43 = vld [vmem:[#allocation6 + $0x3c8] sm:$0xff]  ;;  %v1054_v41 = vrot.slane %v1053_v13, 1  ;;  %v7461_v39 = vld [vmem:[#allocation4 + $0x38] sm:$0xff] }
 0x1ea   :  { %3280 = vmatpush1.bf16.msra.mxu0 %v2384_v20  ;;  %3608 = vmatpush1.bf16.msra.mxu1 %v2386_v22  ;;  %v988_v31 = vadd.f32 %v963_v57, %v828_v40  ;;  %v613_v52 = vpop.f32.mrb[15].mxu0  ;;  %v7393_v37 = vpop.f32.mrb[13].mxu1  ;;  %v1048_v29 = vrot.slane %v1047_v17, 1  ;;  %v7447_v20 = vld [vmem:[#allocation4 + $0x20] sm:$0xff] }
 0x1eb   :  { %3281 = vmatprep.subr.bf16.mxu0 %v2393_v60  ;;  %3609 = vmatprep.subr.bf16.mxu1 %v8103_v35  ;;  %v989_v22 = vadd.f32 %v967_v5, %v829_v23  ;;  %v653_v8 = vpop.f32.mrb[14].mxu1  ;;  %v7411_v35 = vsub.f32 %v7321_v28, %v1114_v54  ;;  %v8104_v5 = vunpack.c.l.s8.bf16 %v7312_v42  ;;  %v8105_v23 = vunpack.c.l.s8.bf16 %v7314_v21 }
 0x1ec   :  { %v7403_v57 = vmax.f32 %v988_v31, 0.0  ;;  %v654_v40 = vpop.f32.mrb[15].mxu1  ;;  %v1115_v8 = vmul.f32 0.125, %v1079_v11  ;;  %v8107_v28 = vunpack.c.h.s8.bf16 %v7308_v15  ;;  %v8109_v60 = vunpack.c.h.s8.bf16 %v7314_v21 }
 0x1ed   :  { %v7408_v52 = vmax.f32 %v989_v22, 0.0  ;;  %v8106_v22 = vunpack.c.h.s8.bf16 %v7299_v9  ;;  %v1146_v31 = vmul.f32 %v7411_v35, %v7411_v35  ;;  %v7434_v9 = vld [vmem:[#allocation6 + $0x3d0] sm:$0xff]  ;;  %v1049_v40 = vadd.f32 %v1048_v29, %v1047_v17 }
 0x1ee   :  { %3282 = vmatpush1.bf16.msra.mxu0 %v8104_v5  ;;  %3610 = vmatpush1.bf16.msra.mxu1 %v8105_v23  ;;  %v1080_v38 = vrot.slane %v7403_v57, 4  ;;  %v7427_v5 = vld [vmem:[#allocation6 + $0x3c0] sm:$0xff]  ;;  %v8110_v17 = vunpack.c.l.s8.bf16 %v7336_v7  ;;  %v2442_v42 = vunpack.c.l.s8.bf16 %v7434_v9  ;;  %v8112_v21 = vunpack.c.l.s8.bf16 %v7359_v3 }
 0x1ef   :  { %3283 = vmatprep.subr.bf16.mxu0 %v8106_v22  ;;  %3611 = vmatprep.subr.bf16.mxu1 %v8107_v28  ;;  %v1086_v23 = vrot.slane %v7408_v52, 4  ;;  %v7438_v22 = vsub.f32 %v7325_v61, %v1115_v8  ;;  %v1212_v16 = vrot.slane %v1146_v31, 4  ;;  %v1110_v11 = vmul.f32 0.125, %v1049_v40 }
 0x1f0   :  { %v1081_v15 = vadd.f32 %v1080_v38, %v7403_v57  ;;  %v1055_v38 = vadd.f32 %v1054_v41, %v1053_v13  ;;  %v8113_v13 = vunpack.c.h.s8.bf16 %v7336_v7  ;;  %v871_v40 = vrot.slane %v7447_v20, %v7101_v0 }
 0x1f1   :  { %v1087_v54 = vadd.f32 %v1086_v23, %v7408_v52  ;;  %v1147_v61 = vmul.f32 %v7438_v22, %v7438_v22  ;;  %v707_v23 = vrot.slane %v7447_v20, %v7088_v44  ;;  %v731_v7 = vrot.slane %v7461_v39, %v7088_v44 }
 0x1f2   :  { %3284 = vmatpush1.bf16.msra.mxu0 %v8108_v6  ;;  %3612 = vmatpush1.bf16.msra.mxu1 %v8109_v60  ;;  %v1082_v59 = vrot.slane %v1081_v15, 2  ;;  %v1213_v60 = vadd.f32 %v1212_v16, %v1146_v31  ;;  %v711_v16 = vrot.slane %v7447_v20, %v7093_v46  ;;  %v1111_v31 = vmul.f32 0.125, %v1055_v38 }
 0x1f3   :  { %3285 = vmatprep.subr.bf16.mxu0 %v8110_v17  ;;  %3613 = vmatprep.subr.bf16.mxu1 %v2411_v50  ;;  %v1088_v6 = vrot.slane %v1087_v54, 2  ;;  %v1218_v8 = vrot.slane %v1147_v61, 4  ;;  %v8111_v50 = vunpack.c.l.s8.bf16 %v7357_v2 }
 0x1f4   :  { %v1083_v41 = vadd.f32 %v1082_v59, %v1081_v15  ;;  %v1214_v28 = vrot.slane %v1213_v60, 2 }
 0x1f5   :  { %v1089_v17 = vadd.f32 %v1088_v6, %v1087_v54  ;;  %v1219_v15 = vadd.f32 %v1218_v8, %v1147_v61  ;;  %v867_v54 = vrot.slane %v7447_v20, %v7096_v47  ;;  %v7482_v61 = vsub.f32 %v7295_v4, %v1110_v11 }
 0x1f6   :  { %3286 = vmatpush1.bf16.msra.mxu0 %v8111_v50  ;;  %3614 = vmatpush1.bf16.msra.mxu1 %v8112_v21  ;;  %v1084_v59 = vrot.slane %v1083_v41, 1  ;;  %v1215_v21 = vadd.f32 %v1214_v28, %v1213_v60  ;;  %v1535_v50 = vrot.slane %v7133_v62, %v7165_v25  ;;  %v8114_v8 = vunpack.c.h.s8.bf16 %v7357_v2 }
 0x1f7   :  { %3287 = vmatprep.subr.bf16.mxu0 %v8113_v13  ;;  %3615 = vmatprep.subr.bf16.mxu1 %v2419_v32  ;;  %v1090_v6 = vrot.slane %v1089_v17, 1  ;;  %v1220_v29 = vrot.slane %v1219_v15, 2  ;;  %v891_v13 = vrot.slane %v7461_v39, %v7096_v47  ;;  %v8115_v28 = vunpack.c.h.s8.bf16 %v7359_v3 }
 0x1f8   :  { %v1085_v38 = vadd.f32 %v1084_v59, %v1083_v41  ;;  %v1216_v32 = vrot.slane %v1215_v21, 1  ;;  %v7491_v62 = vsub.f32 %v7301_v10, %v1111_v31  ;;  %v811_v59 = vrot.slane %v731_v7, %v7088_v44 }
 0x1f9   :  { %v1091_v45 = vadd.f32 %v1090_v6, %v1089_v17  ;;  %v1221_v41 = vadd.f32 %v1220_v29, %v1219_v15  ;;  %v8116_v4 = vunpack.c.l.s8.bf16 %v7376_v34  ;;  %v8117_v11 = vunpack.c.l.s8.bf16 %v7379_v48 }
 0x1fa   :  { %3288 = vmatpush1.bf16.msra.mxu0 %v8114_v8  ;;  %3616 = vmatpush1.bf16.msra.mxu1 %v8115_v28  ;;  %v1116_v60 = vmul.f32 0.125, %v1085_v38  ;;  %v1217_v6 = vadd.f32 %v1216_v32, %v1215_v21  ;;  %v971_v2 = vrot.slane %v891_v13, %v7096_v47  ;;  %v735_v3 = vrot.slane %v7461_v39, %v7093_v46 }
 0x1fb   :  { %3289 = vmatprep.subr.bf16.mxu0 %v8116_v4  ;;  %3617 = vmatprep.subr.bf16.mxu1 %v8117_v11  ;;  %v1117_v17 = vmul.f32 0.125, %v1091_v45  ;;  %v1222_v31 = vrot.slane %v1221_v41, 1  ;;  %v830_v29 = vmul.f32 %v811_v59, %v7383_v53  ;;  %v895_v15 = vrot.slane %v7461_v39, %v7101_v0 }
 0x1fc   :  { %v7502_v10 = vsub.f32 %v7403_v57, %v1116_v60  ;;  %v1142_v38 = vmul.f32 %v7482_v61, %v7482_v61  ;;  %v1258_v21 = vmul.f32 0.125, %v1217_v6  ;;  %v815_v45 = vrot.slane %v735_v3, %v7088_v44 }
 0x1fd   :  { %v7510_v7 = vsub.f32 %v7408_v52, %v1117_v17  ;;  %v8118_v32 = vunpack.c.l.s8.bf16 %v7381_v12  ;;  %v8119_v57 = vunpack.c.l.s8.bf16 %v7391_v14  ;;  %v2450_v53 = vunpack.c.h.s8.bf16 %v7434_v9 }
 0x1fe   :  { %v1148_v13 = vmul.f32 %v7502_v10, %v7502_v10  ;;  %v1223_v8 = vadd.f32 %v1222_v31, %v1221_v41  ;;  %v990_v28 = vadd.f32 %v971_v2, %v830_v29  ;;  %v8120_v60 = vunpack.c.h.s8.bf16 %v7376_v34 }
 0x1ff   :  { %3290 = vmatpush1.bf16.msra.mxu0 %v8118_v32  ;;  %3618 = vmatpush1.bf16.msra.mxu1 %v8119_v57  ;;  %v8121_v52 = vunpack.c.h.s8.bf16 %v7379_v48  ;;  %v1143_v59 = vmul.f32 %v7491_v62, %v7491_v62  ;;  %v1149_v4 = vmul.f32 %v7510_v7, %v7510_v7  ;;  %v1274_v11 = vadd.f32 1e-05, %v1258_v21  ;;  %v7539_v21 = vld [vmem:[#allocation6 + $0x408] sm:$0xff] }
 0x200   :  { %3291 = vmatprep.subr.bf16.mxu0 %v8120_v60  ;;  %v831_v17 = vmul.f32 %v815_v45, %v7393_v37  ;;  %v1224_v6 = vrot.slane %v1148_v13, 4  ;;  %v1259_v3 = vmul.f32 0.125, %v1223_v8  ;;  %v7529_v32 = vmax.f32 %v990_v28, 0.0  ;;  %v7553_v60 = vld [vmem:[#allocation6 + $0x418] sm:$0xff] }
 0x201   :  { %3619 = vmatprep.subr.bf16.mxu1 %v8121_v52  ;;  %v975_v41 = vrot.slane %v895_v15, %v7096_v47  ;;  %v7533_v34 = vrot.slane %v707_v23, %v7088_v44  ;;  %v1188_v48 = vrot.slane %v1142_v38, 4  ;;  %v1230_v2 = vrot.slane %v1149_v4, 4 }
 0x202   :  { %6648 = vrsqrt.f32 %v1274_v11  ;;  %v8122_v31 = vunpack.c.h.s8.bf16 %v7381_v12  ;;  %v8123_v29 = vunpack.c.h.s8.bf16 %v7391_v14  ;;  %v1225_v37 = vadd.f32 %v1224_v6, %v1148_v13 }
 0x203   :  { %v1275_v45 = vadd.f32 1e-05, %v1259_v3  ;;  %v1092_v57 = vrot.slane %v7529_v32, 4  ;;  %v991_v8 = vadd.f32 %v975_v41, %v831_v17  ;;  %v8124_v15 = vunpack.c.l.s8.bf16 %v7406_v43  ;;  %v7575_v41 = vld [vmem:[#allocation6 + $0x400] sm:$0xff] }
 0x204   :  { %3292 = vmatpush1.bf16.msra.mxu0 %v8122_v31  ;;  %3620 = vmatpush1.bf16.msra.mxu1 %v8123_v29  ;;  %v8125_v23 = vunpack.c.l.s8.bf16 %v7418_v51  ;;  %v7550_v12 = vrot.slane %v711_v16, %v7088_v44  ;;  %v1194_v14 = vrot.slane %v1143_v59, 4  ;;  %v1615_v28 = vrot.slane %v1535_v50, %v7162_v24 }
 0x205   :  { %3293 = vmatprep.subr.bf16.mxu0 %v8124_v15  ;;  %v1231_v13 = vadd.f32 %v1230_v2, %v1149_v4  ;;  %v1226_v52 = vrot.slane %v1225_v37, 2  ;;  %6650 = vrsqrt.f32 %v1275_v45  ;;  %v1093_v11 = vadd.f32 %v1092_v57, %v7529_v32  ;;  %v7577_v2 = vld [vmem:[#allocation6 + $0x410] sm:$0xff] }
 0x206   :  { %3621 = vmatprep.subr.bf16.mxu1 %v8125_v23  ;;  %v7556_v17 = vmax.f32 %v991_v8, 0.0  ;;  %v7562_v6 = vrot.slane %v867_v54, %v7096_v47  ;;  %v7568_v16 = vrot.slane %v871_v40, %v7096_v47  ;;  %v2457_v50 = vunpack.c.l.s8.bf16 %v7539_v21 }
 0x207   :  { %v1232_v4 = vrot.slane %v1231_v13, 2  ;;  %v8126_v3 = vunpack.c.l.s8.bf16 %v7427_v5  ;;  %v1189_v54 = vadd.f32 %v1188_v48, %v1142_v38  ;;  %v1227_v31 = vadd.f32 %v1226_v52, %v1225_v37 }
 0x208   :  { %3622 = vmatpush1.bf16.msra.mxu1 %v2442_v42  ;;  %v1094_v29 = vrot.slane %v1093_v11, 2  ;;  %v1098_v20 = vrot.slane %v7556_v17, 4  ;;  %v8127_v40 = vunpack.c.h.s8.bf16 %v7406_v43  ;;  %v8128_v45 = vunpack.c.h.s8.bf16 %v7418_v51 }
 0x209   :  { %3294 = vmatpush1.bf16.msra.mxu0 %v8126_v3  ;;  %v1658_v57 = vadd.f32 %v7265_v58, %v7216_v27  ;;  %v2459_v9 = vunpack.c.l.s8.bf16 %v7553_v60  ;;  %v1195_v42 = vadd.f32 %v1194_v14, %v1143_v59  ;;  %v1233_v8 = vadd.f32 %v1232_v4, %v1231_v13  ;;  %v7594_v58 = vld [vmem:[#allocation6 + $0x448] sm:$0xff] }
 0x20a   :  { %3295 = vmatprep.subr.bf16.mxu0 %v8127_v40  ;;  %3623 = vmatprep.subr.bf16.mxu1 %v8128_v45  ;;  %v1661_v15 = vadd.f32 %v1615_v28, %v7364_v63  ;;  %v1228_v38 = vrot.slane %v1227_v31, 1  ;;  %v1095_v48 = vadd.f32 %v1094_v29, %v1093_v11  ;;  %v1099_v37 = vadd.f32 %v1098_v20, %v7556_v17  ;;  %v7599_v29 = vld [vmem:[#allocation6 + $0x458] sm:$0xff] }
 0x20b   :  { %v2456_v23 = vunpack.c.l.s8.bf16 %v7575_v41  ;;  %v2458_v43 = vunpack.c.l.s8.bf16 %v7577_v2  ;;  %v2465_v51 = vunpack.c.h.s8.bf16 %v7539_v21  ;;  %v1234_v52 = vrot.slane %v1233_v8, 1 }
 0x20c   :  { %v8129_v3 = vunpack.c.h.s8.bf16 %v7427_v5  ;;  %3624 = vmatpush1.bf16.msra.mxu1 %v2450_v53  ;;  %v1190_v27 = vrot.slane %v1189_v54, 2  ;;  %v1229_v59 = vadd.f32 %v1228_v38, %v1227_v31  ;;  %v1096_v63 = vrot.slane %v1095_v48, 1  ;;  %v6649_v28 = vpop.eup %6648 }
 0x20d   :  { %v1100_v14 = vrot.slane %v1099_v37, 2  ;;  %v7596_v13 = vpack.c.bf16 %v1658_v57, %v1658_v57  ;;  %3634 = vmatprep.subr.bf16.mxu1 %v2459_v9  ;;  %v2467_v11 = vunpack.c.h.s8.bf16 %v7553_v60  ;;  %v1196_v4 = vrot.slane %v1195_v42, 2  ;;  %v7608_v60 = vld [vmem:[#allocation6 + $0x440] sm:$0xff] }
 0x20e   :  { %3296 = vmatpush1.bf16.msra.mxu0 %v8129_v3  ;;  %v1235_v21 = vadd.f32 %v1234_v52, %v1233_v8  ;;  %v7601_v5 = vpack.c.bf16 %v1661_v15, %v1661_v15  ;;  %v1260_v53 = vmul.f32 0.125, %v1229_v59  ;;  %v1097_v20 = vadd.f32 %v1096_v63, %v1095_v48 }
 0x20f   :  { %3306 = vmatprep.subr.bf16.mxu0 %v2457_v50  ;;  %v1101_v40 = vadd.f32 %v1100_v14, %v1099_v37  ;;  %3626 = vmatmul.mubr.bf16.vlgmr.msra.gmra.mrb[16].mxu1 %v7596_v13  ;;  %v2464_v31 = vunpack.c.h.s8.bf16 %v7575_v41  ;;  %v2466_v50 = vunpack.c.h.s8.bf16 %v7577_v2  ;;  %v2473_v45 = vunpack.c.l.s8.bf16 %v7594_v58  ;;  %v6651_v9 = vpop.eup %6650  ;;  %v1826_v41 = vld [vmem:[#allocation6 + $0x450] sm:$0xff] }
 0x210   :  { %v1261_v57 = vmul.f32 0.125, %v1235_v21  ;;  %3635 = vmatpush1.bf16.msra.mxu1 %v2458_v43  ;;  %v1191_v8 = vadd.f32 %v1190_v27, %v1189_v54  ;;  %v1276_v15 = vadd.f32 1e-05, %v1260_v53  ;;  %v1118_v38 = vmul.f32 0.125, %v1097_v20  ;;  %3666 = vmatprep.mubr.bf16.mxu1 %v7601_v5 }
 0x211   :  { %3298 = vmatmul.mubr.bf16.vlgmr.msra.gmra.mrb[16].mxu0 %v7596_v13  ;;  %v1102_v48 = vrot.slane %v1101_v40, 1  ;;  %3636 = vmatprep.subr.bf16.mxu1 %v2467_v11  ;;  %v1197_v37 = vadd.f32 %v1196_v4, %v1195_v42  ;;  %v2475_v52 = vunpack.c.l.s8.bf16 %v7599_v29  ;;  %v1317_v2 = vcombine.low %v6649_v28, %v6651_v9 }
 0x212   :  { %3307 = vmatpush1.bf16.msra.mxu0 %v2456_v23  ;;  %v1277_v3 = vadd.f32 1e-05, %v1261_v57  ;;  %v2472_v59 = vunpack.c.l.s8.bf16 %v7608_v60  ;;  %3338 = vmatprep.mubr.bf16.mxu0 %v7601_v5  ;;  %6652 = vrsqrt.f32 %v1276_v15  ;;  %v7615_v54 = vsub.f32 %v7529_v32, %v1118_v38 }
 0x213   :  { %3308 = vmatprep.subr.bf16.mxu0 %v2465_v51  ;;  %v1103_v23 = vadd.f32 %v1102_v48, %v1101_v40  ;;  %v824_v43 = vmul.f32 %v7533_v34, %v7209_v19  ;;  %v825_v42 = vmul.f32 %v7550_v12, %v7213_v26  ;;  %v1325_v51 = vrot.slane %v1317_v2, 7  ;;  %v1833_v26 = vld [vmem:[#allocation6 + $0x488] sm:$0xff]  ;;  %v1835_v12 = vld [vmem:[#allocation6 + $0x498] sm:$0xff] }
 0x214   :  { %6654 = vrsqrt.f32 %v1277_v3  ;;  %v1192_v27 = vrot.slane %v1191_v8, 1  ;;  %3637 = vmatpush1.bf16.msra.mxu1 %v2466_v50  ;;  %v2474_v63 = vunpack.c.l.s8.bf16 %v1826_v41  ;;  %v1150_v14 = vmul.f32 %v7615_v54, %v7615_v54 }
 0x215   :  { %v1119_v28 = vmul.f32 0.125, %v1103_v23  ;;  %v1198_v11 = vrot.slane %v1197_v37, 1  ;;  %3638 = vmatprep.subr.bf16.mxu1 %v2475_v52  ;;  %v2481_v32 = vunpack.c.h.s8.bf16 %v7594_v58  ;;  %v2483_v19 = vunpack.c.h.s8.bf16 %v7599_v29  ;;  %v1832_v29 = vld [vmem:[#allocation6 + $0x480] sm:$0xff] }
 0x216   :  { %3309 = vmatpush1.bf16.msra.mxu0 %v2464_v31  ;;  %v7626_v34 = vmul.f32 %v1325_v51, %v7256_v18  ;;  %v1236_v4 = vrot.slane %v1150_v14, 4  ;;  %v984_v53 = vadd.f32 %v7562_v6, %v824_v43  ;;  %v985_v20 = vadd.f32 %v7568_v16, %v825_v42  ;;  %v1834_v16 = vld [vmem:[#allocation6 + $0x490] sm:$0xff] }
 0x217   :  { %3310 = vmatprep.subr.bf16.mxu0 %v2473_v45  ;;  %v7629_v21 = vsub.f32 %v7556_v17, %v1119_v28  ;;  %v2480_v40 = vunpack.c.h.s8.bf16 %v7608_v60  ;;  %v1193_v31 = vadd.f32 %v1192_v27, %v1191_v8  ;;  %v2482_v18 = vunpack.c.h.s8.bf16 %v1826_v41  ;;  %v1841_v27 = vld [vmem:[#allocation6 + $0x4c8] sm:$0xff] }
 0x218   :  { %v1399_v58 = vrot.slane %v7626_v34, %v7175_v33  ;;  %3639 = vmatpush1.bf16.msra.mxu1 %v2474_v63  ;;  %v1237_v50 = vadd.f32 %v1236_v4, %v1150_v14  ;;  %v1199_v17 = vadd.f32 %v1198_v11, %v1197_v37  ;;  %v2489_v6 = vunpack.c.l.s8.bf16 %v1833_v26  ;;  %v1843_v63 = vld [vmem:[#allocation6 + $0x4d8] sm:$0xff] }
 0x219   :  { %v1151_v45 = vmul.f32 %v7629_v21, %v7629_v21  ;;  %3640 = vmatprep.subr.bf16.mxu1 %v2483_v19  ;;  %v2491_v57 = vunpack.c.l.s8.bf16 %v1835_v12  ;;  %v7639_v38 = vmax.f32 %v984_v53, 0.0  ;;  %v7641_v8 = vmax.f32 %v985_v20, 0.0  ;;  %v1840_v20 = vld [vmem:[#allocation6 + $0x4c0] sm:$0xff] }
 0x21a   :  { %3311 = vmatpush1.bf16.msra.mxu0 %v2472_v59  ;;  %v1479_v60 = vrot.slane %v1399_v58, %v7170_v56  ;;  %v1238_v9 = vrot.slane %v1237_v50, 2  ;;  %v2488_v48 = vunpack.c.l.s8.bf16 %v1832_v29  ;;  %v1254_v3 = vmul.f32 0.125, %v1193_v31 }
 0x21b   :  { %3312 = vmatprep.subr.bf16.mxu0 %v2481_v32  ;;  %v1242_v15 = vrot.slane %v1151_v45, 4  ;;  %v2490_v37 = vunpack.c.l.s8.bf16 %v1834_v16  ;;  %v1255_v43 = vmul.f32 0.125, %v1199_v17  ;;  %v2497_v42 = vunpack.c.h.s8.bf16 %v1833_v26 }
 0x21c   :  { %v7644_v52 = vmul.f32 %v1479_v60, %v7438_v22  ;;  %v6653_v41 = vpop.eup %6652  ;;  %3641 = vmatpush1.bf16.msra.mxu1 %v2482_v18  ;;  %v1239_v2 = vadd.f32 %v1238_v9, %v1237_v50  ;;  %v2499_v51 = vunpack.c.h.s8.bf16 %v1835_v12  ;;  %v1056_v22 = vrot.slane %v7639_v38, 4 }
 0x21d   :  { %v1243_v59 = vadd.f32 %v1242_v15, %v1151_v45  ;;  %3642 = vmatprep.subr.bf16.mxu1 %v2491_v57  ;;  %v1062_v32 = vrot.slane %v7641_v8, 4  ;;  %v2496_v19 = vunpack.c.h.s8.bf16 %v1832_v29  ;;  %v2498_v4 = vunpack.c.h.s8.bf16 %v1834_v16 }
 0x21e   :  { %3313 = vmatpush1.bf16.msra.mxu0 %v2480_v40  ;;  %v6655_v23 = vpop.eup %6654  ;;  %v1240_v28 = vrot.slane %v1239_v2, 1  ;;  %v1270_v53 = vadd.f32 1e-05, %v1254_v3  ;;  %v1842_v40 = vld [vmem:[#allocation6 + $0x4d0] sm:$0xff]  ;;  %v1271_v12 = vadd.f32 1e-05, %v1255_v43  ;;  %v2505_v18 = vunpack.c.l.s8.bf16 %v1841_v27 }
 0x21f   :  { %3314 = vmatprep.subr.bf16.mxu0 %v2489_v6  ;;  %v1318_v14 = vcombine.low %v6653_v41, %v6655_v23  ;;  %v1244_v11 = vrot.slane %v1243_v59, 2  ;;  %v2507_v50 = vunpack.c.l.s8.bf16 %v1843_v63  ;;  %v1057_v29 = vadd.f32 %v1056_v22, %v7639_v38  ;;  %v1850_v22 = vld [vmem:[#allocation6 + $0x510] sm:$0xff] }
 0x220   :  { %3643 = vmatpush1.bf16.msra.mxu1 %v2490_v37  ;;  %v1241_v31 = vadd.f32 %v1240_v28, %v1239_v2  ;;  %v1063_v57 = vadd.f32 %v1062_v32, %v7641_v8  ;;  %v2504_v16 = vunpack.c.l.s8.bf16 %v1840_v20  ;;  %v2506_v60 = vunpack.c.l.s8.bf16 %v1842_v40  ;;  %v1849_v2 = vld [vmem:[#allocation6 + $0x508] sm:$0xff] }
 0x221   :  { %v1326_v58 = vrot.slane %v1318_v14, 7  ;;  %v1245_v26 = vadd.f32 %v1244_v11, %v1243_v59  ;;  %3644 = vmatprep.subr.bf16.mxu1 %v2499_v51  ;;  %6656 = vrsqrt.f32 %v1270_v53  ;;  %v2513_v41 = vunpack.c.h.s8.bf16 %v1841_v27  ;;  %v1851_v59 = vld [vmem:[#allocation6 + $0x518] sm:$0xff]  ;;  %v1848_v11 = vld [vmem:[#allocation6 + $0x500] sm:$0xff] }
 0x222   :  { %3315 = vmatpush1.bf16.msra.mxu0 %v2488_v48  ;;  %v1262_v17 = vmul.f32 0.125, %v1241_v31  ;;  %6658 = vrsqrt.f32 %v1271_v12  ;;  %v1395_v3 = vrot.slane %v7626_v34, %v7170_v56  ;;  %v1058_v43 = vrot.slane %v1057_v29, 2  ;;  %v1857_v12 = vld [vmem:[#allocation6 + $0x548] sm:$0xff] }
 0x223   :  { %3316 = vmatprep.subr.bf16.mxu0 %v2497_v42  ;;  %v1342_v45 = vmul.f32 %v1326_v58, %v7319_v49  ;;  %v1246_v6 = vrot.slane %v1245_v26, 1  ;;  %v2515_v49 = vunpack.c.h.s8.bf16 %v1843_v63  ;;  %v2512_v42 = vunpack.c.h.s8.bf16 %v1840_v20 }
 0x224   :  { %3645 = vmatpush1.bf16.msra.mxu1 %v2498_v4  ;;  %v1278_v15 = vadd.f32 1e-05, %v1262_v17  ;;  %v2514_v51 = vunpack.c.h.s8.bf16 %v1842_v40  ;;  %v1064_v14 = vrot.slane %v1063_v57, 2  ;;  %v2521_v34 = vunpack.c.l.s8.bf16 %v1849_v2 }
 0x225   :  { %v1407_v9 = vrot.slane %v1342_v45, %v7175_v33  ;;  %v1247_v48 = vadd.f32 %v1246_v6, %v1245_v26  ;;  %3646 = vmatprep.subr.bf16.mxu1 %v2507_v50  ;;  %v2523_v63 = vunpack.c.l.s8.bf16 %v1851_v59  ;;  %v1475_v32 = vrot.slane %v1395_v3, %v7170_v56 }
 0x226   :  { %3317 = vmatpush1.bf16.msra.mxu0 %v2496_v19  ;;  %6660 = vrsqrt.f32 %v1278_v15  ;;  %v2520_v19 = vunpack.c.l.s8.bf16 %v1848_v11  ;;  %v1059_v53 = vadd.f32 %v1058_v43, %v1057_v29  ;;  %v1065_v20 = vadd.f32 %v1064_v14, %v1063_v57  ;;  %v1858_v15 = vld [vmem:[#allocation6 + $0x550] sm:$0xff]  ;;  %v1867_v14 = vld [vmem:[#allocation6 + $0x598] sm:$0xff] }
 0x227   :  { %3318 = vmatprep.subr.bf16.mxu0 %v2505_v18  ;;  %v1487_v37 = vrot.slane %v1407_v9, %v7170_v56  ;;  %v1263_v23 = vmul.f32 0.125, %v1247_v48  ;;  %v7660_v4 = vmul.f32 %v1475_v32, %v7411_v35  ;;  %v1403_v40 = vrot.slane %v1342_v45, %v7170_v56  ;;  %v1859_v18 = vld [vmem:[#allocation6 + $0x558] sm:$0xff]  ;;  %v1856_v9 = vld [vmem:[#allocation6 + $0x540] sm:$0xff] }
 0x228   :  { %3647 = vmatpush1.bf16.msra.mxu1 %v2506_v60  ;;  %v2529_v58 = vunpack.c.h.s8.bf16 %v1849_v2  ;;  %v2531_v31 = vunpack.c.h.s8.bf16 %v1851_v59  ;;  %v2528_v6 = vunpack.c.h.s8.bf16 %v1848_v11  ;;  %v1060_v35 = vrot.slane %v1059_v53, 1  ;;  %v1864_v32 = vld [vmem:[#allocation6 + $0x580] sm:$0xff] }
 0x229   :  { %v7656_v28 = vmul.f32 %v1487_v37, %v7510_v7  ;;  %v1279_v27 = vadd.f32 1e-05, %v1263_v23  ;;  %3648 = vmatprep.subr.bf16.mxu1 %v2515_v49  ;;  %v2522_v7 = vunpack.c.l.s8.bf16 %v1850_v22  ;;  %v1483_v50 = vrot.slane %v1403_v40, %v7170_v56 }
 0x22a   :  { %3319 = vmatpush1.bf16.msra.mxu0 %v2504_v16  ;;  %v1066_v16 = vrot.slane %v1065_v20, 1  ;;  %v2530_v29 = vunpack.c.h.s8.bf16 %v1850_v22  ;;  %v2537_v45 = vunpack.c.l.s8.bf16 %v1857_v12  ;;  %v2539_v60 = vunpack.c.l.s8.bf16 %v1859_v18 }
 0x22b   :  { %3320 = vmatprep.subr.bf16.mxu0 %v2513_v41  ;;  %6662 = vrsqrt.f32 %v1279_v27  ;;  %v6657_v26 = vpop.eup %6656  ;;  %v7665_v57 = vmul.f32 %v1483_v50, %v7502_v10  ;;  %v1061_v3 = vadd.f32 %v1060_v35, %v1059_v53  ;;  %v2536_v2 = vunpack.c.l.s8.bf16 %v1856_v9 }
 0x22c   :  { %3649 = vmatpush1.bf16.msra.mxu1 %v2514_v51  ;;  %v6659_v17 = vpop.eup %6658  ;;  %v1067_v37 = vadd.f32 %v1066_v16, %v1065_v20  ;;  %v2538_v59 = vunpack.c.l.s8.bf16 %v1858_v15  ;;  %v2545_v23 = vunpack.c.h.s8.bf16 %v1857_v12  ;;  %v2547_v10 = vunpack.c.h.s8.bf16 %v1859_v18  ;;  %v1865_v51 = vld [vmem:[#allocation6 + $0x588] sm:$0xff]  ;;  %v1866_v20 = vld [vmem:[#allocation6 + $0x590] sm:$0xff] }
 0x22d   :  { %3650 = vmatprep.subr.bf16.mxu1 %v2523_v63  ;;  %v1315_v41 = vcombine.low %v6657_v26, %v6659_v17  ;;  %v1112_v27 = vmul.f32 0.125, %v1061_v3  ;;  %v2544_v63 = vunpack.c.h.s8.bf16 %v1856_v9  ;;  %v2546_v22 = vunpack.c.h.s8.bf16 %v1858_v15  ;;  %v1875_v9 = vld [vmem:[#allocation6 + $0x5d8] sm:$0xff]  ;;  %v6693_v3 = vld [vmem:[#allocation4 + $0x10] sm:$0xff] }
 0x22e   :  { %3321 = vmatpush1.bf16.msra.mxu0 %v2512_v42  ;;  %v2555_v53 = vunpack.c.l.s8.bf16 %v1867_v14  ;;  %v1571_v40 = vrot.slane %v7461_v39, %v7162_v24  ;;  %v2552_v26 = vunpack.c.l.s8.bf16 %v1864_v32  ;;  %v2563_v35 = vunpack.c.h.s8.bf16 %v1867_v14 }
 0x22f   :  { %3322 = vmatprep.subr.bf16.mxu0 %v2521_v34  ;;  %v1323_v42 = vrot.slane %v1315_v41, 7  ;;  %v1113_v34 = vmul.f32 0.125, %v1067_v37  ;;  %v7678_v50 = vsub.f32 %v7639_v38, %v1112_v27  ;;  %v2560_v41 = vunpack.c.h.s8.bf16 %v1864_v32 }
 0x230   :  { %3651 = vmatpush1.bf16.msra.mxu1 %v2522_v7  ;;  %v6661_v48 = vpop.eup %6660  ;;  %v1531_v37 = vrot.slane %v6693_v3, %v7162_v24 }
 0x231   :  { %3652 = vmatprep.subr.bf16.mxu1 %v2531_v31  ;;  %v7681_v17 = vsub.f32 %v7641_v8, %v1113_v34 }
 0x232   :  { %3323 = vmatpush1.bf16.msra.mxu0 %v2520_v19  ;;  %v2553_v19 = vunpack.c.l.s8.bf16 %v1865_v51 }
 0x233   :  { %3324 = vmatprep.subr.bf16.mxu0 %v2529_v58  ;;  %v7670_v58 = vld [vmem:[#allocation4 + $0x18] sm:$0xff] }
 0x234   :  { %3653 = vmatpush1.bf16.msra.mxu1 %v2530_v29  ;;  %v7673_v31 = vmul.f32 %v7670_v58, %v1323_v42  ;;  %v1543_v42 = vrot.slane %v7670_v58, %v7165_v25 }
 0x235   :  { %v6663_v49 = vpop.eup %6662  ;;  %3654 = vmatprep.subr.bf16.mxu1 %v2539_v60  ;;  %v1873_v60 = vld [vmem:[#allocation6 + $0x5c8] sm:$0xff] }
 0x236   :  { %3325 = vmatpush1.bf16.msra.mxu0 %v2528_v6  ;;  %v1319_v43 = vcombine.low %v6661_v48, %v6663_v49  ;;  %v2554_v6 = vunpack.c.l.s8.bf16 %v1866_v20  ;;  %v1383_v38 = vrot.slane %v7673_v31, %v7175_v33  ;;  %v1144_v48 = vmul.f32 %v7678_v50, %v7678_v50 }
 0x237   :  { %3326 = vmatprep.subr.bf16.mxu0 %v2537_v45  ;;  %v1651_v45 = vrot.slane %v1571_v40, %v7162_v24  ;;  %v2562_v49 = vunpack.c.h.s8.bf16 %v1866_v20  ;;  %v2577_v34 = vunpack.c.h.s8.bf16 %v1873_v60  ;;  %v1623_v20 = vrot.slane %v1543_v42, %v7162_v24 }
 0x238   :  { %v1327_v11 = vrot.slane %v1319_v43, 7  ;;  %3655 = vmatpush1.bf16.msra.mxu1 %v2538_v59  ;;  %v2569_v59 = vunpack.c.l.s8.bf16 %v1873_v60  ;;  %v1463_v43 = vrot.slane %v1383_v38, %v7170_v56 }
 0x239   :  { %3656 = vmatprep.subr.bf16.mxu1 %v2547_v10  ;;  %v1874_v10 = vld [vmem:[#allocation6 + $0x5d0] sm:$0xff] }
 0x23a   :  { %3327 = vmatpush1.bf16.msra.mxu0 %v2536_v2  ;;  %v1343_v7 = vmul.f32 %v1327_v11, %v7461_v39  ;;  %v2561_v39 = vunpack.c.h.s8.bf16 %v1865_v51  ;;  %v1145_v2 = vmul.f32 %v7681_v17, %v7681_v17  ;;  %v1200_v51 = vrot.slane %v1144_v48, 4 }
 0x23b   :  { %3328 = vmatprep.subr.bf16.mxu0 %v2545_v23  ;;  %v1872_v23 = vld [vmem:[#allocation6 + $0x5c0] sm:$0xff]  ;;  %v2570_v11 = vunpack.c.l.s8.bf16 %v1874_v10  ;;  %v1503_v32 = vmul.f32 %v1463_v43, %v7491_v62  ;;  %v1890_v43 = vld [vmem:[#allocation6 + $0x650] sm:$0xff] }
 0x23c   :  { %v1415_v12 = vrot.slane %v1343_v7, %v7175_v33  ;;  %v1411_v18 = vrot.slane %v1343_v7, %v7170_v56  ;;  %3657 = vmatpush1.bf16.msra.mxu1 %v2546_v22  ;;  %v2568_v14 = vunpack.c.l.s8.bf16 %v1872_v23  ;;  %v1206_v27 = vrot.slane %v1145_v2, 4 }
 0x23d   :  { %3658 = vmatprep.subr.bf16.mxu1 %v2555_v53  ;;  %v1611_v22 = vrot.slane %v1531_v37, %v7162_v24  ;;  %v1883_v53 = vld [vmem:[#allocation6 + $0x618] sm:$0xff]  ;;  %v1201_v7 = vadd.f32 %v1200_v51, %v1144_v48  ;;  %v2576_v40 = vunpack.c.h.s8.bf16 %v1872_v23 }
 0x23e   :  { %3329 = vmatpush1.bf16.msra.mxu0 %v2544_v63  ;;  %v1495_v16 = vrot.slane %v1415_v12, %v7170_v56  ;;  %v1491_v29 = vrot.slane %v1411_v18, %v7170_v56  ;;  %v2579_v63 = vunpack.c.h.s8.bf16 %v1875_v9  ;;  %v1207_v12 = vadd.f32 %v1206_v27, %v1145_v2 }
 0x23f   :  { %3330 = vmatprep.subr.bf16.mxu0 %v2553_v19  ;;  %v1881_v19 = vld [vmem:[#allocation6 + $0x608] sm:$0xff]  ;;  %v1660_v18 = vadd.f32 %v1611_v22, %v7372_v30  ;;  %v1202_v62 = vrot.slane %v1201_v7, 2  ;;  %v2595_v48 = vunpack.c.h.s8.bf16 %v1883_v53  ;;  %v1899_v22 = vld [vmem:[#allocation6 + $0x698] sm:$0xff] }
 0x240   :  { %v7689_v8 = vmul.f32 %v1495_v16, %v7629_v21  ;;  %v1510_v15 = vmul.f32 %v1491_v29, %v7615_v54  ;;  %3659 = vmatpush1.bf16.msra.mxu1 %v2554_v6  ;;  %v2571_v21 = vunpack.c.l.s8.bf16 %v1875_v9  ;;  %v2585_v6 = vunpack.c.l.s8.bf16 %v1881_v19  ;;  %v1882_v16 = vld [vmem:[#allocation6 + $0x610] sm:$0xff] }
 0x241   :  { %3660 = vmatprep.subr.bf16.mxu1 %v2563_v35  ;;  %v1880_v35 = vld [vmem:[#allocation6 + $0x600] sm:$0xff]  ;;  %v1663_v29 = vadd.f32 %v1623_v20, %v1503_v32  ;;  %v2586_v38 = vunpack.c.l.s8.bf16 %v1882_v16  ;;  %v1208_v60 = vrot.slane %v1207_v12, 2  ;;  %v7706_v9 = vpack.c.bf16 %v1660_v18, %v1660_v18 }
 0x242   :  { %3331 = vmatpush1.bf16.msra.mxu0 %v2552_v26  ;;  %v7697_v54 = vadd.f32 %v1651_v45, %v1510_v15  ;;  %v2578_v26 = vunpack.c.h.s8.bf16 %v1874_v10  ;;  %v2584_v45 = vunpack.c.l.s8.bf16 %v1880_v35  ;;  %v2593_v15 = vunpack.c.h.s8.bf16 %v1881_v19  ;;  %v1888_v10 = vld [vmem:[#allocation6 + $0x640] sm:$0xff] }
 0x243   :  { %3332 = vmatprep.subr.bf16.mxu0 %v2561_v39  ;;  %v2587_v39 = vunpack.c.l.s8.bf16 %v1883_v53  ;;  %v7708_v30 = vpack.c.bf16 %v1663_v29, %v1663_v29  ;;  %v1203_v3 = vadd.f32 %v1202_v62, %v1201_v7  ;;  %v2592_v37 = vunpack.c.h.s8.bf16 %v1880_v35  ;;  %v1905_v62 = vld [vmem:[#allocation6 + $0x6c8] sm:$0xff] }
 0x244   :  { %3661 = vmatpush1.bf16.msra.mxu1 %v2562_v49  ;;  %v1891_v49 = vld [vmem:[#allocation6 + $0x658] sm:$0xff]  ;;  %v2594_v2 = vunpack.c.h.s8.bf16 %v1882_v16  ;;  %v2600_v51 = vunpack.c.l.s8.bf16 %v1888_v10  ;;  %v2608_v19 = vunpack.c.h.s8.bf16 %v1888_v10  ;;  %v2610_v53 = vunpack.c.h.s8.bf16 %v1890_v43  ;;  %v1913_v10 = vld [vmem:[#allocation6 + $0x708] sm:$0xff] }
 0x245   :  { %3662 = vmatprep.subr.bf16.mxu1 %v2571_v21  ;;  %v2603_v23 = vunpack.c.l.s8.bf16 %v1891_v49  ;;  %v1204_v42 = vrot.slane %v1203_v3, 1  ;;  %v2627_v29 = vunpack.c.h.s8.bf16 %v1899_v22 }
 0x246   :  { %3333 = vmatpush1.bf16.msra.mxu0 %v2560_v41  ;;  %v1889_v41 = vld [vmem:[#allocation6 + $0x648] sm:$0xff] }
 0x247   :  { %3334 = vmatprep.subr.bf16.mxu0 %v2569_v59  ;;  %v1209_v59 = vadd.f32 %v1208_v60, %v1207_v12  ;;  %v2601_v21 = vunpack.c.l.s8.bf16 %v1889_v41  ;;  %v2609_v27 = vunpack.c.h.s8.bf16 %v1889_v41  ;;  %v1205_v32 = vadd.f32 %v1204_v42, %v1203_v3  ;;  %v1898_v12 = vld [vmem:[#allocation6 + $0x690] sm:$0xff]  ;;  %v1904_v3 = vld [vmem:[#allocation6 + $0x6c0] sm:$0xff] }
 0x248   :  { %3663 = vmatpush1.bf16.msra.mxu1 %v2570_v11  ;;  %v2633_v41 = vunpack.c.l.s8.bf16 %v1905_v62  ;;  %v2640_v42 = vunpack.c.h.s8.bf16 %v1904_v3 }
 0x249   :  { %3664 = vmatprep.subr.bf16.mxu1 %v2579_v63  ;;  %v1210_v11 = vrot.slane %v1209_v59, 1  ;;  %v1897_v63 = vld [vmem:[#allocation6 + $0x688] sm:$0xff]  ;;  %v1256_v18 = vmul.f32 0.125, %v1205_v32  ;;  %v2657_v32 = vunpack.c.h.s8.bf16 %v1913_v10 }
 0x24a   :  { %3335 = vmatpush1.bf16.msra.mxu0 %v2568_v14  ;;  %v2602_v14 = vunpack.c.l.s8.bf16 %v1890_v43  ;;  %v2617_v7 = vunpack.c.l.s8.bf16 %v1897_v63  ;;  %v2625_v16 = vunpack.c.h.s8.bf16 %v1897_v63  ;;  %v1915_v43 = vld [vmem:[#allocation6 + $0x718] sm:$0xff] }
 0x24b   :  { %3336 = vmatprep.subr.bf16.mxu0 %v2577_v34  ;;  %v2611_v34 = vunpack.c.h.s8.bf16 %v1891_v49  ;;  %v1211_v20 = vadd.f32 %v1210_v11, %v1209_v59  ;;  %v2651_v11 = vunpack.c.l.s8.bf16 %v1915_v43 }
 0x24c   :  { %3665 = vmatpush1.bf16.msra.mxu1 %v2578_v26  ;;  %v1896_v26 = vld [vmem:[#allocation6 + $0x680] sm:$0xff] }
 0x24d   :  { %3675 = vmatprep.subr.bf16.mxu1 %v2587_v39  ;;  %v2618_v39 = vunpack.c.l.s8.bf16 %v1898_v12  ;;  %v1257_v35 = vmul.f32 0.125, %v1211_v20  ;;  %v2624_v60 = vunpack.c.h.s8.bf16 %v1896_v26  ;;  %v1921_v20 = vld [vmem:[#allocation6 + $0x748] sm:$0xff] }
 0x24e   :  { %3337 = vmatpush1.bf16.msra.mxu0 %v2576_v40  ;;  %v2619_v40 = vunpack.c.l.s8.bf16 %v1899_v22 }
 0x24f   :  { %3347 = vmatprep.subr.bf16.mxu0 %v2585_v6  ;;  %3667 = vmatmul.mubr.bf16.vlgmr.msra.gmra.mrb[16].mxu1 %v7706_v9  ;;  %v2616_v6 = vunpack.c.l.s8.bf16 %v1896_v26 }
 0x250   :  { %3676 = vmatpush1.bf16.msra.mxu1 %v2586_v38  ;;  %3707 = vmatprep.mubr.bf16.mxu1 %v7708_v30  ;;  %v1272_v38 = vadd.f32 1e-05, %v1256_v18  ;;  %v2665_v18 = vunpack.c.l.s8.bf16 %v1921_v20 }
 0x251   :  { %3339 = vmatmul.mubr.bf16.vlgmr.msra.gmra.mrb[16].mxu0 %v7706_v9  ;;  %3677 = vmatprep.subr.bf16.mxu1 %v2595_v48  ;;  %v1273_v48 = vadd.f32 1e-05, %v1257_v35  ;;  %v1922_v35 = vld [vmem:[#allocation6 + $0x750] sm:$0xff] }
 0x252   :  { %3348 = vmatpush1.bf16.msra.mxu0 %v2584_v45  ;;  %3379 = vmatprep.mubr.bf16.mxu0 %v7708_v30  ;;  %v1907_v45 = vld [vmem:[#allocation6 + $0x6d8] sm:$0xff]  ;;  %6664 = vrsqrt.f32 %v1272_v38 }
 0x253   :  { %3349 = vmatprep.subr.bf16.mxu0 %v2593_v15  ;;  %v2626_v15 = vunpack.c.h.s8.bf16 %v1898_v12  ;;  %v2635_v49 = vunpack.c.l.s8.bf16 %v1907_v45  ;;  %6666 = vrsqrt.f32 %v1273_v48  ;;  %v1931_v48 = vld [vmem:[#allocation6 + $0x798] sm:$0xff] }
 0x254   :  { %3678 = vmatpush1.bf16.msra.mxu1 %v2594_v2  ;;  %v2632_v2 = vunpack.c.l.s8.bf16 %v1904_v3 }
 0x255   :  { %3679 = vmatprep.subr.bf16.mxu1 %v2603_v23  ;;  %v2643_v23 = vunpack.c.h.s8.bf16 %v1907_v45  ;;  %v2673_v45 = vunpack.c.h.s8.bf16 %v1921_v20  ;;  %v1938_v20 = vld [vmem:[#allocation6 + $0x7d0] sm:$0xff] }
 0x256   :  { %3350 = vmatpush1.bf16.msra.mxu0 %v2592_v37  ;;  %v1906_v37 = vld [vmem:[#allocation6 + $0x6d0] sm:$0xff] }
 0x257   :  { %3351 = vmatprep.subr.bf16.mxu0 %v2601_v21  ;;  %v2634_v59 = vunpack.c.l.s8.bf16 %v1906_v37  ;;  %v2641_v21 = vunpack.c.h.s8.bf16 %v1905_v62  ;;  %v2666_v62 = vunpack.c.l.s8.bf16 %v1922_v35 }
 0x258   :  { %3680 = vmatpush1.bf16.msra.mxu1 %v2602_v14  ;;  %v2649_v14 = vunpack.c.l.s8.bf16 %v1913_v10 }
 0x259   :  { %3681 = vmatprep.subr.bf16.mxu1 %v2611_v34  ;;  %v1914_v34 = vld [vmem:[#allocation6 + $0x710] sm:$0xff] }
 0x25a   :  { %3352 = vmatpush1.bf16.msra.mxu0 %v2600_v51  ;;  %v2642_v51 = vunpack.c.h.s8.bf16 %v1906_v37  ;;  %v2650_v22 = vunpack.c.l.s8.bf16 %v1914_v34  ;;  %v2658_v12 = vunpack.c.h.s8.bf16 %v1914_v34  ;;  %v2683_v37 = vunpack.c.l.s8.bf16 %v1931_v48  ;;  %v1939_v34 = vld [vmem:[#allocation6 + $0x7d8] sm:$0xff] }
 0x25b   :  { %3353 = vmatprep.subr.bf16.mxu0 %v2609_v27  ;;  %v1912_v27 = vld [vmem:[#allocation6 + $0x700] sm:$0xff] }
 0x25c   :  { %3682 = vmatpush1.bf16.msra.mxu1 %v2610_v53  ;;  %v2648_v63 = vunpack.c.l.s8.bf16 %v1912_v27  ;;  %v6665_v53 = vpop.eup %6664  ;;  %v2656_v26 = vunpack.c.h.s8.bf16 %v1912_v27  ;;  %v1937_v27 = vld [vmem:[#allocation6 + $0x7c8] sm:$0xff] }
 0x25d   :  { %3683 = vmatprep.subr.bf16.mxu1 %v2619_v40  ;;  %v6667_v40 = vpop.eup %6666 }
 0x25e   :  { %3354 = vmatpush1.bf16.msra.mxu0 %v2608_v19  ;;  %v2659_v19 = vunpack.c.h.s8.bf16 %v1915_v43 }
 0x25f   :  { %3355 = vmatprep.subr.bf16.mxu0 %v2617_v7  ;;  %v1923_v7 = vld [vmem:[#allocation6 + $0x758] sm:$0xff] }
 0x260   :  { %3684 = vmatpush1.bf16.msra.mxu1 %v2618_v39  ;;  %v1920_v39 = vld [vmem:[#allocation6 + $0x740] sm:$0xff]  ;;  %v2675_v38 = vunpack.c.h.s8.bf16 %v1923_v7 }
 0x261   :  { %3685 = vmatprep.subr.bf16.mxu1 %v2627_v29  ;;  %v2664_v29 = vunpack.c.l.s8.bf16 %v1920_v39 }
 0x262   :  { %3356 = vmatpush1.bf16.msra.mxu0 %v2616_v6  ;;  %v2667_v6 = vunpack.c.l.s8.bf16 %v1923_v7 }
 0x263   :  { %3357 = vmatprep.subr.bf16.mxu0 %v2625_v16  ;;  %v1316_v16 = vcombine.low %v6665_v53, %v6667_v40  ;;  %v1936_v53 = vld [vmem:[#allocation6 + $0x7c0] sm:$0xff] }
 0x264   :  { %3686 = vmatpush1.bf16.msra.mxu1 %v2626_v15  ;;  %v1929_v15 = vld [vmem:[#allocation6 + $0x788] sm:$0xff] }
 0x265   :  { %3687 = vmatprep.subr.bf16.mxu1 %v2635_v49  ;;  %v2674_v49 = vunpack.c.h.s8.bf16 %v1922_v35  ;;  %v2681_v3 = vunpack.c.l.s8.bf16 %v1929_v15 }
 0x266   :  { %3358 = vmatpush1.bf16.msra.mxu0 %v2624_v60  ;;  %v1324_v60 = vrot.slane %v1316_v16, 7 }
 0x267   :  { %3359 = vmatprep.subr.bf16.mxu0 %v2633_v41  ;;  %v2672_v41 = vunpack.c.h.s8.bf16 %v1920_v39  ;;  %v2707_v39 = vunpack.c.h.s8.bf16 %v1939_v34 }
 0x268   :  { %3688 = vmatpush1.bf16.msra.mxu1 %v2634_v59  ;;  %v1930_v59 = vld [vmem:[#allocation6 + $0x790] sm:$0xff] }
 0x269   :  { %3689 = vmatprep.subr.bf16.mxu1 %v2643_v23  ;;  %v2682_v43 = vunpack.c.l.s8.bf16 %v1930_v59 }
 0x26a   :  { %3360 = vmatpush1.bf16.msra.mxu0 %v2632_v2  ;;  %v1928_v2 = vld [vmem:[#allocation6 + $0x780] sm:$0xff] }
 0x26b   :  { %3361 = vmatprep.subr.bf16.mxu0 %v2641_v21  ;;  %v7714_v21 = vld [vmem:[#allocation4 + $0x20] sm:$0xff]  ;;  %v2680_v10 = vunpack.c.l.s8.bf16 %v1928_v2 }
 0x26c   :  { %3690 = vmatpush1.bf16.msra.mxu1 %v2642_v51  ;;  %v7717_v23 = vmul.f32 %v7714_v21, %v1324_v60  ;;  %v2691_v51 = vunpack.c.h.s8.bf16 %v1931_v48  ;;  %v2706_v60 = vunpack.c.h.s8.bf16 %v1938_v20 }
 0x26d   :  { %3691 = vmatprep.subr.bf16.mxu1 %v2651_v11 }
 0x26e   :  { %3362 = vmatpush1.bf16.msra.mxu0 %v2640_v42  ;;  %v2689_v42 = vunpack.c.h.s8.bf16 %v1929_v15  ;;  %v1391_v11 = vrot.slane %v7717_v23, %v7175_v33 }
 0x26f   :  { %3363 = vmatprep.subr.bf16.mxu0 %v2649_v14  ;;  %v1379_v14 = vrot.slane %v7673_v31, %v7170_v56  ;;  %v1539_v31 = vrot.slane %v7670_v58, %v7162_v24  ;;  %v1945_v58 = vld [vmem:[#allocation6 + $0x808] sm:$0xff] }
 0x270   :  { %3692 = vmatpush1.bf16.msra.mxu1 %v2650_v22  ;;  %v2690_v22 = vunpack.c.h.s8.bf16 %v1930_v59  ;;  %v1471_v40 = vrot.slane %v1391_v11, %v7170_v56  ;;  %v2713_v48 = vunpack.c.l.s8.bf16 %v1945_v58 }
 0x271   :  { %3693 = vmatprep.subr.bf16.mxu1 %v2659_v19  ;;  %v2699_v19 = vunpack.c.l.s8.bf16 %v1939_v34  ;;  %v1459_v7 = vrot.slane %v1379_v14, %v7170_v56  ;;  %v1619_v16 = vrot.slane %v1539_v31, %v7162_v24  ;;  %v1952_v34 = vld [vmem:[#allocation6 + $0x840] sm:$0xff]  ;;  %v1963_v31 = vld [vmem:[#allocation6 + $0x898] sm:$0xff] }
 0x272   :  { %3364 = vmatpush1.bf16.msra.mxu0 %v2648_v63  ;;  %v2688_v63 = vunpack.c.h.s8.bf16 %v1928_v2 }
 0x273   :  { %3365 = vmatprep.subr.bf16.mxu0 %v2657_v32  ;;  %v2697_v32 = vunpack.c.l.s8.bf16 %v1937_v27  ;;  %v1502_v35 = vmul.f32 %v1459_v7, %v7482_v61  ;;  %v1946_v61 = vld [vmem:[#allocation6 + $0x810] sm:$0xff]  ;;  %v1961_v7 = vld [vmem:[#allocation6 + $0x888] sm:$0xff] }
 0x274   :  { %3694 = vmatpush1.bf16.msra.mxu1 %v2658_v12  ;;  %v2696_v12 = vunpack.c.l.s8.bf16 %v1936_v53  ;;  %v2714_v2 = vunpack.c.l.s8.bf16 %v1946_v61  ;;  %v2722_v11 = vunpack.c.h.s8.bf16 %v1946_v61 }
 0x275   :  { %3695 = vmatprep.subr.bf16.mxu1 %v2667_v6  ;;  %v2705_v6 = vunpack.c.h.s8.bf16 %v1937_v27  ;;  %v1662_v15 = vadd.f32 %v1619_v16, %v1502_v35 }
 0x276   :  { %3366 = vmatpush1.bf16.msra.mxu0 %v2656_v26  ;;  %v1551_v26 = vrot.slane %v7714_v21, %v7165_v25 }
 0x277   :  { %3367 = vmatprep.subr.bf16.mxu0 %v2665_v18  ;;  %v2698_v18 = vunpack.c.l.s8.bf16 %v1938_v20 }
 0x278   :  { %3696 = vmatpush1.bf16.msra.mxu1 %v2666_v62  ;;  %v1947_v62 = vld [vmem:[#allocation6 + $0x818] sm:$0xff] }
 0x279   :  { %3697 = vmatprep.subr.bf16.mxu1 %v2675_v38  ;;  %v2704_v38 = vunpack.c.h.s8.bf16 %v1936_v53 }
 0x27a   :  { %3368 = vmatpush1.bf16.msra.mxu0 %v2664_v29  ;;  %v1505_v29 = vmul.f32 %v1471_v40, %v7681_v17  ;;  %v7733_v17 = vpack.c.bf16 %v1662_v15, %v1662_v15  ;;  %v2736_v40 = vunpack.c.h.s8.bf16 %v1952_v34 }
 0x27b   :  { %3369 = vmatprep.subr.bf16.mxu0 %v2673_v45  ;;  %v1631_v45 = vrot.slane %v1551_v26, %v7162_v24 }
 0x27c   :  { %3698 = vmatpush1.bf16.msra.mxu1 %v2674_v49  ;;  %v1944_v49 = vld [vmem:[#allocation6 + $0x800] sm:$0xff] }
 0x27d   :  { %3699 = vmatprep.subr.bf16.mxu1 %v2683_v37  ;;  %v2712_v37 = vunpack.c.l.s8.bf16 %v1944_v49  ;;  %v2720_v14 = vunpack.c.h.s8.bf16 %v1944_v49  ;;  %v1970_v49 = vld [vmem:[#allocation6 + $0x8d0] sm:$0xff] }
 0x27e   :  { %3370 = vmatpush1.bf16.msra.mxu0 %v2672_v41  ;;  %v2715_v41 = vunpack.c.l.s8.bf16 %v1947_v62  ;;  %v2762_v61 = vunpack.c.l.s8.bf16 %v1970_v49 }
 0x27f   :  { %3371 = vmatprep.subr.bf16.mxu0 %v2681_v3  ;;  %v1665_v3 = vadd.f32 %v1631_v45, %v1505_v29  ;;  %v2753_v29 = vunpack.c.h.s8.bf16 %v1961_v7  ;;  %v1971_v45 = vld [vmem:[#allocation6 + $0x8d8] sm:$0xff] }
 0x280   :  { %3700 = vmatpush1.bf16.msra.mxu1 %v2682_v43  ;;  %v2723_v43 = vunpack.c.h.s8.bf16 %v1947_v62  ;;  %v1969_v62 = vld [vmem:[#allocation6 + $0x8c8] sm:$0xff] }
 0x281   :  { %3701 = vmatprep.subr.bf16.mxu1 %v2691_v51  ;;  %v7735_v59 = vpack.c.bf16 %v1665_v3, %v1665_v3  ;;  %v1955_v51 = vld [vmem:[#allocation6 + $0x858] sm:$0xff]  ;;  %v2761_v15 = vunpack.c.l.s8.bf16 %v1969_v62 }
 0x282   :  { %3372 = vmatpush1.bf16.msra.mxu0 %v2680_v10  ;;  %v2721_v10 = vunpack.c.h.s8.bf16 %v1945_v58  ;;  %v2739_v20 = vunpack.c.h.s8.bf16 %v1955_v51  ;;  %v2755_v58 = vunpack.c.h.s8.bf16 %v1963_v31 }
 0x283   :  { %3373 = vmatprep.subr.bf16.mxu0 %v2689_v42  ;;  %v1953_v42 = vld [vmem:[#allocation6 + $0x848] sm:$0xff] }
 0x284   :  { %3702 = vmatpush1.bf16.msra.mxu1 %v2690_v22  ;;  %v2729_v27 = vunpack.c.l.s8.bf16 %v1953_v42  ;;  %v1954_v22 = vld [vmem:[#allocation6 + $0x850] sm:$0xff]  ;;  %v2737_v53 = vunpack.c.h.s8.bf16 %v1953_v42 }
 0x285   :  { %3703 = vmatprep.subr.bf16.mxu1 %v2699_v19  ;;  %v2730_v19 = vunpack.c.l.s8.bf16 %v1954_v22  ;;  %v2738_v26 = vunpack.c.h.s8.bf16 %v1954_v22 }
 0x286   :  { %3374 = vmatpush1.bf16.msra.mxu0 %v2688_v63  ;;  %v2731_v63 = vunpack.c.l.s8.bf16 %v1955_v51  ;;  %v2770_v51 = vunpack.c.h.s8.bf16 %v1970_v49 }
 0x287   :  { %3375 = vmatprep.subr.bf16.mxu0 %v2697_v32  ;;  %v2728_v32 = vunpack.c.l.s8.bf16 %v1952_v34  ;;  %v1978_v34 = vld [vmem:[#allocation6 + $0x910] sm:$0xff] }
 0x288   :  { %3704 = vmatpush1.bf16.msra.mxu1 %v2698_v18  ;;  %v1960_v18 = vld [vmem:[#allocation6 + $0x880] sm:$0xff]  ;;  %v2778_v22 = vunpack.c.l.s8.bf16 %v1978_v34 }
 0x289   :  { %3705 = vmatprep.subr.bf16.mxu1 %v2707_v39  ;;  %v1962_v39 = vld [vmem:[#allocation6 + $0x890] sm:$0xff]  ;;  %v2744_v35 = vunpack.c.l.s8.bf16 %v1960_v18 }
 0x28a   :  { %3376 = vmatpush1.bf16.msra.mxu0 %v2696_v12  ;;  %v2745_v12 = vunpack.c.l.s8.bf16 %v1961_v7  ;;  %v2746_v16 = vunpack.c.l.s8.bf16 %v1962_v39 }
 0x28b   :  { %3377 = vmatprep.subr.bf16.mxu0 %v2705_v6  ;;  %v2747_v6 = vunpack.c.l.s8.bf16 %v1963_v31  ;;  %v2786_v31 = vunpack.c.h.s8.bf16 %v1978_v34 }
 0x28c   :  { %3706 = vmatpush1.bf16.msra.mxu1 %v2706_v60  ;;  %v2754_v60 = vunpack.c.h.s8.bf16 %v1962_v39 }
 0x28d   :  { %3716 = vmatprep.subr.bf16.mxu1 %v2715_v41  ;;  %v2763_v41 = vunpack.c.l.s8.bf16 %v1971_v45 }
 0x28e   :  { %3378 = vmatpush1.bf16.msra.mxu0 %v2704_v38  ;;  %v2752_v38 = vunpack.c.h.s8.bf16 %v1960_v18  ;;  %v1986_v18 = vld [vmem:[#allocation6 + $0x950] sm:$0xff] }
 0x28f   :  { %3388 = vmatprep.subr.bf16.mxu0 %v2713_v48  ;;  %3708 = vmatmul.mubr.bf16.vlgmr.msra.gmra.mrb[16].mxu1 %v7733_v17  ;;  %v1968_v48 = vld [vmem:[#allocation6 + $0x8c0] sm:$0xff]  ;;  %v2794_v39 = vunpack.c.l.s8.bf16 %v1986_v18 }
 0x290   :  { %3717 = vmatpush1.bf16.msra.mxu1 %v2714_v2  ;;  %3748 = vmatprep.mubr.bf16.mxu1 %v7735_v59  ;;  %v2760_v3 = vunpack.c.l.s8.bf16 %v1968_v48  ;;  %v2771_v2 = vunpack.c.h.s8.bf16 %v1971_v45  ;;  %v2768_v42 = vunpack.c.h.s8.bf16 %v1968_v48  ;;  %v2802_v45 = vunpack.c.h.s8.bf16 %v1986_v18  ;;  %v1994_v48 = vld [vmem:[#allocation6 + $0x990] sm:$0xff] }
 0x291   :  { %3380 = vmatmul.mubr.bf16.vlgmr.msra.gmra.mrb[16].mxu0 %v7733_v17  ;;  %3718 = vmatprep.subr.bf16.mxu1 %v2723_v43  ;;  %v1979_v43 = vld [vmem:[#allocation6 + $0x918] sm:$0xff]  ;;  %v2810_v49 = vunpack.c.l.s8.bf16 %v1994_v48 }
 0x292   :  { %3389 = vmatpush1.bf16.msra.mxu0 %v2712_v37  ;;  %3420 = vmatprep.mubr.bf16.mxu0 %v7735_v59  ;;  %v2769_v37 = vunpack.c.h.s8.bf16 %v1969_v62 }
 0x293   :  { %3390 = vmatprep.subr.bf16.mxu0 %v2721_v10  ;;  %v1977_v10 = vld [vmem:[#allocation6 + $0x908] sm:$0xff] }
 0x294   :  { %3719 = vmatpush1.bf16.msra.mxu1 %v2722_v11  ;;  %v1976_v11 = vld [vmem:[#allocation6 + $0x900] sm:$0xff] }
 0x295   :  { %3720 = vmatprep.subr.bf16.mxu1 %v2731_v63  ;;  %v2776_v63 = vunpack.c.l.s8.bf16 %v1976_v11  ;;  %v2784_v7 = vunpack.c.h.s8.bf16 %v1976_v11 }
 0x296   :  { %3391 = vmatpush1.bf16.msra.mxu0 %v2720_v14  ;;  %v2777_v14 = vunpack.c.l.s8.bf16 %v1977_v10 }
 0x297   :  { %3392 = vmatprep.subr.bf16.mxu0 %v2729_v27  ;;  %v2779_v27 = vunpack.c.l.s8.bf16 %v1979_v43 }
 0x298   :  { %3721 = vmatpush1.bf16.msra.mxu1 %v2730_v19  ;;  %v2787_v19 = vunpack.c.h.s8.bf16 %v1979_v43 }
 0x299   :  { %3722 = vmatprep.subr.bf16.mxu1 %v2739_v20  ;;  %v1987_v20 = vld [vmem:[#allocation6 + $0x958] sm:$0xff] }
 0x29a   :  { %3393 = vmatpush1.bf16.msra.mxu0 %v2728_v32  ;;  %v2785_v32 = vunpack.c.h.s8.bf16 %v1977_v10  ;;  %v2003_v10 = vld [vmem:[#allocation6 + $0x9d8] sm:$0xff] }
 0x29b   :  { %3394 = vmatprep.subr.bf16.mxu0 %v2737_v53  ;;  %v1985_v53 = vld [vmem:[#allocation6 + $0x948] sm:$0xff]  ;;  %v2827_v34 = vunpack.c.l.s8.bf16 %v2003_v10 }
 0x29c   :  { %3723 = vmatpush1.bf16.msra.mxu1 %v2738_v26  ;;  %v1984_v26 = vld [vmem:[#allocation6 + $0x940] sm:$0xff] }
 0x29d   :  { %3724 = vmatprep.subr.bf16.mxu1 %v2747_v6  ;;  %v2792_v6 = vunpack.c.l.s8.bf16 %v1984_v26  ;;  %v2800_v62 = vunpack.c.h.s8.bf16 %v1984_v26 }
 0x29e   :  { %3395 = vmatpush1.bf16.msra.mxu0 %v2736_v40  ;;  %v2793_v40 = vunpack.c.l.s8.bf16 %v1985_v53 }
 0x29f   :  { %3396 = vmatprep.subr.bf16.mxu0 %v2745_v12  ;;  %v2795_v12 = vunpack.c.l.s8.bf16 %v1987_v20 }
 0x2a0   :  { %3725 = vmatpush1.bf16.msra.mxu1 %v2746_v16  ;;  %v2803_v16 = vunpack.c.h.s8.bf16 %v1987_v20 }
 0x2a1   :  { %3726 = vmatprep.subr.bf16.mxu1 %v2755_v58  ;;  %v1995_v58 = vld [vmem:[#allocation6 + $0x998] sm:$0xff] }
 0x2a2   :  { %3397 = vmatpush1.bf16.msra.mxu0 %v2744_v35  ;;  %v2801_v35 = vunpack.c.h.s8.bf16 %v1985_v53 }
 0x2a3   :  { %3398 = vmatprep.subr.bf16.mxu0 %v2753_v29  ;;  %v1993_v29 = vld [vmem:[#allocation6 + $0x988] sm:$0xff] }
 0x2a4   :  { %3727 = vmatpush1.bf16.msra.mxu1 %v2754_v60  ;;  %v1992_v60 = vld [vmem:[#allocation6 + $0x980] sm:$0xff] }
 0x2a5   :  { %3728 = vmatprep.subr.bf16.mxu1 %v2763_v41  ;;  %v2808_v41 = vunpack.c.l.s8.bf16 %v1992_v60  ;;  %v2816_v43 = vunpack.c.h.s8.bf16 %v1992_v60  ;;  %v2017_v60 = vld [vmem:[#allocation6 + $0xa48] sm:$0xff] }
 0x2a6   :  { %3399 = vmatpush1.bf16.msra.mxu0 %v2752_v38  ;;  %v2809_v38 = vunpack.c.l.s8.bf16 %v1993_v29 }
 0x2a7   :  { %3400 = vmatprep.subr.bf16.mxu0 %v2761_v15  ;;  %v2811_v15 = vunpack.c.l.s8.bf16 %v1995_v58 }
 0x2a8   :  { %3729 = vmatpush1.bf16.msra.mxu1 %v2762_v61  ;;  %v1387_v61 = vrot.slane %v7717_v23, %v7170_v56  ;;  %v7746_v23 = vld [vmem:[#allocation4 + $0x28] sm:$0xff] }
 0x2a9   :  { %3730 = vmatprep.subr.bf16.mxu1 %v2771_v2  ;;  %v2001_v2 = vld [vmem:[#allocation6 + $0x9c8] sm:$0xff] }
 0x2aa   :  { %3401 = vmatpush1.bf16.msra.mxu0 %v2760_v3  ;;  %v2817_v3 = vunpack.c.h.s8.bf16 %v1993_v29  ;;  %v1467_v11 = vrot.slane %v1387_v61, %v7170_v56  ;;  %v2833_v53 = vunpack.c.h.s8.bf16 %v2001_v2  ;;  %v2010_v29 = vld [vmem:[#allocation6 + $0xa10] sm:$0xff]  ;;  %v2016_v61 = vld [vmem:[#allocation6 + $0xa40] sm:$0xff] }
 0x2ab   :  { %3402 = vmatprep.subr.bf16.mxu0 %v2769_v37  ;;  %v2819_v37 = vunpack.c.h.s8.bf16 %v1995_v58 }
 0x2ac   :  { %3731 = vmatpush1.bf16.msra.mxu1 %v2770_v51  ;;  %v2825_v51 = vunpack.c.l.s8.bf16 %v2001_v2  ;;  %v1504_v20 = vmul.f32 %v1467_v11, %v7678_v50  ;;  %v2018_v2 = vld [vmem:[#allocation6 + $0xa50] sm:$0xff]  ;;  %v2027_v11 = vld [vmem:[#allocation6 + $0xa98] sm:$0xff] }
 0x2ad   :  { %3732 = vmatprep.subr.bf16.mxu1 %v2779_v27  ;;  %v1547_v27 = vrot.slane %v7714_v21, %v7162_v24  ;;  %v2835_v21 = vunpack.c.h.s8.bf16 %v2003_v10  ;;  %v2856_v10 = vunpack.c.l.s8.bf16 %v2016_v61 }
 0x2ae   :  { %3403 = vmatpush1.bf16.msra.mxu0 %v2768_v42  ;;  %v2818_v42 = vunpack.c.h.s8.bf16 %v1994_v48 }
 0x2af   :  { %3404 = vmatprep.subr.bf16.mxu0 %v2777_v14  ;;  %v2000_v14 = vld [vmem:[#allocation6 + $0x9c0] sm:$0xff] }
 0x2b0   :  { %3733 = vmatpush1.bf16.msra.mxu1 %v2778_v22  ;;  %v1559_v22 = vrot.slane %v7746_v23, %v7165_v25 }
 0x2b1   :  { %3734 = vmatprep.subr.bf16.mxu1 %v2787_v19 }
 0x2b2   :  { %3405 = vmatpush1.bf16.msra.mxu0 %v2776_v63  ;;  %v2002_v63 = vld [vmem:[#allocation6 + $0x9d0] sm:$0xff]  ;;  %v1639_v26 = vrot.slane %v1559_v22, %v7162_v24  ;;  %v2024_v22 = vld [vmem:[#allocation6 + $0xa80] sm:$0xff] }
 0x2b3   :  { %3406 = vmatprep.subr.bf16.mxu0 %v2785_v32  ;;  %v2824_v32 = vunpack.c.l.s8.bf16 %v2000_v14  ;;  %v2826_v19 = vunpack.c.l.s8.bf16 %v2002_v63  ;;  %v2834_v18 = vunpack.c.h.s8.bf16 %v2002_v63 }
 0x2b4   :  { %3735 = vmatpush1.bf16.msra.mxu1 %v2786_v31  ;;  %v2009_v31 = vld [vmem:[#allocation6 + $0xa08] sm:$0xff]  ;;  %v1667_v50 = vadd.f32 %v1639_v26, %v7644_v52  ;;  %v2880_v26 = vunpack.c.h.s8.bf16 %v2024_v22 }
 0x2b5   :  { %3736 = vmatprep.subr.bf16.mxu1 %v2795_v12  ;;  %v2832_v12 = vunpack.c.h.s8.bf16 %v2000_v14  ;;  %v2025_v14 = vld [vmem:[#allocation6 + $0xa88] sm:$0xff] }
 0x2b6   :  { %3407 = vmatpush1.bf16.msra.mxu0 %v2784_v7  ;;  %v1627_v7 = vrot.slane %v1547_v27, %v7162_v24  ;;  %v2864_v27 = vunpack.c.h.s8.bf16 %v2016_v61  ;;  %v2873_v63 = vunpack.c.l.s8.bf16 %v2025_v14 }
 0x2b7   :  { %3408 = vmatprep.subr.bf16.mxu0 %v2793_v40  ;;  %v2011_v40 = vld [vmem:[#allocation6 + $0xa18] sm:$0xff] }
 0x2b8   :  { %3737 = vmatpush1.bf16.msra.mxu1 %v2794_v39  ;;  %v2841_v39 = vunpack.c.l.s8.bf16 %v2009_v31  ;;  %v2851_v48 = vunpack.c.h.s8.bf16 %v2011_v40 }
 0x2b9   :  { %3738 = vmatprep.subr.bf16.mxu1 %v2803_v16  ;;  %v2843_v16 = vunpack.c.l.s8.bf16 %v2011_v40  ;;  %v2035_v40 = vld [vmem:[#allocation6 + $0xad8] sm:$0xff] }
 0x2ba   :  { %3409 = vmatpush1.bf16.msra.mxu0 %v2792_v6  ;;  %v1664_v6 = vadd.f32 %v1627_v7, %v1504_v20  ;;  %v2881_v7 = vunpack.c.h.s8.bf16 %v2025_v14 }
 0x2bb   :  { %3410 = vmatprep.subr.bf16.mxu0 %v2801_v35  ;;  %v2008_v35 = vld [vmem:[#allocation6 + $0xa00] sm:$0xff] }
 0x2bc   :  { %3739 = vmatpush1.bf16.msra.mxu1 %v2802_v45  ;;  %v2840_v58 = vunpack.c.l.s8.bf16 %v2008_v35  ;;  %v2842_v45 = vunpack.c.l.s8.bf16 %v2010_v29  ;;  %v2848_v52 = vunpack.c.h.s8.bf16 %v2008_v35  ;;  %v2034_v35 = vld [vmem:[#allocation6 + $0xad0] sm:$0xff] }
 0x2bd   :  { %3740 = vmatprep.subr.bf16.mxu1 %v2811_v15  ;;  %v7757_v15 = vpack.c.bf16 %v1667_v50, %v1667_v50 }
 0x2be   :  { %3411 = vmatpush1.bf16.msra.mxu0 %v2800_v62  ;;  %v7754_v62 = vpack.c.bf16 %v1664_v6, %v1664_v6  ;;  %v2032_v6 = vld [vmem:[#allocation6 + $0xac0] sm:$0xff] }
 0x2bf   :  { %3412 = vmatprep.subr.bf16.mxu0 %v2809_v38  ;;  %v2849_v38 = vunpack.c.h.s8.bf16 %v2009_v31  ;;  %v2033_v31 = vld [vmem:[#allocation6 + $0xac8] sm:$0xff] }
 0x2c0   :  { %3741 = vmatpush1.bf16.msra.mxu1 %v2810_v49  ;;  %v2850_v49 = vunpack.c.h.s8.bf16 %v2010_v29  ;;  %v2890_v29 = vunpack.c.l.s8.bf16 %v2034_v35  ;;  %v2897_v50 = vunpack.c.h.s8.bf16 %v2033_v31 }
 0x2c1   :  { %3742 = vmatprep.subr.bf16.mxu1 %v2819_v37 }
 0x2c2   :  { %3413 = vmatpush1.bf16.msra.mxu0 %v2808_v41  ;;  %v2019_v41 = vld [vmem:[#allocation6 + $0xa58] sm:$0xff] }
 0x2c3   :  { %3414 = vmatprep.subr.bf16.mxu0 %v2817_v3  ;;  %v2857_v3 = vunpack.c.l.s8.bf16 %v2017_v60  ;;  %v2859_v37 = vunpack.c.l.s8.bf16 %v2019_v41 }
 0x2c4   :  { %3743 = vmatpush1.bf16.msra.mxu1 %v2818_v42  ;;  %v2865_v42 = vunpack.c.h.s8.bf16 %v2017_v60  ;;  %v2896_v60 = vunpack.c.h.s8.bf16 %v2032_v6 }
 0x2c5   :  { %3744 = vmatprep.subr.bf16.mxu1 %v2827_v34  ;;  %v2866_v34 = vunpack.c.h.s8.bf16 %v2018_v2 }
 0x2c6   :  { %3415 = vmatpush1.bf16.msra.mxu0 %v2816_v43  ;;  %v2858_v43 = vunpack.c.l.s8.bf16 %v2018_v2 }
 0x2c7   :  { %3416 = vmatprep.subr.bf16.mxu0 %v2825_v51  ;;  %v2867_v51 = vunpack.c.h.s8.bf16 %v2019_v41 }
 0x2c8   :  { %3745 = vmatpush1.bf16.msra.mxu1 %v2826_v19  ;;  %v2026_v19 = vld [vmem:[#allocation6 + $0xa90] sm:$0xff] }
 0x2c9   :  { %3746 = vmatprep.subr.bf16.mxu1 %v2835_v21  ;;  %v2874_v20 = vunpack.c.l.s8.bf16 %v2026_v19  ;;  %v2883_v21 = vunpack.c.h.s8.bf16 %v2027_v11 }
 0x2ca   :  { %3417 = vmatpush1.bf16.msra.mxu0 %v2824_v32  ;;  %v2875_v32 = vunpack.c.l.s8.bf16 %v2027_v11 }
 0x2cb   :  { %3418 = vmatprep.subr.bf16.mxu0 %v2833_v53  ;;  %v2872_v53 = vunpack.c.l.s8.bf16 %v2024_v22 }
 0x2cc   :  { %3747 = vmatpush1.bf16.msra.mxu1 %v2834_v18  ;;  %v2889_v18 = vunpack.c.l.s8.bf16 %v2033_v31 }
 0x2cd   :  { %3757 = vmatprep.subr.bf16.mxu1 %v2843_v16  ;;  %v2888_v16 = vunpack.c.l.s8.bf16 %v2032_v6 }
 0x2ce   :  { %3419 = vmatpush1.bf16.msra.mxu0 %v2832_v12  ;;  %v2882_v12 = vunpack.c.h.s8.bf16 %v2026_v19 }
 0x2cf   :  { %3429 = vmatprep.subr.bf16.mxu0 %v2841_v39  ;;  %3749 = vmatmul.mubr.bf16.vlgmr.msra.gmra.mrb[16].mxu1 %v7754_v62  ;;  %v2891_v39 = vunpack.c.l.s8.bf16 %v2035_v40 }
 0x2d0   :  { %3758 = vmatpush1.bf16.msra.mxu1 %v2842_v45  ;;  %3789 = vmatprep.mubr.bf16.mxu1 %v7757_v15  ;;  %v2041_v45 = vld [vmem:[#allocation6 + $0xb08] sm:$0xff] }
 0x2d1   :  { %3421 = vmatmul.mubr.bf16.vlgmr.msra.gmra.mrb[16].mxu0 %v7754_v62  ;;  %3759 = vmatprep.subr.bf16.mxu1 %v2851_v48  ;;  %v2898_v48 = vunpack.c.h.s8.bf16 %v2034_v35  ;;  %v2905_v41 = vunpack.c.l.s8.bf16 %v2041_v45  ;;  %v2913_v2 = vunpack.c.h.s8.bf16 %v2041_v45 }
 0x2d2   :  { %3430 = vmatpush1.bf16.msra.mxu0 %v2840_v58  ;;  %3461 = vmatprep.mubr.bf16.mxu0 %v7757_v15  ;;  %v2899_v58 = vunpack.c.h.s8.bf16 %v2035_v40 }
 0x2d3   :  { %3431 = vmatprep.subr.bf16.mxu0 %v2849_v38  ;;  %v2043_v38 = vld [vmem:[#allocation6 + $0xb18] sm:$0xff] }
 0x2d4   :  { %3760 = vmatpush1.bf16.msra.mxu1 %v2850_v49  ;;  %v2907_v49 = vunpack.c.l.s8.bf16 %v2043_v38 }
 0x2d5   :  { %3761 = vmatprep.subr.bf16.mxu1 %v2859_v37 }
 0x2d6   :  { %3432 = vmatpush1.bf16.msra.mxu0 %v2848_v52  ;;  %v2040_v52 = vld [vmem:[#allocation6 + $0xb00] sm:$0xff] }
 0x2d7   :  { %3433 = vmatprep.subr.bf16.mxu0 %v2857_v3  ;;  %v2042_v3 = vld [vmem:[#allocation6 + $0xb10] sm:$0xff]  ;;  %v2904_v61 = vunpack.c.l.s8.bf16 %v2040_v52 }
 0x2d8   :  { %3762 = vmatpush1.bf16.msra.mxu1 %v2858_v43  ;;  %v2906_v37 = vunpack.c.l.s8.bf16 %v2042_v3  ;;  %v2049_v43 = vld [vmem:[#allocation6 + $0xb48] sm:$0xff]  ;;  %v2914_v14 = vunpack.c.h.s8.bf16 %v2042_v3 }
 0x2d9   :  { %3763 = vmatprep.subr.bf16.mxu1 %v2867_v51  ;;  %v2912_v51 = vunpack.c.h.s8.bf16 %v2040_v52  ;;  %v2921_v11 = vunpack.c.l.s8.bf16 %v2049_v43  ;;  %v2929_v19 = vunpack.c.h.s8.bf16 %v2049_v43  ;;  %v2066_v52 = vld [vmem:[#allocation6 + $0xbd0] sm:$0xff] }
 0x2da   :  { %3434 = vmatpush1.bf16.msra.mxu0 %v2856_v10  ;;  %v2915_v10 = vunpack.c.h.s8.bf16 %v2043_v38 }
 0x2db   :  { %3435 = vmatprep.subr.bf16.mxu0 %v2865_v42  ;;  %v2051_v42 = vld [vmem:[#allocation6 + $0xb58] sm:$0xff] }
 0x2dc   :  { %3764 = vmatpush1.bf16.msra.mxu1 %v2866_v34  ;;  %v2923_v34 = vunpack.c.l.s8.bf16 %v2051_v42 }
 0x2dd   :  { %3765 = vmatprep.subr.bf16.mxu1 %v2875_v32 }
 0x2de   :  { %3436 = vmatpush1.bf16.msra.mxu0 %v2864_v27  ;;  %v2048_v27 = vld [vmem:[#allocation6 + $0xb40] sm:$0xff] }
 0x2df   :  { %3437 = vmatprep.subr.bf16.mxu0 %v2873_v63  ;;  %v2050_v63 = vld [vmem:[#allocation6 + $0xb50] sm:$0xff]  ;;  %v2920_v22 = vunpack.c.l.s8.bf16 %v2048_v27 }
 0x2e0   :  { %3766 = vmatpush1.bf16.msra.mxu1 %v2874_v20  ;;  %v2922_v32 = vunpack.c.l.s8.bf16 %v2050_v63  ;;  %v2057_v20 = vld [vmem:[#allocation6 + $0xb88] sm:$0xff]  ;;  %v2930_v31 = vunpack.c.h.s8.bf16 %v2050_v63  ;;  %v2072_v63 = vld [vmem:[#allocation6 + $0xc00] sm:$0xff] }
 0x2e1   :  { %3767 = vmatprep.subr.bf16.mxu1 %v2883_v21  ;;  %v2928_v21 = vunpack.c.h.s8.bf16 %v2048_v27  ;;  %v2937_v40 = vunpack.c.l.s8.bf16 %v2057_v20  ;;  %v2945_v35 = vunpack.c.h.s8.bf16 %v2057_v20 }
 0x2e2   :  { %3438 = vmatpush1.bf16.msra.mxu0 %v2872_v53  ;;  %v2931_v53 = vunpack.c.h.s8.bf16 %v2051_v42  ;;  %v2073_v42 = vld [vmem:[#allocation6 + $0xc08] sm:$0xff] }
 0x2e3   :  { %3439 = vmatprep.subr.bf16.mxu0 %v2881_v7  ;;  %v2059_v7 = vld [vmem:[#allocation6 + $0xb98] sm:$0xff] }
 0x2e4   :  { %3768 = vmatpush1.bf16.msra.mxu1 %v2882_v12  ;;  %v2939_v12 = vunpack.c.l.s8.bf16 %v2059_v7 }
 0x2e5   :  { %3769 = vmatprep.subr.bf16.mxu1 %v2891_v39 }
 0x2e6   :  { %3440 = vmatpush1.bf16.msra.mxu0 %v2880_v26  ;;  %v2056_v26 = vld [vmem:[#allocation6 + $0xb80] sm:$0xff] }
 0x2e7   :  { %3441 = vmatprep.subr.bf16.mxu0 %v2889_v18  ;;  %v2058_v18 = vld [vmem:[#allocation6 + $0xb90] sm:$0xff]  ;;  %v2936_v6 = vunpack.c.l.s8.bf16 %v2056_v26 }
 0x2e8   :  { %3770 = vmatpush1.bf16.msra.mxu1 %v2890_v29  ;;  %v2938_v39 = vunpack.c.l.s8.bf16 %v2058_v18  ;;  %v2065_v29 = vld [vmem:[#allocation6 + $0xbc8] sm:$0xff]  ;;  %v2946_v45 = vunpack.c.h.s8.bf16 %v2058_v18 }
 0x2e9   :  { %3771 = vmatprep.subr.bf16.mxu1 %v2899_v58  ;;  %v2944_v58 = vunpack.c.h.s8.bf16 %v2056_v26  ;;  %v2953_v38 = vunpack.c.l.s8.bf16 %v2065_v29  ;;  %v2083_v26 = vld [vmem:[#allocation6 + $0xc58] sm:$0xff] }
 0x2ea   :  { %3442 = vmatpush1.bf16.msra.mxu0 %v2888_v16  ;;  %v2947_v16 = vunpack.c.h.s8.bf16 %v2059_v7 }
 0x2eb   :  { %3443 = vmatprep.subr.bf16.mxu0 %v2897_v50  ;;  %v2067_v50 = vld [vmem:[#allocation6 + $0xbd8] sm:$0xff] }
 0x2ec   :  { %3772 = vmatpush1.bf16.msra.mxu1 %v2898_v48  ;;  %v1555_v48 = vrot.slane %v7746_v23, %v7162_v24  ;;  %v2963_v43 = vunpack.c.h.s8.bf16 %v2067_v50  ;;  %v2075_v23 = vld [vmem:[#allocation6 + $0xc18] sm:$0xff] }
 0x2ed   :  { %3773 = vmatprep.subr.bf16.mxu1 %v2907_v49  ;;  %v7764_v49 = vld [vmem:[#allocation4 + $0x30] sm:$0xff] }
 0x2ee   :  { %3444 = vmatpush1.bf16.msra.mxu0 %v2896_v60  ;;  %v2064_v60 = vld [vmem:[#allocation6 + $0xbc0] sm:$0xff]  ;;  %v1567_v3 = vrot.slane %v7764_v49, %v7165_v25 }
 0x2ef   :  { %3445 = vmatprep.subr.bf16.mxu0 %v2905_v41  ;;  %v2955_v41 = vunpack.c.l.s8.bf16 %v2067_v50 }
 0x2f0   :  { %3774 = vmatpush1.bf16.msra.mxu1 %v2906_v37  ;;  %v2954_v37 = vunpack.c.l.s8.bf16 %v2066_v52 }
 0x2f1   :  { %3775 = vmatprep.subr.bf16.mxu1 %v2915_v10  ;;  %v1635_v10 = vrot.slane %v1555_v48, %v7162_v24 }
 0x2f2   :  { %3446 = vmatpush1.bf16.msra.mxu0 %v2904_v61  ;;  %v2952_v61 = vunpack.c.l.s8.bf16 %v2064_v60 }
 0x2f3   :  { %3447 = vmatprep.subr.bf16.mxu0 %v2913_v2  ;;  %v2961_v2 = vunpack.c.h.s8.bf16 %v2065_v29  ;;  %v1666_v27 = vadd.f32 %v1635_v10, %v7660_v4 }
 0x2f4   :  { %3776 = vmatpush1.bf16.msra.mxu1 %v2914_v14  ;;  %v2960_v14 = vunpack.c.h.s8.bf16 %v2064_v60 }
 0x2f5   :  { %3777 = vmatprep.subr.bf16.mxu1 %v2923_v34  ;;  %v2969_v34 = vunpack.c.l.s8.bf16 %v2073_v42  ;;  %v7772_v20 = vpack.c.bf16 %v1666_v27, %v1666_v27  ;;  %v2096_v27 = vld [vmem:[#allocation6 + $0xcc0] sm:$0xff] }
 0x2f6   :  { %3448 = vmatpush1.bf16.msra.mxu0 %v2912_v51  ;;  %v1647_v51 = vrot.slane %v1567_v3, %v7162_v24 }
 0x2f7   :  { %3449 = vmatprep.subr.bf16.mxu0 %v2921_v11  ;;  %v2962_v11 = vunpack.c.h.s8.bf16 %v2066_v52  ;;  %v2088_v52 = vld [vmem:[#allocation6 + $0xc80] sm:$0xff] }
 0x2f8   :  { %3778 = vmatpush1.bf16.msra.mxu1 %v2922_v32  ;;  %v2074_v32 = vld [vmem:[#allocation6 + $0xc10] sm:$0xff] }
 0x2f9   :  { %3779 = vmatprep.subr.bf16.mxu1 %v2931_v53  ;;  %v2968_v53 = vunpack.c.l.s8.bf16 %v2072_v63  ;;  %v2970_v7 = vunpack.c.l.s8.bf16 %v2074_v32 }
 0x2fa   :  { %3450 = vmatpush1.bf16.msra.mxu0 %v2920_v22  ;;  %v2971_v22 = vunpack.c.l.s8.bf16 %v2075_v23 }
 0x2fb   :  { %3451 = vmatprep.subr.bf16.mxu0 %v2929_v19  ;;  %v1669_v19 = vadd.f32 %v1647_v51, %v7656_v28  ;;  %v2976_v28 = vunpack.c.h.s8.bf16 %v2072_v63  ;;  %v3008_v51 = vunpack.c.h.s8.bf16 %v2088_v52  ;;  %v2098_v63 = vld [vmem:[#allocation6 + $0xcd0] sm:$0xff] }
 0x2fc   :  { %3780 = vmatpush1.bf16.msra.mxu1 %v2930_v31  ;;  %v2081_v31 = vld [vmem:[#allocation6 + $0xc48] sm:$0xff] }
 0x2fd   :  { %3781 = vmatprep.subr.bf16.mxu1 %v2939_v12  ;;  %v7775_v4 = vpack.c.bf16 %v1669_v19, %v1669_v19  ;;  %v2978_v12 = vunpack.c.h.s8.bf16 %v2074_v32  ;;  %v2985_v18 = vunpack.c.l.s8.bf16 %v2081_v31  ;;  %v2993_v50 = vunpack.c.h.s8.bf16 %v2081_v31 }
 0x2fe   :  { %3452 = vmatpush1.bf16.msra.mxu0 %v2928_v21  ;;  %v2977_v21 = vunpack.c.h.s8.bf16 %v2073_v42  ;;  %v2097_v42 = vld [vmem:[#allocation6 + $0xcc8] sm:$0xff]  ;;  %v3018_v32 = vunpack.c.l.s8.bf16 %v2098_v63  ;;  %v3024_v31 = vunpack.c.h.s8.bf16 %v2096_v27 }
 0x2ff   :  { %3453 = vmatprep.subr.bf16.mxu0 %v2937_v40  ;;  %v2979_v40 = vunpack.c.h.s8.bf16 %v2075_v23  ;;  %v2099_v23 = vld [vmem:[#allocation6 + $0xcd8] sm:$0xff]  ;;  %v3025_v19 = vunpack.c.h.s8.bf16 %v2097_v42 }
 0x300   :  { %3782 = vmatpush1.bf16.msra.mxu1 %v2938_v39  ;;  %v2987_v39 = vunpack.c.l.s8.bf16 %v2083_v26 }
 0x301   :  { %3783 = vmatprep.subr.bf16.mxu1 %v2947_v16 }
 0x302   :  { %3454 = vmatpush1.bf16.msra.mxu0 %v2936_v6  ;;  %v2080_v6 = vld [vmem:[#allocation6 + $0xc40] sm:$0xff] }
 0x303   :  { %3455 = vmatprep.subr.bf16.mxu0 %v2945_v35  ;;  %v2082_v35 = vld [vmem:[#allocation6 + $0xc50] sm:$0xff]  ;;  %v2984_v16 = vunpack.c.l.s8.bf16 %v2080_v6  ;;  %v2992_v60 = vunpack.c.h.s8.bf16 %v2080_v6 }
 0x304   :  { %3784 = vmatpush1.bf16.msra.mxu1 %v2946_v45  ;;  %v2986_v29 = vunpack.c.l.s8.bf16 %v2082_v35  ;;  %v2089_v45 = vld [vmem:[#allocation6 + $0xc88] sm:$0xff]  ;;  %v2994_v48 = vunpack.c.h.s8.bf16 %v2082_v35 }
 0x305   :  { %3785 = vmatprep.subr.bf16.mxu1 %v2955_v41  ;;  %v3001_v41 = vunpack.c.l.s8.bf16 %v2089_v45  ;;  %v3009_v10 = vunpack.c.h.s8.bf16 %v2089_v45 }
 0x306   :  { %3456 = vmatpush1.bf16.msra.mxu0 %v2944_v58  ;;  %v2995_v58 = vunpack.c.h.s8.bf16 %v2083_v26 }
 0x307   :  { %3457 = vmatprep.subr.bf16.mxu0 %v2953_v38  ;;  %v2091_v38 = vld [vmem:[#allocation6 + $0xc98] sm:$0xff] }
 0x308   :  { %3786 = vmatpush1.bf16.msra.mxu1 %v2954_v37  ;;  %v3003_v3 = vunpack.c.l.s8.bf16 %v2091_v38  ;;  %v3000_v37 = vunpack.c.l.s8.bf16 %v2088_v52 }
 0x309   :  { %3787 = vmatprep.subr.bf16.mxu1 %v2963_v43  ;;  %v3011_v43 = vunpack.c.h.s8.bf16 %v2091_v38 }
 0x30a   :  { %3458 = vmatpush1.bf16.msra.mxu0 %v2952_v61  ;;  %v2090_v61 = vld [vmem:[#allocation6 + $0xc90] sm:$0xff] }
 0x30b   :  { %3459 = vmatprep.subr.bf16.mxu0 %v2961_v2  ;;  %v3002_v2 = vunpack.c.l.s8.bf16 %v2090_v61 }
 0x30c   :  { %3788 = vmatpush1.bf16.msra.mxu1 %v2962_v11  ;;  %v3017_v11 = vunpack.c.l.s8.bf16 %v2097_v42 }
 0x30d   :  { %3798 = vmatprep.subr.bf16.mxu1 %v2971_v22  ;;  %v3016_v22 = vunpack.c.l.s8.bf16 %v2096_v27 }
 0x30e   :  { %3460 = vmatpush1.bf16.msra.mxu0 %v2960_v14  ;;  %v3010_v14 = vunpack.c.h.s8.bf16 %v2090_v61 }
 0x30f   :  { %3470 = vmatprep.subr.bf16.mxu0 %v2969_v34  ;;  %3790 = vmatmul.mubr.bf16.vlgmr.msra.gmra.mrb[16].mxu1 %v7772_v20  ;;  %v3019_v34 = vunpack.c.l.s8.bf16 %v2099_v23 }
 0x310   :  { %3799 = vmatpush1.bf16.msra.mxu1 %v2970_v7  ;;  %3830 = vmatprep.mubr.bf16.mxu1 %v7775_v4  ;;  %v2105_v7 = vld [vmem:[#allocation6 + $0xd08] sm:$0xff] }
 0x311   :  { %3462 = vmatmul.mubr.bf16.vlgmr.msra.gmra.mrb[16].mxu0 %v7772_v20  ;;  %3800 = vmatprep.subr.bf16.mxu1 %v2979_v40  ;;  %v3026_v40 = vunpack.c.h.s8.bf16 %v2098_v63  ;;  %v3033_v26 = vunpack.c.l.s8.bf16 %v2105_v7  ;;  %v3041_v35 = vunpack.c.h.s8.bf16 %v2105_v7 }
 0x312   :  { %3471 = vmatpush1.bf16.msra.mxu0 %v2968_v53  ;;  %3502 = vmatprep.mubr.bf16.mxu0 %v7775_v4  ;;  %v3027_v53 = vunpack.c.h.s8.bf16 %v2099_v23 }
 0x313   :  { %3472 = vmatprep.subr.bf16.mxu0 %v2977_v21  ;;  %v2107_v21 = vld [vmem:[#allocation6 + $0xd18] sm:$0xff] }
 0x314   :  { %3801 = vmatpush1.bf16.msra.mxu1 %v2978_v12  ;;  %v3035_v12 = vunpack.c.l.s8.bf16 %v2107_v21 }
 0x315   :  { %3802 = vmatprep.subr.bf16.mxu1 %v2987_v39 }
 0x316   :  { %3473 = vmatpush1.bf16.msra.mxu0 %v2976_v28  ;;  %v2104_v28 = vld [vmem:[#allocation6 + $0xd00] sm:$0xff] }
 0x317   :  { %3474 = vmatprep.subr.bf16.mxu0 %v2985_v18  ;;  %v2106_v18 = vld [vmem:[#allocation6 + $0xd10] sm:$0xff]  ;;  %v3032_v6 = vunpack.c.l.s8.bf16 %v2104_v28 }
 0x318   :  { %3803 = vmatpush1.bf16.msra.mxu1 %v2986_v29  ;;  %v3034_v39 = vunpack.c.l.s8.bf16 %v2106_v18  ;;  %v2113_v29 = vld [vmem:[#allocation6 + $0xd48] sm:$0xff]  ;;  %v3042_v45 = vunpack.c.h.s8.bf16 %v2106_v18 }
 0x319   :  { %3804 = vmatprep.subr.bf16.mxu1 %v2995_v58  ;;  %v3040_v58 = vunpack.c.h.s8.bf16 %v2104_v28  ;;  %v3049_v38 = vunpack.c.l.s8.bf16 %v2113_v29  ;;  %v3057_v61 = vunpack.c.h.s8.bf16 %v2113_v29  ;;  %v2130_v28 = vld [vmem:[#allocation6 + $0xdd0] sm:$0xff] }
 0x31a   :  { %3475 = vmatpush1.bf16.msra.mxu0 %v2984_v16  ;;  %v3043_v16 = vunpack.c.h.s8.bf16 %v2107_v21 }
 0x31b   :  { %3476 = vmatprep.subr.bf16.mxu0 %v2993_v50  ;;  %v2115_v50 = vld [vmem:[#allocation6 + $0xd58] sm:$0xff] }
 0x31c   :  { %3805 = vmatpush1.bf16.msra.mxu1 %v2994_v48  ;;  %v3051_v48 = vunpack.c.l.s8.bf16 %v2115_v50 }
 0x31d   :  { %3806 = vmatprep.subr.bf16.mxu1 %v3003_v3 }
 0x31e   :  { %3477 = vmatpush1.bf16.msra.mxu0 %v2992_v60  ;;  %v2112_v60 = vld [vmem:[#allocation6 + $0xd40] sm:$0xff] }
 0x31f   :  { %3478 = vmatprep.subr.bf16.mxu0 %v3001_v41  ;;  %v2114_v41 = vld [vmem:[#allocation6 + $0xd50] sm:$0xff]  ;;  %v3048_v52 = vunpack.c.l.s8.bf16 %v2112_v60 }
 0x320   :  { %3807 = vmatpush1.bf16.msra.mxu1 %v3002_v2  ;;  %v3050_v3 = vunpack.c.l.s8.bf16 %v2114_v41  ;;  %v2121_v2 = vld [vmem:[#allocation6 + $0xd88] sm:$0xff]  ;;  %v3058_v42 = vunpack.c.h.s8.bf16 %v2114_v41  ;;  %v2136_v41 = vld [vmem:[#allocation6 + $0xe00] sm:$0xff] }
 0x321   :  { %3808 = vmatprep.subr.bf16.mxu1 %v3011_v43  ;;  %v3056_v43 = vunpack.c.h.s8.bf16 %v2112_v60  ;;  %v3065_v23 = vunpack.c.l.s8.bf16 %v2121_v2  ;;  %v3073_v63 = vunpack.c.h.s8.bf16 %v2121_v2 }
 0x322   :  { %3479 = vmatpush1.bf16.msra.mxu0 %v3000_v37  ;;  %v3059_v37 = vunpack.c.h.s8.bf16 %v2115_v50  ;;  %v2137_v50 = vld [vmem:[#allocation6 + $0xe08] sm:$0xff] }
 0x323   :  { %3480 = vmatprep.subr.bf16.mxu0 %v3009_v10  ;;  %v2123_v10 = vld [vmem:[#allocation6 + $0xd98] sm:$0xff] }
 0x324   :  { %3809 = vmatpush1.bf16.msra.mxu1 %v3010_v14  ;;  %v3067_v14 = vunpack.c.l.s8.bf16 %v2123_v10 }
 0x325   :  { %3810 = vmatprep.subr.bf16.mxu1 %v3019_v34 }
 0x326   :  { %3481 = vmatpush1.bf16.msra.mxu0 %v3008_v51  ;;  %v2120_v51 = vld [vmem:[#allocation6 + $0xd80] sm:$0xff] }
 0x327   :  { %3482 = vmatprep.subr.bf16.mxu0 %v3017_v11  ;;  %v2122_v11 = vld [vmem:[#allocation6 + $0xd90] sm:$0xff]  ;;  %v3064_v27 = vunpack.c.l.s8.bf16 %v2120_v51 }
 0x328   :  { %3811 = vmatpush1.bf16.msra.mxu1 %v3018_v32  ;;  %v3066_v34 = vunpack.c.l.s8.bf16 %v2122_v11  ;;  %v2129_v32 = vld [vmem:[#allocation6 + $0xdc8] sm:$0xff]  ;;  %v3074_v7 = vunpack.c.h.s8.bf16 %v2122_v11 }
 0x329   :  { %3812 = vmatprep.subr.bf16.mxu1 %v3027_v53  ;;  %v3072_v53 = vunpack.c.h.s8.bf16 %v2120_v51  ;;  %v3081_v21 = vunpack.c.l.s8.bf16 %v2129_v32  ;;  %v2147_v51 = vld [vmem:[#allocation6 + $0xe58] sm:$0xff] }
 0x32a   :  { %3483 = vmatpush1.bf16.msra.mxu0 %v3016_v22  ;;  %v3075_v22 = vunpack.c.h.s8.bf16 %v2123_v10 }
 0x32b   :  { %3484 = vmatprep.subr.bf16.mxu0 %v3025_v19  ;;  %v2131_v19 = vld [vmem:[#allocation6 + $0xdd8] sm:$0xff] }
 0x32c   :  { %3813 = vmatpush1.bf16.msra.mxu1 %v3026_v40  ;;  %v1563_v40 = vrot.slane %v7764_v49, %v7162_v24  ;;  %v3091_v29 = vunpack.c.h.s8.bf16 %v2131_v19 }
 0x32d   :  { %3814 = vmatprep.subr.bf16.mxu1 %v3035_v12  ;;  %v6697_v12 = vld [vmem:[#allocation4 + $0x38] sm:$0xff] }
 0x32e   :  { %3485 = vmatpush1.bf16.msra.mxu0 %v3024_v31  ;;  %v2128_v31 = vld [vmem:[#allocation6 + $0xdc0] sm:$0xff]  ;;  %v1575_v18 = vrot.slane %v6697_v12, %v7165_v25 }
 0x32f   :  { %3486 = vmatprep.subr.bf16.mxu0 %v3033_v26  ;;  %v3083_v26 = vunpack.c.l.s8.bf16 %v2131_v19 }
 0x330   :  { %3815 = vmatpush1.bf16.msra.mxu1 %v3034_v39  ;;  %v3082_v39 = vunpack.c.l.s8.bf16 %v2130_v28  ;;  %v1655_v49 = vrot.slane %v1575_v18, %v7162_v24  ;;  %v2154_v18 = vld [vmem:[#allocation6 + $0xe90] sm:$0xff] }
 0x331   :  { %3816 = vmatprep.subr.bf16.mxu1 %v3043_v16  ;;  %v1643_v16 = vrot.slane %v1563_v40, %v7162_v24 }
 0x332   :  { %3487 = vmatpush1.bf16.msra.mxu0 %v3032_v6  ;;  %v3080_v6 = vunpack.c.l.s8.bf16 %v2128_v31 }
 0x333   :  { %3488 = vmatprep.subr.bf16.mxu0 %v3041_v35  ;;  %v3089_v35 = vunpack.c.h.s8.bf16 %v2129_v32  ;;  %v1668_v60 = vadd.f32 %v1643_v16, %v7665_v57 }
 0x334   :  { %3817 = vmatpush1.bf16.msra.mxu1 %v3042_v45  ;;  %v3088_v45 = vunpack.c.h.s8.bf16 %v2128_v31 }
 0x335   :  { %3818 = vmatprep.subr.bf16.mxu1 %v3051_v48  ;;  %v3097_v48 = vunpack.c.l.s8.bf16 %v2137_v50  ;;  %v7787_v2 = vpack.c.bf16 %v1668_v60, %v1668_v60 }
 0x336   :  { %3489 = vmatpush1.bf16.msra.mxu0 %v3040_v58  ;;  %v2139_v58 = vld [vmem:[#allocation6 + $0xe18] sm:$0xff] }
 0x337   :  { %3490 = vmatprep.subr.bf16.mxu0 %v3049_v38  ;;  %v3090_v38 = vunpack.c.h.s8.bf16 %v2130_v28  ;;  %v2152_v28 = vld [vmem:[#allocation6 + $0xe80] sm:$0xff] }
 0x338   :  { %3819 = vmatpush1.bf16.msra.mxu1 %v3050_v3  ;;  %v2138_v3 = vld [vmem:[#allocation6 + $0xe10] sm:$0xff] }
 0x339   :  { %3820 = vmatprep.subr.bf16.mxu1 %v3059_v37  ;;  %v3096_v37 = vunpack.c.l.s8.bf16 %v2136_v41  ;;  %v3098_v10 = vunpack.c.l.s8.bf16 %v2138_v3 }
 0x33a   :  { %3491 = vmatpush1.bf16.msra.mxu0 %v3048_v52  ;;  %v3099_v52 = vunpack.c.l.s8.bf16 %v2139_v58 }
 0x33b   :  { %3492 = vmatprep.subr.bf16.mxu0 %v3057_v61  ;;  %v1671_v61 = vadd.f32 %v1655_v49, %v7689_v8  ;;  %v3104_v8 = vunpack.c.h.s8.bf16 %v2136_v41  ;;  %v3138_v49 = vunpack.c.h.s8.bf16 %v2154_v18 }
 0x33c   :  { %3821 = vmatpush1.bf16.msra.mxu1 %v3058_v42  ;;  %v2145_v42 = vld [vmem:[#allocation6 + $0xe48] sm:$0xff] }
 0x33d   :  { %3822 = vmatprep.subr.bf16.mxu1 %v3067_v14  ;;  %v7790_v57 = vpack.c.bf16 %v1671_v61, %v1671_v61  ;;  %v3106_v14 = vunpack.c.h.s8.bf16 %v2138_v3  ;;  %v3113_v11 = vunpack.c.l.s8.bf16 %v2145_v42  ;;  %v3121_v19 = vunpack.c.h.s8.bf16 %v2145_v42 }
 0x33e   :  { %3493 = vmatpush1.bf16.msra.mxu0 %v3056_v43  ;;  %v3105_v43 = vunpack.c.h.s8.bf16 %v2137_v50  ;;  %v2163_v50 = vld [vmem:[#allocation6 + $0xed8] sm:$0xff] }
 0x33f   :  { %3494 = vmatprep.subr.bf16.mxu0 %v3065_v23  ;;  %v3107_v23 = vunpack.c.h.s8.bf16 %v2139_v58  ;;  %v3136_v58 = vunpack.c.h.s8.bf16 %v2152_v28  ;;  %v3147_v60 = vunpack.c.l.s8.bf16 %v2163_v50  ;;  %v3155_v61 = vunpack.c.h.s8.bf16 %v2163_v50  ;;  %v2184_v50 = vld [vmem:[#allocation6 + $0xf80] sm:$0xff] }
 0x340   :  { %3823 = vmatpush1.bf16.msra.mxu1 %v3066_v34  ;;  %v3115_v34 = vunpack.c.l.s8.bf16 %v2147_v51 }
 0x341   :  { %3824 = vmatprep.subr.bf16.mxu1 %v3075_v22 }
 0x342   :  { %3495 = vmatpush1.bf16.msra.mxu0 %v3064_v27  ;;  %v2144_v27 = vld [vmem:[#allocation6 + $0xe40] sm:$0xff] }
 0x343   :  { %3496 = vmatprep.subr.bf16.mxu0 %v3073_v63  ;;  %v2146_v63 = vld [vmem:[#allocation6 + $0xe50] sm:$0xff]  ;;  %v3112_v22 = vunpack.c.l.s8.bf16 %v2144_v27  ;;  %v3120_v31 = vunpack.c.h.s8.bf16 %v2144_v27 }
 0x344   :  { %3825 = vmatpush1.bf16.msra.mxu1 %v3074_v7  ;;  %v3114_v32 = vunpack.c.l.s8.bf16 %v2146_v63  ;;  %v2153_v7 = vld [vmem:[#allocation6 + $0xe88] sm:$0xff]  ;;  %v3122_v40 = vunpack.c.h.s8.bf16 %v2146_v63 }
 0x345   :  { %3826 = vmatprep.subr.bf16.mxu1 %v3083_v26  ;;  %v3129_v26 = vunpack.c.l.s8.bf16 %v2153_v7 }
 0x346   :  { %3497 = vmatpush1.bf16.msra.mxu0 %v3072_v53  ;;  %v3123_v53 = vunpack.c.h.s8.bf16 %v2147_v51  ;;  %v2168_v51 = vld [vmem:[#allocation6 + $0xf00] sm:$0xff] }
 0x347   :  { %3498 = vmatprep.subr.bf16.mxu0 %v3081_v21  ;;  %v2155_v21 = vld [vmem:[#allocation6 + $0xe98] sm:$0xff] }
 0x348   :  { %3827 = vmatpush1.bf16.msra.mxu1 %v3082_v39  ;;  %v3131_v12 = vunpack.c.l.s8.bf16 %v2155_v21  ;;  %v3130_v39 = vunpack.c.l.s8.bf16 %v2154_v18  ;;  %v3139_v16 = vunpack.c.h.s8.bf16 %v2155_v21  ;;  %v2176_v21 = vld [vmem:[#allocation6 + $0xf40] sm:$0xff] }
 0x349   :  { %3828 = vmatprep.subr.bf16.mxu1 %v3091_v29  ;;  %v2161_v29 = vld [vmem:[#allocation6 + $0xec8] sm:$0xff] }
 0x34a   :  { %3499 = vmatpush1.bf16.msra.mxu0 %v3080_v6  ;;  %v3128_v6 = vunpack.c.l.s8.bf16 %v2152_v28  ;;  %v3153_v3 = vunpack.c.h.s8.bf16 %v2161_v29 }
 0x34b   :  { %3500 = vmatprep.subr.bf16.mxu0 %v3089_v35  ;;  %v3137_v35 = vunpack.c.h.s8.bf16 %v2153_v7 }
 0x34c   :  { %3829 = vmatpush1.bf16.msra.mxu1 %v3090_v38  ;;  %v2160_v38 = vld [vmem:[#allocation6 + $0xec0] sm:$0xff] }
 0x34d   :  { %3839 = vmatprep.subr.bf16.mxu1 %v3099_v52  ;;  %v3144_v41 = vunpack.c.l.s8.bf16 %v2160_v38 }
 0x34e   :  { %3501 = vmatpush1.bf16.msra.mxu0 %v3088_v45  ;;  %v3145_v45 = vunpack.c.l.s8.bf16 %v2161_v29 }
 0x34f   :  { %3511 = vmatprep.subr.bf16.mxu0 %v3097_v48  ;;  %3831 = vmatmul.mubr.bf16.vlgmr.msra.gmra.mrb[16].mxu1 %v7787_v2  ;;  %v2162_v48 = vld [vmem:[#allocation6 + $0xed0] sm:$0xff] }
 0x350   :  { %3840 = vmatpush1.bf16.msra.mxu1 %v3098_v10  ;;  %3871 = vmatprep.mubr.bf16.mxu1 %v7790_v57  ;;  %v3146_v52 = vunpack.c.l.s8.bf16 %v2162_v48  ;;  %v2171_v10 = vld [vmem:[#allocation6 + $0xf18] sm:$0xff]  ;;  %v3154_v42 = vunpack.c.h.s8.bf16 %v2162_v48 }
 0x351   :  { %3503 = vmatmul.mubr.bf16.vlgmr.msra.gmra.mrb[16].mxu0 %v7787_v2  ;;  %3841 = vmatprep.subr.bf16.mxu1 %v3107_v23  ;;  %v3171_v63 = vunpack.c.h.s8.bf16 %v2171_v10 }
 0x352   :  { %3512 = vmatpush1.bf16.msra.mxu0 %v3096_v37  ;;  %3543 = vmatprep.mubr.bf16.mxu0 %v7790_v57  ;;  %v2169_v37 = vld [vmem:[#allocation6 + $0xf08] sm:$0xff] }
 0x353   :  { %3513 = vmatprep.subr.bf16.mxu0 %v3105_v43  ;;  %v3152_v43 = vunpack.c.h.s8.bf16 %v2160_v38  ;;  %v3161_v23 = vunpack.c.l.s8.bf16 %v2169_v37 }
 0x354   :  { %3842 = vmatpush1.bf16.msra.mxu1 %v3106_v14  ;;  %v2170_v14 = vld [vmem:[#allocation6 + $0xf10] sm:$0xff] }
 0x355   :  { %3843 = vmatprep.subr.bf16.mxu1 %v3115_v34  ;;  %v3162_v27 = vunpack.c.l.s8.bf16 %v2170_v14  ;;  %v3169_v34 = vunpack.c.h.s8.bf16 %v2169_v37 }
 0x356   :  { %3514 = vmatpush1.bf16.msra.mxu0 %v3104_v8  ;;  %v3163_v8 = vunpack.c.l.s8.bf16 %v2171_v10  ;;  %v2192_v10 = vld [vmem:[#allocation6 + $0xfc0] sm:$0xff] }
 0x357   :  { %3515 = vmatprep.subr.bf16.mxu0 %v3113_v11  ;;  %v3160_v11 = vunpack.c.l.s8.bf16 %v2168_v51 }
 0x358   :  { %3844 = vmatpush1.bf16.msra.mxu1 %v3114_v32  ;;  %v2179_v32 = vld [vmem:[#allocation6 + $0xf58] sm:$0xff] }
 0x359   :  { %3845 = vmatprep.subr.bf16.mxu1 %v3123_v53  ;;  %v3170_v53 = vunpack.c.h.s8.bf16 %v2170_v14  ;;  %v3187_v18 = vunpack.c.h.s8.bf16 %v2179_v32 }
 0x35a   :  { %3516 = vmatpush1.bf16.msra.mxu0 %v3112_v22  ;;  %v2177_v22 = vld [vmem:[#allocation6 + $0xf48] sm:$0xff] }
 0x35b   :  { %3517 = vmatprep.subr.bf16.mxu0 %v3121_v19  ;;  %v3168_v19 = vunpack.c.h.s8.bf16 %v2168_v51  ;;  %v3177_v7 = vunpack.c.l.s8.bf16 %v2177_v22 }
 0x35c   :  { %3846 = vmatpush1.bf16.msra.mxu1 %v3122_v40  ;;  %v2178_v40 = vld [vmem:[#allocation6 + $0xf50] sm:$0xff] }
 0x35d   :  { %3847 = vmatprep.subr.bf16.mxu1 %v3131_v12  ;;  %v3178_v28 = vunpack.c.l.s8.bf16 %v2178_v40  ;;  %v3185_v12 = vunpack.c.h.s8.bf16 %v2177_v22 }
 0x35e   :  { %3518 = vmatpush1.bf16.msra.mxu0 %v3120_v31  ;;  %v3179_v31 = vunpack.c.l.s8.bf16 %v2179_v32  ;;  %v1692_v32 = vld [vmem:[#allocation6 + $0x20] sm:$0xff] }
 0x35f   :  { %3519 = vmatprep.subr.bf16.mxu0 %v3129_v26  ;;  %v3176_v26 = vunpack.c.l.s8.bf16 %v2176_v21 }
 0x360   :  { %3848 = vmatpush1.bf16.msra.mxu1 %v3130_v39  ;;  %v2187_v39 = vld [vmem:[#allocation6 + $0xf98] sm:$0xff] }
 0x361   :  { %3849 = vmatprep.subr.bf16.mxu1 %v3139_v16  ;;  %v3186_v16 = vunpack.c.h.s8.bf16 %v2178_v40  ;;  %v3203_v48 = vunpack.c.h.s8.bf16 %v2187_v39 }
 0x362   :  { %3520 = vmatpush1.bf16.msra.mxu0 %v3128_v6  ;;  %v2185_v6 = vld [vmem:[#allocation6 + $0xf88] sm:$0xff] }
 0x363   :  { %3521 = vmatprep.subr.bf16.mxu0 %v3137_v35  ;;  %v3184_v35 = vunpack.c.h.s8.bf16 %v2176_v21  ;;  %v3193_v29 = vunpack.c.l.s8.bf16 %v2185_v6  ;;  %v7797_v21 = vpack.c.bf16 %v7697_v54, %v7697_v54  ;;  %v1700_v54 = vld [vmem:[#allocation6 + $0x60] sm:$0xff] }
 0x364   :  { %3850 = vmatpush1.bf16.msra.mxu1 %v3138_v49  ;;  %v2186_v49 = vld [vmem:[#allocation6 + $0xf90] sm:$0xff] }
 0x365   :  { %3851 = vmatprep.subr.bf16.mxu1 %v3147_v60  ;;  %v3194_v38 = vunpack.c.l.s8.bf16 %v2186_v49  ;;  %v3201_v60 = vunpack.c.h.s8.bf16 %v2185_v6 }
 0x366   :  { %3522 = vmatpush1.bf16.msra.mxu0 %v3136_v58  ;;  %v3195_v58 = vunpack.c.l.s8.bf16 %v2187_v39 }
 0x367   :  { %3523 = vmatprep.subr.bf16.mxu0 %v3145_v45  ;;  %v3192_v45 = vunpack.c.l.s8.bf16 %v2184_v50 }
 0x368   :  { %3852 = vmatpush1.bf16.msra.mxu1 %v3146_v52  ;;  %v2195_v52 = vld [vmem:[#allocation6 + $0xfd8] sm:$0xff] }
 0x369   :  { %3853 = vmatprep.subr.bf16.mxu1 %v3155_v61  ;;  %v3202_v61 = vunpack.c.h.s8.bf16 %v2186_v49  ;;  %v3219_v14 = vunpack.c.h.s8.bf16 %v2195_v52 }
 0x36a   :  { %3524 = vmatpush1.bf16.msra.mxu0 %v3144_v41  ;;  %v2193_v41 = vld [vmem:[#allocation6 + $0xfc8] sm:$0xff] }
 0x36b   :  { %3525 = vmatprep.subr.bf16.mxu0 %v3153_v3  ;;  %v3200_v3 = vunpack.c.h.s8.bf16 %v2184_v50  ;;  %v3209_v37 = vunpack.c.l.s8.bf16 %v2193_v41 }
 0x36c   :  { %3854 = vmatpush1.bf16.msra.mxu1 %v3154_v42  ;;  %v2194_v42 = vld [vmem:[#allocation6 + $0xfd0] sm:$0xff] }
 0x36d   :  { %3855 = vmatprep.subr.bf16.mxu1 %v3163_v8  ;;  %v3210_v51 = vunpack.c.l.s8.bf16 %v2194_v42  ;;  %v3217_v8 = vunpack.c.h.s8.bf16 %v2193_v41  ;;  %v1708_v41 = vld [vmem:[#allocation6 + $0xa0] sm:$0xff] }
 0x36e   :  { %3526 = vmatpush1.bf16.msra.mxu0 %v3152_v43  ;;  %v3211_v43 = vunpack.c.l.s8.bf16 %v2195_v52 }
 0x36f   :  { %3527 = vmatprep.subr.bf16.mxu0 %v3161_v23  ;;  %v3208_v23 = vunpack.c.l.s8.bf16 %v2192_v10 }
 0x370   :  { %3856 = vmatpush1.bf16.msra.mxu1 %v3162_v27  ;;  %v1695_v27 = vld [vmem:[#allocation6 + $0x38] sm:$0xff] }
 0x371   :  { %3857 = vmatprep.subr.bf16.mxu1 %v3171_v63  ;;  %v3218_v63 = vunpack.c.h.s8.bf16 %v2194_v42  ;;  %v1717_v42 = vld [vmem:[#allocation6 + $0xe8] sm:$0xff] }
 0x372   :  { %3528 = vmatpush1.bf16.msra.mxu0 %v3160_v11  ;;  %v1693_v11 = vld [vmem:[#allocation6 + $0x28] sm:$0xff] }
 0x373   :  { %3529 = vmatprep.subr.bf16.mxu0 %v3169_v34  ;;  %v3216_v34 = vunpack.c.h.s8.bf16 %v2192_v10  ;;  %v2205_v22 = vunpack.c.l.s8.bf16 %v1693_v11  ;;  %v2213_v40 = vunpack.c.h.s8.bf16 %v1693_v11  ;;  %v1716_v11 = vld [vmem:[#allocation6 + $0xe0] sm:$0xff] }
 0x374   :  { %3858 = vmatpush1.bf16.msra.mxu1 %v3170_v53  ;;  %v1694_v53 = vld [vmem:[#allocation6 + $0x30] sm:$0xff] }
 0x375   :  { %3859 = vmatprep.subr.bf16.mxu1 %v3179_v31  ;;  %v2206_v31 = vunpack.c.l.s8.bf16 %v1694_v53  ;;  %v2214_v6 = vunpack.c.h.s8.bf16 %v1694_v53  ;;  %v1725_v53 = vld [vmem:[#allocation6 + $0x128] sm:$0xff] }
 0x376   :  { %3530 = vmatpush1.bf16.msra.mxu0 %v3168_v19  ;;  %v2207_v19 = vunpack.c.l.s8.bf16 %v1695_v27 }
 0x377   :  { %3531 = vmatprep.subr.bf16.mxu0 %v3177_v7  ;;  %v2204_v7 = vunpack.c.l.s8.bf16 %v1692_v32 }
 0x378   :  { %3860 = vmatpush1.bf16.msra.mxu1 %v3178_v28  ;;  %v2215_v28 = vunpack.c.h.s8.bf16 %v1695_v27 }
 0x379   :  { %3861 = vmatprep.subr.bf16.mxu1 %v3187_v18  ;;  %v2212_v18 = vunpack.c.h.s8.bf16 %v1692_v32  ;;  %v2261_v32 = vunpack.c.h.s8.bf16 %v1717_v42 }
 0x37a   :  { %3532 = vmatpush1.bf16.msra.mxu0 %v3176_v26  ;;  %v1701_v26 = vld [vmem:[#allocation6 + $0x68] sm:$0xff] }
 0x37b   :  { %3533 = vmatprep.subr.bf16.mxu0 %v3185_v12  ;;  %v1703_v12 = vld [vmem:[#allocation6 + $0x78] sm:$0xff]  ;;  %v2221_v39 = vunpack.c.l.s8.bf16 %v1701_v26 }
 0x37c   :  { %3862 = vmatpush1.bf16.msra.mxu1 %v3186_v16  ;;  %v1702_v16 = vld [vmem:[#allocation6 + $0x70] sm:$0xff]  ;;  %v2231_v49 = vunpack.c.h.s8.bf16 %v1703_v12 }
 0x37d   :  { %3863 = vmatprep.subr.bf16.mxu1 %v3195_v58  ;;  %v2222_v50 = vunpack.c.l.s8.bf16 %v1702_v16  ;;  %v2229_v58 = vunpack.c.h.s8.bf16 %v1701_v26  ;;  %v2269_v26 = vunpack.c.l.s8.bf16 %v1725_v53 }
 0x37e   :  { %3534 = vmatpush1.bf16.msra.mxu0 %v3184_v35  ;;  %v2223_v35 = vunpack.c.l.s8.bf16 %v1703_v12 }
 0x37f   :  { %3535 = vmatprep.subr.bf16.mxu0 %v3193_v29  ;;  %v2220_v29 = vunpack.c.l.s8.bf16 %v1700_v54 }
 0x380   :  { %3864 = vmatpush1.bf16.msra.mxu1 %v3194_v38  ;;  %v1711_v38 = vld [vmem:[#allocation6 + $0xb8] sm:$0xff] }
 0x381   :  { %3865 = vmatprep.subr.bf16.mxu1 %v3203_v48  ;;  %v2230_v48 = vunpack.c.h.s8.bf16 %v1702_v16  ;;  %v2239_v52 = vunpack.c.l.s8.bf16 %v1711_v38  ;;  %v1733_v16 = vld [vmem:[#allocation6 + $0x168] sm:$0xff] }
 0x382   :  { %3536 = vmatpush1.bf16.msra.mxu0 %v3192_v45  ;;  %v1709_v45 = vld [vmem:[#allocation6 + $0xa8] sm:$0xff] }
 0x383   :  { %3537 = vmatprep.subr.bf16.mxu0 %v3201_v60  ;;  %v2228_v60 = vunpack.c.h.s8.bf16 %v1700_v54  ;;  %v2245_v10 = vunpack.c.h.s8.bf16 %v1709_v45  ;;  %v2277_v54 = vunpack.c.h.s8.bf16 %v1725_v53  ;;  %v1748_v53 = vld [vmem:[#allocation6 + $0x1e0] sm:$0xff] }
 0x384   :  { %3866 = vmatpush1.bf16.msra.mxu1 %v3202_v61  ;;  %v2236_v61 = vunpack.c.l.s8.bf16 %v1708_v41 }
 0x385   :  { %3867 = vmatprep.subr.bf16.mxu1 %v3211_v43  ;;  %v2247_v43 = vunpack.c.h.s8.bf16 %v1711_v38 }
 0x386   :  { %3538 = vmatpush1.bf16.msra.mxu0 %v3200_v3  ;;  %v1710_v3 = vld [vmem:[#allocation6 + $0xb0] sm:$0xff] }
 0x387   :  { %3539 = vmatprep.subr.bf16.mxu0 %v3209_v37  ;;  %v2238_v37 = vunpack.c.l.s8.bf16 %v1710_v3 }
 0x388   :  { %3868 = vmatpush1.bf16.msra.mxu1 %v3210_v51  ;;  %v2244_v51 = vunpack.c.h.s8.bf16 %v1708_v41  ;;  %v2293_v41 = vunpack.c.h.s8.bf16 %v1733_v16 }
 0x389   :  { %3869 = vmatprep.subr.bf16.mxu1 %v3219_v14  ;;  %v2253_v14 = vunpack.c.l.s8.bf16 %v1717_v42  ;;  %v1740_v42 = vld [vmem:[#allocation6 + $0x1a0] sm:$0xff] }
 0x38a   :  { %3540 = vmatpush1.bf16.msra.mxu0 %v3208_v23  ;;  %v1719_v23 = vld [vmem:[#allocation6 + $0xf8] sm:$0xff] }
 0x38b   :  { %3541 = vmatprep.subr.bf16.mxu0 %v3217_v8  ;;  %v2246_v8 = vunpack.c.h.s8.bf16 %v1710_v3  ;;  %v2255_v27 = vunpack.c.l.s8.bf16 %v1719_v23  ;;  %v1741_v3 = vld [vmem:[#allocation6 + $0x1a8] sm:$0xff] }
 0x38c   :  { %3870 = vmatpush1.bf16.msra.mxu1 %v3218_v63  ;;  %v2252_v63 = vunpack.c.l.s8.bf16 %v1716_v11 }
 0x38d   :  { %4208 = vmatprep.subr.bf16.mxu1 %v2207_v19  ;;  %v2263_v19 = vunpack.c.h.s8.bf16 %v1719_v23 }
 0x38e   :  { %3542 = vmatpush1.bf16.msra.mxu0 %v3216_v34  ;;  %v1718_v34 = vld [vmem:[#allocation6 + $0xf0] sm:$0xff] }
 0x38f   :  { %3880 = vmatprep.subr.bf16.mxu0 %v2205_v22  ;;  %3872 = vmatmul.mubr.bf16.vlgmr.msra.gmra.mrb[16].mxu1 %v7797_v21  ;;  %v2254_v22 = vunpack.c.l.s8.bf16 %v1718_v34 }
 0x390   :  { %4209 = vmatpush1.bf16.msra.mxu1 %v2206_v31  ;;  %4240 = vmatprep.mubr.bf16.mxu1 %v7224_v36  ;;  %v2260_v31 = vunpack.c.h.s8.bf16 %v1716_v11  ;;  %v2309_v11 = vunpack.c.h.s8.bf16 %v1741_v3 }
 0x391   :  { %3544 = vmatmul.mubr.bf16.vlgmr.msra.gmra.mrb[16].mxu0 %v7797_v21  ;;  %4210 = vmatprep.subr.bf16.mxu1 %v2215_v28  ;;  %v1724_v28 = vld [vmem:[#allocation6 + $0x120] sm:$0xff] }
 0x392   :  { %3881 = vmatpush1.bf16.msra.mxu0 %v2204_v7  ;;  %3912 = vmatprep.mubr.bf16.mxu0 %v7224_v36  ;;  %v2237_v36 = vunpack.c.l.s8.bf16 %v1709_v45  ;;  %v1727_v7 = vld [vmem:[#allocation6 + $0x138] sm:$0xff]  ;;  %v1732_v45 = vld [vmem:[#allocation6 + $0x160] sm:$0xff] }
 0x393   :  { %3882 = vmatprep.subr.bf16.mxu0 %v2213_v40  ;;  %v2262_v40 = vunpack.c.h.s8.bf16 %v1718_v34  ;;  %v2271_v12 = vunpack.c.l.s8.bf16 %v1727_v7  ;;  %v1749_v34 = vld [vmem:[#allocation6 + $0x1e8] sm:$0xff] }
 0x394   :  { %4211 = vmatpush1.bf16.msra.mxu1 %v2214_v6  ;;  %v2268_v6 = vunpack.c.l.s8.bf16 %v1724_v28 }
 0x395   :  { %4212 = vmatprep.subr.bf16.mxu1 %v2223_v35  ;;  %v2279_v35 = vunpack.c.h.s8.bf16 %v1727_v7 }
 0x396   :  { %3883 = vmatpush1.bf16.msra.mxu0 %v2212_v18  ;;  %v1726_v18 = vld [vmem:[#allocation6 + $0x130] sm:$0xff] }
 0x397   :  { %3884 = vmatprep.subr.bf16.mxu0 %v2221_v39  ;;  %v2270_v39 = vunpack.c.l.s8.bf16 %v1726_v18 }
 0x398   :  { %4213 = vmatpush1.bf16.msra.mxu1 %v2222_v50  ;;  %v2276_v50 = vunpack.c.h.s8.bf16 %v1724_v28  ;;  %v2325_v28 = vunpack.c.h.s8.bf16 %v1749_v34 }
 0x399   :  { %4214 = vmatprep.subr.bf16.mxu1 %v2231_v49  ;;  %v2285_v49 = vunpack.c.l.s8.bf16 %v1733_v16  ;;  %v1756_v16 = vld [vmem:[#allocation6 + $0x220] sm:$0xff] }
 0x39a   :  { %3885 = vmatpush1.bf16.msra.mxu0 %v2220_v29  ;;  %v1735_v29 = vld [vmem:[#allocation6 + $0x178] sm:$0xff] }
 0x39b   :  { %3886 = vmatprep.subr.bf16.mxu0 %v2229_v58  ;;  %v2278_v58 = vunpack.c.h.s8.bf16 %v1726_v18  ;;  %v2287_v38 = vunpack.c.l.s8.bf16 %v1735_v29  ;;  %v1757_v18 = vld [vmem:[#allocation6 + $0x228] sm:$0xff] }
 0x39c   :  { %4215 = vmatpush1.bf16.msra.mxu1 %v2230_v48  ;;  %v2284_v48 = vunpack.c.l.s8.bf16 %v1732_v45 }
 0x39d   :  { %4216 = vmatprep.subr.bf16.mxu1 %v2239_v52  ;;  %v2295_v52 = vunpack.c.h.s8.bf16 %v1735_v29 }
 0x39e   :  { %3887 = vmatpush1.bf16.msra.mxu0 %v2228_v60  ;;  %v1734_v60 = vld [vmem:[#allocation6 + $0x170] sm:$0xff] }
 0x39f   :  { %3888 = vmatprep.subr.bf16.mxu0 %v2237_v36  ;;  %v2286_v36 = vunpack.c.l.s8.bf16 %v1734_v60 }
 0x3a0   :  { %4217 = vmatpush1.bf16.msra.mxu1 %v2238_v37  ;;  %v2292_v37 = vunpack.c.h.s8.bf16 %v1732_v45  ;;  %v2341_v45 = vunpack.c.h.s8.bf16 %v1757_v18 }
 0x3a1   :  { %4218 = vmatprep.subr.bf16.mxu1 %v2247_v43  ;;  %v2301_v43 = vunpack.c.l.s8.bf16 %v1741_v3  ;;  %v1764_v3 = vld [vmem:[#allocation6 + $0x260] sm:$0xff] }
 0x3a2   :  { %3889 = vmatpush1.bf16.msra.mxu0 %v2236_v61  ;;  %v1743_v61 = vld [vmem:[#allocation6 + $0x1b8] sm:$0xff] }
 0x3a3   :  { %3890 = vmatprep.subr.bf16.mxu0 %v2245_v10  ;;  %v2294_v10 = vunpack.c.h.s8.bf16 %v1734_v60  ;;  %v2303_v23 = vunpack.c.l.s8.bf16 %v1743_v61 }
 0x3a4   :  { %4219 = vmatpush1.bf16.msra.mxu1 %v2246_v8  ;;  %v2300_v8 = vunpack.c.l.s8.bf16 %v1740_v42 }
 0x3a5   :  { %4220 = vmatprep.subr.bf16.mxu1 %v2255_v27  ;;  %v2311_v27 = vunpack.c.h.s8.bf16 %v1743_v61 }
 0x3a6   :  { %3891 = vmatpush1.bf16.msra.mxu0 %v2244_v51  ;;  %v1742_v51 = vld [vmem:[#allocation6 + $0x1b0] sm:$0xff] }
 0x3a7   :  { %3892 = vmatprep.subr.bf16.mxu0 %v2253_v14  ;;  %v2302_v14 = vunpack.c.l.s8.bf16 %v1742_v51 }
 0x3a8   :  { %4221 = vmatpush1.bf16.msra.mxu1 %v2254_v22  ;;  %v2308_v22 = vunpack.c.h.s8.bf16 %v1740_v42 }
 0x3a9   :  { %4222 = vmatprep.subr.bf16.mxu1 %v2263_v19  ;;  %v2317_v19 = vunpack.c.l.s8.bf16 %v1749_v34  ;;  %v1774_v34 = vld [vmem:[#allocation6 + $0x2b0] sm:$0xff] }
 0x3aa   :  { %3893 = vmatpush1.bf16.msra.mxu0 %v2252_v63  ;;  %v1751_v63 = vld [vmem:[#allocation6 + $0x1f8] sm:$0xff] }
 0x3ab   :  { %3894 = vmatprep.subr.bf16.mxu0 %v2261_v32  ;;  %v2310_v32 = vunpack.c.h.s8.bf16 %v1742_v51  ;;  %v2319_v7 = vunpack.c.l.s8.bf16 %v1751_v63  ;;  %v1775_v51 = vld [vmem:[#allocation6 + $0x2b8] sm:$0xff] }
 0x3ac   :  { %4223 = vmatpush1.bf16.msra.mxu1 %v2262_v40  ;;  %v2316_v40 = vunpack.c.l.s8.bf16 %v1748_v53 }
 0x3ad   :  { %4224 = vmatprep.subr.bf16.mxu1 %v2271_v12  ;;  %v2327_v12 = vunpack.c.h.s8.bf16 %v1751_v63 }
 0x3ae   :  { %3895 = vmatpush1.bf16.msra.mxu0 %v2260_v31  ;;  %v1750_v31 = vld [vmem:[#allocation6 + $0x1f0] sm:$0xff] }
 0x3af   :  { %3896 = vmatprep.subr.bf16.mxu0 %v2269_v26  ;;  %v2318_v26 = vunpack.c.l.s8.bf16 %v1750_v31 }
 0x3b0   :  { %4225 = vmatpush1.bf16.msra.mxu1 %v2270_v39  ;;  %v2324_v39 = vunpack.c.h.s8.bf16 %v1748_v53  ;;  %v1781_v53 = vld [vmem:[#allocation6 + $0x2e8] sm:$0xff] }
 0x3b1   :  { %4226 = vmatprep.subr.bf16.mxu1 %v2279_v35  ;;  %v2333_v35 = vunpack.c.l.s8.bf16 %v1757_v18  ;;  %v1782_v18 = vld [vmem:[#allocation6 + $0x2f0] sm:$0xff] }
 0x3b2   :  { %3897 = vmatpush1.bf16.msra.mxu0 %v2268_v6  ;;  %v1759_v6 = vld [vmem:[#allocation6 + $0x238] sm:$0xff] }
 0x3b3   :  { %3898 = vmatprep.subr.bf16.mxu0 %v2277_v54  ;;  %v2326_v54 = vunpack.c.h.s8.bf16 %v1750_v31  ;;  %v2335_v29 = vunpack.c.l.s8.bf16 %v1759_v6  ;;  %v2343_v60 = vunpack.c.h.s8.bf16 %v1759_v6 }
 0x3b4   :  { %4227 = vmatpush1.bf16.msra.mxu1 %v2278_v58  ;;  %v2332_v58 = vunpack.c.l.s8.bf16 %v1756_v16 }
 0x3b5   :  { %4228 = vmatprep.subr.bf16.mxu1 %v2287_v38  ;;  %v1765_v38 = vld [vmem:[#allocation6 + $0x268] sm:$0xff] }
 0x3b6   :  { %3899 = vmatpush1.bf16.msra.mxu0 %v2276_v50  ;;  %v1758_v50 = vld [vmem:[#allocation6 + $0x230] sm:$0xff] }
 0x3b7   :  { %3900 = vmatprep.subr.bf16.mxu0 %v2285_v49  ;;  %v2334_v49 = vunpack.c.l.s8.bf16 %v1758_v50 }
 0x3b8   :  { %4229 = vmatpush1.bf16.msra.mxu1 %v2286_v36  ;;  %v2340_v36 = vunpack.c.h.s8.bf16 %v1756_v16  ;;  %v1789_v16 = vld [vmem:[#allocation6 + $0x328] sm:$0xff] }
 0x3b9   :  { %4230 = vmatprep.subr.bf16.mxu1 %v2295_v52  ;;  %v2349_v52 = vunpack.c.l.s8.bf16 %v1765_v38 }
 0x3ba   :  { %3901 = vmatpush1.bf16.msra.mxu0 %v2284_v48  ;;  %v1767_v48 = vld [vmem:[#allocation6 + $0x278] sm:$0xff] }
 0x3bb   :  { %3902 = vmatprep.subr.bf16.mxu0 %v2293_v41  ;;  %v2342_v41 = vunpack.c.h.s8.bf16 %v1758_v50  ;;  %v2351_v61 = vunpack.c.l.s8.bf16 %v1767_v48  ;;  %v2359_v42 = vunpack.c.h.s8.bf16 %v1767_v48 }
 0x3bc   :  { %4231 = vmatpush1.bf16.msra.mxu1 %v2294_v10  ;;  %v2348_v10 = vunpack.c.l.s8.bf16 %v1764_v3 }
 0x3bd   :  { %4232 = vmatprep.subr.bf16.mxu1 %v2303_v23  ;;  %v1773_v23 = vld [vmem:[#allocation6 + $0x2a8] sm:$0xff] }
 0x3be   :  { %3903 = vmatpush1.bf16.msra.mxu0 %v2292_v37  ;;  %v1766_v37 = vld [vmem:[#allocation6 + $0x270] sm:$0xff] }
 0x3bf   :  { %3904 = vmatprep.subr.bf16.mxu0 %v2301_v43  ;;  %v2350_v43 = vunpack.c.l.s8.bf16 %v1766_v37 }
 0x3c0   :  { %4233 = vmatpush1.bf16.msra.mxu1 %v2302_v14  ;;  %v2358_v14 = vunpack.c.h.s8.bf16 %v1766_v37 }
 0x3c1   :  { %4234 = vmatprep.subr.bf16.mxu1 %v2311_v27  ;;  %v2367_v27 = vunpack.c.l.s8.bf16 %v1775_v51 }
 0x3c2   :  { %3905 = vmatpush1.bf16.msra.mxu0 %v2300_v8  ;;  %v2356_v8 = vunpack.c.h.s8.bf16 %v1764_v3  ;;  %v1797_v3 = vld [vmem:[#allocation6 + $0x368] sm:$0xff] }
 0x3c3   :  { %3906 = vmatprep.subr.bf16.mxu0 %v2309_v11  ;;  %v1772_v11 = vld [vmem:[#allocation6 + $0x2a0] sm:$0xff] }
 0x3c4   :  { %4235 = vmatpush1.bf16.msra.mxu1 %v2310_v32  ;;  %v2364_v63 = vunpack.c.l.s8.bf16 %v1772_v11  ;;  %v2373_v32 = vunpack.c.h.s8.bf16 %v1773_v23  ;;  %v2372_v31 = vunpack.c.h.s8.bf16 %v1772_v11  ;;  %v1805_v11 = vld [vmem:[#allocation6 + $0x3a8] sm:$0xff] }
 0x3c5   :  { %4236 = vmatprep.subr.bf16.mxu1 %v2319_v7  ;;  %v1783_v7 = vld [vmem:[#allocation6 + $0x2f8] sm:$0xff] }
 0x3c6   :  { %3907 = vmatpush1.bf16.msra.mxu0 %v2308_v22  ;;  %v2366_v22 = vunpack.c.l.s8.bf16 %v1774_v34 }
 0x3c7   :  { %3908 = vmatprep.subr.bf16.mxu0 %v2317_v19  ;;  %v2375_v19 = vunpack.c.h.s8.bf16 %v1775_v51 }
 0x3c8   :  { %4237 = vmatpush1.bf16.msra.mxu1 %v2318_v26  ;;  %v2381_v26 = vunpack.c.l.s8.bf16 %v1781_v53 }
 0x3c9   :  { %4238 = vmatprep.subr.bf16.mxu1 %v2327_v12  ;;  %v2383_v12 = vunpack.c.l.s8.bf16 %v1783_v7 }
 0x3ca   :  { %3909 = vmatpush1.bf16.msra.mxu0 %v2316_v40  ;;  %v2374_v40 = vunpack.c.h.s8.bf16 %v1774_v34 }
 0x3cb   :  { %3910 = vmatprep.subr.bf16.mxu0 %v2325_v28  ;;  %v1780_v28 = vld [vmem:[#allocation6 + $0x2e0] sm:$0xff] }
 0x3cc   :  { %4239 = vmatpush1.bf16.msra.mxu1 %v2326_v54  ;;  %v2380_v6 = vunpack.c.l.s8.bf16 %v1780_v28  ;;  %v2389_v54 = vunpack.c.h.s8.bf16 %v1781_v53  ;;  %v2388_v50 = vunpack.c.h.s8.bf16 %v1780_v28  ;;  %v1806_v53 = vld [vmem:[#allocation6 + $0x3b0] sm:$0xff]  ;;  %v1813_v28 = vld [vmem:[#allocation6 + $0x3e8] sm:$0xff] }
 0x3cd   :  { %4249 = vmatprep.subr.bf16.mxu1 %v2335_v29  ;;  %v1791_v29 = vld [vmem:[#allocation6 + $0x338] sm:$0xff] }
 0x3ce   :  { %3911 = vmatpush1.bf16.msra.mxu0 %v2324_v39  ;;  %v2382_v39 = vunpack.c.l.s8.bf16 %v1782_v18 }
 0x3cf   :  { %3921 = vmatprep.subr.bf16.mxu0 %v2333_v35  ;;  %4241 = vmatmul.mubr.bf16.vlgmr.msra.gmra.mrb[20].mxu1 %v7226_v1  ;;  %v2391_v35 = vunpack.c.h.s8.bf16 %v1783_v7 }
 0x3d0   :  { %4250 = vmatpush1.bf16.msra.mxu1 %v2334_v49  ;;  %4281 = vmatprep.mubr.bf16.mxu1 %v7234_v55  ;;  %v2397_v49 = vunpack.c.l.s8.bf16 %v1789_v16 }
 0x3d1   :  { %3913 = vmatmul.mubr.bf16.vlgmr.msra.gmra.mrb[20].mxu0 %v7226_v1  ;;  %4251 = vmatprep.subr.bf16.mxu1 %v2343_v60  ;;  %v2357_v1 = vunpack.c.h.s8.bf16 %v1765_v38  ;;  %v2399_v38 = vunpack.c.l.s8.bf16 %v1791_v29  ;;  %v1790_v60 = vld [vmem:[#allocation6 + $0x330] sm:$0xff] }
 0x3d2   :  { %3922 = vmatpush1.bf16.msra.mxu0 %v2332_v58  ;;  %3953 = vmatprep.mubr.bf16.mxu0 %v7234_v55  ;;  %v2365_v55 = vunpack.c.l.s8.bf16 %v1773_v23  ;;  %v2390_v58 = vunpack.c.h.s8.bf16 %v1782_v18  ;;  %v1798_v23 = vld [vmem:[#allocation6 + $0x370] sm:$0xff] }
 0x3d3   :  { %3923 = vmatprep.subr.bf16.mxu0 %v2341_v45  ;;  %v1788_v45 = vld [vmem:[#allocation6 + $0x320] sm:$0xff] }
 0x3d4   :  { %4252 = vmatpush1.bf16.msra.mxu1 %v2342_v41  ;;  %v2396_v48 = vunpack.c.l.s8.bf16 %v1788_v45  ;;  %v2405_v41 = vunpack.c.h.s8.bf16 %v1789_v16  ;;  %v2404_v37 = vunpack.c.h.s8.bf16 %v1788_v45  ;;  %v1814_v16 = vld [vmem:[#allocation6 + $0x3f0] sm:$0xff]  ;;  %v1821_v45 = vld [vmem:[#allocation6 + $0x428] sm:$0xff] }
 0x3d5   :  { %4253 = vmatprep.subr.bf16.mxu1 %v2351_v61  ;;  %v1799_v61 = vld [vmem:[#allocation6 + $0x378] sm:$0xff] }
 0x3d6   :  { %3924 = vmatpush1.bf16.msra.mxu0 %v2340_v36  ;;  %v2398_v36 = vunpack.c.l.s8.bf16 %v1790_v60 }
 0x3d7   :  { %3925 = vmatprep.subr.bf16.mxu0 %v2349_v52  ;;  %v2407_v52 = vunpack.c.h.s8.bf16 %v1791_v29 }
 0x3d8   :  { %4254 = vmatpush1.bf16.msra.mxu1 %v2350_v43  ;;  %v2413_v43 = vunpack.c.l.s8.bf16 %v1797_v3 }
 0x3d9   :  { %4255 = vmatprep.subr.bf16.mxu1 %v2359_v42  ;;  %v2415_v42 = vunpack.c.l.s8.bf16 %v1799_v61 }
 0x3da   :  { %3926 = vmatpush1.bf16.msra.mxu0 %v2348_v10  ;;  %v2406_v10 = vunpack.c.h.s8.bf16 %v1790_v60 }
 0x3db   :  { %3927 = vmatprep.subr.bf16.mxu0 %v2357_v1  ;;  %v1796_v1 = vld [vmem:[#allocation6 + $0x360] sm:$0xff] }
 0x3dc   :  { %4256 = vmatpush1.bf16.msra.mxu1 %v2358_v14  ;;  %v2412_v51 = vunpack.c.l.s8.bf16 %v1796_v1  ;;  %v2421_v14 = vunpack.c.h.s8.bf16 %v1797_v3  ;;  %v2420_v34 = vunpack.c.h.s8.bf16 %v1796_v1  ;;  %v1822_v3 = vld [vmem:[#allocation6 + $0x430] sm:$0xff] }
 0x3dd   :  { %4257 = vmatprep.subr.bf16.mxu1 %v2367_v27  ;;  %v1807_v27 = vld [vmem:[#allocation6 + $0x3b8] sm:$0xff] }
 0x3de   :  { %3928 = vmatpush1.bf16.msra.mxu0 %v2356_v8  ;;  %v2414_v8 = vunpack.c.l.s8.bf16 %v1798_v23 }
 0x3df   :  { %3929 = vmatprep.subr.bf16.mxu0 %v2365_v55  ;;  %v2423_v55 = vunpack.c.h.s8.bf16 %v1799_v61 }
 0x3e0   :  { %4258 = vmatpush1.bf16.msra.mxu1 %v2366_v22  ;;  %v2429_v22 = vunpack.c.l.s8.bf16 %v1805_v11 }
 0x3e1   :  { %4259 = vmatprep.subr.bf16.mxu1 %v2375_v19  ;;  %v2431_v19 = vunpack.c.l.s8.bf16 %v1807_v27 }
 0x3e2   :  { %3930 = vmatpush1.bf16.msra.mxu0 %v2364_v63  ;;  %v2422_v63 = vunpack.c.h.s8.bf16 %v1798_v23 }
 0x3e3   :  { %3931 = vmatprep.subr.bf16.mxu0 %v2373_v32  ;;  %v1804_v32 = vld [vmem:[#allocation6 + $0x3a0] sm:$0xff] }
 0x3e4   :  { %4260 = vmatpush1.bf16.msra.mxu1 %v2374_v40  ;;  %v2428_v7 = vunpack.c.l.s8.bf16 %v1804_v32  ;;  %v2437_v40 = vunpack.c.h.s8.bf16 %v1805_v11  ;;  %v2436_v18 = vunpack.c.h.s8.bf16 %v1804_v32  ;;  %v1830_v11 = vld [vmem:[#allocation6 + $0x470] sm:$0xff]  ;;  %v1839_v32 = vld [vmem:[#allocation6 + $0x4b8] sm:$0xff] }
 0x3e5   :  { %4261 = vmatprep.subr.bf16.mxu1 %v2383_v12  ;;  %v1815_v12 = vld [vmem:[#allocation6 + $0x3f8] sm:$0xff] }
 0x3e6   :  { %3932 = vmatpush1.bf16.msra.mxu0 %v2372_v31  ;;  %v2430_v31 = vunpack.c.l.s8.bf16 %v1806_v53 }
 0x3e7   :  { %3933 = vmatprep.subr.bf16.mxu0 %v2381_v26  ;;  %v2439_v26 = vunpack.c.h.s8.bf16 %v1807_v27 }
 0x3e8   :  { %4262 = vmatpush1.bf16.msra.mxu1 %v2382_v39  ;;  %v2445_v39 = vunpack.c.l.s8.bf16 %v1813_v28 }
 0x3e9   :  { %4263 = vmatprep.subr.bf16.mxu1 %v2391_v35  ;;  %v2447_v35 = vunpack.c.l.s8.bf16 %v1815_v12 }
 0x3ea   :  { %3934 = vmatpush1.bf16.msra.mxu0 %v2380_v6  ;;  %v2438_v6 = vunpack.c.h.s8.bf16 %v1806_v53  ;;  %v2486_v53 = vunpack.c.h.s8.bf16 %v1830_v11 }
 0x3eb   :  { %3935 = vmatprep.subr.bf16.mxu0 %v2389_v54  ;;  %v1812_v54 = vld [vmem:[#allocation6 + $0x3e0] sm:$0xff] }
 0x3ec   :  { %4264 = vmatpush1.bf16.msra.mxu1 %v2390_v58  ;;  %v2444_v29 = vunpack.c.l.s8.bf16 %v1812_v54  ;;  %v2453_v58 = vunpack.c.h.s8.bf16 %v1813_v28  ;;  %v2452_v60 = vunpack.c.h.s8.bf16 %v1812_v54 }
 0x3ed   :  { %4265 = vmatprep.subr.bf16.mxu1 %v2399_v38  ;;  %v1823_v38 = vld [vmem:[#allocation6 + $0x438] sm:$0xff] }
 0x3ee   :  { %3936 = vmatpush1.bf16.msra.mxu0 %v2388_v50  ;;  %v2446_v50 = vunpack.c.l.s8.bf16 %v1814_v16  ;;  %v2471_v1 = vunpack.c.h.s8.bf16 %v1823_v38 }
 0x3ef   :  { %3937 = vmatprep.subr.bf16.mxu0 %v2397_v49  ;;  %v2455_v49 = vunpack.c.h.s8.bf16 %v1815_v12 }
 0x3f0   :  { %4266 = vmatpush1.bf16.msra.mxu1 %v2398_v36  ;;  %v2461_v36 = vunpack.c.l.s8.bf16 %v1821_v45 }
 0x3f1   :  { %4267 = vmatprep.subr.bf16.mxu1 %v2407_v52  ;;  %v2463_v52 = vunpack.c.l.s8.bf16 %v1823_v38 }
 0x3f2   :  { %3938 = vmatpush1.bf16.msra.mxu0 %v2396_v48  ;;  %v2454_v48 = vunpack.c.h.s8.bf16 %v1814_v16 }
 0x3f3   :  { %3939 = vmatprep.subr.bf16.mxu0 %v2405_v41  ;;  %v1820_v41 = vld [vmem:[#allocation6 + $0x420] sm:$0xff] }
 0x3f4   :  { %4268 = vmatpush1.bf16.msra.mxu1 %v2406_v10  ;;  %v2460_v61 = vunpack.c.l.s8.bf16 %v1820_v41  ;;  %v2469_v10 = vunpack.c.h.s8.bf16 %v1821_v45  ;;  %v2468_v23 = vunpack.c.h.s8.bf16 %v1820_v41 }
 0x3f5   :  { %4269 = vmatprep.subr.bf16.mxu1 %v2415_v42  ;;  %v1831_v42 = vld [vmem:[#allocation6 + $0x478] sm:$0xff] }
 0x3f6   :  { %3940 = vmatpush1.bf16.msra.mxu0 %v2404_v37  ;;  %v2462_v37 = vunpack.c.l.s8.bf16 %v1822_v3 }
 0x3f7   :  { %3941 = vmatprep.subr.bf16.mxu0 %v2413_v43  ;;  %v1829_v43 = vld [vmem:[#allocation6 + $0x468] sm:$0xff] }
 0x3f8   :  { %4270 = vmatpush1.bf16.msra.mxu1 %v2414_v8  ;;  %v2477_v8 = vunpack.c.l.s8.bf16 %v1829_v43 }
 0x3f9   :  { %4271 = vmatprep.subr.bf16.mxu1 %v2423_v55  ;;  %v2479_v55 = vunpack.c.l.s8.bf16 %v1831_v42 }
 0x3fa   :  { %3942 = vmatpush1.bf16.msra.mxu0 %v2412_v51  ;;  %v2470_v51 = vunpack.c.h.s8.bf16 %v1822_v3 }
 0x3fb   :  { %3943 = vmatprep.subr.bf16.mxu0 %v2421_v14  ;;  %v1828_v14 = vld [vmem:[#allocation6 + $0x460] sm:$0xff] }
 0x3fc   :  { %4272 = vmatpush1.bf16.msra.mxu1 %v2422_v63  ;;  %v2476_v27 = vunpack.c.l.s8.bf16 %v1828_v14  ;;  %v2487_v63 = vunpack.c.h.s8.bf16 %v1831_v42 }
 0x3fd   :  { %4273 = vmatprep.subr.bf16.mxu1 %v2431_v19  ;;  %v2484_v19 = vunpack.c.h.s8.bf16 %v1828_v14 }
 0x3fe   :  { %3944 = vmatpush1.bf16.msra.mxu0 %v2420_v34  ;;  %v2478_v34 = vunpack.c.l.s8.bf16 %v1830_v11 }
 0x3ff   :  { %3945 = vmatprep.subr.bf16.mxu0 %v2429_v22  ;;  %v1837_v22 = vld [vmem:[#allocation6 + $0x4a8] sm:$0xff] }
 0x400   :  { %4274 = vmatpush1.bf16.msra.mxu1 %v2430_v31  ;;  %v2495_v31 = vunpack.c.l.s8.bf16 %v1839_v32  ;;  %v2501_v12 = vunpack.c.h.s8.bf16 %v1837_v22 }
 0x401   :  { %4275 = vmatprep.subr.bf16.mxu1 %v2439_v26 }
 0x402   :  { %3946 = vmatpush1.bf16.msra.mxu0 %v2428_v7  ;;  %v1836_v7 = vld [vmem:[#allocation6 + $0x4a0] sm:$0xff] }
 0x403   :  { %3947 = vmatprep.subr.bf16.mxu0 %v2437_v40  ;;  %v1838_v40 = vld [vmem:[#allocation6 + $0x4b0] sm:$0xff]  ;;  %v2492_v26 = vunpack.c.l.s8.bf16 %v1836_v7  ;;  %v2500_v54 = vunpack.c.h.s8.bf16 %v1836_v7 }
 0x404   :  { %4276 = vmatpush1.bf16.msra.mxu1 %v2438_v6  ;;  %v2494_v28 = vunpack.c.l.s8.bf16 %v1838_v40  ;;  %v1845_v6 = vld [vmem:[#allocation6 + $0x4e8] sm:$0xff] }
 0x405   :  { %4277 = vmatprep.subr.bf16.mxu1 %v2447_v35  ;;  %v2502_v35 = vunpack.c.h.s8.bf16 %v1838_v40  ;;  %v2509_v16 = vunpack.c.l.s8.bf16 %v1845_v6  ;;  %v2517_v38 = vunpack.c.h.s8.bf16 %v1845_v6 }
 0x406   :  { %3948 = vmatpush1.bf16.msra.mxu0 %v2436_v18  ;;  %v2503_v18 = vunpack.c.h.s8.bf16 %v1839_v32 }
 0x407   :  { %3949 = vmatprep.subr.bf16.mxu0 %v2445_v39  ;;  %v1847_v39 = vld [vmem:[#allocation6 + $0x4f8] sm:$0xff] }
 0x408   :  { %4278 = vmatpush1.bf16.msra.mxu1 %v2446_v50  ;;  %v2511_v50 = vunpack.c.l.s8.bf16 %v1847_v39 }
 0x409   :  { %4279 = vmatprep.subr.bf16.mxu1 %v2455_v49 }
 0x40a   :  { %3950 = vmatpush1.bf16.msra.mxu0 %v2444_v29  ;;  %v1844_v29 = vld [vmem:[#allocation6 + $0x4e0] sm:$0xff] }
 0x40b   :  { %3951 = vmatprep.subr.bf16.mxu0 %v2453_v58  ;;  %v1846_v58 = vld [vmem:[#allocation6 + $0x4f0] sm:$0xff]  ;;  %v2508_v49 = vunpack.c.l.s8.bf16 %v1844_v29  ;;  %v2516_v41 = vunpack.c.h.s8.bf16 %v1844_v29 }
 0x40c   :  { %4280 = vmatpush1.bf16.msra.mxu1 %v2454_v48  ;;  %v2510_v45 = vunpack.c.l.s8.bf16 %v1846_v58  ;;  %v1853_v48 = vld [vmem:[#allocation6 + $0x528] sm:$0xff] }
 0x40d   :  { %4290 = vmatprep.subr.bf16.mxu1 %v2463_v52  ;;  %v2518_v52 = vunpack.c.h.s8.bf16 %v1846_v58  ;;  %v2525_v3 = vunpack.c.l.s8.bf16 %v1853_v48  ;;  %v2533_v42 = vunpack.c.h.s8.bf16 %v1853_v48 }
 0x40e   :  { %3952 = vmatpush1.bf16.msra.mxu0 %v2452_v60  ;;  %v2519_v60 = vunpack.c.h.s8.bf16 %v1847_v39 }
 0x40f   :  { %3962 = vmatprep.subr.bf16.mxu0 %v2461_v36  ;;  %4282 = vmatmul.mubr.bf16.vlgmr.msra.gmra.mrb[20].mxu1 %v7596_v13  ;;  %v1855_v36 = vld [vmem:[#allocation6 + $0x538] sm:$0xff] }
 0x410   :  { %4291 = vmatpush1.bf16.msra.mxu1 %v2462_v37  ;;  %4322 = vmatprep.mubr.bf16.mxu1 %v7601_v5  ;;  %v2527_v37 = vunpack.c.l.s8.bf16 %v1855_v36 }
 0x411   :  { %3954 = vmatmul.mubr.bf16.vlgmr.msra.gmra.mrb[20].mxu0 %v7596_v13  ;;  %4292 = vmatprep.subr.bf16.mxu1 %v2471_v1  ;;  %v2485_v13 = vunpack.c.h.s8.bf16 %v1829_v43 }
 0x412   :  { %3963 = vmatpush1.bf16.msra.mxu0 %v2460_v61  ;;  %3994 = vmatprep.mubr.bf16.mxu0 %v7601_v5  ;;  %v2493_v5 = vunpack.c.l.s8.bf16 %v1837_v22  ;;  %v1852_v61 = vld [vmem:[#allocation6 + $0x520] sm:$0xff] }
 0x413   :  { %3964 = vmatprep.subr.bf16.mxu0 %v2469_v10  ;;  %v1854_v10 = vld [vmem:[#allocation6 + $0x530] sm:$0xff]  ;;  %v2524_v43 = vunpack.c.l.s8.bf16 %v1852_v61  ;;  %v2532_v14 = vunpack.c.h.s8.bf16 %v1852_v61 }
 0x414   :  { %4293 = vmatpush1.bf16.msra.mxu1 %v2470_v51  ;;  %v2526_v1 = vunpack.c.l.s8.bf16 %v1854_v10  ;;  %v1861_v51 = vld [vmem:[#allocation6 + $0x568] sm:$0xff] }
 0x415   :  { %4294 = vmatprep.subr.bf16.mxu1 %v2479_v55  ;;  %v2534_v55 = vunpack.c.h.s8.bf16 %v1854_v10  ;;  %v2541_v11 = vunpack.c.l.s8.bf16 %v1861_v51  ;;  %v2549_v32 = vunpack.c.h.s8.bf16 %v1861_v51 }
 0x416   :  { %3965 = vmatpush1.bf16.msra.mxu0 %v2468_v23  ;;  %v2535_v23 = vunpack.c.h.s8.bf16 %v1855_v36 }
 0x417   :  { %3966 = vmatprep.subr.bf16.mxu0 %v2477_v8  ;;  %v1863_v8 = vld [vmem:[#allocation6 + $0x578] sm:$0xff] }
 0x418   :  { %4295 = vmatpush1.bf16.msra.mxu1 %v2478_v34  ;;  %v2543_v34 = vunpack.c.l.s8.bf16 %v1863_v8 }
 0x419   :  { %4296 = vmatprep.subr.bf16.mxu1 %v2487_v63 }
 0x41a   :  { %3967 = vmatpush1.bf16.msra.mxu0 %v2476_v27  ;;  %v1860_v27 = vld [vmem:[#allocation6 + $0x560] sm:$0xff] }
 0x41b   :  { %3968 = vmatprep.subr.bf16.mxu0 %v2485_v13  ;;  %v1862_v13 = vld [vmem:[#allocation6 + $0x570] sm:$0xff]  ;;  %v2540_v63 = vunpack.c.l.s8.bf16 %v1860_v27  ;;  %v2548_v7 = vunpack.c.h.s8.bf16 %v1860_v27 }
 0x41c   :  { %4297 = vmatpush1.bf16.msra.mxu1 %v2486_v53  ;;  %v2542_v22 = vunpack.c.l.s8.bf16 %v1862_v13  ;;  %v1869_v53 = vld [vmem:[#allocation6 + $0x5a8] sm:$0xff] }
 0x41d   :  { %4298 = vmatprep.subr.bf16.mxu1 %v2495_v31  ;;  %v2550_v31 = vunpack.c.h.s8.bf16 %v1862_v13  ;;  %v2557_v40 = vunpack.c.l.s8.bf16 %v1869_v53  ;;  %v2565_v39 = vunpack.c.h.s8.bf16 %v1869_v53 }
 0x41e   :  { %3969 = vmatpush1.bf16.msra.mxu0 %v2484_v19  ;;  %v2551_v19 = vunpack.c.h.s8.bf16 %v1863_v8 }
 0x41f   :  { %3970 = vmatprep.subr.bf16.mxu0 %v2493_v5  ;;  %v1871_v5 = vld [vmem:[#allocation6 + $0x5b8] sm:$0xff] }
 0x420   :  { %4299 = vmatpush1.bf16.msra.mxu1 %v2494_v28  ;;  %v2559_v28 = vunpack.c.l.s8.bf16 %v1871_v5 }
 0x421   :  { %4300 = vmatprep.subr.bf16.mxu1 %v2503_v18 }
 0x422   :  { %3971 = vmatpush1.bf16.msra.mxu0 %v2492_v26  ;;  %v1868_v26 = vld [vmem:[#allocation6 + $0x5a0] sm:$0xff] }
 0x423   :  { %3972 = vmatprep.subr.bf16.mxu0 %v2501_v12  ;;  %v1870_v12 = vld [vmem:[#allocation6 + $0x5b0] sm:$0xff]  ;;  %v2556_v18 = vunpack.c.l.s8.bf16 %v1868_v26  ;;  %v2564_v29 = vunpack.c.h.s8.bf16 %v1868_v26  ;;  %v7815_v26 = vld [vmem:[#allocation7] sm:$0xff] }
 0x424   :  { %4301 = vmatpush1.bf16.msra.mxu1 %v2502_v35  ;;  %v2558_v6 = vunpack.c.l.s8.bf16 %v1870_v12  ;;  %v1877_v35 = vld [vmem:[#allocation6 + $0x5e8] sm:$0xff] }
 0x425   :  { %4302 = vmatprep.subr.bf16.mxu1 %v2511_v50  ;;  %v2566_v50 = vunpack.c.h.s8.bf16 %v1870_v12  ;;  %v2573_v58 = vunpack.c.l.s8.bf16 %v1877_v35  ;;  %v2581_v36 = vunpack.c.h.s8.bf16 %v1877_v35  ;;  %v1900_v12 = vld [vmem:[#allocation6 + $0x6a0] sm:$0xff] }
 0x426   :  { %3973 = vmatpush1.bf16.msra.mxu0 %v2500_v54  ;;  %v2567_v54 = vunpack.c.h.s8.bf16 %v1871_v5  ;;  %v2620_v35 = vunpack.c.l.s8.bf16 %v1900_v12 }
 0x427   :  { %3974 = vmatprep.subr.bf16.mxu0 %v2509_v16  ;;  %v1879_v16 = vld [vmem:[#allocation6 + $0x5f8] sm:$0xff] }
 0x428   :  { %4303 = vmatpush1.bf16.msra.mxu1 %v2510_v45  ;;  %v2575_v45 = vunpack.c.l.s8.bf16 %v1879_v16 }
 0x429   :  { %4304 = vmatprep.subr.bf16.mxu1 %v2519_v60 }
 0x42a   :  { %3975 = vmatpush1.bf16.msra.mxu0 %v2508_v49  ;;  %v1876_v49 = vld [vmem:[#allocation6 + $0x5e0] sm:$0xff] }
 0x42b   :  { %3976 = vmatprep.subr.bf16.mxu0 %v2517_v38  ;;  %v1878_v38 = vld [vmem:[#allocation6 + $0x5f0] sm:$0xff]  ;;  %v2572_v60 = vunpack.c.l.s8.bf16 %v1876_v49  ;;  %v2580_v61 = vunpack.c.h.s8.bf16 %v1876_v49 }
 0x42c   :  { %4305 = vmatpush1.bf16.msra.mxu1 %v2518_v52  ;;  %v2574_v48 = vunpack.c.l.s8.bf16 %v1878_v38  ;;  %v1885_v52 = vld [vmem:[#allocation6 + $0x628] sm:$0xff] }
 0x42d   :  { %4306 = vmatprep.subr.bf16.mxu1 %v2527_v37  ;;  %v2582_v37 = vunpack.c.h.s8.bf16 %v1878_v38  ;;  %v2589_v10 = vunpack.c.l.s8.bf16 %v1885_v52  ;;  %v2597_v8 = vunpack.c.h.s8.bf16 %v1885_v52 }
 0x42e   :  { %3977 = vmatpush1.bf16.msra.mxu0 %v2516_v41  ;;  %v2583_v41 = vunpack.c.h.s8.bf16 %v1879_v16 }
 0x42f   :  { %3978 = vmatprep.subr.bf16.mxu0 %v2525_v3  ;;  %v1887_v3 = vld [vmem:[#allocation6 + $0x638] sm:$0xff] }
 0x430   :  { %4307 = vmatpush1.bf16.msra.mxu1 %v2526_v1  ;;  %v2591_v1 = vunpack.c.l.s8.bf16 %v1887_v3 }
 0x431   :  { %4308 = vmatprep.subr.bf16.mxu1 %v2535_v23 }
 0x432   :  { %3979 = vmatpush1.bf16.msra.mxu0 %v2524_v43  ;;  %v1884_v43 = vld [vmem:[#allocation6 + $0x620] sm:$0xff] }
 0x433   :  { %3980 = vmatprep.subr.bf16.mxu0 %v2533_v42  ;;  %v1886_v42 = vld [vmem:[#allocation6 + $0x630] sm:$0xff]  ;;  %v2588_v23 = vunpack.c.l.s8.bf16 %v1884_v43  ;;  %v2596_v27 = vunpack.c.h.s8.bf16 %v1884_v43 }
 0x434   :  { %4309 = vmatpush1.bf16.msra.mxu1 %v2534_v55  ;;  %v2590_v51 = vunpack.c.l.s8.bf16 %v1886_v42  ;;  %v2599_v55 = vunpack.c.h.s8.bf16 %v1887_v3  ;;  %v1911_v3 = vld [vmem:[#allocation6 + $0x6f8] sm:$0xff] }
 0x435   :  { %4310 = vmatprep.subr.bf16.mxu1 %v2543_v34  ;;  %v2598_v34 = vunpack.c.h.s8.bf16 %v1886_v42 }
 0x436   :  { %3981 = vmatpush1.bf16.msra.mxu0 %v2532_v14  ;;  %v1893_v14 = vld [vmem:[#allocation6 + $0x668] sm:$0xff] }
 0x437   :  { %3982 = vmatprep.subr.bf16.mxu0 %v2541_v11  ;;  %v1895_v11 = vld [vmem:[#allocation6 + $0x678] sm:$0xff]  ;;  %v2605_v13 = vunpack.c.l.s8.bf16 %v1893_v14 }
 0x438   :  { %4311 = vmatpush1.bf16.msra.mxu1 %v2542_v22  ;;  %v2607_v22 = vunpack.c.l.s8.bf16 %v1895_v11  ;;  %v2615_v5 = vunpack.c.h.s8.bf16 %v1895_v11  ;;  %v2639_v11 = vunpack.c.l.s8.bf16 %v1911_v3 }
 0x439   :  { %4312 = vmatprep.subr.bf16.mxu1 %v2551_v19 }
 0x43a   :  { %3983 = vmatpush1.bf16.msra.mxu0 %v2540_v63  ;;  %v1892_v63 = vld [vmem:[#allocation6 + $0x660] sm:$0xff] }
 0x43b   :  { %3984 = vmatprep.subr.bf16.mxu0 %v2549_v32  ;;  %v1894_v32 = vld [vmem:[#allocation6 + $0x670] sm:$0xff]  ;;  %v2604_v19 = vunpack.c.l.s8.bf16 %v1892_v63 }
 0x43c   :  { %4313 = vmatpush1.bf16.msra.mxu1 %v2550_v31  ;;  %v2606_v53 = vunpack.c.l.s8.bf16 %v1894_v32  ;;  %v1903_v31 = vld [vmem:[#allocation6 + $0x6b8] sm:$0xff] }
 0x43d   :  { %4314 = vmatprep.subr.bf16.mxu1 %v2559_v28 }
 0x43e   :  { %3985 = vmatpush1.bf16.msra.mxu0 %v2548_v7  ;;  %v1901_v7 = vld [vmem:[#allocation6 + $0x6a8] sm:$0xff] }
 0x43f   :  { %3986 = vmatprep.subr.bf16.mxu0 %v2557_v40  ;;  %v2612_v40 = vunpack.c.h.s8.bf16 %v1892_v63  ;;  %v2621_v28 = vunpack.c.l.s8.bf16 %v1901_v7 }
 0x440   :  { %4315 = vmatpush1.bf16.msra.mxu1 %v2558_v6  ;;  %v2623_v6 = vunpack.c.l.s8.bf16 %v1903_v31 }
 0x441   :  { %4316 = vmatprep.subr.bf16.mxu1 %v2567_v54  ;;  %v4547_v54 = vrot.slane %v7815_v26, %v7088_v44 }
 0x442   :  { %3987 = vmatpush1.bf16.msra.mxu0 %v2556_v18  ;;  %v7817_v18 = vld [vmem:[#allocation7 + $0x8] sm:$0xff] }
 0x443   :  { %3988 = vmatprep.subr.bf16.mxu0 %v2565_v39  ;;  %v1902_v39 = vld [vmem:[#allocation6 + $0x6b0] sm:$0xff]  ;;  %v4555_v16 = vrot.slane %v7817_v18, %v7088_v44  ;;  %v4559_v49 = vrot.slane %v7817_v18, %v7093_v46  ;;  %v4635_v38 = vrot.slane %v7817_v18, %v7096_v47  ;;  %v4639_v52 = vrot.slane %v7817_v18, %v7101_v0 }
 0x444   :  { %4317 = vmatpush1.bf16.msra.mxu1 %v2566_v50  ;;  %v2622_v50 = vunpack.c.l.s8.bf16 %v1902_v39  ;;  %v2630_v42 = vunpack.c.h.s8.bf16 %v1902_v39 }
 0x445   :  { %4318 = vmatprep.subr.bf16.mxu1 %v2575_v45  ;;  %v2629_v45 = vunpack.c.h.s8.bf16 %v1901_v7 }
 0x446   :  { %3989 = vmatpush1.bf16.msra.mxu0 %v2564_v29  ;;  %v4551_v29 = vrot.slane %v7815_v26, %v7093_v46 }
 0x447   :  { %3990 = vmatprep.subr.bf16.mxu0 %v2573_v58  ;;  %v4627_v58 = vrot.slane %v7815_v26, %v7096_v47 }
 0x448   :  { %4319 = vmatpush1.bf16.msra.mxu1 %v2574_v48  ;;  %v2631_v48 = vunpack.c.h.s8.bf16 %v1903_v31 }
 0x449   :  { %4320 = vmatprep.subr.bf16.mxu1 %v2583_v41  ;;  %v4587_v41 = vrot.slane %v4547_v54, %v7088_v44  ;;  %v4667_v43 = vrot.slane %v4627_v58, %v7096_v47  ;;  %v1919_v58 = vld [vmem:[#allocation6 + $0x738] sm:$0xff] }
 0x44a   :  { %3991 = vmatpush1.bf16.msra.mxu0 %v2572_v60  ;;  %v4631_v60 = vrot.slane %v7815_v26, %v7101_v0 }
 0x44b   :  { %3992 = vmatprep.subr.bf16.mxu0 %v2581_v36  ;;  %v1909_v36 = vld [vmem:[#allocation6 + $0x6e8] sm:$0xff] }
 0x44c   :  { %4321 = vmatpush1.bf16.msra.mxu1 %v2582_v37  ;;  %v4591_v37 = vrot.slane %v4551_v29, %v7088_v44 }
 0x44d   :  { %4331 = vmatprep.subr.bf16.mxu1 %v2591_v1  ;;  %v4599_v1 = vrot.slane %v4559_v49, %v7088_v44 }
 0x44e   :  { %3993 = vmatpush1.bf16.msra.mxu0 %v2580_v61  ;;  %v4595_v61 = vrot.slane %v4555_v16, %v7088_v44  ;;  %v1917_v16 = vld [vmem:[#allocation6 + $0x728] sm:$0xff] }
 0x44f   :  { %4003 = vmatprep.subr.bf16.mxu0 %v2589_v10  ;;  %4323 = vmatmul.mubr.bf16.vlgmr.msra.gmra.mrb[20].mxu1 %v7706_v9  ;;  %v2628_v10 = vunpack.c.h.s8.bf16 %v1900_v12  ;;  %v2645_v12 = vunpack.c.h.s8.bf16 %v1909_v36 }
 0x450   :  { %4332 = vmatpush1.bf16.msra.mxu1 %v2590_v51  ;;  %4363 = vmatprep.mubr.bf16.mxu1 %v7708_v30  ;;  %v1908_v51 = vld [vmem:[#allocation6 + $0x6e0] sm:$0xff] }
 0x451   :  { %3995 = vmatmul.mubr.bf16.vlgmr.msra.gmra.mrb[20].mxu0 %v7706_v9  ;;  %4333 = vmatprep.subr.bf16.mxu1 %v2599_v55  ;;  %v2613_v9 = vunpack.c.h.s8.bf16 %v1893_v14  ;;  %v4675_v14 = vrot.slane %v4635_v38, %v7096_v47  ;;  %v4671_v55 = vrot.slane %v4631_v60, %v7096_v47  ;;  %v2644_v38 = vunpack.c.h.s8.bf16 %v1908_v51 }
 0x452   :  { %4004 = vmatpush1.bf16.msra.mxu0 %v2588_v23  ;;  %4035 = vmatprep.mubr.bf16.mxu0 %v7708_v30  ;;  %v2614_v30 = vunpack.c.h.s8.bf16 %v1894_v32  ;;  %v2637_v23 = vunpack.c.l.s8.bf16 %v1909_v36 }
 0x453   :  { %4005 = vmatprep.subr.bf16.mxu0 %v2597_v8 }
 0x454   :  { %4334 = vmatpush1.bf16.msra.mxu1 %v2598_v34 }
 0x455   :  { %4335 = vmatprep.subr.bf16.mxu1 %v2607_v22  ;;  %v4679_v22 = vrot.slane %v4639_v52, %v7096_v47  ;;  %v1916_v52 = vld [vmem:[#allocation6 + $0x720] sm:$0xff] }
 0x456   :  { %4006 = vmatpush1.bf16.msra.mxu0 %v2596_v27  ;;  %v1910_v27 = vld [vmem:[#allocation6 + $0x6f0] sm:$0xff] }
 0x457   :  { %4007 = vmatprep.subr.bf16.mxu0 %v2605_v13  ;;  %v2646_v36 = vunpack.c.h.s8.bf16 %v1910_v27 }
 0x458   :  { %4336 = vmatpush1.bf16.msra.mxu1 %v2606_v53 }
 0x459   :  { %4337 = vmatprep.subr.bf16.mxu1 %v2615_v5  ;;  %v2636_v5 = vunpack.c.l.s8.bf16 %v1908_v51  ;;  %v2652_v51 = vunpack.c.l.s8.bf16 %v1916_v52 }
 0x45a   :  { %4008 = vmatpush1.bf16.msra.mxu0 %v2604_v19 }
 0x45b   :  { %4009 = vmatprep.subr.bf16.mxu0 %v2613_v9 }
 0x45c   :  { %4338 = vmatpush1.bf16.msra.mxu1 %v2614_v30 }
 0x45d   :  { %4339 = vmatprep.subr.bf16.mxu1 %v2623_v6 }
 0x45e   :  { %4010 = vmatpush1.bf16.msra.mxu0 %v2612_v40 }
 0x45f   :  { %4011 = vmatprep.subr.bf16.mxu0 %v2621_v28  ;;  %v2638_v28 = vunpack.c.l.s8.bf16 %v1910_v27 }
 0x460   :  { %4340 = vmatpush1.bf16.msra.mxu1 %v2622_v50 }
 0x461   :  { %4341 = vmatprep.subr.bf16.mxu1 %v2631_v48 }
 0x462   :  { %4012 = vmatpush1.bf16.msra.mxu0 %v2620_v35  ;;  %v3873_v13 = vpop.f32.mrb[16].mxu1  ;;  %v2647_v35 = vunpack.c.h.s8.bf16 %v1911_v3 }
 0x463   :  { %4013 = vmatprep.subr.bf16.mxu0 %v2629_v45  ;;  %v4618_v32 = vmul.f32 %v4595_v61, %v3873_v13  ;;  %v3875_v53 = vpop.f32.mrb[17].mxu1  ;;  %v2663_v13 = vunpack.c.h.s8.bf16 %v1919_v58 }
 0x464   :  { %v3545_v8 = vpop.f32.mrb[16].mxu0  ;;  %v4619_v31 = vmul.f32 %v4599_v1, %v3875_v53  ;;  %v3877_v40 = vpop.f32.mrb[18].mxu1  ;;  %4342 = vmatpush1.bf16.msra.mxu1 %v2630_v42 }
 0x465   :  { %v4616_v34 = vmul.f32 %v4587_v41, %v3545_v8  ;;  %v3547_v63 = vpop.f32.mrb[17].mxu0  ;;  %v4698_v6 = vadd.f32 %v4675_v14, %v4618_v32  ;;  %v3878_v54 = vpop.f32.mrb[19].mxu1  ;;  %4343 = vmatprep.subr.bf16.mxu1 %v2639_v11  ;;  %v2653_v41 = vunpack.c.l.s8.bf16 %v1917_v16  ;;  %v2661_v11 = vunpack.c.h.s8.bf16 %v1917_v16 }
 0x466   :  { %v4617_v19 = vmul.f32 %v4591_v37, %v3547_v63  ;;  %v3549_v9 = vpop.f32.mrb[18].mxu0  ;;  %4014 = vmatpush1.bf16.msra.mxu0 %v2628_v10  ;;  %v4699_v50 = vadd.f32 %v4679_v22, %v4619_v31  ;;  %v2655_v37 = vunpack.c.l.s8.bf16 %v1919_v58  ;;  %v1918_v10 = vld [vmem:[#allocation6 + $0x730] sm:$0xff]  ;;  %v1925_v63 = vld [vmem:[#allocation6 + $0x768] sm:$0xff] }
 0x467   :  { %v4696_v7 = vadd.f32 %v4667_v43, %v4616_v34  ;;  %v3550_v30 = vpop.f32.mrb[19].mxu0  ;;  %4015 = vmatprep.subr.bf16.mxu0 %v2637_v23  ;;  %v7845_v49 = vmax.f32 %v4698_v6, 0.0  ;;  %v2662_v40 = vunpack.c.h.s8.bf16 %v1918_v10  ;;  %v1926_v54 = vld [vmem:[#allocation6 + $0x770] sm:$0xff] }
 0x468   :  { %v4697_v39 = vadd.f32 %v4671_v55, %v4617_v19  ;;  %v7850_v48 = vmax.f32 %v4699_v50, 0.0  ;;  %4344 = vmatpush1.bf16.msra.mxu1 %v2638_v28  ;;  %v2654_v55 = vunpack.c.l.s8.bf16 %v1918_v10  ;;  %v1927_v19 = vld [vmem:[#allocation6 + $0x778] sm:$0xff]  ;;  %v2669_v30 = vunpack.c.l.s8.bf16 %v1925_v63  ;;  %v1924_v28 = vld [vmem:[#allocation6 + $0x760] sm:$0xff]  ;;  %v1933_v10 = vld [vmem:[#allocation6 + $0x7a8] sm:$0xff] }
 0x469   :  { %v7843_v29 = vmax.f32 %v4696_v7, 0.0  ;;  %v4724_v3 = vrot.slane %v7845_v49, 4  ;;  %4345 = vmatprep.subr.bf16.mxu1 %v2647_v35 }
 0x46a   :  { %v7847_v45 = vmax.f32 %v4697_v39, 0.0  ;;  %4016 = vmatpush1.bf16.msra.mxu0 %v2636_v5  ;;  %v4730_v1 = vrot.slane %v7850_v48, 4  ;;  %v2660_v5 = vunpack.c.h.s8.bf16 %v1916_v52  ;;  %v2671_v39 = vunpack.c.l.s8.bf16 %v1927_v19 }
 0x46b   :  { %v4712_v60 = vrot.slane %v7843_v29, 4  ;;  %4017 = vmatprep.subr.bf16.mxu0 %v2645_v12  ;;  %v4725_v42 = vadd.f32 %v4724_v3, %v7845_v49  ;;  %v2677_v52 = vunpack.c.h.s8.bf16 %v1925_v63 }
 0x46c   :  { %v4718_v61 = vrot.slane %v7847_v45, 4  ;;  %v4731_v14 = vadd.f32 %v4730_v1, %v7850_v48  ;;  %4346 = vmatpush1.bf16.msra.mxu1 %v2646_v36 }
 0x46d   :  { %v4713_v43 = vadd.f32 %v4712_v60, %v7843_v29  ;;  %v4726_v27 = vrot.slane %v4725_v42, 2  ;;  %4347 = vmatprep.subr.bf16.mxu1 %v2655_v37  ;;  %v2679_v37 = vunpack.c.h.s8.bf16 %v1927_v19 }
 0x46e   :  { %v4719_v23 = vadd.f32 %v4718_v61, %v7847_v45  ;;  %4018 = vmatpush1.bf16.msra.mxu0 %v2644_v38  ;;  %v4732_v32 = vrot.slane %v4731_v14, 2  ;;  %v2668_v38 = vunpack.c.l.s8.bf16 %v1924_v28 }
 0x46f   :  { %v4714_v8 = vrot.slane %v4713_v43, 2  ;;  %4019 = vmatprep.subr.bf16.mxu0 %v2653_v41  ;;  %v4727_v53 = vadd.f32 %v4726_v27, %v4725_v42  ;;  %v2670_v41 = vunpack.c.l.s8.bf16 %v1926_v54  ;;  %v1935_v42 = vld [vmem:[#allocation6 + $0x7b8] sm:$0xff]  ;;  %v1932_v27 = vld [vmem:[#allocation6 + $0x7a0] sm:$0xff] }
 0x470   :  { %v4720_v34 = vrot.slane %v4719_v23, 2  ;;  %v4733_v31 = vadd.f32 %v4732_v32, %v4731_v14  ;;  %4348 = vmatpush1.bf16.msra.mxu1 %v2654_v55  ;;  %v2684_v19 = vunpack.c.l.s8.bf16 %v1932_v27 }
 0x471   :  { %v4715_v22 = vadd.f32 %v4714_v8, %v4713_v43  ;;  %v4728_v12 = vrot.slane %v4727_v53, 1  ;;  %4349 = vmatprep.subr.bf16.mxu1 %v2663_v13  ;;  %v2676_v8 = vunpack.c.h.s8.bf16 %v1924_v28  ;;  %v1934_v13 = vld [vmem:[#allocation6 + $0x7b0] sm:$0xff]  ;;  %v1941_v28 = vld [vmem:[#allocation6 + $0x7e8] sm:$0xff] }
 0x472   :  { %v4721_v9 = vadd.f32 %v4720_v34, %v4719_v23  ;;  %4020 = vmatpush1.bf16.msra.mxu0 %v2652_v51  ;;  %v4734_v16 = vrot.slane %v4733_v31, 1  ;;  %v2687_v34 = vunpack.c.l.s8.bf16 %v1935_v42 }
 0x473   :  { %v4716_v7 = vrot.slane %v4715_v22, 1  ;;  %4021 = vmatprep.subr.bf16.mxu0 %v2661_v11  ;;  %v4729_v50 = vadd.f32 %v4728_v12, %v4727_v53  ;;  %v2685_v11 = vunpack.c.l.s8.bf16 %v1933_v10 }
 0x474   :  { %v4722_v6 = vrot.slane %v4721_v9, 1  ;;  %v4735_v36 = vadd.f32 %v4734_v16, %v4733_v31  ;;  %4350 = vmatpush1.bf16.msra.mxu1 %v2662_v40  ;;  %v2692_v16 = vunpack.c.h.s8.bf16 %v1932_v27  ;;  %v2709_v27 = vunpack.c.h.s8.bf16 %v1941_v28 }
 0x475   :  { %v4717_v35 = vadd.f32 %v4716_v7, %v4715_v22  ;;  %v4762_v3 = vmul.f32 0.125, %v4729_v50  ;;  %4351 = vmatprep.subr.bf16.mxu1 %v2671_v39  ;;  %v2693_v7 = vunpack.c.h.s8.bf16 %v1933_v10  ;;  %v1943_v39 = vld [vmem:[#allocation6 + $0x7f8] sm:$0xff] }
 0x476   :  { %v4723_v58 = vadd.f32 %v4722_v6, %v4721_v9  ;;  %4022 = vmatpush1.bf16.msra.mxu0 %v2660_v5  ;;  %v4763_v1 = vmul.f32 0.125, %v4735_v36  ;;  %v2686_v5 = vunpack.c.l.s8.bf16 %v1934_v13  ;;  %v1940_v36 = vld [vmem:[#allocation6 + $0x7e0] sm:$0xff] }
 0x477   :  { %v4760_v60 = vmul.f32 0.125, %v4717_v35  ;;  %4023 = vmatprep.subr.bf16.mxu0 %v2669_v30  ;;  %v7863_v23 = vsub.f32 %v7845_v49, %v4762_v3  ;;  %v2695_v30 = vunpack.c.h.s8.bf16 %v1935_v42  ;;  %v2703_v3 = vunpack.c.l.s8.bf16 %v1943_v39 }
 0x478   :  { %v4761_v61 = vmul.f32 0.125, %v4723_v58  ;;  %v7871_v55 = vsub.f32 %v7850_v48, %v4763_v1  ;;  %4352 = vmatpush1.bf16.msra.mxu1 %v2670_v41 }
 0x479   :  { %v7860_v43 = vsub.f32 %v7843_v29, %v4760_v60  ;;  %v2678_v29 = vunpack.c.h.s8.bf16 %v1926_v54  ;;  %v4778_v49 = vmul.f32 %v7863_v23, %v7863_v23  ;;  %4353 = vmatprep.subr.bf16.mxu1 %v2679_v37  ;;  %v2701_v60 = vunpack.c.l.s8.bf16 %v1941_v28 }
 0x47a   :  { %v7866_v51 = vsub.f32 %v7847_v45, %v4761_v61  ;;  %4024 = vmatpush1.bf16.msra.mxu0 %v2668_v38  ;;  %v4779_v22 = vmul.f32 %v7871_v55, %v7871_v55  ;;  %v2694_v38 = vunpack.c.h.s8.bf16 %v1934_v13  ;;  %v1942_v61 = vld [vmem:[#allocation6 + $0x7f0] sm:$0xff]  ;;  %v1949_v13 = vld [vmem:[#allocation6 + $0x828] sm:$0xff] }
 0x47b   :  { %v4776_v14 = vmul.f32 %v7860_v43, %v7860_v43  ;;  %4025 = vmatprep.subr.bf16.mxu0 %v2677_v52  ;;  %v4796_v48 = vrot.slane %v4778_v49, 4 }
 0x47c   :  { %v4777_v45 = vmul.f32 %v7866_v51, %v7866_v51  ;;  %v4802_v9 = vrot.slane %v4779_v22, 4  ;;  %4354 = vmatpush1.bf16.msra.mxu1 %v2678_v29 }
 0x47d   :  { %v4784_v63 = vrot.slane %v4776_v14, 4  ;;  %v4797_v31 = vadd.f32 %v4796_v48, %v4778_v49  ;;  %4355 = vmatprep.subr.bf16.mxu1 %v2687_v34  ;;  %v2711_v34 = vunpack.c.h.s8.bf16 %v1943_v39  ;;  %v1951_v48 = vld [vmem:[#allocation6 + $0x838] sm:$0xff] }
 0x47e   :  { %v4790_v32 = vrot.slane %v4777_v45, 4  ;;  %4026 = vmatpush1.bf16.msra.mxu0 %v2676_v8  ;;  %v4803_v6 = vadd.f32 %v4802_v9, %v4779_v22  ;;  %v2700_v8 = vunpack.c.l.s8.bf16 %v1940_v36 }
 0x47f   :  { %v4785_v53 = vadd.f32 %v4784_v63, %v4776_v14  ;;  %4027 = vmatprep.subr.bf16.mxu0 %v2685_v11  ;;  %v4798_v54 = vrot.slane %v4797_v31, 2  ;;  %v2702_v11 = vunpack.c.l.s8.bf16 %v1942_v61 }
 0x480   :  { %v4791_v40 = vadd.f32 %v4790_v32, %v4777_v45  ;;  %v4804_v58 = vrot.slane %v4803_v6, 2  ;;  %4356 = vmatpush1.bf16.msra.mxu1 %v2686_v5 }
 0x481   :  { %v4786_v12 = vrot.slane %v4785_v53, 2  ;;  %v4799_v41 = vadd.f32 %v4798_v54, %v4797_v31  ;;  %4357 = vmatprep.subr.bf16.mxu1 %v2695_v30  ;;  %v2717_v31 = vunpack.c.l.s8.bf16 %v1949_v13 }
 0x482   :  { %v4792_v35 = vrot.slane %v4791_v40, 2  ;;  %4028 = vmatpush1.bf16.msra.mxu0 %v2684_v19  ;;  %v4805_v10 = vadd.f32 %v4804_v58, %v4803_v6  ;;  %v1950_v6 = vld [vmem:[#allocation6 + $0x830] sm:$0xff]  ;;  %v2727_v58 = vunpack.c.h.s8.bf16 %v1951_v48 }
 0x483   :  { %v4787_v50 = vadd.f32 %v4786_v12, %v4785_v53  ;;  %4029 = vmatprep.subr.bf16.mxu0 %v2693_v7  ;;  %v4800_v1 = vrot.slane %v4799_v41, 1  ;;  %v2708_v53 = vunpack.c.h.s8.bf16 %v1940_v36  ;;  %v2710_v7 = vunpack.c.h.s8.bf16 %v1942_v61  ;;  %v1958_v61 = vld [vmem:[#allocation6 + $0x870] sm:$0xff] }
 0x484   :  { %v4793_v52 = vadd.f32 %v4792_v35, %v4791_v40  ;;  %v4806_v29 = vrot.slane %v4805_v10, 1  ;;  %4358 = vmatpush1.bf16.msra.mxu1 %v2694_v38  ;;  %v1948_v40 = vld [vmem:[#allocation6 + $0x820] sm:$0xff]  ;;  %v2719_v12 = vunpack.c.l.s8.bf16 %v1951_v48  ;;  %v2718_v35 = vunpack.c.l.s8.bf16 %v1950_v6  ;;  %v1959_v38 = vld [vmem:[#allocation6 + $0x878] sm:$0xff]  ;;  %v1966_v48 = vld [vmem:[#allocation6 + $0x8b0] sm:$0xff] }
 0x485   :  { %v4788_v37 = vrot.slane %v4787_v50, 1  ;;  %v4801_v49 = vadd.f32 %v4800_v1, %v4799_v41  ;;  %4359 = vmatprep.subr.bf16.mxu1 %v2703_v3  ;;  %v2716_v54 = vunpack.c.l.s8.bf16 %v1948_v40  ;;  %v2726_v36 = vunpack.c.h.s8.bf16 %v1950_v6  ;;  %v1975_v6 = vld [vmem:[#allocation6 + $0x8f8] sm:$0xff] }
 0x486   :  { %v4794_v42 = vrot.slane %v4793_v52, 1  ;;  %4030 = vmatpush1.bf16.msra.mxu0 %v2692_v16  ;;  %v4807_v22 = vadd.f32 %v4806_v29, %v4805_v10  ;;  %v2725_v16 = vunpack.c.h.s8.bf16 %v1949_v13  ;;  %v2735_v3 = vunpack.c.l.s8.bf16 %v1959_v38  ;;  %v1964_v13 = vld [vmem:[#allocation6 + $0x8a0] sm:$0xff] }
 0x487   :  { %v4789_v14 = vadd.f32 %v4788_v37, %v4787_v50  ;;  %4031 = vmatprep.subr.bf16.mxu0 %v2701_v60  ;;  %v4834_v32 = vmul.f32 0.125, %v4801_v49  ;;  %v1957_v50 = vld [vmem:[#allocation6 + $0x868] sm:$0xff]  ;;  %v2724_v60 = vunpack.c.h.s8.bf16 %v1948_v40 }
 0x488   :  { %v4795_v45 = vadd.f32 %v4794_v42, %v4793_v52  ;;  %v4835_v5 = vmul.f32 0.125, %v4807_v22  ;;  %4360 = vmatpush1.bf16.msra.mxu1 %v2702_v11  ;;  %v2733_v41 = vunpack.c.l.s8.bf16 %v1957_v50  ;;  %v1956_v52 = vld [vmem:[#allocation6 + $0x860] sm:$0xff]  ;;  %v2741_v1 = vunpack.c.h.s8.bf16 %v1957_v50  ;;  %v1967_v11 = vld [vmem:[#allocation6 + $0x8b8] sm:$0xff] }
 0x489   :  { %v4832_v63 = vmul.f32 0.125, %v4789_v14  ;;  %v4842_v30 = vadd.f32 1e-05, %v4834_v32  ;;  %4361 = vmatprep.subr.bf16.mxu1 %v2711_v34  ;;  %v2732_v37 = vunpack.c.l.s8.bf16 %v1956_v52  ;;  %v1965_v14 = vld [vmem:[#allocation6 + $0x8a8] sm:$0xff]  ;;  %v2751_v22 = vunpack.c.l.s8.bf16 %v1967_v11 }
 0x48a   :  { %v4833_v19 = vmul.f32 0.125, %v4795_v45  ;;  %4032 = vmatpush1.bf16.msra.mxu0 %v2700_v8  ;;  %v4843_v39 = vadd.f32 1e-05, %v4835_v5  ;;  %v2743_v8 = vunpack.c.h.s8.bf16 %v1959_v38  ;;  %v2742_v45 = vunpack.c.h.s8.bf16 %v1958_v61 }
 0x48b   :  { %v4840_v9 = vadd.f32 1e-05, %v4832_v63  ;;  %4033 = vmatprep.subr.bf16.mxu0 %v2709_v27  ;;  %v2749_v34 = vunpack.c.l.s8.bf16 %v1965_v14  ;;  %v2750_v5 = vunpack.c.l.s8.bf16 %v1966_v48  ;;  %v2759_v40 = vunpack.c.h.s8.bf16 %v1967_v11  ;;  %v1982_v11 = vld [vmem:[#allocation6 + $0x930] sm:$0xff] }
 0x48c   :  { %v4841_v28 = vadd.f32 1e-05, %v4833_v19  ;;  %4362 = vmatpush1.bf16.msra.mxu1 %v2710_v7  ;;  %v2757_v7 = vunpack.c.h.s8.bf16 %v1965_v14 }
 0x48d   :  { %6668 = vrsqrt.f32 %v4840_v9  ;;  %4372 = vmatprep.subr.bf16.mxu1 %v2719_v12 }
 0x48e   :  { %6670 = vrsqrt.f32 %v4842_v30  ;;  %4034 = vmatpush1.bf16.msra.mxu0 %v2708_v53  ;;  %v2748_v53 = vunpack.c.l.s8.bf16 %v1964_v13  ;;  %v1973_v30 = vld [vmem:[#allocation6 + $0x8e8] sm:$0xff] }
 0x48f   :  { %6672 = vrsqrt.f32 %v4841_v28  ;;  %4044 = vmatprep.subr.bf16.mxu0 %v2717_v31  ;;  %4364 = vmatmul.mubr.bf16.vlgmr.msra.gmra.mrb[20].mxu1 %v7733_v17  ;;  %v2765_v50 = vunpack.c.l.s8.bf16 %v1973_v30 }
 0x490   :  { %6674 = vrsqrt.f32 %v4843_v39  ;;  %4373 = vmatpush1.bf16.msra.mxu1 %v2718_v35  ;;  %4404 = vmatprep.mubr.bf16.mxu1 %v7735_v59 }
 0x491   :  { %4036 = vmatmul.mubr.bf16.vlgmr.msra.gmra.mrb[20].mxu0 %v7733_v17  ;;  %4374 = vmatprep.subr.bf16.mxu1 %v2727_v58  ;;  %v2734_v17 = vunpack.c.l.s8.bf16 %v1958_v61  ;;  %v1972_v58 = vld [vmem:[#allocation6 + $0x8e0] sm:$0xff] }
 0x492   :  { %4045 = vmatpush1.bf16.msra.mxu0 %v2716_v54  ;;  %4076 = vmatprep.mubr.bf16.mxu0 %v7735_v59  ;;  %v2740_v59 = vunpack.c.h.s8.bf16 %v1956_v52  ;;  %v2772_v14 = vunpack.c.h.s8.bf16 %v1972_v58 }
 0x493   :  { %4046 = vmatprep.subr.bf16.mxu0 %v2725_v16 }
 0x494   :  { %4375 = vmatpush1.bf16.msra.mxu1 %v2726_v36  ;;  %v2767_v36 = vunpack.c.l.s8.bf16 %v1975_v6 }
 0x495   :  { %4376 = vmatprep.subr.bf16.mxu1 %v2735_v3 }
 0x496   :  { %4047 = vmatpush1.bf16.msra.mxu0 %v2724_v60 }
 0x497   :  { %v6669_v10 = vpop.eup %6668  ;;  %4048 = vmatprep.subr.bf16.mxu0 %v2733_v41  ;;  %v1974_v41 = vld [vmem:[#allocation6 + $0x8f0] sm:$0xff] }
 0x498   :  { %v6671_v42 = vpop.eup %6670  ;;  %4377 = vmatpush1.bf16.msra.mxu1 %v2734_v17  ;;  %v2766_v17 = vunpack.c.l.s8.bf16 %v1974_v41 }
 0x499   :  { %v6673_v29 = vpop.eup %6672  ;;  %4378 = vmatprep.subr.bf16.mxu1 %v2743_v8  ;;  %v1981_v8 = vld [vmem:[#allocation6 + $0x928] sm:$0xff] }
 0x49a   :  { %v6675_v27 = vpop.eup %6674  ;;  %4049 = vmatpush1.bf16.msra.mxu0 %v2732_v37  ;;  %v4864_v49 = vcombine.low %v6669_v10, %v6673_v29  ;;  %v2764_v10 = vunpack.c.l.s8.bf16 %v1972_v58  ;;  %v1980_v29 = vld [vmem:[#allocation6 + $0x920] sm:$0xff]  ;;  %v2005_v58 = vld [vmem:[#allocation6 + $0x9e8] sm:$0xff] }
 0x49b   :  { %4050 = vmatprep.subr.bf16.mxu0 %v2741_v1  ;;  %v4865_v63 = vcombine.low %v6671_v42, %v6675_v27  ;;  %v2773_v1 = vunpack.c.h.s8.bf16 %v1973_v30  ;;  %v2775_v42 = vunpack.c.h.s8.bf16 %v1975_v6  ;;  %v2780_v27 = vunpack.c.l.s8.bf16 %v1980_v29  ;;  %v1999_v30 = vld [vmem:[#allocation6 + $0x9b8] sm:$0xff] }
 0x49c   :  { %v4868_v32 = vrot.slane %v4864_v49, 7  ;;  %4379 = vmatpush1.bf16.msra.mxu1 %v2742_v45  ;;  %v2789_v49 = vunpack.c.h.s8.bf16 %v1981_v8 }
 0x49d   :  { %v4869_v19 = vrot.slane %v4865_v63, 7  ;;  %4380 = vmatprep.subr.bf16.mxu1 %v2751_v22  ;;  %v2788_v63 = vunpack.c.h.s8.bf16 %v1980_v29  ;;  %v2790_v22 = vunpack.c.h.s8.bf16 %v1982_v11 }
 0x49e   :  { %4051 = vmatpush1.bf16.msra.mxu0 %v2740_v59  ;;  %v4876_v9 = vmul.f32 %v4868_v32, %v7815_v26  ;;  %v2756_v26 = vunpack.c.h.s8.bf16 %v1964_v13  ;;  %v2782_v59 = vunpack.c.l.s8.bf16 %v1982_v11  ;;  %v1991_v13 = vld [vmem:[#allocation6 + $0x978] sm:$0xff]  ;;  %v1988_v32 = vld [vmem:[#allocation6 + $0x960] sm:$0xff] }
 0x49f   :  { %4052 = vmatprep.subr.bf16.mxu0 %v2749_v34  ;;  %v4877_v31 = vmul.f32 %v4869_v19, %v7817_v18  ;;  %v2758_v18 = vunpack.c.h.s8.bf16 %v1966_v48  ;;  %v1989_v34 = vld [vmem:[#allocation6 + $0x968] sm:$0xff]  ;;  %v2799_v19 = vunpack.c.l.s8.bf16 %v1991_v13 }
 0x4a0   :  { %v4891_v28 = vrot.slane %v4876_v9, %v7175_v33  ;;  %v4887_v12 = vrot.slane %v4876_v9, %v7170_v56  ;;  %4381 = vmatpush1.bf16.msra.mxu1 %v2750_v5  ;;  %v2797_v48 = vunpack.c.l.s8.bf16 %v1989_v34  ;;  %v2796_v9 = vunpack.c.l.s8.bf16 %v1988_v32 }
 0x4a1   :  { %v4899_v39 = vrot.slane %v4877_v31, %v7175_v33  ;;  %v4895_v54 = vrot.slane %v4877_v31, %v7170_v56  ;;  %4382 = vmatprep.subr.bf16.mxu1 %v2759_v40  ;;  %v2807_v31 = vunpack.c.h.s8.bf16 %v1991_v13  ;;  %v1997_v40 = vld [vmem:[#allocation6 + $0x9a8] sm:$0xff] }
 0x4a2   :  { %4053 = vmatpush1.bf16.msra.mxu0 %v2748_v53  ;;  %v4931_v35 = vrot.slane %v4891_v28, %v7170_v56  ;;  %v4927_v16 = vrot.slane %v4887_v12, %v7170_v56  ;;  %v1990_v53 = vld [vmem:[#allocation6 + $0x970] sm:$0xff]  ;;  %v2804_v28 = vunpack.c.h.s8.bf16 %v1988_v32  ;;  %v2813_v6 = vunpack.c.l.s8.bf16 %v1997_v40 }
 0x4a3   :  { %4054 = vmatprep.subr.bf16.mxu0 %v2757_v7  ;;  %v4939_v38 = vrot.slane %v4899_v39, %v7170_v56  ;;  %v4935_v60 = vrot.slane %v4895_v54, %v7170_v56  ;;  %v2798_v5 = vunpack.c.l.s8.bf16 %v1990_v53  ;;  %v2805_v7 = vunpack.c.h.s8.bf16 %v1989_v34  ;;  %v1996_v39 = vld [vmem:[#allocation6 + $0x9a0] sm:$0xff] }
 0x4a4   :  { %v7894_v52 = vmul.f32 %v4931_v35, %v7866_v51  ;;  %v7897_v3 = vmul.f32 %v4927_v16, %v7860_v43  ;;  %4383 = vmatpush1.bf16.msra.mxu1 %v2758_v18  ;;  %v1983_v51 = vld [vmem:[#allocation6 + $0x938] sm:$0xff]  ;;  %v2774_v43 = vunpack.c.h.s8.bf16 %v1974_v41  ;;  %v2806_v12 = vunpack.c.h.s8.bf16 %v1990_v53 }
 0x4a5   :  { %v7900_v61 = vmul.f32 %v4939_v38, %v7871_v55  ;;  %v7903_v37 = vmul.f32 %v4935_v60, %v7863_v23  ;;  %4384 = vmatprep.subr.bf16.mxu1 %v2767_v36  ;;  %v2781_v55 = vunpack.c.l.s8.bf16 %v1981_v8  ;;  %v2783_v23 = vunpack.c.l.s8.bf16 %v1983_v51  ;;  %v2007_v38 = vld [vmem:[#allocation6 + $0x9f8] sm:$0xff] }
 0x4a6   :  { %4055 = vmatpush1.bf16.msra.mxu0 %v2756_v26  ;;  %v2791_v45 = vunpack.c.h.s8.bf16 %v1983_v51  ;;  %v2815_v54 = vunpack.c.l.s8.bf16 %v1999_v30  ;;  %v1998_v26 = vld [vmem:[#allocation6 + $0x9b0] sm:$0xff]  ;;  %v2812_v35 = vunpack.c.l.s8.bf16 %v1996_v39  ;;  %v2821_v18 = vunpack.c.h.s8.bf16 %v1997_v40 }
 0x4a7   :  { %4056 = vmatprep.subr.bf16.mxu0 %v2765_v50  ;;  %v2814_v16 = vunpack.c.l.s8.bf16 %v1998_v26  ;;  %v2823_v50 = vunpack.c.h.s8.bf16 %v1999_v30  ;;  %v2820_v60 = vunpack.c.h.s8.bf16 %v1996_v39  ;;  %v2822_v36 = vunpack.c.h.s8.bf16 %v1998_v26 }
 0x4a8   :  { %4385 = vmatpush1.bf16.msra.mxu1 %v2766_v17  ;;  %v2829_v41 = vunpack.c.l.s8.bf16 %v2005_v58  ;;  %v2831_v17 = vunpack.c.l.s8.bf16 %v2007_v38  ;;  %v2837_v51 = vunpack.c.h.s8.bf16 %v2005_v58 }
 0x4a9   :  { %4386 = vmatprep.subr.bf16.mxu1 %v2775_v42 }
 0x4aa   :  { %4057 = vmatpush1.bf16.msra.mxu0 %v2764_v10  ;;  %v2004_v10 = vld [vmem:[#allocation6 + $0x9e0] sm:$0xff] }
 0x4ab   :  { %4058 = vmatprep.subr.bf16.mxu0 %v2773_v1  ;;  %v2006_v1 = vld [vmem:[#allocation6 + $0x9f0] sm:$0xff]  ;;  %v2828_v42 = vunpack.c.l.s8.bf16 %v2004_v10  ;;  %v2836_v29 = vunpack.c.h.s8.bf16 %v2004_v10 }
 0x4ac   :  { %4387 = vmatpush1.bf16.msra.mxu1 %v2774_v43  ;;  %v2830_v8 = vunpack.c.l.s8.bf16 %v2006_v1  ;;  %v2013_v43 = vld [vmem:[#allocation6 + $0xa28] sm:$0xff] }
 0x4ad   :  { %4388 = vmatprep.subr.bf16.mxu1 %v2783_v23  ;;  %v2838_v23 = vunpack.c.h.s8.bf16 %v2006_v1  ;;  %v2845_v11 = vunpack.c.l.s8.bf16 %v2013_v43  ;;  %v2853_v13 = vunpack.c.h.s8.bf16 %v2013_v43 }
 0x4ae   :  { %4059 = vmatpush1.bf16.msra.mxu0 %v2772_v14  ;;  %v2839_v14 = vunpack.c.h.s8.bf16 %v2007_v38  ;;  %v2037_v38 = vld [vmem:[#allocation6 + $0xae8] sm:$0xff] }
 0x4af   :  { %4060 = vmatprep.subr.bf16.mxu0 %v2781_v55  ;;  %v2015_v55 = vld [vmem:[#allocation6 + $0xa38] sm:$0xff]  ;;  %v2893_v10 = vunpack.c.l.s8.bf16 %v2037_v38 }
 0x4b0   :  { %4389 = vmatpush1.bf16.msra.mxu1 %v2782_v59  ;;  %v2847_v59 = vunpack.c.l.s8.bf16 %v2015_v55 }
 0x4b1   :  { %4390 = vmatprep.subr.bf16.mxu1 %v2791_v45 }
 0x4b2   :  { %4061 = vmatpush1.bf16.msra.mxu0 %v2780_v27  ;;  %v2012_v27 = vld [vmem:[#allocation6 + $0xa20] sm:$0xff] }
 0x4b3   :  { %4062 = vmatprep.subr.bf16.mxu0 %v2789_v49  ;;  %v2014_v49 = vld [vmem:[#allocation6 + $0xa30] sm:$0xff]  ;;  %v2844_v45 = vunpack.c.l.s8.bf16 %v2012_v27  ;;  %v2852_v32 = vunpack.c.h.s8.bf16 %v2012_v27 }
 0x4b4   :  { %4391 = vmatpush1.bf16.msra.mxu1 %v2790_v22  ;;  %v2846_v34 = vunpack.c.l.s8.bf16 %v2014_v49  ;;  %v2855_v22 = vunpack.c.h.s8.bf16 %v2015_v55  ;;  %v2045_v55 = vld [vmem:[#allocation6 + $0xb28] sm:$0xff] }
 0x4b5   :  { %4392 = vmatprep.subr.bf16.mxu1 %v2799_v19  ;;  %v2854_v19 = vunpack.c.h.s8.bf16 %v2014_v49  ;;  %v2909_v27 = vunpack.c.l.s8.bf16 %v2045_v55 }
 0x4b6   :  { %4063 = vmatpush1.bf16.msra.mxu0 %v2788_v63  ;;  %v2021_v63 = vld [vmem:[#allocation6 + $0xa68] sm:$0xff] }
 0x4b7   :  { %4064 = vmatprep.subr.bf16.mxu0 %v2797_v48  ;;  %v2023_v48 = vld [vmem:[#allocation6 + $0xa78] sm:$0xff]  ;;  %v2861_v53 = vunpack.c.l.s8.bf16 %v2021_v63 }
 0x4b8   :  { %4393 = vmatpush1.bf16.msra.mxu1 %v2798_v5  ;;  %v2863_v5 = vunpack.c.l.s8.bf16 %v2023_v48  ;;  %v2871_v30 = vunpack.c.h.s8.bf16 %v2023_v48  ;;  %v2053_v48 = vld [vmem:[#allocation6 + $0xb68] sm:$0xff] }
 0x4b9   :  { %4394 = vmatprep.subr.bf16.mxu1 %v2807_v31 }
 0x4ba   :  { %4065 = vmatpush1.bf16.msra.mxu0 %v2796_v9  ;;  %v2020_v9 = vld [vmem:[#allocation6 + $0xa60] sm:$0xff] }
 0x4bb   :  { %4066 = vmatprep.subr.bf16.mxu0 %v2805_v7  ;;  %v2022_v7 = vld [vmem:[#allocation6 + $0xa70] sm:$0xff]  ;;  %v2860_v31 = vunpack.c.l.s8.bf16 %v2020_v9 }
 0x4bc   :  { %4395 = vmatpush1.bf16.msra.mxu1 %v2806_v12  ;;  %v2862_v40 = vunpack.c.l.s8.bf16 %v2022_v7  ;;  %v2031_v12 = vld [vmem:[#allocation6 + $0xab8] sm:$0xff]  ;;  %v2870_v39 = vunpack.c.h.s8.bf16 %v2022_v7 }
 0x4bd   :  { %4396 = vmatprep.subr.bf16.mxu1 %v2815_v54  ;;  %v2028_v54 = vld [vmem:[#allocation6 + $0xaa0] sm:$0xff]  ;;  %v2879_v26 = vunpack.c.l.s8.bf16 %v2031_v12  ;;  %v2887_v58 = vunpack.c.h.s8.bf16 %v2031_v12  ;;  %v2061_v12 = vld [vmem:[#allocation6 + $0xba8] sm:$0xff] }
 0x4be   :  { %4067 = vmatpush1.bf16.msra.mxu0 %v2804_v28  ;;  %v2029_v28 = vld [vmem:[#allocation6 + $0xaa8] sm:$0xff] }
 0x4bf   :  { %4068 = vmatprep.subr.bf16.mxu0 %v2813_v6  ;;  %v2868_v6 = vunpack.c.h.s8.bf16 %v2020_v9  ;;  %v2925_v9 = vunpack.c.l.s8.bf16 %v2053_v48 }
 0x4c0   :  { %4397 = vmatpush1.bf16.msra.mxu1 %v2814_v16  ;;  %v2876_v16 = vunpack.c.l.s8.bf16 %v2028_v54 }
 0x4c1   :  { %4398 = vmatprep.subr.bf16.mxu1 %v2823_v50  ;;  %v2885_v50 = vunpack.c.h.s8.bf16 %v2029_v28 }
 0x4c2   :  { %4069 = vmatpush1.bf16.msra.mxu0 %v2812_v35  ;;  %v2030_v35 = vld [vmem:[#allocation6 + $0xab0] sm:$0xff] }
 0x4c3   :  { %4070 = vmatprep.subr.bf16.mxu0 %v2821_v18  ;;  %v2878_v18 = vunpack.c.l.s8.bf16 %v2030_v35 }
 0x4c4   :  { %4399 = vmatpush1.bf16.msra.mxu1 %v2822_v36  ;;  %v2884_v36 = vunpack.c.h.s8.bf16 %v2028_v54  ;;  %v2941_v54 = vunpack.c.l.s8.bf16 %v2061_v12 }
 0x4c5   :  { %4400 = vmatprep.subr.bf16.mxu1 %v2831_v17  ;;  %v2036_v17 = vld [vmem:[#allocation6 + $0xae0] sm:$0xff] }
 0x4c6   :  { %4071 = vmatpush1.bf16.msra.mxu0 %v2820_v60  ;;  %v2039_v60 = vld [vmem:[#allocation6 + $0xaf8] sm:$0xff] }
 0x4c7   :  { %4072 = vmatprep.subr.bf16.mxu0 %v2829_v41  ;;  %v2886_v41 = vunpack.c.h.s8.bf16 %v2030_v35  ;;  %v2895_v1 = vunpack.c.l.s8.bf16 %v2039_v60  ;;  %v2903_v43 = vunpack.c.h.s8.bf16 %v2039_v60  ;;  %v2069_v60 = vld [vmem:[#allocation6 + $0xbe8] sm:$0xff] }
 0x4c8   :  { %4401 = vmatpush1.bf16.msra.mxu1 %v2830_v8  ;;  %v2892_v8 = vunpack.c.l.s8.bf16 %v2036_v17 }
 0x4c9   :  { %4402 = vmatprep.subr.bf16.mxu1 %v2839_v14  ;;  %v2901_v14 = vunpack.c.h.s8.bf16 %v2037_v38 }
 0x4ca   :  { %4073 = vmatpush1.bf16.msra.mxu0 %v2828_v42  ;;  %v2038_v42 = vld [vmem:[#allocation6 + $0xaf0] sm:$0xff] }
 0x4cb   :  { %4074 = vmatprep.subr.bf16.mxu0 %v2837_v51  ;;  %v2894_v51 = vunpack.c.l.s8.bf16 %v2038_v42 }
 0x4cc   :  { %4403 = vmatpush1.bf16.msra.mxu1 %v2838_v23  ;;  %v2900_v23 = vunpack.c.h.s8.bf16 %v2036_v17  ;;  %v2957_v17 = vunpack.c.l.s8.bf16 %v2069_v60 }
 0x4cd   :  { %4413 = vmatprep.subr.bf16.mxu1 %v2847_v59  ;;  %v2044_v59 = vld [vmem:[#allocation6 + $0xb20] sm:$0xff] }
 0x4ce   :  { %4075 = vmatpush1.bf16.msra.mxu0 %v2836_v29  ;;  %v2047_v29 = vld [vmem:[#allocation6 + $0xb38] sm:$0xff] }
 0x4cf   :  { %4085 = vmatprep.subr.bf16.mxu0 %v2845_v11  ;;  %4405 = vmatmul.mubr.bf16.vlgmr.msra.gmra.mrb[20].mxu1 %v7754_v62  ;;  %v2902_v11 = vunpack.c.h.s8.bf16 %v2038_v42  ;;  %v2911_v49 = vunpack.c.l.s8.bf16 %v2047_v29 }
 0x4d0   :  { %4414 = vmatpush1.bf16.msra.mxu1 %v2846_v34  ;;  %4445 = vmatprep.mubr.bf16.mxu1 %v7757_v15  ;;  %v2908_v34 = vunpack.c.l.s8.bf16 %v2044_v59 }
 0x4d1   :  { %4077 = vmatmul.mubr.bf16.vlgmr.msra.gmra.mrb[20].mxu0 %v7754_v62  ;;  %4415 = vmatprep.subr.bf16.mxu1 %v2855_v22  ;;  %v2869_v62 = vunpack.c.h.s8.bf16 %v2021_v63  ;;  %v2917_v63 = vunpack.c.h.s8.bf16 %v2045_v55  ;;  %v2919_v22 = vunpack.c.h.s8.bf16 %v2047_v29  ;;  %v2077_v29 = vld [vmem:[#allocation6 + $0xc28] sm:$0xff] }
 0x4d2   :  { %4086 = vmatpush1.bf16.msra.mxu0 %v2844_v45  ;;  %4117 = vmatprep.mubr.bf16.mxu0 %v7757_v15  ;;  %v2877_v15 = vunpack.c.l.s8.bf16 %v2029_v28  ;;  %v2046_v45 = vld [vmem:[#allocation6 + $0xb30] sm:$0xff] }
 0x4d3   :  { %4087 = vmatprep.subr.bf16.mxu0 %v2853_v13  ;;  %v2910_v13 = vunpack.c.l.s8.bf16 %v2046_v45 }
 0x4d4   :  { %4416 = vmatpush1.bf16.msra.mxu1 %v2854_v19  ;;  %v2916_v19 = vunpack.c.h.s8.bf16 %v2044_v59  ;;  %v2973_v59 = vunpack.c.l.s8.bf16 %v2077_v29 }
 0x4d5   :  { %4417 = vmatprep.subr.bf16.mxu1 %v2863_v5  ;;  %v2052_v5 = vld [vmem:[#allocation6 + $0xb60] sm:$0xff] }
 0x4d6   :  { %4088 = vmatpush1.bf16.msra.mxu0 %v2852_v32  ;;  %v2055_v32 = vld [vmem:[#allocation6 + $0xb78] sm:$0xff] }
 0x4d7   :  { %4089 = vmatprep.subr.bf16.mxu0 %v2861_v53  ;;  %v2918_v53 = vunpack.c.h.s8.bf16 %v2046_v45  ;;  %v2927_v7 = vunpack.c.l.s8.bf16 %v2055_v32  ;;  %v2935_v28 = vunpack.c.h.s8.bf16 %v2055_v32 }
 0x4d8   :  { %4418 = vmatpush1.bf16.msra.mxu1 %v2862_v40  ;;  %v2924_v40 = vunpack.c.l.s8.bf16 %v2052_v5 }
 0x4d9   :  { %4419 = vmatprep.subr.bf16.mxu1 %v2871_v30  ;;  %v2933_v30 = vunpack.c.h.s8.bf16 %v2053_v48  ;;  %v2085_v48 = vld [vmem:[#allocation6 + $0xc68] sm:$0xff] }
 0x4da   :  { %4090 = vmatpush1.bf16.msra.mxu0 %v2860_v31  ;;  %v2054_v31 = vld [vmem:[#allocation6 + $0xb70] sm:$0xff] }
 0x4db   :  { %4091 = vmatprep.subr.bf16.mxu0 %v2869_v62  ;;  %v2926_v62 = vunpack.c.l.s8.bf16 %v2054_v31 }
 0x4dc   :  { %4420 = vmatpush1.bf16.msra.mxu1 %v2870_v39  ;;  %v2932_v39 = vunpack.c.h.s8.bf16 %v2052_v5  ;;  %v2989_v5 = vunpack.c.l.s8.bf16 %v2085_v48 }
 0x4dd   :  { %4421 = vmatprep.subr.bf16.mxu1 %v2879_v26  ;;  %v2060_v26 = vld [vmem:[#allocation6 + $0xba0] sm:$0xff] }
 0x4de   :  { %4092 = vmatpush1.bf16.msra.mxu0 %v2868_v6  ;;  %v2063_v6 = vld [vmem:[#allocation6 + $0xbb8] sm:$0xff] }
 0x4df   :  { %4093 = vmatprep.subr.bf16.mxu0 %v2877_v15  ;;  %v2934_v15 = vunpack.c.h.s8.bf16 %v2054_v31  ;;  %v2943_v35 = vunpack.c.l.s8.bf16 %v2063_v6  ;;  %v2951_v38 = vunpack.c.h.s8.bf16 %v2063_v6  ;;  %v2095_v6 = vld [vmem:[#allocation6 + $0xcb8] sm:$0xff] }
 0x4e0   :  { %4422 = vmatpush1.bf16.msra.mxu1 %v2878_v18  ;;  %v2940_v18 = vunpack.c.l.s8.bf16 %v2060_v26 }
 0x4e1   :  { %4423 = vmatprep.subr.bf16.mxu1 %v2887_v58  ;;  %v2949_v58 = vunpack.c.h.s8.bf16 %v2061_v12  ;;  %v2093_v12 = vld [vmem:[#allocation6 + $0xca8] sm:$0xff] }
 0x4e2   :  { %4094 = vmatpush1.bf16.msra.mxu0 %v2876_v16  ;;  %v2062_v16 = vld [vmem:[#allocation6 + $0xbb0] sm:$0xff] }
 0x4e3   :  { %4095 = vmatprep.subr.bf16.mxu0 %v2885_v50  ;;  %v2942_v50 = vunpack.c.l.s8.bf16 %v2062_v16 }
 0x4e4   :  { %4424 = vmatpush1.bf16.msra.mxu1 %v2886_v41  ;;  %v2948_v41 = vunpack.c.h.s8.bf16 %v2060_v26  ;;  %v3007_v26 = vunpack.c.l.s8.bf16 %v2095_v6 }
 0x4e5   :  { %4425 = vmatprep.subr.bf16.mxu1 %v2895_v1  ;;  %v2068_v1 = vld [vmem:[#allocation6 + $0xbe0] sm:$0xff] }
 0x4e6   :  { %4096 = vmatpush1.bf16.msra.mxu0 %v2884_v36  ;;  %v2071_v36 = vld [vmem:[#allocation6 + $0xbf8] sm:$0xff] }
 0x4e7   :  { %4097 = vmatprep.subr.bf16.mxu0 %v2893_v10  ;;  %v2950_v10 = vunpack.c.h.s8.bf16 %v2062_v16  ;;  %v2959_v42 = vunpack.c.l.s8.bf16 %v2071_v36  ;;  %v2967_v55 = vunpack.c.h.s8.bf16 %v2071_v36 }
 0x4e8   :  { %4426 = vmatpush1.bf16.msra.mxu1 %v2894_v51  ;;  %v2956_v51 = vunpack.c.l.s8.bf16 %v2068_v1 }
 0x4e9   :  { %4427 = vmatprep.subr.bf16.mxu1 %v2903_v43  ;;  %v2965_v43 = vunpack.c.h.s8.bf16 %v2069_v60  ;;  %v2103_v60 = vld [vmem:[#allocation6 + $0xcf8] sm:$0xff] }
 0x4ea   :  { %4098 = vmatpush1.bf16.msra.mxu0 %v2892_v8  ;;  %v2070_v8 = vld [vmem:[#allocation6 + $0xbf0] sm:$0xff] }
 0x4eb   :  { %4099 = vmatprep.subr.bf16.mxu0 %v2901_v14  ;;  %v2958_v14 = vunpack.c.l.s8.bf16 %v2070_v8 }
 0x4ec   :  { %4428 = vmatpush1.bf16.msra.mxu1 %v2902_v11  ;;  %v2964_v11 = vunpack.c.h.s8.bf16 %v2068_v1  ;;  %v3023_v1 = vunpack.c.l.s8.bf16 %v2103_v60 }
 0x4ed   :  { %4429 = vmatprep.subr.bf16.mxu1 %v2911_v49  ;;  %v2076_v49 = vld [vmem:[#allocation6 + $0xc20] sm:$0xff] }
 0x4ee   :  { %4100 = vmatpush1.bf16.msra.mxu0 %v2900_v23  ;;  %v2079_v23 = vld [vmem:[#allocation6 + $0xc38] sm:$0xff] }
 0x4ef   :  { %4101 = vmatprep.subr.bf16.mxu0 %v2909_v27  ;;  %v2966_v27 = vunpack.c.h.s8.bf16 %v2070_v8  ;;  %v2975_v45 = vunpack.c.l.s8.bf16 %v2079_v23  ;;  %v2983_v32 = vunpack.c.h.s8.bf16 %v2079_v23 }
 0x4f0   :  { %4430 = vmatpush1.bf16.msra.mxu1 %v2910_v13  ;;  %v2972_v13 = vunpack.c.l.s8.bf16 %v2076_v49 }
 0x4f1   :  { %4431 = vmatprep.subr.bf16.mxu1 %v2919_v22  ;;  %v2981_v22 = vunpack.c.h.s8.bf16 %v2077_v29  ;;  %v2111_v29 = vld [vmem:[#allocation6 + $0xd38] sm:$0xff] }
 0x4f2   :  { %4102 = vmatpush1.bf16.msra.mxu0 %v2908_v34  ;;  %v2078_v34 = vld [vmem:[#allocation6 + $0xc30] sm:$0xff] }
 0x4f3   :  { %4103 = vmatprep.subr.bf16.mxu0 %v2917_v63  ;;  %v2974_v63 = vunpack.c.l.s8.bf16 %v2078_v34 }
 0x4f4   :  { %4432 = vmatpush1.bf16.msra.mxu1 %v2918_v53  ;;  %v2980_v53 = vunpack.c.h.s8.bf16 %v2076_v49  ;;  %v3039_v49 = vunpack.c.l.s8.bf16 %v2111_v29 }
 0x4f5   :  { %4433 = vmatprep.subr.bf16.mxu1 %v2927_v7  ;;  %v2084_v7 = vld [vmem:[#allocation6 + $0xc60] sm:$0xff] }
 0x4f6   :  { %4104 = vmatpush1.bf16.msra.mxu0 %v2916_v19  ;;  %v2087_v19 = vld [vmem:[#allocation6 + $0xc78] sm:$0xff] }
 0x4f7   :  { %4105 = vmatprep.subr.bf16.mxu0 %v2925_v9  ;;  %v2982_v9 = vunpack.c.h.s8.bf16 %v2078_v34  ;;  %v2991_v31 = vunpack.c.l.s8.bf16 %v2087_v19 }
 0x4f8   :  { %4434 = vmatpush1.bf16.msra.mxu1 %v2926_v62  ;;  %v2988_v62 = vunpack.c.l.s8.bf16 %v2084_v7 }
 0x4f9   :  { %4435 = vmatprep.subr.bf16.mxu1 %v2935_v28  ;;  %v2999_v28 = vunpack.c.h.s8.bf16 %v2087_v19 }
 0x4fa   :  { %4106 = vmatpush1.bf16.msra.mxu0 %v2924_v40  ;;  %v2086_v40 = vld [vmem:[#allocation6 + $0xc70] sm:$0xff] }
 0x4fb   :  { %4107 = vmatprep.subr.bf16.mxu0 %v2933_v30  ;;  %v2990_v30 = vunpack.c.l.s8.bf16 %v2086_v40 }
 0x4fc   :  { %4436 = vmatpush1.bf16.msra.mxu1 %v2934_v15  ;;  %v2998_v15 = vunpack.c.h.s8.bf16 %v2086_v40 }
 0x4fd   :  { %4437 = vmatprep.subr.bf16.mxu1 %v2943_v35  ;;  %v2094_v35 = vld [vmem:[#allocation6 + $0xcb0] sm:$0xff] }
 0x4fe   :  { %4108 = vmatpush1.bf16.msra.mxu0 %v2932_v39  ;;  %v2996_v39 = vunpack.c.h.s8.bf16 %v2084_v7 }
 0x4ff   :  { %4109 = vmatprep.subr.bf16.mxu0 %v2941_v54  ;;  %v2092_v54 = vld [vmem:[#allocation6 + $0xca0] sm:$0xff] }
 0x500   :  { %4438 = vmatpush1.bf16.msra.mxu1 %v2942_v50  ;;  %v3004_v16 = vunpack.c.l.s8.bf16 %v2092_v54  ;;  %v3013_v50 = vunpack.c.h.s8.bf16 %v2093_v12  ;;  %v3012_v36 = vunpack.c.h.s8.bf16 %v2092_v54 }
 0x501   :  { %4439 = vmatprep.subr.bf16.mxu1 %v2951_v38  ;;  %v2101_v38 = vld [vmem:[#allocation6 + $0xce8] sm:$0xff] }
 0x502   :  { %4110 = vmatpush1.bf16.msra.mxu0 %v2940_v18  ;;  %v3006_v18 = vunpack.c.l.s8.bf16 %v2094_v35 }
 0x503   :  { %4111 = vmatprep.subr.bf16.mxu0 %v2949_v58  ;;  %v3015_v58 = vunpack.c.h.s8.bf16 %v2095_v6 }
 0x504   :  { %4440 = vmatpush1.bf16.msra.mxu1 %v2950_v10  ;;  %v3021_v10 = vunpack.c.l.s8.bf16 %v2101_v38 }
 0x505   :  { %4441 = vmatprep.subr.bf16.mxu1 %v2959_v42  ;;  %v2102_v42 = vld [vmem:[#allocation6 + $0xcf0] sm:$0xff] }
 0x506   :  { %4112 = vmatpush1.bf16.msra.mxu0 %v2948_v41  ;;  %v3014_v41 = vunpack.c.h.s8.bf16 %v2094_v35 }
 0x507   :  { %4113 = vmatprep.subr.bf16.mxu0 %v2957_v17  ;;  %v2100_v17 = vld [vmem:[#allocation6 + $0xce0] sm:$0xff] }
 0x508   :  { %4442 = vmatpush1.bf16.msra.mxu1 %v2958_v14  ;;  %v3020_v8 = vunpack.c.l.s8.bf16 %v2100_v17  ;;  %v3029_v14 = vunpack.c.h.s8.bf16 %v2101_v38  ;;  %v3028_v23 = vunpack.c.h.s8.bf16 %v2100_v17  ;;  %v2135_v38 = vld [vmem:[#allocation6 + $0xdf8] sm:$0xff] }
 0x509   :  { %4443 = vmatprep.subr.bf16.mxu1 %v2967_v55  ;;  %v2109_v55 = vld [vmem:[#allocation6 + $0xd28] sm:$0xff]  ;;  %v3087_v17 = vunpack.c.l.s8.bf16 %v2135_v38 }
 0x50a   :  { %4114 = vmatpush1.bf16.msra.mxu0 %v2956_v51  ;;  %v3022_v51 = vunpack.c.l.s8.bf16 %v2102_v42 }
 0x50b   :  { %4115 = vmatprep.subr.bf16.mxu0 %v2965_v43  ;;  %v3031_v43 = vunpack.c.h.s8.bf16 %v2103_v60 }
 0x50c   :  { %4444 = vmatpush1.bf16.msra.mxu1 %v2966_v27  ;;  %v3037_v27 = vunpack.c.l.s8.bf16 %v2109_v55 }
 0x50d   :  { %4454 = vmatprep.subr.bf16.mxu1 %v2975_v45  ;;  %v2110_v45 = vld [vmem:[#allocation6 + $0xd30] sm:$0xff] }
 0x50e   :  { %4116 = vmatpush1.bf16.msra.mxu0 %v2964_v11  ;;  %v3030_v11 = vunpack.c.h.s8.bf16 %v2102_v42 }
 0x50f   :  { %4126 = vmatprep.subr.bf16.mxu0 %v2973_v59  ;;  %4446 = vmatmul.mubr.bf16.vlgmr.msra.gmra.mrb[20].mxu1 %v7772_v20  ;;  %v2108_v59 = vld [vmem:[#allocation6 + $0xd20] sm:$0xff] }
 0x510   :  { %4455 = vmatpush1.bf16.msra.mxu1 %v2974_v63  ;;  %4486 = vmatprep.mubr.bf16.mxu1 %v7775_v4  ;;  %v3036_v34 = vunpack.c.l.s8.bf16 %v2108_v59  ;;  %v3045_v63 = vunpack.c.h.s8.bf16 %v2109_v55  ;;  %v3044_v19 = vunpack.c.h.s8.bf16 %v2108_v59  ;;  %v2143_v55 = vld [vmem:[#allocation6 + $0xe38] sm:$0xff] }
 0x511   :  { %4118 = vmatmul.mubr.bf16.vlgmr.msra.gmra.mrb[20].mxu0 %v7772_v20  ;;  %4456 = vmatprep.subr.bf16.mxu1 %v2983_v32  ;;  %v2997_v20 = vunpack.c.h.s8.bf16 %v2085_v48  ;;  %v2117_v48 = vld [vmem:[#allocation6 + $0xd68] sm:$0xff]  ;;  %v2119_v32 = vld [vmem:[#allocation6 + $0xd78] sm:$0xff]  ;;  %v3103_v59 = vunpack.c.l.s8.bf16 %v2143_v55 }
 0x512   :  { %4127 = vmatpush1.bf16.msra.mxu0 %v2972_v13  ;;  %4158 = vmatprep.mubr.bf16.mxu0 %v7775_v4  ;;  %v3005_v4 = vunpack.c.l.s8.bf16 %v2093_v12  ;;  %v3038_v13 = vunpack.c.l.s8.bf16 %v2110_v45  ;;  %v3055_v7 = vunpack.c.l.s8.bf16 %v2119_v32  ;;  %v2127_v12 = vld [vmem:[#allocation6 + $0xdb8] sm:$0xff] }
 0x513   :  { %4128 = vmatprep.subr.bf16.mxu0 %v2981_v22  ;;  %v3047_v22 = vunpack.c.h.s8.bf16 %v2111_v29  ;;  %v3071_v54 = vunpack.c.l.s8.bf16 %v2127_v12 }
 0x514   :  { %4457 = vmatpush1.bf16.msra.mxu1 %v2982_v9  ;;  %v3053_v9 = vunpack.c.l.s8.bf16 %v2117_v48 }
 0x515   :  { %4458 = vmatprep.subr.bf16.mxu1 %v2991_v31  ;;  %v2118_v31 = vld [vmem:[#allocation6 + $0xd70] sm:$0xff] }
 0x516   :  { %4129 = vmatpush1.bf16.msra.mxu0 %v2980_v53  ;;  %v3046_v53 = vunpack.c.h.s8.bf16 %v2110_v45 }
 0x517   :  { %4130 = vmatprep.subr.bf16.mxu0 %v2989_v5  ;;  %v2116_v5 = vld [vmem:[#allocation6 + $0xd60] sm:$0xff] }
 0x518   :  { %4459 = vmatpush1.bf16.msra.mxu1 %v2990_v30  ;;  %v3052_v40 = vunpack.c.l.s8.bf16 %v2116_v5  ;;  %v3061_v30 = vunpack.c.h.s8.bf16 %v2117_v48  ;;  %v3060_v6 = vunpack.c.h.s8.bf16 %v2116_v5  ;;  %v2151_v48 = vld [vmem:[#allocation6 + $0xe78] sm:$0xff] }
 0x519   :  { %4460 = vmatprep.subr.bf16.mxu1 %v2999_v28  ;;  %v2125_v28 = vld [vmem:[#allocation6 + $0xda8] sm:$0xff]  ;;  %v3119_v5 = vunpack.c.l.s8.bf16 %v2151_v48 }
 0x51a   :  { %4131 = vmatpush1.bf16.msra.mxu0 %v2988_v62  ;;  %v3054_v62 = vunpack.c.l.s8.bf16 %v2118_v31 }
 0x51b   :  { %4132 = vmatprep.subr.bf16.mxu0 %v2997_v20  ;;  %v3063_v20 = vunpack.c.h.s8.bf16 %v2119_v32 }
 0x51c   :  { %4461 = vmatpush1.bf16.msra.mxu1 %v2998_v15  ;;  %v3069_v15 = vunpack.c.l.s8.bf16 %v2125_v28 }
 0x51d   :  { %4462 = vmatprep.subr.bf16.mxu1 %v3007_v26  ;;  %v2126_v26 = vld [vmem:[#allocation6 + $0xdb0] sm:$0xff] }
 0x51e   :  { %4133 = vmatpush1.bf16.msra.mxu0 %v2996_v39  ;;  %v3062_v39 = vunpack.c.h.s8.bf16 %v2118_v31 }
 0x51f   :  { %4134 = vmatprep.subr.bf16.mxu0 %v3005_v4  ;;  %v2124_v4 = vld [vmem:[#allocation6 + $0xda0] sm:$0xff] }
 0x520   :  { %4463 = vmatpush1.bf16.msra.mxu1 %v3006_v18  ;;  %v3068_v35 = vunpack.c.l.s8.bf16 %v2124_v4  ;;  %v3077_v18 = vunpack.c.h.s8.bf16 %v2125_v28  ;;  %v3076_v60 = vunpack.c.h.s8.bf16 %v2124_v4 }
 0x521   :  { %4464 = vmatprep.subr.bf16.mxu1 %v3015_v58  ;;  %v2133_v58 = vld [vmem:[#allocation6 + $0xde8] sm:$0xff] }
 0x522   :  { %4135 = vmatpush1.bf16.msra.mxu0 %v3004_v16  ;;  %v3070_v16 = vunpack.c.l.s8.bf16 %v2126_v26 }
 0x523   :  { %4136 = vmatprep.subr.bf16.mxu0 %v3013_v50  ;;  %v3079_v50 = vunpack.c.h.s8.bf16 %v2127_v12 }
 0x524   :  { %4465 = vmatpush1.bf16.msra.mxu1 %v3014_v41  ;;  %v3085_v41 = vunpack.c.l.s8.bf16 %v2133_v58 }
 0x525   :  { %4466 = vmatprep.subr.bf16.mxu1 %v3023_v1  ;;  %v2134_v1 = vld [vmem:[#allocation6 + $0xdf0] sm:$0xff] }
 0x526   :  { %4137 = vmatpush1.bf16.msra.mxu0 %v3012_v36  ;;  %v3078_v36 = vunpack.c.h.s8.bf16 %v2126_v26 }
 0x527   :  { %4138 = vmatprep.subr.bf16.mxu0 %v3021_v10  ;;  %v2132_v10 = vld [vmem:[#allocation6 + $0xde0] sm:$0xff] }
 0x528   :  { %4467 = vmatpush1.bf16.msra.mxu1 %v3022_v51  ;;  %v3084_v42 = vunpack.c.l.s8.bf16 %v2132_v10  ;;  %v3093_v51 = vunpack.c.h.s8.bf16 %v2133_v58  ;;  %v3092_v29 = vunpack.c.h.s8.bf16 %v2132_v10 }
 0x529   :  { %4468 = vmatprep.subr.bf16.mxu1 %v3031_v43  ;;  %v2141_v43 = vld [vmem:[#allocation6 + $0xe28] sm:$0xff] }
 0x52a   :  { %4139 = vmatpush1.bf16.msra.mxu0 %v3020_v8  ;;  %v3086_v8 = vunpack.c.l.s8.bf16 %v2134_v1 }
 0x52b   :  { %4140 = vmatprep.subr.bf16.mxu0 %v3029_v14  ;;  %v3095_v14 = vunpack.c.h.s8.bf16 %v2135_v38 }
 0x52c   :  { %4469 = vmatpush1.bf16.msra.mxu1 %v3030_v11  ;;  %v3101_v11 = vunpack.c.l.s8.bf16 %v2141_v43 }
 0x52d   :  { %4470 = vmatprep.subr.bf16.mxu1 %v3039_v49  ;;  %v2142_v49 = vld [vmem:[#allocation6 + $0xe30] sm:$0xff] }
 0x52e   :  { %4141 = vmatpush1.bf16.msra.mxu0 %v3028_v23  ;;  %v3094_v23 = vunpack.c.h.s8.bf16 %v2134_v1 }
 0x52f   :  { %4142 = vmatprep.subr.bf16.mxu0 %v3037_v27  ;;  %v2140_v27 = vld [vmem:[#allocation6 + $0xe20] sm:$0xff] }
 0x530   :  { %4471 = vmatpush1.bf16.msra.mxu1 %v3038_v13  ;;  %v3100_v45 = vunpack.c.l.s8.bf16 %v2140_v27  ;;  %v3109_v13 = vunpack.c.h.s8.bf16 %v2141_v43  ;;  %v3108_v32 = vunpack.c.h.s8.bf16 %v2140_v27 }
 0x531   :  { %4472 = vmatprep.subr.bf16.mxu1 %v3047_v22  ;;  %v3111_v22 = vunpack.c.h.s8.bf16 %v2143_v55 }
 0x532   :  { %4143 = vmatpush1.bf16.msra.mxu0 %v3036_v34  ;;  %v3102_v34 = vunpack.c.l.s8.bf16 %v2142_v49 }
 0x533   :  { %4144 = vmatprep.subr.bf16.mxu0 %v3045_v63  ;;  %v2149_v63 = vld [vmem:[#allocation6 + $0xe68] sm:$0xff] }
 0x534   :  { %4473 = vmatpush1.bf16.msra.mxu1 %v3046_v53  ;;  %v3117_v53 = vunpack.c.l.s8.bf16 %v2149_v63 }
 0x535   :  { %4474 = vmatprep.subr.bf16.mxu1 %v3055_v7  ;;  %v2150_v7 = vld [vmem:[#allocation6 + $0xe70] sm:$0xff] }
 0x536   :  { %4145 = vmatpush1.bf16.msra.mxu0 %v3044_v19  ;;  %v3110_v19 = vunpack.c.h.s8.bf16 %v2142_v49  ;;  %v3126_v12 = vunpack.c.h.s8.bf16 %v2150_v7 }
 0x537   :  { %4146 = vmatprep.subr.bf16.mxu0 %v3053_v9  ;;  %v2148_v9 = vld [vmem:[#allocation6 + $0xe60] sm:$0xff] }
 0x538   :  { %4475 = vmatpush1.bf16.msra.mxu1 %v3054_v62  ;;  %v3116_v31 = vunpack.c.l.s8.bf16 %v2148_v9  ;;  %v3127_v62 = vunpack.c.h.s8.bf16 %v2151_v48  ;;  %v3124_v28 = vunpack.c.h.s8.bf16 %v2148_v9 }
 0x539   :  { %4476 = vmatprep.subr.bf16.mxu1 %v3063_v20  ;;  %v2159_v20 = vld [vmem:[#allocation6 + $0xeb8] sm:$0xff] }
 0x53a   :  { %4147 = vmatpush1.bf16.msra.mxu0 %v3052_v40  ;;  %v3118_v40 = vunpack.c.l.s8.bf16 %v2150_v7 }
 0x53b   :  { %4148 = vmatprep.subr.bf16.mxu0 %v3061_v30  ;;  %v2157_v30 = vld [vmem:[#allocation6 + $0xea8] sm:$0xff] }
 0x53c   :  { %4477 = vmatpush1.bf16.msra.mxu1 %v3062_v39  ;;  %v3135_v39 = vunpack.c.l.s8.bf16 %v2159_v20  ;;  %v3141_v26 = vunpack.c.h.s8.bf16 %v2157_v30 }
 0x53d   :  { %4478 = vmatprep.subr.bf16.mxu1 %v3071_v54 }
 0x53e   :  { %4149 = vmatpush1.bf16.msra.mxu0 %v3060_v6  ;;  %v2156_v6 = vld [vmem:[#allocation6 + $0xea0] sm:$0xff] }
 0x53f   :  { %4150 = vmatprep.subr.bf16.mxu0 %v3069_v15  ;;  %v2158_v15 = vld [vmem:[#allocation6 + $0xeb0] sm:$0xff]  ;;  %v3132_v4 = vunpack.c.l.s8.bf16 %v2156_v6 }
 0x540   :  { %4479 = vmatpush1.bf16.msra.mxu1 %v3070_v16  ;;  %v3134_v54 = vunpack.c.l.s8.bf16 %v2158_v15  ;;  %v2165_v16 = vld [vmem:[#allocation6 + $0xee8] sm:$0xff]  ;;  %v3142_v58 = vunpack.c.h.s8.bf16 %v2158_v15 }
 0x541   :  { %4480 = vmatprep.subr.bf16.mxu1 %v3079_v50  ;;  %v3140_v50 = vunpack.c.h.s8.bf16 %v2156_v6  ;;  %v3149_v38 = vunpack.c.l.s8.bf16 %v2165_v16  ;;  %v3157_v1 = vunpack.c.h.s8.bf16 %v2165_v16 }
 0x542   :  { %4151 = vmatpush1.bf16.msra.mxu0 %v3068_v35  ;;  %v3143_v35 = vunpack.c.h.s8.bf16 %v2159_v20 }
 0x543   :  { %4152 = vmatprep.subr.bf16.mxu0 %v3077_v18  ;;  %v2167_v18 = vld [vmem:[#allocation6 + $0xef8] sm:$0xff] }
 0x544   :  { %4481 = vmatpush1.bf16.msra.mxu1 %v3078_v36  ;;  %v3151_v36 = vunpack.c.l.s8.bf16 %v2167_v18 }
 0x545   :  { %4482 = vmatprep.subr.bf16.mxu1 %v3087_v17 }
 0x546   :  { %4153 = vmatpush1.bf16.msra.mxu0 %v3076_v60  ;;  %v2164_v60 = vld [vmem:[#allocation6 + $0xee0] sm:$0xff] }
 0x547   :  { %4154 = vmatprep.subr.bf16.mxu0 %v3085_v41  ;;  %v2166_v41 = vld [vmem:[#allocation6 + $0xef0] sm:$0xff]  ;;  %v3148_v10 = vunpack.c.l.s8.bf16 %v2164_v60 }
 0x548   :  { %4483 = vmatpush1.bf16.msra.mxu1 %v3086_v8  ;;  %v3150_v17 = vunpack.c.l.s8.bf16 %v2166_v41  ;;  %v2173_v8 = vld [vmem:[#allocation6 + $0xf28] sm:$0xff]  ;;  %v3158_v43 = vunpack.c.h.s8.bf16 %v2166_v41 }
 0x549   :  { %4484 = vmatprep.subr.bf16.mxu1 %v3095_v14  ;;  %v3156_v14 = vunpack.c.h.s8.bf16 %v2164_v60  ;;  %v3165_v55 = vunpack.c.l.s8.bf16 %v2173_v8  ;;  %v3173_v49 = vunpack.c.h.s8.bf16 %v2173_v8  ;;  %v7917_v60 = vld [vmem:[#allocation7] sm:$0xff]  ;;  %v5055_v8 = vld [vmem:[#allocation9 + $0x18] sm:$0xff] }
 0x54a   :  { %4155 = vmatpush1.bf16.msra.mxu0 %v3084_v42  ;;  %v3159_v42 = vunpack.c.h.s8.bf16 %v2167_v18 }
 0x54b   :  { %4156 = vmatprep.subr.bf16.mxu0 %v3093_v51  ;;  %v2175_v51 = vld [vmem:[#allocation6 + $0xf38] sm:$0xff] }
 0x54c   :  { %4485 = vmatpush1.bf16.msra.mxu1 %v3094_v23  ;;  %v3167_v23 = vunpack.c.l.s8.bf16 %v2175_v51 }
 0x54d   :  { %4495 = vmatprep.subr.bf16.mxu1 %v3103_v59 }
 0x54e   :  { %4157 = vmatpush1.bf16.msra.mxu0 %v3092_v29  ;;  %v2172_v29 = vld [vmem:[#allocation6 + $0xf20] sm:$0xff] }
 0x54f   :  { %4167 = vmatprep.subr.bf16.mxu0 %v3101_v11  ;;  %4487 = vmatmul.mubr.bf16.vlgmr.msra.gmra.mrb[20].mxu1 %v7787_v2  ;;  %v2174_v11 = vld [vmem:[#allocation6 + $0xf30] sm:$0xff]  ;;  %v3164_v27 = vunpack.c.l.s8.bf16 %v2172_v29 }
 0x550   :  { %4496 = vmatpush1.bf16.msra.mxu1 %v3102_v34  ;;  %4527 = vmatprep.mubr.bf16.mxu1 %v7790_v57  ;;  %v3166_v59 = vunpack.c.l.s8.bf16 %v2174_v11  ;;  %v2181_v34 = vld [vmem:[#allocation6 + $0xf68] sm:$0xff] }
 0x551   :  { %4159 = vmatmul.mubr.bf16.vlgmr.msra.gmra.mrb[20].mxu0 %v7787_v2  ;;  %4497 = vmatprep.subr.bf16.mxu1 %v3111_v22  ;;  %v3125_v2 = vunpack.c.h.s8.bf16 %v2149_v63  ;;  %v3172_v63 = vunpack.c.h.s8.bf16 %v2172_v29  ;;  %v3174_v22 = vunpack.c.h.s8.bf16 %v2174_v11  ;;  %v3181_v48 = vunpack.c.l.s8.bf16 %v2181_v34  ;;  %v5052_v29 = vld [vmem:[#allocation9] sm:$0xff]  ;;  %v5054_v11 = vld [vmem:[#allocation9 + $0x10] sm:$0xff] }
 0x552   :  { %4168 = vmatpush1.bf16.msra.mxu0 %v3100_v45  ;;  %4199 = vmatprep.mubr.bf16.mxu0 %v7790_v57  ;;  %v3133_v57 = vunpack.c.l.s8.bf16 %v2157_v30  ;;  %v3175_v45 = vunpack.c.h.s8.bf16 %v2175_v51  ;;  %v3189_v7 = vunpack.c.h.s8.bf16 %v2181_v34  ;;  %v5057_v34 = vld [vmem:[#allocation9 + $0x28] sm:$0xff] }
 0x553   :  { %4169 = vmatprep.subr.bf16.mxu0 %v3109_v13  ;;  %v2183_v13 = vld [vmem:[#allocation6 + $0xf78] sm:$0xff] }
 0x554   :  { %4498 = vmatpush1.bf16.msra.mxu1 %v3110_v19  ;;  %v3183_v19 = vunpack.c.l.s8.bf16 %v2183_v13 }
 0x555   :  { %4499 = vmatprep.subr.bf16.mxu1 %v3119_v5 }
 0x556   :  { %4170 = vmatpush1.bf16.msra.mxu0 %v3108_v32  ;;  %v2180_v32 = vld [vmem:[#allocation6 + $0xf60] sm:$0xff] }
 0x557   :  { %4171 = vmatprep.subr.bf16.mxu0 %v3117_v53  ;;  %v2182_v53 = vld [vmem:[#allocation6 + $0xf70] sm:$0xff]  ;;  %v3180_v9 = vunpack.c.l.s8.bf16 %v2180_v32 }
 0x558   :  { %4500 = vmatpush1.bf16.msra.mxu1 %v3118_v40  ;;  %v3182_v5 = vunpack.c.l.s8.bf16 %v2182_v53  ;;  %v2189_v40 = vld [vmem:[#allocation6 + $0xfa8] sm:$0xff]  ;;  %v3190_v30 = vunpack.c.h.s8.bf16 %v2182_v53 }
 0x559   :  { %4501 = vmatprep.subr.bf16.mxu1 %v3127_v62  ;;  %v3188_v62 = vunpack.c.h.s8.bf16 %v2180_v32  ;;  %v3197_v20 = vunpack.c.l.s8.bf16 %v2189_v40  ;;  %v3205_v15 = vunpack.c.h.s8.bf16 %v2189_v40  ;;  %v5189_v32 = vunpack.c.l.s8.bf16 %v5057_v34  ;;  %v5061_v40 = vld [vmem:[#allocation9 + $0x48] sm:$0xff] }
 0x55a   :  { %4172 = vmatpush1.bf16.msra.mxu0 %v3116_v31  ;;  %v3191_v31 = vunpack.c.h.s8.bf16 %v2183_v13 }
 0x55b   :  { %4173 = vmatprep.subr.bf16.mxu0 %v3125_v2  ;;  %v2191_v2 = vld [vmem:[#allocation6 + $0xfb8] sm:$0xff] }
 0x55c   :  { %4502 = vmatpush1.bf16.msra.mxu1 %v3126_v12  ;;  %v3199_v12 = vunpack.c.l.s8.bf16 %v2191_v2 }
 0x55d   :  { %4503 = vmatprep.subr.bf16.mxu1 %v3135_v39 }
 0x55e   :  { %4174 = vmatpush1.bf16.msra.mxu0 %v3124_v28  ;;  %v2188_v28 = vld [vmem:[#allocation6 + $0xfa0] sm:$0xff] }
 0x55f   :  { %4175 = vmatprep.subr.bf16.mxu0 %v3133_v57  ;;  %v2190_v57 = vld [vmem:[#allocation6 + $0xfb0] sm:$0xff]  ;;  %v3196_v6 = vunpack.c.l.s8.bf16 %v2188_v28 }
 0x560   :  { %4504 = vmatpush1.bf16.msra.mxu1 %v3134_v54  ;;  %v3198_v39 = vunpack.c.l.s8.bf16 %v2190_v57  ;;  %v2197_v54 = vld [vmem:[#allocation6 + $0xfe8] sm:$0xff]  ;;  %v3206_v16 = vunpack.c.h.s8.bf16 %v2190_v57  ;;  %v5062_v57 = vld [vmem:[#allocation9 + $0x50] sm:$0xff] }
 0x561   :  { %4505 = vmatprep.subr.bf16.mxu1 %v3143_v35  ;;  %v3204_v35 = vunpack.c.h.s8.bf16 %v2188_v28  ;;  %v3213_v18 = vunpack.c.l.s8.bf16 %v2197_v54  ;;  %v5060_v28 = vld [vmem:[#allocation9 + $0x40] sm:$0xff] }
 0x562   :  { %4176 = vmatpush1.bf16.msra.mxu0 %v3132_v4  ;;  %v3207_v4 = vunpack.c.h.s8.bf16 %v2191_v2  ;;  %v5063_v2 = vld [vmem:[#allocation9 + $0x58] sm:$0xff] }
 0x563   :  { %4177 = vmatprep.subr.bf16.mxu0 %v3141_v26  ;;  %v2199_v26 = vld [vmem:[#allocation6 + $0xff8] sm:$0xff] }
 0x564   :  { %4506 = vmatpush1.bf16.msra.mxu1 %v3142_v58  ;;  %v3215_v58 = vunpack.c.l.s8.bf16 %v2199_v26 }
 0x565   :  { %4507 = vmatprep.subr.bf16.mxu1 %v3151_v36  ;;  %v4971_v36 = vrot.slane %v7917_v60, %v7165_v25 }
 0x566   :  { %4178 = vmatpush1.bf16.msra.mxu0 %v3140_v50  ;;  %v2196_v50 = vld [vmem:[#allocation6 + $0xfe0] sm:$0xff] }
 0x567   :  { %4179 = vmatprep.subr.bf16.mxu0 %v3149_v38  ;;  %v2198_v38 = vld [vmem:[#allocation6 + $0xff0] sm:$0xff]  ;;  %v3212_v41 = vunpack.c.l.s8.bf16 %v2196_v50  ;;  %v5011_v51 = vrot.slane %v4971_v36, %v7162_v24 }
 0x568   :  { %4508 = vmatpush1.bf16.msra.mxu1 %v3150_v17  ;;  %v3221_v17 = vunpack.c.h.s8.bf16 %v2197_v54  ;;  %v5065_v54 = vld [vmem:[#allocation9 + $0x68] sm:$0xff] }
 0x569   :  { %4509 = vmatprep.subr.bf16.mxu1 %v3159_v42  ;;  %v5053_v42 = vld [vmem:[#allocation9 + $0x8] sm:$0xff] }
 0x56a   :  { %4180 = vmatpush1.bf16.msra.mxu0 %v3148_v10  ;;  %v3214_v10 = vunpack.c.l.s8.bf16 %v2198_v38 }
 0x56b   :  { %4181 = vmatprep.subr.bf16.mxu0 %v3157_v1  ;;  %v3223_v1 = vunpack.c.h.s8.bf16 %v2199_v26  ;;  %v5067_v26 = vld [vmem:[#allocation9 + $0x78] sm:$0xff] }
 0x56c   :  { %4510 = vmatpush1.bf16.msra.mxu1 %v3158_v43  ;;  %v3222_v43 = vunpack.c.h.s8.bf16 %v2198_v38  ;;  %v5066_v38 = vld [vmem:[#allocation9 + $0x70] sm:$0xff] }
 0x56d   :  { %4511 = vmatprep.subr.bf16.mxu1 %v3167_v23  ;;  %v5183_v23 = vunpack.c.l.s8.bf16 %v5055_v8 }
 0x56e   :  { %4182 = vmatpush1.bf16.msra.mxu0 %v3156_v14  ;;  %v3220_v14 = vunpack.c.h.s8.bf16 %v2196_v50  ;;  %v5064_v50 = vld [vmem:[#allocation9 + $0x60] sm:$0xff] }
 0x56f   :  { %4183 = vmatprep.subr.bf16.mxu0 %v3165_v55  ;;  %v5181_v55 = vunpack.c.l.s8.bf16 %v5053_v42  ;;  %v5204_v36 = vunpack.c.l.s8.bf16 %v5064_v50 }
 0x570   :  { %4512 = vmatpush1.bf16.msra.mxu1 %v3166_v59  ;;  %v5180_v59 = vunpack.c.l.s8.bf16 %v5052_v29 }
 0x571   :  { %4513 = vmatprep.subr.bf16.mxu1 %v3175_v45  ;;  %v5185_v45 = vunpack.c.h.s8.bf16 %v5053_v42  ;;  %v5071_v42 = vld [vmem:[#allocation9 + $0x98] sm:$0xff] }
 0x572   :  { %4184 = vmatpush1.bf16.msra.mxu0 %v3164_v27  ;;  %v5037_v27 = vadd.f32 %v5011_v51, %v7894_v52  ;;  %v5186_v52 = vunpack.c.h.s8.bf16 %v5054_v11  ;;  %v5210_v51 = vunpack.c.h.s8.bf16 %v5066_v38 }
 0x573   :  { %4185 = vmatprep.subr.bf16.mxu0 %v3173_v49  ;;  %v5182_v49 = vunpack.c.l.s8.bf16 %v5054_v11 }
 0x574   :  { %4514 = vmatpush1.bf16.msra.mxu1 %v3174_v22  ;;  %v5045_v13 = vpack.c.bf16 %v5037_v27, %v5037_v27  ;;  %v5059_v22 = vld [vmem:[#allocation9 + $0x38] sm:$0xff] }
 0x575   :  { %4515 = vmatprep.subr.bf16.mxu1 %v3183_v19  ;;  %v5056_v19 = vld [vmem:[#allocation9 + $0x20] sm:$0xff]  ;;  %v5191_v53 = vunpack.c.l.s8.bf16 %v5059_v22 }
 0x576   :  { %4186 = vmatpush1.bf16.msra.mxu0 %v3172_v63  ;;  %v5187_v63 = vunpack.c.h.s8.bf16 %v5055_v8  ;;  %v5208_v8 = vunpack.c.h.s8.bf16 %v5064_v50  ;;  %v7927_v50 = vld [vmem:[#allocation7 + $0x8] sm:$0xff] }
 0x577   :  { %4187 = vmatprep.subr.bf16.mxu0 %v3181_v48  ;;  %v5184_v48 = vunpack.c.h.s8.bf16 %v5052_v29  ;;  %v5070_v29 = vld [vmem:[#allocation9 + $0x90] sm:$0xff] }
 0x578   :  { %4516 = vmatpush1.bf16.msra.mxu1 %v3182_v5  ;;  %v5188_v5 = vunpack.c.l.s8.bf16 %v5056_v19  ;;  %v5214_v11 = vunpack.c.l.s8.bf16 %v5070_v29 }
 0x579   :  { %4517 = vmatprep.subr.bf16.mxu1 %v3191_v31  ;;  %v5193_v31 = vunpack.c.h.s8.bf16 %v5057_v34 }
 0x57a   :  { %4188 = vmatpush1.bf16.msra.mxu0 %v3180_v9  ;;  %v5058_v9 = vld [vmem:[#allocation9 + $0x30] sm:$0xff] }
 0x57b   :  { %4189 = vmatprep.subr.bf16.mxu0 %v3189_v7  ;;  %v5190_v7 = vunpack.c.l.s8.bf16 %v5058_v9 }
 0x57c   :  { %4518 = vmatpush1.bf16.msra.mxu1 %v3190_v30  ;;  %v5194_v30 = vunpack.c.h.s8.bf16 %v5058_v9 }
 0x57d   :  { %4519 = vmatprep.subr.bf16.mxu1 %v3199_v12  ;;  %v5199_v12 = vunpack.c.l.s8.bf16 %v5063_v2 }
 0x57e   :  { %4190 = vmatpush1.bf16.msra.mxu0 %v3188_v62  ;;  %v5192_v62 = vunpack.c.h.s8.bf16 %v5056_v19 }
 0x57f   :  { %4191 = vmatprep.subr.bf16.mxu0 %v3197_v20  ;;  %v5197_v20 = vunpack.c.l.s8.bf16 %v5061_v40 }
 0x580   :  { %4520 = vmatpush1.bf16.msra.mxu1 %v3198_v39  ;;  %v5198_v39 = vunpack.c.l.s8.bf16 %v5062_v57 }
 0x581   :  { %4521 = vmatprep.subr.bf16.mxu1 %v3207_v4  ;;  %v5203_v4 = vunpack.c.h.s8.bf16 %v5063_v2  ;;  %v5076_v2 = vld [vmem:[#allocation9 + $0xc0] sm:$0xff] }
 0x582   :  { %4192 = vmatpush1.bf16.msra.mxu0 %v3196_v6  ;;  %v5196_v6 = vunpack.c.l.s8.bf16 %v5060_v28 }
 0x583   :  { %4193 = vmatprep.subr.bf16.mxu0 %v3205_v15  ;;  %v5201_v15 = vunpack.c.h.s8.bf16 %v5061_v40 }
 0x584   :  { %4522 = vmatpush1.bf16.msra.mxu1 %v3206_v16  ;;  %v5202_v16 = vunpack.c.h.s8.bf16 %v5062_v57 }
 0x585   :  { %4523 = vmatprep.subr.bf16.mxu1 %v3215_v58  ;;  %v5207_v58 = vunpack.c.l.s8.bf16 %v5067_v26 }
 0x586   :  { %4194 = vmatpush1.bf16.msra.mxu0 %v3204_v35  ;;  %v5200_v35 = vunpack.c.h.s8.bf16 %v5060_v28 }
 0x587   :  { %4195 = vmatprep.subr.bf16.mxu0 %v3213_v18  ;;  %v5205_v18 = vunpack.c.l.s8.bf16 %v5065_v54 }
 0x588   :  { %4524 = vmatpush1.bf16.msra.mxu1 %v3214_v10  ;;  %v5209_v10 = vunpack.c.h.s8.bf16 %v5065_v54 }
 0x589   :  { %4525 = vmatprep.subr.bf16.mxu1 %v3223_v1  ;;  %v5069_v1 = vld [vmem:[#allocation9 + $0x88] sm:$0xff] }
 0x58a   :  { %4196 = vmatpush1.bf16.msra.mxu0 %v3212_v41  ;;  %v5206_v41 = vunpack.c.l.s8.bf16 %v5066_v38  ;;  %v5217_v27 = vunpack.c.h.s8.bf16 %v5069_v1 }
 0x58b   :  { %4197 = vmatprep.subr.bf16.mxu0 %v3221_v17  ;;  %v5211_v17 = vunpack.c.h.s8.bf16 %v5067_v26  ;;  %v5080_v26 = vld [vmem:[#allocation9 + $0xe0] sm:$0xff] }
 0x58c   :  { %4526 = vmatpush1.bf16.msra.mxu1 %v3222_v43  ;;  %v5068_v43 = vld [vmem:[#allocation9 + $0x80] sm:$0xff]  ;;  %v5236_v38 = vunpack.c.l.s8.bf16 %v5080_v26 }
 0x58d   :  { %5600 = vmatprep.subr.bf16.mxu1 %v5183_v23  ;;  %v5212_v23 = vunpack.c.l.s8.bf16 %v5068_v43  ;;  %v5216_v34 = vunpack.c.h.s8.bf16 %v5068_v43 }
 0x58e   :  { %4198 = vmatpush1.bf16.msra.mxu0 %v3220_v14  ;;  %v5213_v14 = vunpack.c.l.s8.bf16 %v5069_v1  ;;  %v5085_v1 = vld [vmem:[#allocation9 + $0x108] sm:$0xff] }
 0x58f   :  { %5436 = vmatprep.subr.bf16.mxu0 %v5181_v55  ;;  %4528 = vmatmul.mubr.bf16.vlgmr.msra.gmra.mrb[20].mxu1 %v7797_v21  ;;  %v5215_v55 = vunpack.c.l.s8.bf16 %v5071_v42  ;;  %v5245_v43 = vunpack.c.l.s8.bf16 %v5085_v1 }
 0x590   :  { %5601 = vmatpush1.bf16.msra.mxu1 %v5182_v49  ;;  %5632 = vmatprep.mubr.bf16.mxu1 %v5045_v13  ;;  %v5073_v49 = vld [vmem:[#allocation9 + $0xa8] sm:$0xff] }
 0x591   :  { %4200 = vmatmul.mubr.bf16.vlgmr.msra.gmra.mrb[20].mxu0 %v7797_v21  ;;  %5602 = vmatprep.subr.bf16.mxu1 %v5187_v63  ;;  %v5195_v21 = vunpack.c.h.s8.bf16 %v5059_v22  ;;  %v5221_v63 = vunpack.c.l.s8.bf16 %v5073_v49  ;;  %v5072_v22 = vld [vmem:[#allocation9 + $0xa0] sm:$0xff] }
 0x592   :  { %5437 = vmatpush1.bf16.msra.mxu0 %v5180_v59  ;;  %5468 = vmatprep.mubr.bf16.mxu0 %v5045_v13  ;;  %v5219_v59 = vunpack.c.h.s8.bf16 %v5071_v42  ;;  %v5218_v13 = vunpack.c.h.s8.bf16 %v5070_v29 }
 0x593   :  { %5438 = vmatprep.subr.bf16.mxu0 %v5185_v45  ;;  %v5075_v45 = vld [vmem:[#allocation9 + $0xb8] sm:$0xff] }
 0x594   :  { %5603 = vmatpush1.bf16.msra.mxu1 %v5186_v52  ;;  %v5074_v52 = vld [vmem:[#allocation9 + $0xb0] sm:$0xff]  ;;  %v5227_v9 = vunpack.c.h.s8.bf16 %v5075_v45 }
 0x595   :  { %5604 = vmatprep.subr.bf16.mxu1 %v5191_v53  ;;  %v5222_v19 = vunpack.c.l.s8.bf16 %v5074_v52  ;;  %v5225_v53 = vunpack.c.h.s8.bf16 %v5073_v49 }
 0x596   :  { %5439 = vmatpush1.bf16.msra.mxu0 %v5184_v48  ;;  %v5223_v48 = vunpack.c.l.s8.bf16 %v5075_v45  ;;  %v5249_v45 = vunpack.c.h.s8.bf16 %v5085_v1  ;;  %v5103_v1 = vld [vmem:[#allocation9 + $0x198] sm:$0xff] }
 0x597   :  { %5440 = vmatprep.subr.bf16.mxu0 %v5189_v32  ;;  %v5220_v32 = vunpack.c.l.s8.bf16 %v5072_v22 }
 0x598   :  { %5605 = vmatpush1.bf16.msra.mxu1 %v5190_v7  ;;  %v5079_v7 = vld [vmem:[#allocation9 + $0xd8] sm:$0xff] }
 0x599   :  { %5606 = vmatprep.subr.bf16.mxu1 %v5195_v21  ;;  %v5226_v21 = vunpack.c.h.s8.bf16 %v5074_v52  ;;  %v5235_v57 = vunpack.c.h.s8.bf16 %v5079_v7  ;;  %v5088_v52 = vld [vmem:[#allocation9 + $0x120] sm:$0xff] }
 0x59a   :  { %5441 = vmatpush1.bf16.msra.mxu0 %v5188_v5  ;;  %v5077_v5 = vld [vmem:[#allocation9 + $0xc8] sm:$0xff] }
 0x59b   :  { %5442 = vmatprep.subr.bf16.mxu0 %v5193_v31  ;;  %v5224_v31 = vunpack.c.h.s8.bf16 %v5072_v22  ;;  %v5229_v40 = vunpack.c.l.s8.bf16 %v5077_v5 }
 0x59c   :  { %5607 = vmatpush1.bf16.msra.mxu1 %v5194_v30  ;;  %v5078_v30 = vld [vmem:[#allocation9 + $0xd0] sm:$0xff] }
 0x59d   :  { %5608 = vmatprep.subr.bf16.mxu1 %v5199_v12  ;;  %v5230_v28 = vunpack.c.l.s8.bf16 %v5078_v30  ;;  %v5233_v12 = vunpack.c.h.s8.bf16 %v5077_v5 }
 0x59e   :  { %5443 = vmatpush1.bf16.msra.mxu0 %v5192_v62  ;;  %v5231_v62 = vunpack.c.l.s8.bf16 %v5079_v7 }
 0x59f   :  { %5444 = vmatprep.subr.bf16.mxu0 %v5197_v20  ;;  %v5228_v20 = vunpack.c.l.s8.bf16 %v5076_v2 }
 0x5a0   :  { %5609 = vmatpush1.bf16.msra.mxu1 %v5198_v39  ;;  %v5083_v39 = vld [vmem:[#allocation9 + $0xf8] sm:$0xff] }
 0x5a1   :  { %5610 = vmatprep.subr.bf16.mxu1 %v5203_v4  ;;  %v5234_v4 = vunpack.c.h.s8.bf16 %v5078_v30  ;;  %v5092_v30 = vld [vmem:[#allocation9 + $0x140] sm:$0xff] }
 0x5a2   :  { %5445 = vmatpush1.bf16.msra.mxu0 %v5196_v6  ;;  %v5081_v6 = vld [vmem:[#allocation9 + $0xe8] sm:$0xff] }
 0x5a3   :  { %5446 = vmatprep.subr.bf16.mxu0 %v5201_v15  ;;  %v5232_v15 = vunpack.c.h.s8.bf16 %v5076_v2  ;;  %v5237_v54 = vunpack.c.l.s8.bf16 %v5081_v6 }
 0x5a4   :  { %5611 = vmatpush1.bf16.msra.mxu1 %v5202_v16  ;;  %v5239_v16 = vunpack.c.l.s8.bf16 %v5083_v39 }
 0x5a5   :  { %5612 = vmatprep.subr.bf16.mxu1 %v5207_v58  ;;  %v4979_v58 = vrot.slane %v7927_v50, %v7165_v25 }
 0x5a6   :  { %5447 = vmatpush1.bf16.msra.mxu0 %v5200_v35  ;;  %v4967_v35 = vrot.slane %v7917_v60, %v7162_v24  ;;  %v5087_v60 = vld [vmem:[#allocation9 + $0x118] sm:$0xff] }
 0x5a7   :  { %5448 = vmatprep.subr.bf16.mxu0 %v5205_v18  ;;  %v5082_v18 = vld [vmem:[#allocation9 + $0xf0] sm:$0xff]  ;;  %v5019_v42 = vrot.slane %v4979_v58, %v7162_v24  ;;  %v5247_v29 = vunpack.c.l.s8.bf16 %v5087_v60 }
 0x5a8   :  { %5613 = vmatpush1.bf16.msra.mxu1 %v5206_v41  ;;  %v5241_v41 = vunpack.c.h.s8.bf16 %v5081_v6  ;;  %v5098_v58 = vld [vmem:[#allocation9 + $0x170] sm:$0xff] }
 0x5a9   :  { %5614 = vmatprep.subr.bf16.mxu1 %v5211_v17  ;;  %v5243_v17 = vunpack.c.h.s8.bf16 %v5083_v39 }
 0x5aa   :  { %5449 = vmatpush1.bf16.msra.mxu0 %v5204_v36  ;;  %v5238_v36 = vunpack.c.l.s8.bf16 %v5082_v18 }
 0x5ab   :  { %5450 = vmatprep.subr.bf16.mxu0 %v5209_v10  ;;  %v5007_v10 = vrot.slane %v4967_v35, %v7162_v24 }
 0x5ac   :  { %5615 = vmatpush1.bf16.msra.mxu1 %v5210_v51  ;;  %v5242_v51 = vunpack.c.h.s8.bf16 %v5082_v18 }
 0x5ad   :  { %5616 = vmatprep.subr.bf16.mxu1 %v5215_v55  ;;  %v5084_v55 = vld [vmem:[#allocation9 + $0x100] sm:$0xff] }
 0x5ae   :  { %5451 = vmatpush1.bf16.msra.mxu0 %v5208_v8  ;;  %v5240_v8 = vunpack.c.h.s8.bf16 %v5080_v26  ;;  %v5248_v22 = vunpack.c.h.s8.bf16 %v5084_v55 }
 0x5af   :  { %5452 = vmatprep.subr.bf16.mxu0 %v5213_v14  ;;  %v5036_v14 = vadd.f32 %v5007_v10, %v7897_v3  ;;  %v5091_v3 = vld [vmem:[#allocation9 + $0x138] sm:$0xff] }
 0x5b0   :  { %5617 = vmatpush1.bf16.msra.mxu1 %v5214_v11  ;;  %v5039_v11 = vadd.f32 %v5019_v42, %v7900_v61  ;;  %v5259_v7 = vunpack.c.h.s8.bf16 %v5091_v3  ;;  %v5274_v42 = vunpack.c.h.s8.bf16 %v5098_v58 }
 0x5b1   :  { %5618 = vmatprep.subr.bf16.mxu1 %v5219_v59  ;;  %v5044_v59 = vpack.c.bf16 %v5036_v14, %v5036_v14  ;;  %v5279_v14 = vunpack.c.l.s8.bf16 %v5103_v1 }
 0x5b2   :  { %5453 = vmatpush1.bf16.msra.mxu0 %v5212_v23  ;;  %v5086_v23 = vld [vmem:[#allocation9 + $0x110] sm:$0xff] }
 0x5b3   :  { %5454 = vmatprep.subr.bf16.mxu0 %v5217_v27  ;;  %v5244_v27 = vunpack.c.l.s8.bf16 %v5084_v55  ;;  %v5246_v49 = vunpack.c.l.s8.bf16 %v5086_v23 }
 0x5b4   :  { %5619 = vmatpush1.bf16.msra.mxu1 %v5218_v13  ;;  %v5047_v13 = vpack.c.bf16 %v5039_v11, %v5039_v11  ;;  %v5283_v11 = vunpack.c.h.s8.bf16 %v5103_v1  ;;  %v5116_v1 = vld [vmem:[#allocation9 + $0x200] sm:$0xff] }
 0x5b5   :  { %5620 = vmatprep.subr.bf16.mxu1 %v5223_v48  ;;  %v5250_v48 = vunpack.c.h.s8.bf16 %v5086_v23 }
 0x5b6   :  { %5455 = vmatpush1.bf16.msra.mxu0 %v5216_v34  ;;  %v5089_v34 = vld [vmem:[#allocation9 + $0x128] sm:$0xff] }
 0x5b7   :  { %5456 = vmatprep.subr.bf16.mxu0 %v5221_v63  ;;  %v5251_v63 = vunpack.c.h.s8.bf16 %v5087_v60  ;;  %v5253_v61 = vunpack.c.l.s8.bf16 %v5089_v34  ;;  %v5257_v5 = vunpack.c.h.s8.bf16 %v5089_v34 }
 0x5b8   :  { %5621 = vmatpush1.bf16.msra.mxu1 %v5222_v19  ;;  %v5090_v19 = vld [vmem:[#allocation9 + $0x130] sm:$0xff] }
 0x5b9   :  { %5622 = vmatprep.subr.bf16.mxu1 %v5227_v9  ;;  %v5254_v9 = vunpack.c.l.s8.bf16 %v5090_v19  ;;  %v5258_v2 = vunpack.c.h.s8.bf16 %v5090_v19  ;;  %v5111_v19 = vld [vmem:[#allocation9 + $0x1d8] sm:$0xff] }
 0x5ba   :  { %5457 = vmatpush1.bf16.msra.mxu0 %v5220_v32  ;;  %v5255_v32 = vunpack.c.l.s8.bf16 %v5091_v3  ;;  %v5106_v3 = vld [vmem:[#allocation9 + $0x1b0] sm:$0xff] }
 0x5bb   :  { %5458 = vmatprep.subr.bf16.mxu0 %v5225_v53  ;;  %v5252_v53 = vunpack.c.l.s8.bf16 %v5088_v52 }
 0x5bc   :  { %5623 = vmatpush1.bf16.msra.mxu1 %v5226_v21  ;;  %v5095_v21 = vld [vmem:[#allocation9 + $0x158] sm:$0xff] }
 0x5bd   :  { %5624 = vmatprep.subr.bf16.mxu1 %v5231_v62  ;;  %v5267_v39 = vunpack.c.h.s8.bf16 %v5095_v21 }
 0x5be   :  { %5459 = vmatpush1.bf16.msra.mxu0 %v5224_v31  ;;  %v5093_v31 = vld [vmem:[#allocation9 + $0x148] sm:$0xff] }
 0x5bf   :  { %5460 = vmatprep.subr.bf16.mxu0 %v5229_v40  ;;  %v5256_v40 = vunpack.c.h.s8.bf16 %v5088_v52  ;;  %v5261_v62 = vunpack.c.l.s8.bf16 %v5093_v31  ;;  %v5265_v6 = vunpack.c.h.s8.bf16 %v5093_v31  ;;  %v5295_v31 = vunpack.c.l.s8.bf16 %v5111_v19 }
 0x5c0   :  { %5625 = vmatpush1.bf16.msra.mxu1 %v5230_v28  ;;  %v5094_v28 = vld [vmem:[#allocation9 + $0x150] sm:$0xff] }
 0x5c1   :  { %5626 = vmatprep.subr.bf16.mxu1 %v5235_v57  ;;  %v5262_v57 = vunpack.c.l.s8.bf16 %v5094_v28  ;;  %v5266_v26 = vunpack.c.h.s8.bf16 %v5094_v28  ;;  %v5115_v28 = vld [vmem:[#allocation9 + $0x1f8] sm:$0xff] }
 0x5c2   :  { %5461 = vmatpush1.bf16.msra.mxu0 %v5228_v20  ;;  %v5263_v20 = vunpack.c.l.s8.bf16 %v5095_v21  ;;  %v5110_v21 = vld [vmem:[#allocation9 + $0x1d0] sm:$0xff] }
 0x5c3   :  { %5462 = vmatprep.subr.bf16.mxu0 %v5233_v12  ;;  %v5260_v12 = vunpack.c.l.s8.bf16 %v5092_v30 }
 0x5c4   :  { %5627 = vmatpush1.bf16.msra.mxu1 %v5234_v4  ;;  %v5099_v4 = vld [vmem:[#allocation9 + $0x178] sm:$0xff] }
 0x5c5   :  { %5628 = vmatprep.subr.bf16.mxu1 %v5239_v16  ;;  %v5096_v16 = vld [vmem:[#allocation9 + $0x160] sm:$0xff]  ;;  %v5271_v18 = vunpack.c.l.s8.bf16 %v5099_v4  ;;  %v5275_v10 = vunpack.c.h.s8.bf16 %v5099_v4  ;;  %v5303_v4 = vunpack.c.l.s8.bf16 %v5115_v28 }
 0x5c6   :  { %5463 = vmatpush1.bf16.msra.mxu0 %v5232_v15  ;;  %v5097_v15 = vld [vmem:[#allocation9 + $0x168] sm:$0xff]  ;;  %v5272_v60 = vunpack.c.h.s8.bf16 %v5096_v16 }
 0x5c7   :  { %5464 = vmatprep.subr.bf16.mxu0 %v5237_v54  ;;  %v5264_v54 = vunpack.c.h.s8.bf16 %v5092_v30  ;;  %v5269_v35 = vunpack.c.l.s8.bf16 %v5097_v15  ;;  %v5299_v30 = vunpack.c.h.s8.bf16 %v5111_v19  ;;  %v5124_v19 = vld [vmem:[#allocation9 + $0x240] sm:$0xff] }
 0x5c8   :  { %5629 = vmatpush1.bf16.msra.mxu1 %v5238_v36  ;;  %v5270_v36 = vunpack.c.l.s8.bf16 %v5098_v58  ;;  %v5307_v58 = vunpack.c.h.s8.bf16 %v5115_v28  ;;  %v5128_v28 = vld [vmem:[#allocation9 + $0x260] sm:$0xff] }
 0x5c9   :  { %5630 = vmatprep.subr.bf16.mxu1 %v5243_v17  ;;  %v5101_v17 = vld [vmem:[#allocation9 + $0x188] sm:$0xff] }
 0x5ca   :  { %5465 = vmatpush1.bf16.msra.mxu0 %v5236_v38  ;;  %v5268_v38 = vunpack.c.l.s8.bf16 %v5096_v16  ;;  %v5281_v23 = vunpack.c.h.s8.bf16 %v5101_v17 }
 0x5cb   :  { %5466 = vmatprep.subr.bf16.mxu0 %v5241_v41  ;;  %v5273_v41 = vunpack.c.h.s8.bf16 %v5097_v15  ;;  %v4975_v15 = vrot.slane %v7927_v50, %v7162_v24 }
 0x5cc   :  { %5631 = vmatpush1.bf16.msra.mxu1 %v5242_v51  ;;  %v5100_v51 = vld [vmem:[#allocation9 + $0x180] sm:$0xff] }
 0x5cd   :  { %5641 = vmatprep.subr.bf16.mxu1 %v5247_v29  ;;  %v5276_v55 = vunpack.c.l.s8.bf16 %v5100_v51 }
 0x5ce   :  { %5467 = vmatpush1.bf16.msra.mxu0 %v5240_v8  ;;  %v5277_v8 = vunpack.c.l.s8.bf16 %v5101_v17 }
 0x5cf   :  { %5477 = vmatprep.subr.bf16.mxu0 %v5245_v43  ;;  %5633 = vmatmul.mubr.bf16.vlgmr.msra.gmra.mrb[24].mxu1 %v5044_v59  ;;  %v5102_v43 = vld [vmem:[#allocation9 + $0x190] sm:$0xff] }
 0x5d0   :  { %5642 = vmatpush1.bf16.msra.mxu1 %v5246_v49  ;;  %5673 = vmatprep.mubr.bf16.mxu1 %v5047_v13  ;;  %v5278_v29 = vunpack.c.l.s8.bf16 %v5102_v43  ;;  %v5280_v49 = vunpack.c.h.s8.bf16 %v5100_v51 }
 0x5d1   :  { %5469 = vmatmul.mubr.bf16.vlgmr.msra.gmra.mrb[24].mxu0 %v5044_v59  ;;  %5643 = vmatprep.subr.bf16.mxu1 %v5251_v63  ;;  %v5107_v59 = vld [vmem:[#allocation9 + $0x1b8] sm:$0xff] }
 0x5d2   :  { %5478 = vmatpush1.bf16.msra.mxu0 %v5244_v27  ;;  %5509 = vmatprep.mubr.bf16.mxu0 %v5047_v13  ;;  %v5105_v27 = vld [vmem:[#allocation9 + $0x1a8] sm:$0xff]  ;;  %v5104_v13 = vld [vmem:[#allocation9 + $0x1a0] sm:$0xff]  ;;  %v5287_v63 = vunpack.c.l.s8.bf16 %v5107_v59  ;;  %v5291_v52 = vunpack.c.h.s8.bf16 %v5107_v59 }
 0x5d3   :  { %5479 = vmatprep.subr.bf16.mxu0 %v5249_v45  ;;  %v5282_v45 = vunpack.c.h.s8.bf16 %v5102_v43  ;;  %v5285_v34 = vunpack.c.l.s8.bf16 %v5105_v27  ;;  %v5120_v59 = vld [vmem:[#allocation9 + $0x220] sm:$0xff] }
 0x5d4   :  { %5644 = vmatpush1.bf16.msra.mxu1 %v5250_v48  ;;  %v5286_v48 = vunpack.c.l.s8.bf16 %v5106_v3 }
 0x5d5   :  { %5645 = vmatprep.subr.bf16.mxu1 %v5255_v32  ;;  %v5109_v32 = vld [vmem:[#allocation9 + $0x1c8] sm:$0xff] }
 0x5d6   :  { %5480 = vmatpush1.bf16.msra.mxu0 %v5248_v22  ;;  %v5284_v22 = vunpack.c.l.s8.bf16 %v5104_v13 }
 0x5d7   :  { %5481 = vmatprep.subr.bf16.mxu0 %v5253_v61  ;;  %v5289_v61 = vunpack.c.h.s8.bf16 %v5105_v27 }
 0x5d8   :  { %5646 = vmatpush1.bf16.msra.mxu1 %v5254_v9  ;;  %v5290_v9 = vunpack.c.h.s8.bf16 %v5106_v3 }
 0x5d9   :  { %5647 = vmatprep.subr.bf16.mxu1 %v5259_v7  ;;  %v5108_v7 = vld [vmem:[#allocation9 + $0x1c0] sm:$0xff] }
 0x5da   :  { %5482 = vmatpush1.bf16.msra.mxu0 %v5252_v53  ;;  %v5288_v53 = vunpack.c.h.s8.bf16 %v5104_v13 }
 0x5db   :  { %5483 = vmatprep.subr.bf16.mxu0 %v5257_v5  ;;  %v5293_v5 = vunpack.c.l.s8.bf16 %v5109_v32 }
 0x5dc   :  { %5648 = vmatpush1.bf16.msra.mxu1 %v5258_v2  ;;  %v5294_v2 = vunpack.c.l.s8.bf16 %v5110_v21 }
 0x5dd   :  { %5649 = vmatprep.subr.bf16.mxu1 %v5263_v20  ;;  %v5113_v20 = vld [vmem:[#allocation9 + $0x1e8] sm:$0xff] }
 0x5de   :  { %5484 = vmatpush1.bf16.msra.mxu0 %v5256_v40  ;;  %v5292_v40 = vunpack.c.l.s8.bf16 %v5108_v7  ;;  %v5305_v16 = vunpack.c.h.s8.bf16 %v5113_v20 }
 0x5df   :  { %5485 = vmatprep.subr.bf16.mxu0 %v5261_v62  ;;  %v5297_v62 = vunpack.c.h.s8.bf16 %v5109_v32 }
 0x5e0   :  { %5650 = vmatpush1.bf16.msra.mxu1 %v5262_v57  ;;  %v5298_v57 = vunpack.c.h.s8.bf16 %v5110_v21 }
 0x5e1   :  { %5651 = vmatprep.subr.bf16.mxu1 %v5267_v39  ;;  %v5112_v39 = vld [vmem:[#allocation9 + $0x1e0] sm:$0xff] }
 0x5e2   :  { %5486 = vmatpush1.bf16.msra.mxu0 %v5260_v12  ;;  %v5296_v12 = vunpack.c.h.s8.bf16 %v5108_v7 }
 0x5e3   :  { %5487 = vmatprep.subr.bf16.mxu0 %v5265_v6  ;;  %v5301_v6 = vunpack.c.l.s8.bf16 %v5113_v20 }
 0x5e4   :  { %5652 = vmatpush1.bf16.msra.mxu1 %v5266_v26  ;;  %v5300_v26 = vunpack.c.l.s8.bf16 %v5112_v39 }
 0x5e5   :  { %5653 = vmatprep.subr.bf16.mxu1 %v5271_v18  ;;  %v5015_v18 = vrot.slane %v4975_v15, %v7162_v24 }
 0x5e6   :  { %5488 = vmatpush1.bf16.msra.mxu0 %v5264_v54  ;;  %v5114_v54 = vld [vmem:[#allocation9 + $0x1f0] sm:$0xff] }
 0x5e7   :  { %5489 = vmatprep.subr.bf16.mxu0 %v5269_v35  ;;  %v5302_v35 = vunpack.c.l.s8.bf16 %v5114_v54  ;;  %v5306_v50 = vunpack.c.h.s8.bf16 %v5114_v54  ;;  %v5133_v54 = vld [vmem:[#allocation9 + $0x288] sm:$0xff] }
 0x5e8   :  { %5654 = vmatpush1.bf16.msra.mxu1 %v5270_v36  ;;  %v5119_v36 = vld [vmem:[#allocation9 + $0x218] sm:$0xff] }
 0x5e9   :  { %5655 = vmatprep.subr.bf16.mxu1 %v5275_v10  ;;  %v5038_v10 = vadd.f32 %v5015_v18, %v7903_v37  ;;  %v5312_v37 = vunpack.c.h.s8.bf16 %v5116_v1  ;;  %v5341_v18 = vunpack.c.l.s8.bf16 %v5133_v54 }
 0x5ea   :  { %5490 = vmatpush1.bf16.msra.mxu0 %v5268_v38  ;;  %v5117_v38 = vld [vmem:[#allocation9 + $0x208] sm:$0xff] }
 0x5eb   :  { %5491 = vmatprep.subr.bf16.mxu0 %v5273_v41  ;;  %v5304_v41 = vunpack.c.h.s8.bf16 %v5112_v39  ;;  %v5309_v17 = vunpack.c.l.s8.bf16 %v5117_v38  ;;  %v5046_v51 = vpack.c.bf16 %v5038_v10, %v5038_v10  ;;  %v5313_v43 = vunpack.c.h.s8.bf16 %v5117_v38 }
 0x5ec   :  { %5656 = vmatpush1.bf16.msra.mxu1 %v5274_v42  ;;  %v5118_v42 = vld [vmem:[#allocation9 + $0x210] sm:$0xff]  ;;  %v5345_v10 = vunpack.c.h.s8.bf16 %v5133_v54 }
 0x5ed   :  { %5657 = vmatprep.subr.bf16.mxu1 %v5279_v14  ;;  %v5310_v14 = vunpack.c.l.s8.bf16 %v5118_v42 }
 0x5ee   :  { %5492 = vmatpush1.bf16.msra.mxu0 %v5272_v60  ;;  %v5311_v60 = vunpack.c.l.s8.bf16 %v5119_v36 }
 0x5ef   :  { %5493 = vmatprep.subr.bf16.mxu0 %v5277_v8  ;;  %v5308_v8 = vunpack.c.l.s8.bf16 %v5116_v1  ;;  %v5137_v1 = vld [vmem:[#allocation9 + $0x2a8] sm:$0xff] }
 0x5f0   :  { %5658 = vmatpush1.bf16.msra.mxu1 %v5278_v29  ;;  %v5121_v29 = vld [vmem:[#allocation9 + $0x228] sm:$0xff] }
 0x5f1   :  { %5659 = vmatprep.subr.bf16.mxu1 %v5283_v11  ;;  %v5314_v11 = vunpack.c.h.s8.bf16 %v5118_v42  ;;  %v5317_v27 = vunpack.c.l.s8.bf16 %v5121_v29 }
 0x5f2   :  { %5494 = vmatpush1.bf16.msra.mxu0 %v5276_v55  ;;  %v5315_v55 = vunpack.c.h.s8.bf16 %v5119_v36  ;;  %v5134_v36 = vld [vmem:[#allocation9 + $0x290] sm:$0xff] }
 0x5f3   :  { %5495 = vmatprep.subr.bf16.mxu0 %v5281_v23  ;;  %v5123_v23 = vld [vmem:[#allocation9 + $0x238] sm:$0xff] }
 0x5f4   :  { %5660 = vmatpush1.bf16.msra.mxu1 %v5282_v45  ;;  %v5122_v45 = vld [vmem:[#allocation9 + $0x230] sm:$0xff]  ;;  %v5323_v3 = vunpack.c.h.s8.bf16 %v5123_v23 }
 0x5f5   :  { %5661 = vmatprep.subr.bf16.mxu1 %v5287_v63  ;;  %v5318_v13 = vunpack.c.l.s8.bf16 %v5122_v45  ;;  %v5321_v63 = vunpack.c.h.s8.bf16 %v5121_v29 }
 0x5f6   :  { %5496 = vmatpush1.bf16.msra.mxu0 %v5280_v49  ;;  %v5319_v49 = vunpack.c.l.s8.bf16 %v5123_v23 }
 0x5f7   :  { %5497 = vmatprep.subr.bf16.mxu0 %v5285_v34  ;;  %v5316_v34 = vunpack.c.l.s8.bf16 %v5120_v59 }
 0x5f8   :  { %5662 = vmatpush1.bf16.msra.mxu1 %v5286_v48  ;;  %v5127_v48 = vld [vmem:[#allocation9 + $0x258] sm:$0xff] }
 0x5f9   :  { %5663 = vmatprep.subr.bf16.mxu1 %v5291_v52  ;;  %v5322_v52 = vunpack.c.h.s8.bf16 %v5122_v45  ;;  %v5331_v21 = vunpack.c.h.s8.bf16 %v5127_v48 }
 0x5fa   :  { %5498 = vmatpush1.bf16.msra.mxu0 %v5284_v22  ;;  %v5125_v22 = vld [vmem:[#allocation9 + $0x248] sm:$0xff] }
 0x5fb   :  { %5499 = vmatprep.subr.bf16.mxu0 %v5289_v61  ;;  %v5320_v61 = vunpack.c.h.s8.bf16 %v5120_v59  ;;  %v5325_v32 = vunpack.c.l.s8.bf16 %v5125_v22  ;;  %v5143_v59 = vld [vmem:[#allocation9 + $0x2d8] sm:$0xff] }
 0x5fc   :  { %5664 = vmatpush1.bf16.msra.mxu1 %v5290_v9  ;;  %v5126_v9 = vld [vmem:[#allocation9 + $0x250] sm:$0xff] }
 0x5fd   :  { %5665 = vmatprep.subr.bf16.mxu1 %v5295_v31  ;;  %v5326_v7 = vunpack.c.l.s8.bf16 %v5126_v9  ;;  %v5329_v31 = vunpack.c.h.s8.bf16 %v5125_v22 }
 0x5fe   :  { %5500 = vmatpush1.bf16.msra.mxu0 %v5288_v53  ;;  %v5327_v53 = vunpack.c.l.s8.bf16 %v5127_v48 }
 0x5ff   :  { %5501 = vmatprep.subr.bf16.mxu0 %v5293_v5  ;;  %v5324_v5 = vunpack.c.l.s8.bf16 %v5124_v19 }
 0x600   :  { %5666 = vmatpush1.bf16.msra.mxu1 %v5294_v2  ;;  %v5131_v2 = vld [vmem:[#allocation9 + $0x278] sm:$0xff] }
 0x601   :  { %5667 = vmatprep.subr.bf16.mxu1 %v5299_v30  ;;  %v5330_v30 = vunpack.c.h.s8.bf16 %v5126_v9 }
 0x602   :  { %5502 = vmatpush1.bf16.msra.mxu0 %v5292_v40  ;;  %v5129_v40 = vld [vmem:[#allocation9 + $0x268] sm:$0xff] }
 0x603   :  { %5503 = vmatprep.subr.bf16.mxu0 %v5297_v62  ;;  %v5328_v62 = vunpack.c.h.s8.bf16 %v5124_v19  ;;  %v5333_v20 = vunpack.c.l.s8.bf16 %v5129_v40  ;;  %v5337_v15 = vunpack.c.h.s8.bf16 %v5129_v40  ;;  %v5147_v19 = vld [vmem:[#allocation9 + $0x2f8] sm:$0xff] }
 0x604   :  { %5668 = vmatpush1.bf16.msra.mxu1 %v5298_v57  ;;  %v5130_v57 = vld [vmem:[#allocation9 + $0x270] sm:$0xff] }
 0x605   :  { %5669 = vmatprep.subr.bf16.mxu1 %v5303_v4  ;;  %v5334_v39 = vunpack.c.l.s8.bf16 %v5130_v57  ;;  %v5339_v4 = vunpack.c.h.s8.bf16 %v5131_v2 }
 0x606   :  { %5504 = vmatpush1.bf16.msra.mxu0 %v5296_v12  ;;  %v5335_v12 = vunpack.c.l.s8.bf16 %v5131_v2 }
 0x607   :  { %5505 = vmatprep.subr.bf16.mxu0 %v5301_v6  ;;  %v5332_v6 = vunpack.c.l.s8.bf16 %v5128_v28 }
 0x608   :  { %5670 = vmatpush1.bf16.msra.mxu1 %v5302_v35  ;;  %v5336_v35 = vunpack.c.h.s8.bf16 %v5128_v28  ;;  %v7941_v28 = vld [vmem:[#allocation9 + $0x318] sm:$0xff] }
 0x609   :  { %5671 = vmatprep.subr.bf16.mxu1 %v5307_v58  ;;  %v5132_v58 = vld [vmem:[#allocation9 + $0x280] sm:$0xff] }
 0x60a   :  { %5506 = vmatpush1.bf16.msra.mxu0 %v5300_v26  ;;  %v5135_v26 = vld [vmem:[#allocation9 + $0x298] sm:$0xff]  ;;  %v5344_v42 = vunpack.c.h.s8.bf16 %v5132_v58 }
 0x60b   :  { %5507 = vmatprep.subr.bf16.mxu0 %v5305_v16  ;;  %v5338_v16 = vunpack.c.h.s8.bf16 %v5130_v57  ;;  %v5343_v38 = vunpack.c.l.s8.bf16 %v5135_v26 }
 0x60c   :  { %5672 = vmatpush1.bf16.msra.mxu1 %v5306_v50  ;;  %v5342_v50 = vunpack.c.l.s8.bf16 %v5134_v36 }
 0x60d   :  { %5682 = vmatprep.subr.bf16.mxu1 %v5311_v60  ;;  %v5139_v60 = vld [vmem:[#allocation9 + $0x2b8] sm:$0xff] }
 0x60e   :  { %5508 = vmatpush1.bf16.msra.mxu0 %v5304_v41  ;;  %v5340_v41 = vunpack.c.l.s8.bf16 %v5132_v58 }
 0x60f   :  { %5518 = vmatprep.subr.bf16.mxu0 %v5309_v17  ;;  %5674 = vmatmul.mubr.bf16.vlgmr.msra.gmra.mrb[24].mxu1 %v5046_v51  ;;  %v5347_v17 = vunpack.c.h.s8.bf16 %v5135_v26 }
 0x610   :  { %5683 = vmatpush1.bf16.msra.mxu1 %v5310_v14  ;;  %v5136_v14 = vld [vmem:[#allocation9 + $0x2a0] sm:$0xff] }
 0x611   :  { %5510 = vmatmul.mubr.bf16.vlgmr.msra.gmra.mrb[24].mxu0 %v5046_v51  ;;  %5684 = vmatprep.subr.bf16.mxu1 %v5315_v55  ;;  %v5349_v51 = vunpack.c.l.s8.bf16 %v5137_v1  ;;  %v5138_v55 = vld [vmem:[#allocation9 + $0x2b0] sm:$0xff]  ;;  %v5348_v29 = vunpack.c.l.s8.bf16 %v5136_v14 }
 0x612   :  { %5519 = vmatpush1.bf16.msra.mxu0 %v5308_v8  ;;  %v5346_v8 = vunpack.c.h.s8.bf16 %v5134_v36  ;;  %v5350_v23 = vunpack.c.l.s8.bf16 %v5138_v55  ;;  %v5354_v45 = vunpack.c.h.s8.bf16 %v5138_v55 }
 0x613   :  { %5520 = vmatprep.subr.bf16.mxu0 %v5313_v43  ;;  %v5351_v43 = vunpack.c.l.s8.bf16 %v5139_v60 }
 0x614   :  { %5685 = vmatpush1.bf16.msra.mxu1 %v5314_v11  ;;  %v5355_v11 = vunpack.c.h.s8.bf16 %v5139_v60 }
 0x615   :  { %5686 = vmatprep.subr.bf16.mxu1 %v5319_v49  ;;  %v5352_v49 = vunpack.c.h.s8.bf16 %v5136_v14 }
 0x616   :  { %5521 = vmatpush1.bf16.msra.mxu0 %v5312_v37  ;;  %v5353_v37 = vunpack.c.h.s8.bf16 %v5137_v1 }
 0x617   :  { %5522 = vmatprep.subr.bf16.mxu0 %v5317_v27  ;;  %v5141_v27 = vld [vmem:[#allocation9 + $0x2c8] sm:$0xff] }
 0x618   :  { %5687 = vmatpush1.bf16.msra.mxu1 %v5318_v13  ;;  %v5140_v13 = vld [vmem:[#allocation9 + $0x2c0] sm:$0xff] }
 0x619   :  { %5688 = vmatprep.subr.bf16.mxu1 %v5323_v3  ;;  %v5142_v3 = vld [vmem:[#allocation9 + $0x2d0] sm:$0xff]  ;;  %v5356_v22 = vunpack.c.l.s8.bf16 %v5140_v13 }
 0x61a   :  { %5523 = vmatpush1.bf16.msra.mxu0 %v5316_v34  ;;  %v5357_v34 = vunpack.c.l.s8.bf16 %v5141_v27  ;;  %v5358_v48 = vunpack.c.l.s8.bf16 %v5142_v3  ;;  %v5362_v9 = vunpack.c.h.s8.bf16 %v5142_v3 }
 0x61b   :  { %5524 = vmatprep.subr.bf16.mxu0 %v5321_v63  ;;  %v5359_v63 = vunpack.c.l.s8.bf16 %v5143_v59 }
 0x61c   :  { %5689 = vmatpush1.bf16.msra.mxu1 %v5322_v52  ;;  %v5363_v52 = vunpack.c.h.s8.bf16 %v5143_v59 }
 0x61d   :  { %5690 = vmatprep.subr.bf16.mxu1 %v5327_v53  ;;  %v5360_v53 = vunpack.c.h.s8.bf16 %v5140_v13 }
 0x61e   :  { %5525 = vmatpush1.bf16.msra.mxu0 %v5320_v61  ;;  %v5361_v61 = vunpack.c.h.s8.bf16 %v5141_v27 }
 0x61f   :  { %5526 = vmatprep.subr.bf16.mxu0 %v5325_v32  ;;  %v5145_v32 = vld [vmem:[#allocation9 + $0x2e8] sm:$0xff] }
 0x620   :  { %5691 = vmatpush1.bf16.msra.mxu1 %v5326_v7  ;;  %v5144_v7 = vld [vmem:[#allocation9 + $0x2e0] sm:$0xff] }
 0x621   :  { %5692 = vmatprep.subr.bf16.mxu1 %v5331_v21  ;;  %v5146_v21 = vld [vmem:[#allocation9 + $0x2f0] sm:$0xff]  ;;  %v5364_v40 = vunpack.c.l.s8.bf16 %v5144_v7 }
 0x622   :  { %5527 = vmatpush1.bf16.msra.mxu0 %v5324_v5  ;;  %v5365_v5 = vunpack.c.l.s8.bf16 %v5145_v32  ;;  %v5366_v2 = vunpack.c.l.s8.bf16 %v5146_v21  ;;  %v5370_v57 = vunpack.c.h.s8.bf16 %v5146_v21 }
 0x623   :  { %5528 = vmatprep.subr.bf16.mxu0 %v5329_v31  ;;  %v5367_v31 = vunpack.c.l.s8.bf16 %v5147_v19 }
 0x624   :  { %5693 = vmatpush1.bf16.msra.mxu1 %v5330_v30  ;;  %v5371_v30 = vunpack.c.h.s8.bf16 %v5147_v19 }
 0x625   :  { %5694 = vmatprep.subr.bf16.mxu1 %v5335_v12  ;;  %v5368_v12 = vunpack.c.h.s8.bf16 %v5144_v7 }
 0x626   :  { %5529 = vmatpush1.bf16.msra.mxu0 %v5328_v62  ;;  %v5369_v62 = vunpack.c.h.s8.bf16 %v5145_v32 }
 0x627   :  { %5530 = vmatprep.subr.bf16.mxu0 %v5333_v20  ;;  %v7939_v20 = vld [vmem:[#allocation9 + $0x308] sm:$0xff] }
 0x628   :  { %5695 = vmatpush1.bf16.msra.mxu1 %v5334_v39  ;;  %v5375_v39 = vunpack.c.l.s8.bf16 %v7941_v28 }
 0x629   :  { %5696 = vmatprep.subr.bf16.mxu1 %v5339_v4  ;;  %v7947_v4 = vld [vmem:[#allocation7 + $0x18] sm:$0xff] }
 0x62a   :  { %5531 = vmatpush1.bf16.msra.mxu0 %v5332_v6  ;;  %v5373_v6 = vunpack.c.l.s8.bf16 %v7939_v20  ;;  %v4571_v26 = vrot.slane %v7947_v4, %v7088_v44  ;;  %v4651_v58 = vrot.slane %v7947_v4, %v7096_v47 }
 0x62b   :  { %5532 = vmatprep.subr.bf16.mxu0 %v5337_v15  ;;  %v7945_v15 = vld [vmem:[#allocation7 + $0x10] sm:$0xff] }
 0x62c   :  { %5697 = vmatpush1.bf16.msra.mxu1 %v5338_v16  ;;  %v4563_v54 = vrot.slane %v7945_v15, %v7088_v44  ;;  %v4643_v16 = vrot.slane %v7945_v15, %v7096_v47 }
 0x62d   :  { %5698 = vmatprep.subr.bf16.mxu1 %v5343_v38  ;;  %v4647_v38 = vrot.slane %v7945_v15, %v7101_v0 }
 0x62e   :  { %5533 = vmatpush1.bf16.msra.mxu0 %v5336_v35  ;;  %v4567_v35 = vrot.slane %v7945_v15, %v7093_v46  ;;  %v4603_v36 = vrot.slane %v4563_v54, %v7088_v44 }
 0x62f   :  { %5534 = vmatprep.subr.bf16.mxu0 %v5341_v18  ;;  %v4575_v18 = vrot.slane %v7947_v4, %v7093_v46 }
 0x630   :  { %5699 = vmatpush1.bf16.msra.mxu1 %v5342_v50  ;;  %v4611_v50 = vrot.slane %v4571_v26, %v7088_v44 }
 0x631   :  { %5700 = vmatprep.subr.bf16.mxu1 %v5347_v17  ;;  %v4683_v17 = vrot.slane %v4643_v16, %v7096_v47  ;;  %v4615_v1 = vrot.slane %v4575_v18, %v7088_v44 }
 0x632   :  { %5535 = vmatpush1.bf16.msra.mxu0 %v5340_v41  ;;  %v4655_v41 = vrot.slane %v7947_v4, %v7101_v0 }
 0x633   :  { %5536 = vmatprep.subr.bf16.mxu0 %v5345_v10  ;;  %v4607_v10 = vrot.slane %v4567_v35, %v7088_v44 }
 0x634   :  { %5701 = vmatpush1.bf16.msra.mxu1 %v5346_v8  ;;  %v4687_v8 = vrot.slane %v4647_v38, %v7096_v47  ;;  %v4695_v55 = vrot.slane %v4655_v41, %v7096_v47 }
 0x635   :  { %5702 = vmatprep.subr.bf16.mxu1 %v5351_v43 }
 0x636   :  { %5537 = vmatpush1.bf16.msra.mxu0 %v5344_v42  ;;  %v4691_v42 = vrot.slane %v4651_v58, %v7096_v47 }
 0x637   :  { %5538 = vmatprep.subr.bf16.mxu0 %v5349_v51 }
 0x638   :  { %5703 = vmatpush1.bf16.msra.mxu1 %v5350_v23 }
 0x639   :  { %5704 = vmatprep.subr.bf16.mxu1 %v5355_v11 }
 0x63a   :  { %5539 = vmatpush1.bf16.msra.mxu0 %v5348_v29 }
 0x63b   :  { %5540 = vmatprep.subr.bf16.mxu0 %v5353_v37 }
 0x63c   :  { %5705 = vmatpush1.bf16.msra.mxu1 %v5354_v45 }
 0x63d   :  { %5706 = vmatprep.subr.bf16.mxu1 %v5359_v63 }
 0x63e   :  { %5541 = vmatpush1.bf16.msra.mxu0 %v5352_v49 }
 0x63f   :  { %5542 = vmatprep.subr.bf16.mxu0 %v5357_v34 }
 0x640   :  { %5707 = vmatpush1.bf16.msra.mxu1 %v5358_v48 }
 0x641   :  { %5708 = vmatprep.subr.bf16.mxu1 %v5363_v52 }
 0x642   :  { %5543 = vmatpush1.bf16.msra.mxu0 %v5356_v22 }
 0x643   :  { %5544 = vmatprep.subr.bf16.mxu0 %v5361_v61 }
 0x644   :  { %5709 = vmatpush1.bf16.msra.mxu1 %v5362_v9 }
 0x645   :  { %5710 = vmatprep.subr.bf16.mxu1 %v5367_v31 }
 0x646   :  { %5545 = vmatpush1.bf16.msra.mxu0 %v5360_v53 }
 0x647   :  { %5546 = vmatprep.subr.bf16.mxu0 %v5365_v5 }
 0x648   :  { %5711 = vmatpush1.bf16.msra.mxu1 %v5366_v2 }
 0x649   :  { %5712 = vmatprep.subr.bf16.mxu1 %v5371_v30 }
 0x64a   :  { %5547 = vmatpush1.bf16.msra.mxu0 %v5364_v40 }
 0x64b   :  { %5548 = vmatprep.subr.bf16.mxu0 %v5369_v62 }
 0x64c   :  { %5713 = vmatpush1.bf16.msra.mxu1 %v5370_v57 }
 0x64d   :  { %5723 = vmatprep.subr.bf16.mxu1 %v5375_v39 }
 0x64e   :  { %5549 = vmatpush1.bf16.msra.mxu0 %v5368_v12 }
 0x64f   :  { %5559 = vmatprep.subr.bf16.mxu0 %v5373_v6 }
 0x662   :  { %v4529_v14 = vpop.f32.mrb[20].mxu1 }
 0x663   :  { %v4622_v29 = vmul.f32 %v4611_v50, %v4529_v14  ;;  %v4531_v37 = vpop.f32.mrb[21].mxu1 }
 0x664   :  { %v4201_v60 = vpop.f32.mrb[20].mxu0  ;;  %v4623_v59 = vmul.f32 %v4615_v1, %v4531_v37  ;;  %v4533_v49 = vpop.f32.mrb[22].mxu1 }
 0x665   :  { %v4620_v51 = vmul.f32 %v4603_v36, %v4201_v60  ;;  %v4203_v43 = vpop.f32.mrb[21].mxu0  ;;  %v4702_v34 = vadd.f32 %v4691_v42, %v4622_v29  ;;  %v4534_v63 = vpop.f32.mrb[23].mxu1 }
 0x666   :  { %v4621_v23 = vmul.f32 %v4607_v10, %v4203_v43  ;;  %v4205_v11 = vpop.f32.mrb[22].mxu0  ;;  %v4703_v22 = vadd.f32 %v4695_v55, %v4623_v59 }
 0x667   :  { %v4700_v27 = vadd.f32 %v4683_v17, %v4620_v51  ;;  %v4206_v45 = vpop.f32.mrb[23].mxu0  ;;  %v4710_v48 = vmax.f32 %v4702_v34, 0.0 }
 0x668   :  { %v4701_v13 = vadd.f32 %v4687_v8, %v4621_v23  ;;  %v4711_v32 = vmax.f32 %v4703_v22, 0.0 }
 0x669   :  { %v4708_v3 = vmax.f32 %v4700_v27, 0.0  ;;  %v4748_v19 = vrot.slane %v4710_v48, 4 }
 0x66a   :  { %v4709_v61 = vmax.f32 %v4701_v13, 0.0  ;;  %v4754_v5 = vrot.slane %v4711_v32, 4 }
 0x66b   :  { %v4736_v52 = vrot.slane %v4708_v3, 4  ;;  %v4749_v7 = vadd.f32 %v4748_v19, %v4710_v48 }
 0x66c   :  { %v4742_v53 = vrot.slane %v4709_v61, 4  ;;  %v4755_v40 = vadd.f32 %v4754_v5, %v4711_v32 }
 0x66d   :  { %v4737_v9 = vadd.f32 %v4736_v52, %v4708_v3  ;;  %v4750_v2 = vrot.slane %v4749_v7, 2 }
 0x66e   :  { %v4743_v31 = vadd.f32 %v4742_v53, %v4709_v61  ;;  %v4756_v12 = vrot.slane %v4755_v40, 2 }
 0x66f   :  { %v4738_v21 = vrot.slane %v4737_v9, 2  ;;  %v4751_v57 = vadd.f32 %v4750_v2, %v4749_v7 }
 0x670   :  { %v4744_v62 = vrot.slane %v4743_v31, 2  ;;  %v4757_v54 = vadd.f32 %v4756_v12, %v4755_v40 }
 0x671   :  { %v4739_v30 = vadd.f32 %v4738_v21, %v4737_v9  ;;  %v4752_v26 = vrot.slane %v4751_v57, 1 }
 0x672   :  { %v4745_v6 = vadd.f32 %v4744_v62, %v4743_v31  ;;  %v4758_v18 = vrot.slane %v4757_v54, 1 }
 0x673   :  { %v4740_v39 = vrot.slane %v4739_v30, 1  ;;  %v4753_v58 = vadd.f32 %v4752_v26, %v4751_v57 }
 0x674   :  { %v4746_v35 = vrot.slane %v4745_v6, 1  ;;  %v4759_v41 = vadd.f32 %v4758_v18, %v4757_v54 }
 0x675   :  { %v4741_v16 = vadd.f32 %v4740_v39, %v4739_v30  ;;  %v4766_v50 = vmul.f32 0.125, %v4753_v58 }
 0x676   :  { %v4747_v38 = vadd.f32 %v4746_v35, %v4745_v6  ;;  %v4767_v1 = vmul.f32 0.125, %v4759_v41 }
 0x677   :  { %v4764_v36 = vmul.f32 0.125, %v4741_v16  ;;  %v7975_v60 = vsub.f32 %v4710_v48, %v4766_v50  ;;  %v4987_v50 = vrot.slane %v7945_v15, %v7165_v25 }
 0x678   :  { %v4765_v10 = vmul.f32 0.125, %v4747_v38  ;;  %v7981_v51 = vsub.f32 %v4711_v32, %v4767_v1 }
 0x679   :  { %v7973_v17 = vsub.f32 %v4708_v3, %v4764_v36  ;;  %v4782_v14 = vmul.f32 %v7975_v60, %v7975_v60 }
 0x67a   :  { %v7977_v42 = vsub.f32 %v4709_v61, %v4765_v10  ;;  %v4783_v29 = vmul.f32 %v7981_v51, %v7981_v51  ;;  %v4983_v10 = vrot.slane %v7945_v15, %v7162_v24 }
 0x67b   :  { %v4780_v8 = vmul.f32 %v7973_v17, %v7973_v17  ;;  %v4820_v23 = vrot.slane %v4782_v14, 4 }
 0x67c   :  { %v4781_v43 = vmul.f32 %v7977_v42, %v7977_v42  ;;  %v4826_v27 = vrot.slane %v4783_v29, 4 }
 0x67d   :  { %v4808_v55 = vrot.slane %v4780_v8, 4  ;;  %v4821_v59 = vadd.f32 %v4820_v23, %v4782_v14 }
 0x67e   :  { %v4814_v37 = vrot.slane %v4781_v43, 4  ;;  %v4827_v34 = vadd.f32 %v4826_v27, %v4783_v29 }
 0x67f   :  { %v4809_v11 = vadd.f32 %v4808_v55, %v4780_v8  ;;  %v4822_v13 = vrot.slane %v4821_v59, 2  ;;  %v4995_v8 = vrot.slane %v7947_v4, %v7165_v25 }
 0x680   :  { %v4815_v49 = vadd.f32 %v4814_v37, %v4781_v43  ;;  %v4828_v22 = vrot.slane %v4827_v34, 2  ;;  %v5027_v37 = vrot.slane %v4987_v50, %v7162_v24  ;;  %v5161_v50 = vld [vmem:[#allocation9 + $0x368] sm:$0xff] }
 0x681   :  { %v4810_v45 = vrot.slane %v4809_v11, 2  ;;  %v4823_v48 = vadd.f32 %v4822_v13, %v4821_v59  ;;  %v5035_v59 = vrot.slane %v4995_v8, %v7162_v24  ;;  %v5148_v13 = vld [vmem:[#allocation9 + $0x300] sm:$0xff] }
 0x682   :  { %v4816_v63 = vrot.slane %v4815_v49, 2  ;;  %v4829_v32 = vadd.f32 %v4828_v22, %v4827_v34 }
 0x683   :  { %v4811_v3 = vadd.f32 %v4810_v45, %v4809_v11  ;;  %v4824_v19 = vrot.slane %v4823_v48, 1 }
 0x684   :  { %v4817_v61 = vadd.f32 %v4816_v63, %v4815_v49  ;;  %v4830_v5 = vrot.slane %v4829_v32, 1  ;;  %v5150_v63 = vld [vmem:[#allocation9 + $0x310] sm:$0xff] }
 0x685   :  { %v4812_v52 = vrot.slane %v4811_v3, 1  ;;  %v4825_v7 = vadd.f32 %v4824_v19, %v4823_v48 }
 0x686   :  { %v4818_v53 = vrot.slane %v4817_v61, 1  ;;  %v4831_v40 = vadd.f32 %v4830_v5, %v4829_v32  ;;  %v5153_v5 = vld [vmem:[#allocation9 + $0x328] sm:$0xff] }
 0x687   :  { %v4813_v9 = vadd.f32 %v4812_v52, %v4811_v3  ;;  %v4838_v2 = vmul.f32 0.125, %v4825_v7  ;;  %v5155_v7 = vld [vmem:[#allocation9 + $0x338] sm:$0xff] }
 0x688   :  { %v4819_v31 = vadd.f32 %v4818_v53, %v4817_v61  ;;  %v4839_v12 = vmul.f32 0.125, %v4831_v40  ;;  %v5372_v53 = vunpack.c.l.s8.bf16 %v5148_v13  ;;  %v5383_v40 = vunpack.c.l.s8.bf16 %v5155_v7 }
 0x689   :  { %v4836_v21 = vmul.f32 0.125, %v4813_v9  ;;  %v4846_v57 = vadd.f32 1e-05, %v4838_v2  ;;  %v5374_v9 = vunpack.c.l.s8.bf16 %v5150_v63  ;;  %v5152_v2 = vld [vmem:[#allocation9 + $0x320] sm:$0xff] }
 0x68a   :  { %v4837_v62 = vmul.f32 0.125, %v4819_v31  ;;  %v4847_v39 = vadd.f32 1e-05, %v4839_v12  ;;  %v5378_v31 = vunpack.c.h.s8.bf16 %v5150_v63  ;;  %v5387_v12 = vunpack.c.h.s8.bf16 %v5155_v7  ;;  %v5164_v63 = vld [vmem:[#allocation9 + $0x380] sm:$0xff] }
 0x68b   :  { %v4844_v30 = vadd.f32 1e-05, %v4836_v21  ;;  %v5381_v21 = vunpack.c.l.s8.bf16 %v5153_v5  ;;  %v5168_v7 = vld [vmem:[#allocation9 + $0x3a0] sm:$0xff] }
 0x68c   :  { %v4845_v6 = vadd.f32 1e-05, %v4837_v62  ;;  %v5154_v62 = vld [vmem:[#allocation9 + $0x330] sm:$0xff] }
 0x68d   :  { %6676 = vrsqrt.f32 %v4844_v30  ;;  %v5385_v30 = vunpack.c.h.s8.bf16 %v5153_v5 }
 0x68e   :  { %6678 = vrsqrt.f32 %v4846_v57  ;;  %v5157_v57 = vld [vmem:[#allocation9 + $0x348] sm:$0xff] }
 0x68f   :  { %6680 = vrsqrt.f32 %v4845_v6  ;;  %v5159_v6 = vld [vmem:[#allocation9 + $0x358] sm:$0xff] }
 0x690   :  { %6682 = vrsqrt.f32 %v4847_v39  ;;  %v5384_v39 = vunpack.c.h.s8.bf16 %v5152_v2 }
 0x697   :  { %v6677_v54 = vpop.eup %6676 }
 0x698   :  { %v6679_v26 = vpop.eup %6678 }
 0x699   :  { %v6681_v35 = vpop.eup %6680 }
 0x69a   :  { %v6683_v16 = vpop.eup %6682  ;;  %v4866_v18 = vcombine.low %v6677_v54, %v6681_v35  ;;  %v5386_v54 = vunpack.c.h.s8.bf16 %v5154_v62  ;;  %v5391_v35 = vunpack.c.l.s8.bf16 %v5159_v6 }
 0x69b   :  { %v4867_v58 = vcombine.low %v6679_v26, %v6683_v16  ;;  %v5389_v26 = vunpack.c.l.s8.bf16 %v5157_v57  ;;  %v5156_v16 = vld [vmem:[#allocation9 + $0x340] sm:$0xff] }
 0x69c   :  { %v4870_v38 = vrot.slane %v4866_v18, 7  ;;  %v5158_v18 = vld [vmem:[#allocation9 + $0x350] sm:$0xff] }
 0x69d   :  { %v4871_v36 = vrot.slane %v4867_v58, 7  ;;  %v5388_v58 = vunpack.c.l.s8.bf16 %v5156_v16  ;;  %v5394_v8 = vunpack.c.h.s8.bf16 %v5158_v18 }
 0x69e   :  { %v4878_v41 = vmul.f32 %v4870_v38, %v7945_v15  ;;  %v5023_v15 = vrot.slane %v4983_v10, %v7162_v24  ;;  %v5390_v38 = vunpack.c.l.s8.bf16 %v5158_v18  ;;  %v5163_v10 = vld [vmem:[#allocation9 + $0x378] sm:$0xff] }
 0x69f   :  { %v4879_v1 = vmul.f32 %v4871_v36, %v7947_v4  ;;  %v5393_v36 = vunpack.c.h.s8.bf16 %v5157_v57  ;;  %v5172_v57 = vld [vmem:[#allocation9 + $0x3c0] sm:$0xff]  ;;  %v5179_v18 = vld [vmem:[#allocation9 + $0x3f8] sm:$0xff] }
 0x6a0   :  { %v4907_v14 = vrot.slane %v4878_v41, %v7175_v33  ;;  %v4903_v43 = vrot.slane %v4878_v41, %v7170_v56  ;;  %v5395_v41 = vunpack.c.h.s8.bf16 %v5159_v6  ;;  %v5174_v6 = vld [vmem:[#allocation9 + $0x3d0] sm:$0xff] }
 0x6a1   :  { %v4915_v55 = vrot.slane %v4879_v1, %v7175_v33  ;;  %v4911_v29 = vrot.slane %v4879_v1, %v7170_v56  ;;  %v5392_v1 = vunpack.c.h.s8.bf16 %v5156_v16  ;;  %v5177_v16 = vld [vmem:[#allocation9 + $0x3e8] sm:$0xff] }
 0x6a2   :  { %v4947_v23 = vrot.slane %v4907_v14, %v7170_v56  ;;  %v4943_v11 = vrot.slane %v4903_v43, %v7170_v56  ;;  %v5397_v14 = vunpack.c.l.s8.bf16 %v5161_v50  ;;  %v5399_v43 = vunpack.c.l.s8.bf16 %v5163_v10 }
 0x6a3   :  { %v4955_v27 = vrot.slane %v4915_v55, %v7170_v56  ;;  %v4951_v49 = vrot.slane %v4911_v29, %v7170_v56  ;;  %v5160_v55 = vld [vmem:[#allocation9 + $0x360] sm:$0xff]  ;;  %v5162_v29 = vld [vmem:[#allocation9 + $0x370] sm:$0xff] }
 0x6a4   :  { %v4961_v45 = vmul.f32 %v4947_v23, %v7977_v42  ;;  %v4960_v34 = vmul.f32 %v4943_v11, %v7973_v17  ;;  %v5377_v42 = vunpack.c.h.s8.bf16 %v7939_v20  ;;  %v5379_v17 = vunpack.c.h.s8.bf16 %v7941_v28 }
 0x6a5   :  { %v4963_v3 = vmul.f32 %v4955_v27, %v7981_v51  ;;  %v8012_v22 = vmul.f32 %v4951_v49, %v7975_v60  ;;  %v5376_v60 = vunpack.c.h.s8.bf16 %v5148_v13  ;;  %v5380_v20 = vunpack.c.l.s8.bf16 %v5152_v2  ;;  %v5165_v27 = vld [vmem:[#allocation9 + $0x388] sm:$0xff] }
 0x6a6   :  { %v5041_v48 = vadd.f32 %v5027_v37, %v4961_v45  ;;  %v5040_v61 = vadd.f32 %v5023_v15, %v4960_v34  ;;  %v5382_v28 = vunpack.c.l.s8.bf16 %v5154_v62  ;;  %v5396_v23 = vunpack.c.l.s8.bf16 %v5160_v55  ;;  %v5173_v2 = vld [vmem:[#allocation9 + $0x3c8] sm:$0xff]  ;;  %v5175_v62 = vld [vmem:[#allocation9 + $0x3d8] sm:$0xff] }
 0x6a7   :  { %v5043_v52 = vadd.f32 %v5035_v59, %v4963_v3  ;;  %v5398_v37 = vunpack.c.l.s8.bf16 %v5162_v29  ;;  %v5401_v11 = vunpack.c.h.s8.bf16 %v5161_v50  ;;  %v5403_v15 = vunpack.c.h.s8.bf16 %v5163_v10  ;;  %v5167_v59 = vld [vmem:[#allocation9 + $0x398] sm:$0xff]  ;;  %v5166_v3 = vld [vmem:[#allocation9 + $0x390] sm:$0xff]  ;;  %v5176_v50 = vld [vmem:[#allocation9 + $0x3e0] sm:$0xff] }
 0x6a8   :  { %v5049_v32 = vpack.c.bf16 %v5041_v48, %v5041_v48  ;;  %v5048_v19 = vpack.c.bf16 %v5040_v61, %v5040_v61  ;;  %v5400_v49 = vunpack.c.h.s8.bf16 %v5160_v55  ;;  %v5402_v45 = vunpack.c.h.s8.bf16 %v5162_v29  ;;  %v5178_v10 = vld [vmem:[#allocation9 + $0x3f0] sm:$0xff] }
 0x6a9   :  { %v5051_v51 = vpack.c.bf16 %v5043_v52, %v5043_v52  ;;  %v5405_v34 = vunpack.c.l.s8.bf16 %v5165_v27  ;;  %v5407_v13 = vunpack.c.l.s8.bf16 %v5167_v59  ;;  %v5404_v48 = vunpack.c.l.s8.bf16 %v5164_v63 }
 0x6aa   :  { %5550 = vmatprep.mubr.bf16.mxu0 %v5049_v32  ;;  %5714 = vmatprep.mubr.bf16.mxu1 %v5049_v32  ;;  %v5406_v61 = vunpack.c.l.s8.bf16 %v5166_v3  ;;  %v5409_v52 = vunpack.c.h.s8.bf16 %v5165_v27  ;;  %v5411_v32 = vunpack.c.h.s8.bf16 %v5167_v59  ;;  %v5435_v55 = vunpack.c.h.s8.bf16 %v5179_v18  ;;  %v6605_v27 = vld [vmem:[#allocation12 + $0xc0] sm:$0xff]  }
 0x6ab   :  { %5551 = vmatmul.mubr.bf16.vlgmr.msra.gmra.mrb[24].mxu0 %v5048_v19  ;;  %5715 = vmatmul.mubr.bf16.vlgmr.msra.gmra.mrb[24].mxu1 %v5048_v19  ;;  %v5169_v19 = vld [vmem:[#allocation9 + $0x3a8] sm:$0xff]  ;;  %v6606_v59 = vld [vmem:[#allocation12] sm:$0xff]  }
 0x6ac   :  { %5560 = vmatpush1.bf16.msra.mxu0 %v5372_v53  ;;  %5724 = vmatpush1.bf16.msra.mxu1 %v5374_v9  ;;  %v5171_v53 = vld [vmem:[#allocation9 + $0x3b8] sm:$0xff]  ;;  %v5408_v9 = vunpack.c.h.s8.bf16 %v5164_v63 }
 0x6ad   :  { %5591 = vmatprep.mubr.bf16.mxu0 %v5051_v51  ;;  %5755 = vmatprep.mubr.bf16.mxu1 %v5051_v51  ;;  %v5415_v5 = vunpack.c.l.s8.bf16 %v5171_v53  ;;  %v5170_v51 = vld [vmem:[#allocation9 + $0x3b0] sm:$0xff]  ;;  %v6611_v63 = vld [vmem:[#allocation12 + $0x88] sm:$0xff]  }
 0x6ae   :  { %5561 = vmatprep.subr.bf16.mxu0 %v5377_v42  ;;  %5725 = vmatprep.subr.bf16.mxu1 %v5379_v17  ;;  %v5410_v42 = vunpack.c.h.s8.bf16 %v5166_v3  ;;  %v5413_v17 = vunpack.c.l.s8.bf16 %v5169_v19  ;;  %v6613_v3 = vld [vmem:[#allocation12 + $0xd0] sm:$0xff]  }
 0x6b0   :  { %5562 = vmatpush1.bf16.msra.mxu0 %v5376_v60  ;;  %5726 = vmatpush1.bf16.msra.mxu1 %v5378_v31  ;;  %v5412_v60 = vunpack.c.l.s8.bf16 %v5168_v7  ;;  %v5414_v31 = vunpack.c.l.s8.bf16 %v5170_v51 }
 0x6b1   :  { %5563 = vmatprep.subr.bf16.mxu0 %v5381_v21  ;;  %5727 = vmatprep.subr.bf16.mxu1 %v5383_v40  ;;  %v5417_v21 = vunpack.c.h.s8.bf16 %v5169_v19  ;;  %v5419_v40 = vunpack.c.h.s8.bf16 %v5171_v53  ;;  %v6618_v19 = vld [vmem:[#allocation12 + $0x18] sm:$0xff]  }
 0x6b2   :  { %v6619_v53 = vld [vmem:[#allocation12 + $0x98] sm:$0xff]  }
 0x6b4   :  { %5564 = vmatpush1.bf16.msra.mxu0 %v5380_v20  ;;  %5728 = vmatpush1.bf16.msra.mxu1 %v5382_v28  ;;  %v5416_v20 = vunpack.c.h.s8.bf16 %v5168_v7  ;;  %v5418_v28 = vunpack.c.h.s8.bf16 %v5170_v51  ;;  %v6624_v7 = vld [vmem:[#allocation12 + $0x68] sm:$0xff]  }
 0x6b5   :  { %5565 = vmatprep.subr.bf16.mxu0 %v5385_v30  ;;  %5729 = vmatprep.subr.bf16.mxu1 %v5387_v12  ;;  %v5421_v30 = vunpack.c.l.s8.bf16 %v5173_v2  ;;  %v5423_v12 = vunpack.c.l.s8.bf16 %v5175_v62  ;;  %v6625_v51 = vld [vmem:[#allocation12 + $0xe8] sm:$0xff]  }
 0x6b8   :  { %5566 = vmatpush1.bf16.msra.mxu0 %v5384_v39  ;;  %5730 = vmatpush1.bf16.msra.mxu1 %v5386_v54  ;;  %v5420_v39 = vunpack.c.l.s8.bf16 %v5172_v57  ;;  %v5422_v54 = vunpack.c.l.s8.bf16 %v5174_v6 }
 0x6b9   :  { %5567 = vmatprep.subr.bf16.mxu0 %v5389_v26  ;;  %5731 = vmatprep.subr.bf16.mxu1 %v5391_v35  ;;  %v5425_v26 = vunpack.c.h.s8.bf16 %v5173_v2  ;;  %v5427_v35 = vunpack.c.h.s8.bf16 %v5175_v62  ;;  %v6630_v2 = vld [vmem:[#allocation12 + $0x30] sm:$0xff]  }
 0x6ba   :  { %v6631_v62 = vld [vmem:[#allocation12 + $0xb0] sm:$0xff]  }
 0x6bc   :  { %5568 = vmatpush1.bf16.msra.mxu0 %v5388_v58  ;;  %5732 = vmatpush1.bf16.msra.mxu1 %v5390_v38  ;;  %v5424_v58 = vunpack.c.h.s8.bf16 %v5172_v57  ;;  %v5426_v38 = vunpack.c.h.s8.bf16 %v5174_v6  ;;  %v8020_v57 = vld [vmem:[#allocation10] sm:$0xff]  ;;  %v8022_v6 = vld [vmem:[#allocation10 + $0x8] sm:$0xff] }
 0x6bd   :  { %5569 = vmatprep.subr.bf16.mxu0 %v5393_v36  ;;  %5733 = vmatprep.subr.bf16.mxu1 %v5395_v41  ;;  %v5429_v36 = vunpack.c.l.s8.bf16 %v5177_v16  ;;  %v5431_v41 = vunpack.c.l.s8.bf16 %v5179_v18  ;;  %v5819_v18 = vrot.slane %v8022_v6, %v7096_v47 }
 0x6c0   :  { %5570 = vmatpush1.bf16.msra.mxu0 %v5392_v1  ;;  %5734 = vmatpush1.bf16.msra.mxu1 %v5394_v8  ;;  %v4991_v1 = vrot.slane %v7947_v4, %v7162_v24  ;;  %v5428_v8 = vunpack.c.l.s8.bf16 %v5176_v50 }
 0x6c1   :  { %5571 = vmatprep.subr.bf16.mxu0 %v5397_v14  ;;  %5735 = vmatprep.subr.bf16.mxu1 %v5399_v43  ;;  %v5430_v14 = vunpack.c.l.s8.bf16 %v5178_v10  ;;  %v5433_v43 = vunpack.c.h.s8.bf16 %v5177_v16  ;;  %v5811_v16 = vrot.slane %v8020_v57, %v7096_v47 }
 0x6c2   :  { %v5031_v29 = vrot.slane %v4991_v1, %v7162_v24  ;;  %v5839_v1 = vrot.slane %v5819_v18, %v7096_v47 }
 0x6c4   :  { %5572 = vmatpush1.bf16.msra.mxu0 %v5396_v23  ;;  %5736 = vmatpush1.bf16.msra.mxu1 %v5398_v37  ;;  %v5432_v23 = vunpack.c.h.s8.bf16 %v5176_v50  ;;  %v5434_v37 = vunpack.c.h.s8.bf16 %v5178_v10  ;;  %v5831_v10 = vrot.slane %v5811_v16, %v7096_v47 }
 0x6c5   :  { %5573 = vmatprep.subr.bf16.mxu0 %v5401_v11  ;;  %5737 = vmatprep.subr.bf16.mxu1 %v5403_v15  ;;  %v5042_v11 = vadd.f32 %v5031_v29, %v8012_v22  ;;  %v6604_v15 = vld [vmem:[#allocation12 + $0x40] sm:$0xff]   ;;  %v6612_v22 = vld [vmem:[#allocation12 + $0x50] sm:$0xff]  }
 0x6c7   :  { %v5050_v4 = vpack.c.bf16 %v5042_v11, %v5042_v11 }
 0x6c8   :  { %5574 = vmatpush1.bf16.msra.mxu0 %v5400_v49  ;;  %5738 = vmatpush1.bf16.msra.mxu1 %v5402_v45  ;;  %v6607_v49 = vld [vmem:[#allocation12 + $0x80] sm:$0xff]   ;;  %v6608_v45 = vld [vmem:[#allocation12 + $0x48] sm:$0xff]  }
 0x6c9   :  { %5575 = vmatprep.subr.bf16.mxu0 %v5405_v34  ;;  %5739 = vmatprep.subr.bf16.mxu1 %v5407_v13  ;;  %v6609_v34 = vld [vmem:[#allocation12 + $0xc8] sm:$0xff]  }
 0x6ca   :  { %v6610_v13 = vld [vmem:[#allocation12 + $0x8] sm:$0xff]  }
 0x6cc   :  { %5576 = vmatpush1.bf16.msra.mxu0 %v5404_v48  ;;  %5740 = vmatpush1.bf16.msra.mxu1 %v5406_v61  ;;  %v6614_v48 = vld [vmem:[#allocation12 + $0x10] sm:$0xff]  }
 0x6cd   :  { %5577 = vmatprep.subr.bf16.mxu0 %v5409_v52  ;;  %5741 = vmatprep.subr.bf16.mxu1 %v5411_v32  ;;  %v6615_v61 = vld [vmem:[#allocation12 + $0x90] sm:$0xff]   ;;  %v6616_v52 = vld [vmem:[#allocation12 + $0x58] sm:$0xff]  }
 0x6ce   :  { %v6617_v32 = vld [vmem:[#allocation12 + $0xd8] sm:$0xff]  }
 0x6d0   :  { %5578 = vmatpush1.bf16.msra.mxu0 %v5408_v9  ;;  %5742 = vmatpush1.bf16.msra.mxu1 %v5410_v42  ;;  %v6620_v9 = vld [vmem:[#allocation12 + $0x60] sm:$0xff]  }
 0x6d1   :  { %5579 = vmatprep.subr.bf16.mxu0 %v5413_v17  ;;  %5743 = vmatprep.subr.bf16.mxu1 %v5415_v5  ;;  %v6621_v42 = vld [vmem:[#allocation12 + $0xe0] sm:$0xff]  }
 0x6d2   :  { %v6622_v17 = vld [vmem:[#allocation12 + $0x20] sm:$0xff]  }
 0x6d3   :  { %v6623_v5 = vld [vmem:[#allocation12 + $0xa0] sm:$0xff]  }
 0x6d4   :  { %5580 = vmatpush1.bf16.msra.mxu0 %v5412_v60  ;;  %5744 = vmatpush1.bf16.msra.mxu1 %v5414_v31  ;;  %v6626_v60 = vld [vmem:[#allocation12 + $0x28] sm:$0xff]  }
 0x6d5   :  { %5581 = vmatprep.subr.bf16.mxu0 %v5417_v21  ;;  %5745 = vmatprep.subr.bf16.mxu1 %v5419_v40  ;;  %v6627_v31 = vld [vmem:[#allocation12 + $0xa8] sm:$0xff]   ;;  %v6628_v21 = vld [vmem:[#allocation12 + $0x70] sm:$0xff]  }
 0x6d6   :  { %v6629_v40 = vld [vmem:[#allocation12 + $0xf0] sm:$0xff]  }
 0x6d8   :  { %5582 = vmatpush1.bf16.msra.mxu0 %v5416_v20  ;;  %5746 = vmatpush1.bf16.msra.mxu1 %v5418_v28  ;;  %v6632_v20 = vld [vmem:[#allocation12 + $0x78] sm:$0xff]  }
 0x6d9   :  { %5583 = vmatprep.subr.bf16.mxu0 %v5421_v30  ;;  %5747 = vmatprep.subr.bf16.mxu1 %v5423_v12  ;;  %v6633_v28 = vld [vmem:[#allocation12 + $0xf8] sm:$0xff]  }
 0x6da   :  { %v6634_v30 = vld [vmem:[#allocation12 + $0x38] sm:$0xff]  }
 0x6db   :  { %v6635_v12 = vld [vmem:[#allocation12 + $0xb8] sm:$0xff]  }
 0x6dc   :  { %5584 = vmatpush1.bf16.msra.mxu0 %v5420_v39  ;;  %5748 = vmatpush1.bf16.msra.mxu1 %v5422_v54  ;;  %v5771_v39 = vrot.slane %v8020_v57, %v7088_v44  ;;  %v5779_v54 = vrot.slane %v8022_v6, %v7088_v44 }
 0x6dd   :  { %5585 = vmatprep.subr.bf16.mxu0 %v5425_v26  ;;  %5749 = vmatprep.subr.bf16.mxu1 %v5427_v35  ;;  %v5775_v26 = vrot.slane %v8020_v57, %v7093_v46  ;;  %v5783_v35 = vrot.slane %v8022_v6, %v7093_v46 }
 0x6df   :  { %v5795_v50 = vrot.slane %v5775_v26, %v7088_v44  ;;  %v5803_v46 = vrot.slane %v5783_v35, %v7088_v44 }
 0x6e0   :  { %5586 = vmatpush1.bf16.msra.mxu0 %v5424_v58  ;;  %5750 = vmatpush1.bf16.msra.mxu1 %v5426_v38  ;;  %v5815_v58 = vrot.slane %v8020_v57, %v7101_v0  ;;  %v5823_v38 = vrot.slane %v8022_v6, %v7101_v0 }
 0x6e1   :  { %5587 = vmatprep.subr.bf16.mxu0 %v5429_v36  ;;  %5751 = vmatprep.subr.bf16.mxu1 %v5431_v41  ;;  %v5791_v36 = vrot.slane %v5771_v39, %v7088_v44  ;;  %v5799_v41 = vrot.slane %v5779_v54, %v7088_v44 }
 0x6e4   :  { %5588 = vmatpush1.bf16.msra.mxu0 %v5428_v8  ;;  %5752 = vmatpush1.bf16.msra.mxu1 %v5430_v14 }
 0x6e5   :  { %5589 = vmatprep.subr.bf16.mxu0 %v5433_v43  ;;  %5753 = vmatprep.subr.bf16.mxu1 %v5435_v55  ;;  %v5835_v43 = vrot.slane %v5815_v58, %v7096_v47  ;;  %v5843_v55 = vrot.slane %v5823_v38, %v7096_v47 }
 0x6e8   :  { %5590 = vmatpush1.bf16.msra.mxu0 %v5432_v23  ;;  %5754 = vmatpush1.bf16.msra.mxu1 %v5434_v37 }
 0x6e9   :  { %6408 = vmatprep.subr.bf16.mxu0 %v6604_v15  ;;  %6430 = vmatprep.subr.bf16.mxu1 %v6605_v27 }
 0x6eb   :  { %5592 = vmatmul.mubr.bf16.vlgmr.msra.gmra.mrb[24].mxu0 %v5050_v4  ;;  %5756 = vmatmul.mubr.bf16.vlgmr.msra.gmra.mrb[24].mxu1 %v5050_v4 }
 0x6ec   :  { %6409 = vmatpush3.bf16.msra.mxu0 %v6606_v59  ;;  %6431 = vmatpush3.bf16.msra.mxu1 %v6607_v49 }
 0x6ed   :  { %6410 = vmatprep.subr.bf16.mxu0 %v6608_v45  ;;  %6432 = vmatprep.subr.bf16.mxu1 %v6609_v34 }
 0x6f0   :  { %6411 = vmatpush3.bf16.msra.mxu0 %v6610_v13  ;;  %6433 = vmatpush3.bf16.msra.mxu1 %v6611_v63 }
 0x6f1   :  { %6412 = vmatprep.subr.bf16.mxu0 %v6612_v22  ;;  %6434 = vmatprep.subr.bf16.mxu1 %v6613_v3 }
 0x6f4   :  { %6413 = vmatpush3.bf16.msra.mxu0 %v6614_v48  ;;  %6435 = vmatpush3.bf16.msra.mxu1 %v6615_v61 }
 0x6f5   :  { %6414 = vmatprep.subr.bf16.mxu0 %v6616_v52  ;;  %6436 = vmatprep.subr.bf16.mxu1 %v6617_v32 }
 0x6f8   :  { %6415 = vmatpush3.bf16.msra.mxu0 %v6618_v19  ;;  %6437 = vmatpush3.bf16.msra.mxu1 %v6619_v53 }
 0x6f9   :  { %6416 = vmatprep.subr.bf16.mxu0 %v6620_v9  ;;  %6438 = vmatprep.subr.bf16.mxu1 %v6621_v42 }
 0x6fc   :  { %6417 = vmatpush3.bf16.msra.mxu0 %v6622_v17  ;;  %6439 = vmatpush3.bf16.msra.mxu1 %v6623_v5 }
 0x6fd   :  { %6418 = vmatprep.subr.bf16.mxu0 %v6624_v7  ;;  %6440 = vmatprep.subr.bf16.mxu1 %v6625_v51 }
 0x700   :  { %6419 = vmatpush3.bf16.msra.mxu0 %v6626_v60  ;;  %6441 = vmatpush3.bf16.msra.mxu1 %v6627_v31 }
 0x701   :  { %6420 = vmatprep.subr.bf16.mxu0 %v6628_v21  ;;  %6442 = vmatprep.subr.bf16.mxu1 %v6629_v40 }
 0x704   :  { %6421 = vmatpush3.bf16.msra.mxu0 %v6630_v2  ;;  %6443 = vmatpush3.bf16.msra.mxu1 %v6631_v62 }
 0x705   :  { %6422 = vmatprep.subr.bf16.mxu0 %v6632_v20  ;;  %6444 = vmatprep.subr.bf16.mxu1 %v6633_v28 }
 0x708   :  { %6423 = vmatpush3.bf16.msra.mxu0 %v6634_v30  ;;  %6445 = vmatpush3.bf16.msra.mxu1 %v6635_v12 }
 0x7be   :  { %v5593_v8 = vpop.f32.mrb[24].mxu0  ;;  %v5757_v14 = vpop.f32.mrb[24].mxu1 }
 0x7bf   :  { %v5804_v29 = vmul.f32 %v5791_v36, %v5593_v8  ;;  %v5806_v0 = vmul.f32 %v5799_v41, %v5757_v14  ;;  %v5595_v23 = vpop.f32.mrb[25].mxu0  ;;  %v5759_v37 = vpop.f32.mrb[25].mxu1 }
 0x7c0   :  { %v5805_v11 = vmul.f32 %v5795_v50, %v5595_v23  ;;  %v5807_v4 = vmul.f32 %v5803_v46, %v5759_v37  ;;  %v5597_v15 = vpop.f32.mrb[26].mxu0  ;;  %v5761_v27 = vpop.f32.mrb[26].mxu1 }
 0x7c1   :  { %v5844_v59 = vadd.f32 %v5831_v10, %v5804_v29  ;;  %v5846_v44 = vadd.f32 %v5839_v1, %v5806_v0  ;;  %v5598_v49 = vpop.f32.mrb[27].mxu0  ;;  %v5762_v45 = vpop.f32.mrb[27].mxu1 }
 0x7c2   :  { %v5845_v34 = vadd.f32 %v5835_v43, %v5805_v11  ;;  %v5847_v13 = vadd.f32 %v5843_v55, %v5807_v4 }
 0x7c3   :  { %v5848_v63 = vmax.f32 %v5844_v59, 0.0  ;;  %v5850_v22 = vmax.f32 %v5846_v44, 0.0 }
 0x7c4   :  { %v5849_v3 = vmax.f32 %v5845_v34, 0.0  ;;  %v5851_v48 = vmax.f32 %v5847_v13, 0.0 }
 0x7c5   :  { %v5852_v61 = vrot.slane %v5848_v63, 4  ;;  %v5864_v47 = vrot.slane %v5850_v22, 4 }
 0x7c6   :  { %v5858_v52 = vrot.slane %v5849_v3, 4  ;;  %v5870_v32 = vrot.slane %v5851_v48, 4 }
 0x7c7   :  { %v5853_v19 = vadd.f32 %v5852_v61, %v5848_v63  ;;  %v5865_v53 = vadd.f32 %v5864_v47, %v5850_v22 }
 0x7c8   :  { %v5859_v9 = vadd.f32 %v5858_v52, %v5849_v3  ;;  %v5871_v42 = vadd.f32 %v5870_v32, %v5851_v48 }
 0x7c9   :  { %v5854_v17 = vrot.slane %v5853_v19, 2  ;;  %v5866_v5 = vrot.slane %v5865_v53, 2 }
 0x7ca   :  { %v5860_v7 = vrot.slane %v5859_v9, 2  ;;  %v5872_v51 = vrot.slane %v5871_v42, 2 }
 0x7cb   :  { %v5855_v60 = vadd.f32 %v5854_v17, %v5853_v19  ;;  %v5867_v31 = vadd.f32 %v5866_v5, %v5865_v53 }
 0x7cc   :  { %v5861_v21 = vadd.f32 %v5860_v7, %v5859_v9  ;;  %v5873_v40 = vadd.f32 %v5872_v51, %v5871_v42 }
 0x7cd   :  { %v5856_v2 = vrot.slane %v5855_v60, 1  ;;  %v5868_v62 = vrot.slane %v5867_v31, 1 }
 0x7ce   :  { %v5862_v20 = vrot.slane %v5861_v21, 1  ;;  %v5874_v28 = vrot.slane %v5873_v40, 1 }
 0x7cf   :  { %v5857_v30 = vadd.f32 %v5856_v2, %v5855_v60  ;;  %v5869_v12 = vadd.f32 %v5868_v62, %v5867_v31 }
 0x7d0   :  { %v5863_v39 = vadd.f32 %v5862_v20, %v5861_v21  ;;  %v5875_v54 = vadd.f32 %v5874_v28, %v5873_v40  ;;  %v5985_v28 = vrot.slane %v8020_v57, %v7165_v25 }
 0x7d1   :  { %v5876_v26 = vmul.f32 0.125, %v5857_v30  ;;  %v5878_v35 = vmul.f32 0.125, %v5869_v12  ;;  %v5981_v30 = vrot.slane %v8020_v57, %v7162_v24 }
 0x7d2   :  { %v5877_v16 = vmul.f32 0.125, %v5863_v39  ;;  %v5879_v18 = vmul.f32 0.125, %v5875_v54  ;;  %v5993_v39 = vrot.slane %v8022_v6, %v7165_v25  ;;  %v5989_v54 = vrot.slane %v8022_v6, %v7162_v24 }
 0x7d3   :  { %v8048_v58 = vsub.f32 %v5848_v63, %v5876_v26  ;;  %v8050_v38 = vsub.f32 %v5850_v22, %v5878_v35 }
 0x7d4   :  { %v8052_v36 = vsub.f32 %v5849_v3, %v5877_v16  ;;  %v8054_v41 = vsub.f32 %v5851_v48, %v5879_v18 }
 0x7d5   :  { %v5884_v50 = vmul.f32 %v8048_v58, %v8048_v58  ;;  %v5886_v46 = vmul.f32 %v8050_v38, %v8050_v38 }
 0x7d6   :  { %v5885_v10 = vmul.f32 %v8052_v36, %v8052_v36  ;;  %v5887_v1 = vmul.f32 %v8054_v41, %v8054_v41 }
 0x7d7   :  { %v5888_v8 = vrot.slane %v5884_v50, 4  ;;  %v5900_v14 = vrot.slane %v5886_v46, 4 }
 0x7d8   :  { %v5894_v43 = vrot.slane %v5885_v10, 4  ;;  %v5906_v55 = vrot.slane %v5887_v1, 4 }
 0x7d9   :  { %v5889_v29 = vadd.f32 %v5888_v8, %v5884_v50  ;;  %v5901_v0 = vadd.f32 %v5900_v14, %v5886_v46  ;;  %v6009_v8 = vrot.slane %v5989_v54, %v7162_v24 }
 0x7da   :  { %v5895_v23 = vadd.f32 %v5894_v43, %v5885_v10  ;;  %v5907_v37 = vadd.f32 %v5906_v55, %v5887_v1  ;;  %v6001_v10 = vrot.slane %v5981_v30, %v7162_v24 }
 0x7db   :  { %v5890_v11 = vrot.slane %v5889_v29, 2  ;;  %v5902_v4 = vrot.slane %v5901_v0, 2 }
 0x7dc   :  { %v5896_v15 = vrot.slane %v5895_v23, 2  ;;  %v5908_v27 = vrot.slane %v5907_v37, 2 }
 0x7dd   :  { %v5891_v59 = vadd.f32 %v5890_v11, %v5889_v29  ;;  %v5903_v44 = vadd.f32 %v5902_v4, %v5901_v0 }
 0x7de   :  { %v5897_v49 = vadd.f32 %v5896_v15, %v5895_v23  ;;  %v5909_v45 = vadd.f32 %v5908_v27, %v5907_v37 }
 0x7df   :  { %v5892_v34 = vrot.slane %v5891_v59, 1  ;;  %v5904_v13 = vrot.slane %v5903_v44, 1 }
 0x7e0   :  { %v5898_v63 = vrot.slane %v5897_v49, 1  ;;  %v5910_v22 = vrot.slane %v5909_v45, 1 }
 0x7e1   :  { %v5893_v3 = vadd.f32 %v5892_v34, %v5891_v59  ;;  %v5905_v48 = vadd.f32 %v5904_v13, %v5903_v44 }
 0x7e2   :  { %v5899_v61 = vadd.f32 %v5898_v63, %v5897_v49  ;;  %v5911_v47 = vadd.f32 %v5910_v22, %v5909_v45 }
 0x7e3   :  { %v5912_v52 = vmul.f32 0.125, %v5893_v3  ;;  %v5914_v32 = vmul.f32 0.125, %v5905_v48 }
 0x7e4   :  { %v5913_v19 = vmul.f32 0.125, %v5899_v61  ;;  %v5915_v53 = vmul.f32 0.125, %v5911_v47 }
 0x7e5   :  { %v5916_v9 = vadd.f32 1e-05, %v5912_v52  ;;  %v5918_v42 = vadd.f32 1e-05, %v5914_v32 }
 0x7e6   :  { %v5917_v17 = vadd.f32 1e-05, %v5913_v19  ;;  %v5919_v5 = vadd.f32 1e-05, %v5915_v53 }
 0x7e7   :  { %6684 = vrsqrt.f32 %v5916_v9 }
 0x7e8   :  { %6686 = vrsqrt.f32 %v5918_v42 }
 0x7e9   :  { %6688 = vrsqrt.f32 %v5917_v17 }
 0x7ea   :  { %6690 = vrsqrt.f32 %v5919_v5 }
 0x7f1   :  { %v6685_v7 = vpop.eup %6684 }
 0x7f2   :  { %v6687_v51 = vpop.eup %6686 }
 0x7f3   :  { %v6689_v60 = vpop.eup %6688 }
 0x7f4   :  { %v6691_v31 = vpop.eup %6690  ;;  %v5928_v21 = vcombine.low %v6685_v7, %v6689_v60 }
 0x7f5   :  { %v5929_v40 = vcombine.low %v6687_v51, %v6691_v31 }
 0x7f6   :  { %v5930_v2 = vrot.slane %v5928_v21, 7 }
 0x7f7   :  { %v5931_v62 = vrot.slane %v5929_v40, 7 }
 0x7f8   :  { %v5934_v20 = vmul.f32 %v5930_v2, %v8020_v57  ;;  %v6005_v57 = vrot.slane %v5985_v28, %v7162_v24 }
 0x7f9   :  { %v5935_v12 = vmul.f32 %v5931_v62, %v8022_v6  ;;  %v6013_v6 = vrot.slane %v5993_v39, %v7162_v24 }
 0x7fa   :  { %v5945_v26 = vrot.slane %v5934_v20, %v7175_v33  ;;  %v5941_v35 = vrot.slane %v5934_v20, %v7170_v56 }
 0x7fb   :  { %v5953_v16 = vrot.slane %v5935_v12, %v7175_v33  ;;  %v5949_v18 = vrot.slane %v5935_v12, %v7170_v56 }
 0x7fc   :  { %v5965_v50 = vrot.slane %v5945_v26, %v7170_v56  ;;  %v5961_v46 = vrot.slane %v5941_v35, %v7170_v56 }
 0x7fd   :  { %v5973_v25 = vrot.slane %v5953_v16, %v7170_v56  ;;  %v5969_v1 = vrot.slane %v5949_v18, %v7170_v56 }
 0x7fe   :  { %v5975_v33 = vmul.f32 %v5965_v50, %v8052_v36  ;;  %v5974_v14 = vmul.f32 %v5961_v46, %v8048_v58  ;;  %v6375_v36 = vld [vmem:[#allocation13] ss:$0 sm:$0xff] }
 0x7ff   :  { %v5977_v43 = vmul.f32 %v5973_v25, %v8054_v41  ;;  %v5976_v55 = vmul.f32 %v5969_v1, %v8050_v38 }
 0x800   :  { %v6015_v29 = vadd.f32 %v6005_v57, %v5975_v33  ;;  %v6014_v0 = vadd.f32 %v6001_v10, %v5974_v14 }
 0x801   :  { %v6017_v23 = vadd.f32 %v6013_v6, %v5977_v43  ;;  %v6016_v37 = vadd.f32 %v6009_v8, %v5976_v55 }
 0x802   :  { %v6019_v11 = vpack.c.bf16 %v6015_v29, %v6015_v29  ;;  %v6018_v4 = vpack.c.bf16 %v6014_v0, %v6014_v0 }
 0x803   :  { %v6021_v15 = vpack.c.bf16 %v6017_v23, %v6017_v23  ;;  %v6020_v27 = vpack.c.bf16 %v6016_v37, %v6016_v37 }
 0x804   :  { %6317 = vmatprep.mubr.bf16.mxu0 %v6019_v11 }
 0x805   :  { %6357 = vmatprep.mubr.bf16.mxu1 %v6021_v15  ;;  %6318 = vmatmul.mubr.bf16.vlgmr.msra.gmra.mrb[28].mxu0 %v6018_v4 }
 0x806   :  { %6358 = vmatmul.mubr.bf16.vlgmr.msra.gmra.mrb[28].mxu1 %v6020_v27 }
 0x8d8   :  { %v6424_v24 = vpop.f32.mrb[28].mxu0 }
 0x8d9   :  { %v6446_v56 = vpop.f32.mrb[28].mxu1  ;;  %v6425_v58 = vpop.f32.mrb[29].mxu0 }
 0x8da   :  { %v6426_v59 = vadd.f32 %v6425_v58, %v6424_v24  ;;  %v6447_v41 = vpop.f32.mrb[29].mxu1  ;;  %v6427_v44 = vpop.f32.mrb[30].mxu0 }
 0x8db   :  { %v6448_v38 = vadd.f32 %v6447_v41, %v6446_v56  ;;  %v6449_v49 = vpop.f32.mrb[30].mxu1  ;;  %v6428_v45 = vpop.f32.mrb[31].mxu0 }
 0x8dc   :  { %v6320_v34 = vadd.f32 %v6426_v59, %v6375_v36  ;;  %v6450_v13 = vpop.f32.mrb[31].mxu1 }
 0x8de   :  { %v6360_v63 = vadd.f32 %v6448_v38, %v6320_v34 }
 0x8e0   :  { %6365 = vst [vmem:[%s8102_s9] sm:$0xff] %v6360_v63 }
 0x8e1   :  { %6370 = vsyncpa [#allocation3], 1 }
 0x8e2   :  { %6371 = vsyncpa [#allocation5], 1 }
 0x8e3   :  { %6372 = vsyncpa [#allocation8], 1 }
 0x8e4   :  { %6373 = vsyncpa [#allocation11], 1 }
 0x8e5   :  { %6374 = vsyncpa [#allocation14], 1 }

</bundles_post_ra>
